<compile_context>
chip_gen: v7x
topology: tpu7x:2x2x1
jax: 0.10.0
libtpu: 0.0.40
codegen_flags: <defaults>
</compile_context>

<pallas_src>
import functools

import jax
import jax.numpy as jnp
from jax.experimental import pallas as pl
from jax.experimental.pallas import tpu as pltpu

EPS = 1e-5
CPAD = 128     # every output-channel axis is zero-padded to a full 128-lane vreg
CSTEM = 8      # stem input channels (3) are zero-padded to 8

# tap row/col offset -> (phase (0=even,1=odd), phase-canvas start) for stride-2
_S2_SEL = {0: (1, 0), 1: (0, 1), 2: (1, 1)}


# ---------------------------------------------------------------------------
# In-kernel helpers (all slices static, everything VMEM resident)
# ---------------------------------------------------------------------------
def _zero_border(can):
    """Zero only the 1-wide border of a canvas ref (interior rewritten later)."""
    nr, nc, c = can.shape
    zr = jnp.zeros((1, nc, c), can.dtype)
    zc = jnp.zeros((nr, 1, c), can.dtype)
    can[0:1, :, :] = zr
    can[nr - 1:nr, :, :] = zr
    can[:, 0:1, :] = zc
    can[:, nc - 1:nc, :] = zc


def _conv3x3(tap_fn, w_ref, b_ref, relu):
    """One fused im2col matmul: concat 9 taps -> (M, 9*Cin) @ (9*Cin, 128)."""
    taps = [tap_fn(di, dj) for di in range(3) for dj in range(3)]
    patch = jnp.concatenate(taps, axis=-1)
    out = jnp.dot(patch, w_ref[...], preferred_element_type=jnp.float32)
    out = out + b_ref[...]
    return jnp.maximum(out, 0.0) if relu else out


def _s1_taps(can, H, W, C):
    """Stride-1 taps: shifted windows of a (H+2, W+2, C) zero-border canvas."""
    def tap(di, dj):
        return can[di:di + H, dj:dj + W, :].reshape(H * W, C)
    return tap


def _s2_taps(cans, Ho, Wo, C):
    """Stride-2 taps from the 4 even/odd phase canvases ((Ho+1, Wo+1, C))."""
    def tap(di, dj):
        rp, r0 = _S2_SEL[di]
        cp, c0 = _S2_SEL[dj]
        return cans[(rp, cp)][r0:r0 + Ho, c0:c0 + Wo, :].reshape(Ho * Wo, C)
    return tap


def _fill_canvas(can, y, H, W, C):
    """canvas[1:1+H, 1:1+W, :] = y[:, :C]; the zero border is untouched."""
    can[1:1 + H, 1:1 + W, :] = y[:, :C].reshape(H, W, C)


def _fill_phases(sel_ref, y, cans, Ho, Wo, C):
    """Even/odd phase split of y ((H*W, 128)) via a 0/1 permutation matmul."""
    M = Ho * Wo
    P = jnp.dot(sel_ref[...], y, preferred_element_type=jnp.float32)  # (4M,128)
    for g, (rp, cp) in enumerate(((0, 0), (0, 1), (1, 0), (1, 1))):
        cans[(rp, cp)][1:1 + Ho, 1:1 + Wo, :] = (
            P[g * M:(g + 1) * M, :C].reshape(Ho, Wo, C))


# ---------------------------------------------------------------------------
# The single fused kernel: stem + block1 + block2 + block3 + pool + linear
# ---------------------------------------------------------------------------
def _resnet_kernel(x_ref, sel2, sel3,
                   w0, b0,
                   w11, b11, w12, b12, s13, c13,
                   w21, b21, w22, b22, wsc2, bsc2, s23, c23,
                   w31, b31, w32, b32, wsc3, bsc3, s33, c33,
                   wl, bl,
                   out_ref,
                   ca, p2ee, p2eo, p2oe, p2oo, cb, p3ee, p3eo, p3oe, p3oo, cc,
                   *, B, H, W, C1):
    C2, C3 = 2 * C1, 4 * C1
    H2, W2 = H // 2, W // 2
    H3, W3 = H2 // 2, W2 // 2
    cans2 = {(0, 0): p2ee, (0, 1): p2eo, (1, 0): p2oe, (1, 1): p2oo}
    cans3 = {(0, 0): p3ee, (0, 1): p3eo, (1, 0): p3oe, (1, 1): p3oo}

    # Re-zero only the borders each step (unconditional -> megacore-safe since
    # scratch is per-TensorCore).  Interiors are fully overwritten per image.
    for can in (ca, p2ee, p2eo, p2oe, p2oo, cb, p3ee, p3eo, p3oe, p3oo, cc):
        _zero_border(can)

    for b in range(B):
        # ---- stem: relu(prunablebn1(conv1(x)));  the DMA'd block is already
        #      the zero-padded (H+2, W+2, CSTEM) canvas.
        xb = x_ref[b]
        h0 = _conv3x3(
            lambda di, dj, xb=xb: xb[di:di + H, dj:dj + W, :].reshape(H * W,
                                                                      CSTEM),
            w0, b0, relu=True)                                    # (H*W, 128)

        # ---- BasicBlock 1 (stride 1, identity shortcut)
        _fill_canvas(ca, h0, H, W, C1)
        h1 = _conv3x3(_s1_taps(ca, H, W, C1), w11, b11, relu=True)
        _fill_canvas(ca, h1, H, W, C1)
        h2 = _conv3x3(_s1_taps(ca, H, W, C1), w12, b12, relu=False)
        y1 = jnp.maximum((h2 + h0) * s13[...] + c13[...], 0.0)   # bn3 + relu

        # ---- BasicBlock 2 (stride 2, 1x1-conv shortcut)
        _fill_phases(sel2, y1, cans2, H2, W2, C1)
        g1 = _conv3x3(_s2_taps(cans2, H2, W2, C1), w21, b21, relu=True)
        _fill_canvas(cb, g1, H2, W2, C2)
        g2 = _conv3x3(_s1_taps(cb, H2, W2, C2), w22, b22, relu=False)
        sc2 = jnp.dot(p2ee[1:1 + H2, 1:1 + W2, :].reshape(H2 * W2, C1),
                      wsc2[...], preferred_element_type=jnp.float32) + bsc2[...]
        y2 = jnp.maximum((g2 + sc2) * s23[...] + c23[...], 0.0)

        # ---- BasicBlock 3 (stride 2, 1x1-conv shortcut)
        _fill_phases(sel3, y2, cans3, H3, W3, C2)
        f1 = _conv3x3(_s2_taps(cans3, H3, W3, C2), w31, b31, relu=True)
        _fill_canvas(cc, f1, H3, W3, C3)
        f2 = _conv3x3(_s1_taps(cc, H3, W3, C3), w32, b32, relu=False)
        sc3 = jnp.dot(p3ee[1:1 + H3, 1:1 + W3, :].reshape(H3 * W3, C2),
                      wsc3[...], preferred_element_type=jnp.float32) + bsc3[...]
        y3 = jnp.maximum((f2 + sc3) * s33[...] + c33[...], 0.0)  # (H3*W3, 128)

        # ---- global avg-pool + Linear head (lane-dense 128-wide output)
        pooled = jnp.mean(y3, axis=0, keepdims=True)              # (1, 128)
        out_ref[b] = (jnp.dot(pooled, wl[...],
                              preferred_element_type=jnp.float32) + bl[...])


# ---------------------------------------------------------------------------
# pallas_call wrapper
# ---------------------------------------------------------------------------
def _const_spec(a):
    nd = a.ndim
    return pl.BlockSpec(a.shape, lambda i, _nd=nd: (0,) * _nd)


def _run_fused(x_canvas, consts, *, B, H, W, C1):
    Npad = x_canvas.shape[0]
    C2, C3 = 2 * C1, 4 * C1
    H2, W2 = H // 2, W // 2
    H3, W3 = H2 // 2, W2 // 2
    f32 = jnp.float32
    kernel = functools.partial(_resnet_kernel, B=B, H=H, W=W, C1=C1)
    return pl.pallas_call(
        kernel,
        out_shape=jax.ShapeDtypeStruct((Npad, 1, CPAD), f32),
        grid_spec=pltpu.PrefetchScalarGridSpec(
            num_scalar_prefetch=0,
            grid=(Npad // B,),
            in_specs=[pl.BlockSpec((B, H + 2, W + 2, CSTEM),
                                   lambda i: (i, 0, 0, 0))]
                     + [_const_spec(a) for a in consts],
            out_specs=pl.BlockSpec((B, 1, CPAD), lambda i: (i, 0, 0)),
            scratch_shapes=(
                [pltpu.VMEM((H + 2, W + 2, C1), f32)]            # ca
                + [pltpu.VMEM((H2 + 1, W2 + 1, C1), f32)] * 4    # p2 phases
                + [pltpu.VMEM((H2 + 2, W2 + 2, C2), f32)]        # cb
                + [pltpu.VMEM((H3 + 1, W3 + 1, C2), f32)] * 4    # p3 phases
                + [pltpu.VMEM((H3 + 2, W3 + 2, C3), f32)])),     # cc
        compiler_params=pltpu.CompilerParams(
            dimension_semantics=("parallel",),
            vmem_limit_bytes=32 * 1024 * 1024),
    )(x_canvas, *consts)


# ---------------------------------------------------------------------------
# Parameter folding (eval-mode BN -> folded weights / biases)  [JAX glue]
# ---------------------------------------------------------------------------
def _fold_bn(bn):
    scale = bn["gamma"] * jax.lax.rsqrt(bn["var"] + EPS)
    shift = bn["beta"] - bn["mean"] * scale
    return scale, shift


def conv_bn_matrix(w_oikk, bn):
    """(Cout,Cin,k,k) conv weight + following eval-mode BN ->
       (k*k*Cin, 128) MXU matrix (BN scale folded in) and a (1,128) bias."""
    Cout, Cin, k, _ = w_oikk.shape
    scale, shift = _fold_bn(bn)
    w = w_oikk * scale[:, None, None, None]
    wmat = jnp.transpose(w, (2, 3, 1, 0)).reshape(k * k * Cin, Cout)
    wmat = jnp.pad(wmat, ((0, 0), (0, CPAD - Cout)))
    bias = jnp.pad(shift, (0, CPAD - Cout)).reshape(1, CPAD)
    return wmat, bias


def bn_affine(bn):
    scale, shift = _fold_bn(bn)
    C = scale.shape[0]
    return (jnp.pad(scale, (0, CPAD - C)).reshape(1, CPAD),
            jnp.pad(shift, (0, CPAD - C)).reshape(1, CPAD))


def linear_matrix(W, b):
    out_dim, in_dim = W.shape
    wm = jnp.zeros((CPAD, CPAD), jnp.float32).at[:in_dim, :out_dim].set(W.T)
    bm = jnp.zeros((1, CPAD), jnp.float32).at[0, :out_dim].set(b)
    return wm, bm


def _phase_select_matrix(H, W):
    """(4*(H/2)*(W/2), H*W) 0/1 matrix whose rows pick the [ee|eo|oe|oo]
       even/odd phases of a row-major (H*W, C) activation slab."""
    Ho, Wo = H // 2, W // 2
    a = jnp.arange(Ho)
    l = jnp.arange(Wo)
    blocks = []
    for rp in (0, 1):
        for cp in (0, 1):
            m = ((2 * a[:, None] + rp) * W + (2 * l[None, :] + cp)).reshape(-1)
            blocks.append(jax.nn.one_hot(m, H * W, dtype=jnp.float32))
    return jnp.concatenate(blocks, axis=0)


# ---------------------------------------------------------------------------
# Model forward
# ---------------------------------------------------------------------------
def resnet_forward(params, x_nchw, images_per_step=1):
    x = jnp.transpose(x_nchw, (0, 2, 3, 1)).astype(jnp.float32)   # NCHW -> NHWC
    N, H, W, Cin = x.shape
    C1 = params["conv1_w"].shape[0]                                # in_planes
    num_classes = params["linear_w"].shape[0]

    # channel-pad the stem input to CSTEM lanes and spatially pre-pad by 1 so
    # the block the kernel receives is already the stem conv canvas
    x = jnp.pad(x, ((0, 0), (1, 1), (1, 1), (0, CSTEM - Cin)))

    B = max(1, min(int(images_per_step), N))
    Npad = -(-N // B) * B
    if Npad != N:
        x = jnp.pad(x, ((0, Npad - N), (0, 0), (0, 0), (0, 0)))

    p1, p2, p3 = params["block1"], params["block2"], params["block3"]
    w0pad = jnp.pad(params["conv1_w"],
                    ((0, 0), (0, CSTEM - Cin), (0, 0), (0, 0)))

    def s2_consts(p):
        return (*conv_bn_matrix(p["conv1_w"], p["bn1"]),
                *conv_bn_matrix(p["conv2_w"], p["bn2"]),
                *conv_bn_matrix(p["sc_w"], p["bn_sc"]),
                *bn_affine(p["bn3"]))

    consts = (_phase_select_matrix(H, W),
              _phase_select_matrix(H // 2, W // 2),
              *conv_bn_matrix(w0pad, params["bn1"]),
              *conv_bn_matrix(p1["conv1_w"], p1["bn1"]),
              *conv_bn_matrix(p1["conv2_w"], p1["bn2"]),
              *bn_affine(p1["bn3"]),
              *s2_consts(p2),
              *s2_consts(p3),
              *linear_matrix(params["linear_w"], params["linear_b"]))

    out = _run_fused(x, consts, B=B, H=H, W=W, C1=C1)              # (Npad,1,128)
    return out[:N, 0, :num_classes]


# ---------------------------------------------------------------------------
# Deterministic parameter init (mirrors ResNet(BasicBlock,[1,1,1],10,in_planes))
# ---------------------------------------------------------------------------
def _init_conv(key, cout, cin, k):
    return 0.1 * jax.random.normal(key, (cout, cin, k, k), jnp.float32)


def _init_bn(key, c):
    k1, k2 = jax.random.split(key)
    return dict(
        gamma=1.0 + 0.1 * jax.random.normal(k1, (c,), jnp.float32),
        beta=0.1 * jax.random.normal(k2, (c,), jnp.float32),
        mean=jnp.zeros((c,), jnp.float32),
        var=jnp.ones((c,), jnp.float32),
    )


def make_params(key, in_planes=8, num_classes=10):
    keys = iter(jax.random.split(key, 64))
    p = {}
    p["conv1_w"] = _init_conv(next(keys), in_planes, 3, 3)
    p["bn1"] = _init_bn(next(keys), in_planes)

    def make_block(cin, planes, shortcut):
        bp = {
            "conv1_w": _init_conv(next(keys), planes, cin, 3),
            "bn1": _init_bn(next(keys), planes),
            "conv2_w": _init_conv(next(keys), planes, planes, 3),
            "bn2": _init_bn(next(keys), planes),
            "bn3": _init_bn(next(keys), planes),
        }
        if shortcut:
            bp["sc_w"] = _init_conv(next(keys), planes, cin, 1)
            bp["bn_sc"] = _init_bn(next(keys), planes)
        return bp

    p["block1"] = make_block(in_planes, in_planes, shortcut=False)
    p["block2"] = make_block(in_planes, in_planes * 2, shortcut=True)
    p["block3"] = make_block(in_planes * 2, in_planes * 4, shortcut=True)

    feat = in_planes * 4  # BasicBlock.expansion == 1, 3 layers (no layer4)
    p["linear_w"] = 0.1 * jax.random.normal(next(keys), (num_classes, feat),
                                            jnp.float32)
    p["linear_b"] = 0.1 * jax.random.normal(next(keys), (num_classes,),
                                            jnp.float32)
    return p


# ---------------------------------------------------------------------------
if __name__ == "__main__":
    key = jax.random.PRNGKey(0)
    kx, kp = jax.random.split(key)
    # input: NCHW like PyTorch, small spatial
    x = jax.random.normal(kx, (2, 3, 16, 16), jnp.float32)
    params = make_params(kp, in_planes=8, num_classes=10)

    fwd = jax.jit(resnet_forward)
    out = fwd(params, x)
    jax.block_until_ready(out)
    assert out.shape == (2, 10) and out.dtype == jnp.float32
    print("KERNEL_OK")
</pallas_src>

<mosaic_0001>
module attributes {stable_mosaic.version = 11 : i64} {
  func.func @_resnet_kernel(%arg0: i32, %arg1: memref<1x18x18x8xf32, #tpu.memory_space<vmem>>, %arg2: memref<256x256xf32, #tpu.memory_space<vmem>>, %arg3: memref<64x64xf32, #tpu.memory_space<vmem>>, %arg4: memref<72x128xf32, #tpu.memory_space<vmem>>, %arg5: memref<1x128xf32, #tpu.memory_space<vmem>>, %arg6: memref<72x128xf32, #tpu.memory_space<vmem>>, %arg7: memref<1x128xf32, #tpu.memory_space<vmem>>, %arg8: memref<72x128xf32, #tpu.memory_space<vmem>>, %arg9: memref<1x128xf32, #tpu.memory_space<vmem>>, %arg10: memref<1x128xf32, #tpu.memory_space<vmem>>, %arg11: memref<1x128xf32, #tpu.memory_space<vmem>>, %arg12: memref<72x128xf32, #tpu.memory_space<vmem>>, %arg13: memref<1x128xf32, #tpu.memory_space<vmem>>, %arg14: memref<144x128xf32, #tpu.memory_space<vmem>>, %arg15: memref<1x128xf32, #tpu.memory_space<vmem>>, %arg16: memref<8x128xf32, #tpu.memory_space<vmem>>, %arg17: memref<1x128xf32, #tpu.memory_space<vmem>>, %arg18: memref<1x128xf32, #tpu.memory_space<vmem>>, %arg19: memref<1x128xf32, #tpu.memory_space<vmem>>, %arg20: memref<144x128xf32, #tpu.memory_space<vmem>>, %arg21: memref<1x128xf32, #tpu.memory_space<vmem>>, %arg22: memref<288x128xf32, #tpu.memory_space<vmem>>, %arg23: memref<1x128xf32, #tpu.memory_space<vmem>>, %arg24: memref<16x128xf32, #tpu.memory_space<vmem>>, %arg25: memref<1x128xf32, #tpu.memory_space<vmem>>, %arg26: memref<1x128xf32, #tpu.memory_space<vmem>>, %arg27: memref<1x128xf32, #tpu.memory_space<vmem>>, %arg28: memref<128x128xf32, #tpu.memory_space<vmem>>, %arg29: memref<1x128xf32, #tpu.memory_space<vmem>>, %arg30: memref<1x1x128xf32, #tpu.memory_space<vmem>>, %arg31: memref<18x18x8xf32, #tpu.memory_space<vmem>>, %arg32: memref<9x9x8xf32, #tpu.memory_space<vmem>>, %arg33: memref<9x9x8xf32, #tpu.memory_space<vmem>>, %arg34: memref<9x9x8xf32, #tpu.memory_space<vmem>>, %arg35: memref<9x9x8xf32, #tpu.memory_space<vmem>>, %arg36: memref<10x10x16xf32, #tpu.memory_space<vmem>>, %arg37: memref<5x5x16xf32, #tpu.memory_space<vmem>>, %arg38: memref<5x5x16xf32, #tpu.memory_space<vmem>>, %arg39: memref<5x5x16xf32, #tpu.memory_space<vmem>>, %arg40: memref<5x5x16xf32, #tpu.memory_space<vmem>>, %arg41: memref<6x6x32xf32, #tpu.memory_space<vmem>>) attributes {dimension_semantics = [#tpu.dimension_semantics<parallel>], iteration_bounds = array<i64: 2>, scalar_prefetch = 0 : i64, scratch_operands = 11 : i64, tpu.core_type = #tpu.core_type<tc>, window_params = [{transform_indices = @transform_0, window_bounds = array<i64: 1, 18, 18, 8>}, {pipeline_mode = #tpu.pipeline_mode<synchronous>, transform_indices = @transform_1, window_bounds = array<i64: 256, 256>}, {pipeline_mode = #tpu.pipeline_mode<synchronous>, transform_indices = @transform_2, window_bounds = array<i64: 64, 64>}, {pipeline_mode = #tpu.pipeline_mode<synchronous>, transform_indices = @transform_3, window_bounds = array<i64: 72, 128>}, {pipeline_mode = #tpu.pipeline_mode<synchronous>, transform_indices = @transform_4, window_bounds = array<i64: 1, 128>}, {pipeline_mode = #tpu.pipeline_mode<synchronous>, transform_indices = @transform_5, window_bounds = array<i64: 72, 128>}, {pipeline_mode = #tpu.pipeline_mode<synchronous>, transform_indices = @transform_6, window_bounds = array<i64: 1, 128>}, {pipeline_mode = #tpu.pipeline_mode<synchronous>, transform_indices = @transform_7, window_bounds = array<i64: 72, 128>}, {pipeline_mode = #tpu.pipeline_mode<synchronous>, transform_indices = @transform_8, window_bounds = array<i64: 1, 128>}, {pipeline_mode = #tpu.pipeline_mode<synchronous>, transform_indices = @transform_9, window_bounds = array<i64: 1, 128>}, {pipeline_mode = #tpu.pipeline_mode<synchronous>, transform_indices = @transform_10, window_bounds = array<i64: 1, 128>}, {pipeline_mode = #tpu.pipeline_mode<synchronous>, transform_indices = @transform_11, window_bounds = array<i64: 72, 128>}, {pipeline_mode = #tpu.pipeline_mode<synchronous>, transform_indices = @transform_12, window_bounds = array<i64: 1, 128>}, {pipeline_mode = #tpu.pipeline_mode<synchronous>, transform_indices = @transform_13, window_bounds = array<i64: 144, 128>}, {pipeline_mode = #tpu.pipeline_mode<synchronous>, transform_indices = @transform_14, window_bounds = array<i64: 1, 128>}, {pipeline_mode = #tpu.pipeline_mode<synchronous>, transform_indices = @transform_15, window_bounds = array<i64: 8, 128>}, {pipeline_mode = #tpu.pipeline_mode<synchronous>, transform_indices = @transform_16, window_bounds = array<i64: 1, 128>}, {pipeline_mode = #tpu.pipeline_mode<synchronous>, transform_indices = @transform_17, window_bounds = array<i64: 1, 128>}, {pipeline_mode = #tpu.pipeline_mode<synchronous>, transform_indices = @transform_18, window_bounds = array<i64: 1, 128>}, {pipeline_mode = #tpu.pipeline_mode<synchronous>, transform_indices = @transform_19, window_bounds = array<i64: 144, 128>}, {pipeline_mode = #tpu.pipeline_mode<synchronous>, transform_indices = @transform_20, window_bounds = array<i64: 1, 128>}, {pipeline_mode = #tpu.pipeline_mode<synchronous>, transform_indices = @transform_21, window_bounds = array<i64: 288, 128>}, {pipeline_mode = #tpu.pipeline_mode<synchronous>, transform_indices = @transform_22, window_bounds = array<i64: 1, 128>}, {pipeline_mode = #tpu.pipeline_mode<synchronous>, transform_indices = @transform_23, window_bounds = array<i64: 16, 128>}, {pipeline_mode = #tpu.pipeline_mode<synchronous>, transform_indices = @transform_24, window_bounds = array<i64: 1, 128>}, {pipeline_mode = #tpu.pipeline_mode<synchronous>, transform_indices = @transform_25, window_bounds = array<i64: 1, 128>}, {pipeline_mode = #tpu.pipeline_mode<synchronous>, transform_indices = @transform_26, window_bounds = array<i64: 1, 128>}, {pipeline_mode = #tpu.pipeline_mode<synchronous>, transform_indices = @transform_27, window_bounds = array<i64: 128, 128>}, {pipeline_mode = #tpu.pipeline_mode<synchronous>, transform_indices = @transform_28, window_bounds = array<i64: 1, 128>}, {transform_indices = @transform_29, window_bounds = array<i64: 1, 1, 128>}]} {
    %cst = arith.constant 0.000000e+00 : f32
    %0 = vector.broadcast %cst : f32 to vector<1x18x8xf32>
    %cst_0 = arith.constant 0.000000e+00 : f32
    %1 = vector.broadcast %cst_0 : f32 to vector<18x1x8xf32>
    %c0 = arith.constant 0 : index
    %c0_1 = arith.constant 0 : index
    %c0_2 = arith.constant 0 : index
    %2 = vector.load %arg31[%c0, %c0_1, %c0_2] : memref<18x18x8xf32, #tpu.memory_space<vmem>>, vector<1x18x8xf32>
    tpu.vector_store %arg31[%c0, %c0_1, %c0_2], %0 {strides = array<i32>} : memref<18x18x8xf32, #tpu.memory_space<vmem>>, vector<1x18x8xf32>,
    %c17 = arith.constant 17 : index
    %c0_3 = arith.constant 0 : index
    %c0_4 = arith.constant 0 : index
    %3 = vector.load %arg31[%c17, %c0_3, %c0_4] : memref<18x18x8xf32, #tpu.memory_space<vmem>>, vector<1x18x8xf32>
    tpu.vector_store %arg31[%c17, %c0_3, %c0_4], %0 {strides = array<i32>} : memref<18x18x8xf32, #tpu.memory_space<vmem>>, vector<1x18x8xf32>,
    %c0_5 = arith.constant 0 : index
    %c0_6 = arith.constant 0 : index
    %c0_7 = arith.constant 0 : index
    %4 = vector.load %arg31[%c0_5, %c0_6, %c0_7] : memref<18x18x8xf32, #tpu.memory_space<vmem>>, vector<18x1x8xf32>
    tpu.vector_store %arg31[%c0_5, %c0_6, %c0_7], %1 {strides = array<i32>} : memref<18x18x8xf32, #tpu.memory_space<vmem>>, vector<18x1x8xf32>,
    %c0_8 = arith.constant 0 : index
    %c17_9 = arith.constant 17 : index
    %c0_10 = arith.constant 0 : index
    %5 = vector.load %arg31[%c0_8, %c17_9, %c0_10] : memref<18x18x8xf32, #tpu.memory_space<vmem>>, vector<18x1x8xf32>
    tpu.vector_store %arg31[%c0_8, %c17_9, %c0_10], %1 {strides = array<i32>} : memref<18x18x8xf32, #tpu.memory_space<vmem>>, vector<18x1x8xf32>,
    %cst_11 = arith.constant 0.000000e+00 : f32
    %6 = vector.broadcast %cst_11 : f32 to vector<1x9x8xf32>
    %cst_12 = arith.constant 0.000000e+00 : f32
    %7 = vector.broadcast %cst_12 : f32 to vector<9x1x8xf32>
    %c0_13 = arith.constant 0 : index
    %c0_14 = arith.constant 0 : index
    %c0_15 = arith.constant 0 : index
    %8 = vector.load %arg32[%c0_13, %c0_14, %c0_15] : memref<9x9x8xf32, #tpu.memory_space<vmem>>, vector<1x9x8xf32>
    tpu.vector_store %arg32[%c0_13, %c0_14, %c0_15], %6 {strides = array<i32>} : memref<9x9x8xf32, #tpu.memory_space<vmem>>, vector<1x9x8xf32>,
    %c8 = arith.constant 8 : index
    %c0_16 = arith.constant 0 : index
    %c0_17 = arith.constant 0 : index
    %9 = vector.load %arg32[%c8, %c0_16, %c0_17] : memref<9x9x8xf32, #tpu.memory_space<vmem>>, vector<1x9x8xf32>
    tpu.vector_store %arg32[%c8, %c0_16, %c0_17], %6 {strides = array<i32>} : memref<9x9x8xf32, #tpu.memory_space<vmem>>, vector<1x9x8xf32>,
    %c0_18 = arith.constant 0 : index
    %c0_19 = arith.constant 0 : index
    %c0_20 = arith.constant 0 : index
    %10 = vector.load %arg32[%c0_18, %c0_19, %c0_20] : memref<9x9x8xf32, #tpu.memory_space<vmem>>, vector<9x1x8xf32>
    tpu.vector_store %arg32[%c0_18, %c0_19, %c0_20], %7 {strides = array<i32>} : memref<9x9x8xf32, #tpu.memory_space<vmem>>, vector<9x1x8xf32>,
    %c0_21 = arith.constant 0 : index
    %c8_22 = arith.constant 8 : index
    %c0_23 = arith.constant 0 : index
    %11 = vector.load %arg32[%c0_21, %c8_22, %c0_23] : memref<9x9x8xf32, #tpu.memory_space<vmem>>, vector<9x1x8xf32>
    tpu.vector_store %arg32[%c0_21, %c8_22, %c0_23], %7 {strides = array<i32>} : memref<9x9x8xf32, #tpu.memory_space<vmem>>, vector<9x1x8xf32>,
    %cst_24 = arith.constant 0.000000e+00 : f32
    %12 = vector.broadcast %cst_24 : f32 to vector<1x9x8xf32>
    %cst_25 = arith.constant 0.000000e+00 : f32
    %13 = vector.broadcast %cst_25 : f32 to vector<9x1x8xf32>
    %c0_26 = arith.constant 0 : index
    %c0_27 = arith.constant 0 : index
    %c0_28 = arith.constant 0 : index
    %14 = vector.load %arg33[%c0_26, %c0_27, %c0_28] : memref<9x9x8xf32, #tpu.memory_space<vmem>>, vector<1x9x8xf32>
    tpu.vector_store %arg33[%c0_26, %c0_27, %c0_28], %12 {strides = array<i32>} : memref<9x9x8xf32, #tpu.memory_space<vmem>>, vector<1x9x8xf32>,
    %c8_29 = arith.constant 8 : index
    %c0_30 = arith.constant 0 : index
    %c0_31 = arith.constant 0 : index
    %15 = vector.load %arg33[%c8_29, %c0_30, %c0_31] : memref<9x9x8xf32, #tpu.memory_space<vmem>>, vector<1x9x8xf32>
    tpu.vector_store %arg33[%c8_29, %c0_30, %c0_31], %12 {strides = array<i32>} : memref<9x9x8xf32, #tpu.memory_space<vmem>>, vector<1x9x8xf32>,
    %c0_32 = arith.constant 0 : index
    %c0_33 = arith.constant 0 : index
    %c0_34 = arith.constant 0 : index
    %16 = vector.load %arg33[%c0_32, %c0_33, %c0_34] : memref<9x9x8xf32, #tpu.memory_space<vmem>>, vector<9x1x8xf32>
    tpu.vector_store %arg33[%c0_32, %c0_33, %c0_34], %13 {strides = array<i32>} : memref<9x9x8xf32, #tpu.memory_space<vmem>>, vector<9x1x8xf32>,
    %c0_35 = arith.constant 0 : index
    %c8_36 = arith.constant 8 : index
    %c0_37 = arith.constant 0 : index
    %17 = vector.load %arg33[%c0_35, %c8_36, %c0_37] : memref<9x9x8xf32, #tpu.memory_space<vmem>>, vector<9x1x8xf32>
    tpu.vector_store %arg33[%c0_35, %c8_36, %c0_37], %13 {strides = array<i32>} : memref<9x9x8xf32, #tpu.memory_space<vmem>>, vector<9x1x8xf32>,
    %cst_38 = arith.constant 0.000000e+00 : f32
    %18 = vector.broadcast %cst_38 : f32 to vector<1x9x8xf32>
    %cst_39 = arith.constant 0.000000e+00 : f32
    %19 = vector.broadcast %cst_39 : f32 to vector<9x1x8xf32>
    %c0_40 = arith.constant 0 : index
    %c0_41 = arith.constant 0 : index
    %c0_42 = arith.constant 0 : index
    %20 = vector.load %arg34[%c0_40, %c0_41, %c0_42] : memref<9x9x8xf32, #tpu.memory_space<vmem>>, vector<1x9x8xf32>
    tpu.vector_store %arg34[%c0_40, %c0_41, %c0_42], %18 {strides = array<i32>} : memref<9x9x8xf32, #tpu.memory_space<vmem>>, vector<1x9x8xf32>,
    %c8_43 = arith.constant 8 : index
    %c0_44 = arith.constant 0 : index
    %c0_45 = arith.constant 0 : index
    %21 = vector.load %arg34[%c8_43, %c0_44, %c0_45] : memref<9x9x8xf32, #tpu.memory_space<vmem>>, vector<1x9x8xf32>
    tpu.vector_store %arg34[%c8_43, %c0_44, %c0_45], %18 {strides = array<i32>} : memref<9x9x8xf32, #tpu.memory_space<vmem>>, vector<1x9x8xf32>,
    %c0_46 = arith.constant 0 : index
    %c0_47 = arith.constant 0 : index
    %c0_48 = arith.constant 0 : index
    %22 = vector.load %arg34[%c0_46, %c0_47, %c0_48] : memref<9x9x8xf32, #tpu.memory_space<vmem>>, vector<9x1x8xf32>
    tpu.vector_store %arg34[%c0_46, %c0_47, %c0_48], %19 {strides = array<i32>} : memref<9x9x8xf32, #tpu.memory_space<vmem>>, vector<9x1x8xf32>,
    %c0_49 = arith.constant 0 : index
    %c8_50 = arith.constant 8 : index
    %c0_51 = arith.constant 0 : index
    %23 = vector.load %arg34[%c0_49, %c8_50, %c0_51] : memref<9x9x8xf32, #tpu.memory_space<vmem>>, vector<9x1x8xf32>
    tpu.vector_store %arg34[%c0_49, %c8_50, %c0_51], %19 {strides = array<i32>} : memref<9x9x8xf32, #tpu.memory_space<vmem>>, vector<9x1x8xf32>,
    %cst_52 = arith.constant 0.000000e+00 : f32
    %24 = vector.broadcast %cst_52 : f32 to vector<1x9x8xf32>
    %cst_53 = arith.constant 0.000000e+00 : f32
    %25 = vector.broadcast %cst_53 : f32 to vector<9x1x8xf32>
    %c0_54 = arith.constant 0 : index
    %c0_55 = arith.constant 0 : index
    %c0_56 = arith.constant 0 : index
    %26 = vector.load %arg35[%c0_54, %c0_55, %c0_56] : memref<9x9x8xf32, #tpu.memory_space<vmem>>, vector<1x9x8xf32>
    tpu.vector_store %arg35[%c0_54, %c0_55, %c0_56], %24 {strides = array<i32>} : memref<9x9x8xf32, #tpu.memory_space<vmem>>, vector<1x9x8xf32>,
    %c8_57 = arith.constant 8 : index
    %c0_58 = arith.constant 0 : index
    %c0_59 = arith.constant 0 : index
    %27 = vector.load %arg35[%c8_57, %c0_58, %c0_59] : memref<9x9x8xf32, #tpu.memory_space<vmem>>, vector<1x9x8xf32>
    tpu.vector_store %arg35[%c8_57, %c0_58, %c0_59], %24 {strides = array<i32>} : memref<9x9x8xf32, #tpu.memory_space<vmem>>, vector<1x9x8xf32>,
    %c0_60 = arith.constant 0 : index
    %c0_61 = arith.constant 0 : index
    %c0_62 = arith.constant 0 : index
    %28 = vector.load %arg35[%c0_60, %c0_61, %c0_62] : memref<9x9x8xf32, #tpu.memory_space<vmem>>, vector<9x1x8xf32>
    tpu.vector_store %arg35[%c0_60, %c0_61, %c0_62], %25 {strides = array<i32>} : memref<9x9x8xf32, #tpu.memory_space<vmem>>, vector<9x1x8xf32>,
    %c0_63 = arith.constant 0 : index
    %c8_64 = arith.constant 8 : index
    %c0_65 = arith.constant 0 : index
    %29 = vector.load %arg35[%c0_63, %c8_64, %c0_65] : memref<9x9x8xf32, #tpu.memory_space<vmem>>, vector<9x1x8xf32>
    tpu.vector_store %arg35[%c0_63, %c8_64, %c0_65], %25 {strides = array<i32>} : memref<9x9x8xf32, #tpu.memory_space<vmem>>, vector<9x1x8xf32>,
    %cst_66 = arith.constant 0.000000e+00 : f32
    %30 = vector.broadcast %cst_66 : f32 to vector<1x10x16xf32>
    %cst_67 = arith.constant 0.000000e+00 : f32
    %31 = vector.broadcast %cst_67 : f32 to vector<10x1x16xf32>
    %c0_68 = arith.constant 0 : index
    %c0_69 = arith.constant 0 : index
    %c0_70 = arith.constant 0 : index
    %32 = vector.load %arg36[%c0_68, %c0_69, %c0_70] : memref<10x10x16xf32, #tpu.memory_space<vmem>>, vector<1x10x16xf32>
    tpu.vector_store %arg36[%c0_68, %c0_69, %c0_70], %30 {strides = array<i32>} : memref<10x10x16xf32, #tpu.memory_space<vmem>>, vector<1x10x16xf32>,
    %c9 = arith.constant 9 : index
    %c0_71 = arith.constant 0 : index
    %c0_72 = arith.constant 0 : index
    %33 = vector.load %arg36[%c9, %c0_71, %c0_72] : memref<10x10x16xf32, #tpu.memory_space<vmem>>, vector<1x10x16xf32>
    tpu.vector_store %arg36[%c9, %c0_71, %c0_72], %30 {strides = array<i32>} : memref<10x10x16xf32, #tpu.memory_space<vmem>>, vector<1x10x16xf32>,
    %c0_73 = arith.constant 0 : index
    %c0_74 = arith.constant 0 : index
    %c0_75 = arith.constant 0 : index
    %34 = vector.load %arg36[%c0_73, %c0_74, %c0_75] : memref<10x10x16xf32, #tpu.memory_space<vmem>>, vector<10x1x16xf32>
    tpu.vector_store %arg36[%c0_73, %c0_74, %c0_75], %31 {strides = array<i32>} : memref<10x10x16xf32, #tpu.memory_space<vmem>>, vector<10x1x16xf32>,
    %c0_76 = arith.constant 0 : index
    %c9_77 = arith.constant 9 : index
    %c0_78 = arith.constant 0 : index
    %35 = vector.load %arg36[%c0_76, %c9_77, %c0_78] : memref<10x10x16xf32, #tpu.memory_space<vmem>>, vector<10x1x16xf32>
    tpu.vector_store %arg36[%c0_76, %c9_77, %c0_78], %31 {strides = array<i32>} : memref<10x10x16xf32, #tpu.memory_space<vmem>>, vector<10x1x16xf32>,
    %cst_79 = arith.constant 0.000000e+00 : f32
    %36 = vector.broadcast %cst_79 : f32 to vector<1x5x16xf32>
    %cst_80 = arith.constant 0.000000e+00 : f32
    %37 = vector.broadcast %cst_80 : f32 to vector<5x1x16xf32>
    %c0_81 = arith.constant 0 : index
    %c0_82 = arith.constant 0 : index
    %c0_83 = arith.constant 0 : index
    %38 = vector.load %arg37[%c0_81, %c0_82, %c0_83] : memref<5x5x16xf32, #tpu.memory_space<vmem>>, vector<1x5x16xf32>
    tpu.vector_store %arg37[%c0_81, %c0_82, %c0_83], %36 {strides = array<i32>} : memref<5x5x16xf32, #tpu.memory_space<vmem>>, vector<1x5x16xf32>,
    %c4 = arith.constant 4 : index
    %c0_84 = arith.constant 0 : index
    %c0_85 = arith.constant 0 : index
    %39 = vector.load %arg37[%c4, %c0_84, %c0_85] : memref<5x5x16xf32, #tpu.memory_space<vmem>>, vector<1x5x16xf32>
    tpu.vector_store %arg37[%c4, %c0_84, %c0_85], %36 {strides = array<i32>} : memref<5x5x16xf32, #tpu.memory_space<vmem>>, vector<1x5x16xf32>,
    %c0_86 = arith.constant 0 : index
    %c0_87 = arith.constant 0 : index
    %c0_88 = arith.constant 0 : index
    %40 = vector.load %arg37[%c0_86, %c0_87, %c0_88] : memref<5x5x16xf32, #tpu.memory_space<vmem>>, vector<5x1x16xf32>
    tpu.vector_store %arg37[%c0_86, %c0_87, %c0_88], %37 {strides = array<i32>} : memref<5x5x16xf32, #tpu.memory_space<vmem>>, vector<5x1x16xf32>,
    %c0_89 = arith.constant 0 : index
    %c4_90 = arith.constant 4 : index
    %c0_91 = arith.constant 0 : index
    %41 = vector.load %arg37[%c0_89, %c4_90, %c0_91] : memref<5x5x16xf32, #tpu.memory_space<vmem>>, vector<5x1x16xf32>
    tpu.vector_store %arg37[%c0_89, %c4_90, %c0_91], %37 {strides = array<i32>} : memref<5x5x16xf32, #tpu.memory_space<vmem>>, vector<5x1x16xf32>,
    %cst_92 = arith.constant 0.000000e+00 : f32
    %42 = vector.broadcast %cst_92 : f32 to vector<1x5x16xf32>
    %cst_93 = arith.constant 0.000000e+00 : f32
    %43 = vector.broadcast %cst_93 : f32 to vector<5x1x16xf32>
    %c0_94 = arith.constant 0 : index
    %c0_95 = arith.constant 0 : index
    %c0_96 = arith.constant 0 : index
    %44 = vector.load %arg38[%c0_94, %c0_95, %c0_96] : memref<5x5x16xf32, #tpu.memory_space<vmem>>, vector<1x5x16xf32>
    tpu.vector_store %arg38[%c0_94, %c0_95, %c0_96], %42 {strides = array<i32>} : memref<5x5x16xf32, #tpu.memory_space<vmem>>, vector<1x5x16xf32>,
    %c4_97 = arith.constant 4 : index
    %c0_98 = arith.constant 0 : index
    %c0_99 = arith.constant 0 : index
    %45 = vector.load %arg38[%c4_97, %c0_98, %c0_99] : memref<5x5x16xf32, #tpu.memory_space<vmem>>, vector<1x5x16xf32>
    tpu.vector_store %arg38[%c4_97, %c0_98, %c0_99], %42 {strides = array<i32>} : memref<5x5x16xf32, #tpu.memory_space<vmem>>, vector<1x5x16xf32>,
    %c0_100 = arith.constant 0 : index
    %c0_101 = arith.constant 0 : index
    %c0_102 = arith.constant 0 : index
    %46 = vector.load %arg38[%c0_100, %c0_101, %c0_102] : memref<5x5x16xf32, #tpu.memory_space<vmem>>, vector<5x1x16xf32>
    tpu.vector_store %arg38[%c0_100, %c0_101, %c0_102], %43 {strides = array<i32>} : memref<5x5x16xf32, #tpu.memory_space<vmem>>, vector<5x1x16xf32>,
    %c0_103 = arith.constant 0 : index
    %c4_104 = arith.constant 4 : index
    %c0_105 = arith.constant 0 : index
    %47 = vector.load %arg38[%c0_103, %c4_104, %c0_105] : memref<5x5x16xf32, #tpu.memory_space<vmem>>, vector<5x1x16xf32>
    tpu.vector_store %arg38[%c0_103, %c4_104, %c0_105], %43 {strides = array<i32>} : memref<5x5x16xf32, #tpu.memory_space<vmem>>, vector<5x1x16xf32>,
    %cst_106 = arith.constant 0.000000e+00 : f32
    %48 = vector.broadcast %cst_106 : f32 to vector<1x5x16xf32>
    %cst_107 = arith.constant 0.000000e+00 : f32
    %49 = vector.broadcast %cst_107 : f32 to vector<5x1x16xf32>
    %c0_108 = arith.constant 0 : index
    %c0_109 = arith.constant 0 : index
    %c0_110 = arith.constant 0 : index
    %50 = vector.load %arg39[%c0_108, %c0_109, %c0_110] : memref<5x5x16xf32, #tpu.memory_space<vmem>>, vector<1x5x16xf32>
    tpu.vector_store %arg39[%c0_108, %c0_109, %c0_110], %48 {strides = array<i32>} : memref<5x5x16xf32, #tpu.memory_space<vmem>>, vector<1x5x16xf32>,
    %c4_111 = arith.constant 4 : index
    %c0_112 = arith.constant 0 : index
    %c0_113 = arith.constant 0 : index
    %51 = vector.load %arg39[%c4_111, %c0_112, %c0_113] : memref<5x5x16xf32, #tpu.memory_space<vmem>>, vector<1x5x16xf32>
    tpu.vector_store %arg39[%c4_111, %c0_112, %c0_113], %48 {strides = array<i32>} : memref<5x5x16xf32, #tpu.memory_space<vmem>>, vector<1x5x16xf32>,
    %c0_114 = arith.constant 0 : index
    %c0_115 = arith.constant 0 : index
    %c0_116 = arith.constant 0 : index
    %52 = vector.load %arg39[%c0_114, %c0_115, %c0_116] : memref<5x5x16xf32, #tpu.memory_space<vmem>>, vector<5x1x16xf32>
    tpu.vector_store %arg39[%c0_114, %c0_115, %c0_116], %49 {strides = array<i32>} : memref<5x5x16xf32, #tpu.memory_space<vmem>>, vector<5x1x16xf32>,
    %c0_117 = arith.constant 0 : index
    %c4_118 = arith.constant 4 : index
    %c0_119 = arith.constant 0 : index
    %53 = vector.load %arg39[%c0_117, %c4_118, %c0_119] : memref<5x5x16xf32, #tpu.memory_space<vmem>>, vector<5x1x16xf32>
    tpu.vector_store %arg39[%c0_117, %c4_118, %c0_119], %49 {strides = array<i32>} : memref<5x5x16xf32, #tpu.memory_space<vmem>>, vector<5x1x16xf32>,
    %cst_120 = arith.constant 0.000000e+00 : f32
    %54 = vector.broadcast %cst_120 : f32 to vector<1x5x16xf32>
    %cst_121 = arith.constant 0.000000e+00 : f32
    %55 = vector.broadcast %cst_121 : f32 to vector<5x1x16xf32>
    %c0_122 = arith.constant 0 : index
    %c0_123 = arith.constant 0 : index
    %c0_124 = arith.constant 0 : index
    %56 = vector.load %arg40[%c0_122, %c0_123, %c0_124] : memref<5x5x16xf32, #tpu.memory_space<vmem>>, vector<1x5x16xf32>
    tpu.vector_store %arg40[%c0_122, %c0_123, %c0_124], %54 {strides = array<i32>} : memref<5x5x16xf32, #tpu.memory_space<vmem>>, vector<1x5x16xf32>,
    %c4_125 = arith.constant 4 : index
    %c0_126 = arith.constant 0 : index
    %c0_127 = arith.constant 0 : index
    %57 = vector.load %arg40[%c4_125, %c0_126, %c0_127] : memref<5x5x16xf32, #tpu.memory_space<vmem>>, vector<1x5x16xf32>
    tpu.vector_store %arg40[%c4_125, %c0_126, %c0_127], %54 {strides = array<i32>} : memref<5x5x16xf32, #tpu.memory_space<vmem>>, vector<1x5x16xf32>,
    %c0_128 = arith.constant 0 : index
    %c0_129 = arith.constant 0 : index
    %c0_130 = arith.constant 0 : index
    %58 = vector.load %arg40[%c0_128, %c0_129, %c0_130] : memref<5x5x16xf32, #tpu.memory_space<vmem>>, vector<5x1x16xf32>
    tpu.vector_store %arg40[%c0_128, %c0_129, %c0_130], %55 {strides = array<i32>} : memref<5x5x16xf32, #tpu.memory_space<vmem>>, vector<5x1x16xf32>,
    %c0_131 = arith.constant 0 : index
    %c4_132 = arith.constant 4 : index
    %c0_133 = arith.constant 0 : index
    %59 = vector.load %arg40[%c0_131, %c4_132, %c0_133] : memref<5x5x16xf32, #tpu.memory_space<vmem>>, vector<5x1x16xf32>
    tpu.vector_store %arg40[%c0_131, %c4_132, %c0_133], %55 {strides = array<i32>} : memref<5x5x16xf32, #tpu.memory_space<vmem>>, vector<5x1x16xf32>,
    %cst_134 = arith.constant 0.000000e+00 : f32
    %60 = vector.broadcast %cst_134 : f32 to vector<1x6x32xf32>
    %cst_135 = arith.constant 0.000000e+00 : f32
    %61 = vector.broadcast %cst_135 : f32 to vector<6x1x32xf32>
    %c0_136 = arith.constant 0 : index
    %c0_137 = arith.constant 0 : index
    %c0_138 = arith.constant 0 : index
    %62 = vector.load %arg41[%c0_136, %c0_137, %c0_138] : memref<6x6x32xf32, #tpu.memory_space<vmem>>, vector<1x6x32xf32>
    tpu.vector_store %arg41[%c0_136, %c0_137, %c0_138], %60 {strides = array<i32>} : memref<6x6x32xf32, #tpu.memory_space<vmem>>, vector<1x6x32xf32>,
    %c5 = arith.constant 5 : index
    %c0_139 = arith.constant 0 : index
    %c0_140 = arith.constant 0 : index
    %63 = vector.load %arg41[%c5, %c0_139, %c0_140] : memref<6x6x32xf32, #tpu.memory_space<vmem>>, vector<1x6x32xf32>
    tpu.vector_store %arg41[%c5, %c0_139, %c0_140], %60 {strides = array<i32>} : memref<6x6x32xf32, #tpu.memory_space<vmem>>, vector<1x6x32xf32>,
    %c0_141 = arith.constant 0 : index
    %c0_142 = arith.constant 0 : index
    %c0_143 = arith.constant 0 : index
    %64 = vector.load %arg41[%c0_141, %c0_142, %c0_143] : memref<6x6x32xf32, #tpu.memory_space<vmem>>, vector<6x1x32xf32>
    tpu.vector_store %arg41[%c0_141, %c0_142, %c0_143], %61 {strides = array<i32>} : memref<6x6x32xf32, #tpu.memory_space<vmem>>, vector<6x1x32xf32>,
    %c0_144 = arith.constant 0 : index
    %c5_145 = arith.constant 5 : index
    %c0_146 = arith.constant 0 : index
    %65 = vector.load %arg41[%c0_144, %c5_145, %c0_146] : memref<6x6x32xf32, #tpu.memory_space<vmem>>, vector<6x1x32xf32>
    tpu.vector_store %arg41[%c0_144, %c5_145, %c0_146], %61 {strides = array<i32>} : memref<6x6x32xf32, #tpu.memory_space<vmem>>, vector<6x1x32xf32>,
    %c0_147 = arith.constant 0 : index
    %c0_148 = arith.constant 0 : index
    %c0_149 = arith.constant 0 : index
    %c0_150 = arith.constant 0 : index
    %66 = vector.load %arg1[%c0_147, %c0_148, %c0_149, %c0_150] : memref<1x18x18x8xf32, #tpu.memory_space<vmem>>, vector<1x18x18x8xf32>
    %67 = vector.shape_cast %66 : vector<1x18x18x8xf32> to vector<18x18x8xf32>
    %68 = vector.extract_strided_slice %67 {offsets = [0, 0, 0], sizes = [16, 16, 8], strides = [1, 1, 1]} : vector<18x18x8xf32> to vector<16x16x8xf32>
    %69 = vector.shape_cast %68 : vector<16x16x8xf32> to vector<256x8xf32>
    %70 = vector.extract_strided_slice %67 {offsets = [0, 1, 0], sizes = [16, 16, 8], strides = [1, 1, 1]} : vector<18x18x8xf32> to vector<16x16x8xf32>
    %71 = vector.shape_cast %70 : vector<16x16x8xf32> to vector<256x8xf32>
    %72 = vector.extract_strided_slice %67 {offsets = [0, 2, 0], sizes = [16, 16, 8], strides = [1, 1, 1]} : vector<18x18x8xf32> to vector<16x16x8xf32>
    %73 = vector.shape_cast %72 : vector<16x16x8xf32> to vector<256x8xf32>
    %74 = vector.extract_strided_slice %67 {offsets = [1, 0, 0], sizes = [16, 16, 8], strides = [1, 1, 1]} : vector<18x18x8xf32> to vector<16x16x8xf32>
    %75 = vector.shape_cast %74 : vector<16x16x8xf32> to vector<256x8xf32>
    %76 = vector.extract_strided_slice %67 {offsets = [1, 1, 0], sizes = [16, 16, 8], strides = [1, 1, 1]} : vector<18x18x8xf32> to vector<16x16x8xf32>
    %77 = vector.shape_cast %76 : vector<16x16x8xf32> to vector<256x8xf32>
    %78 = vector.extract_strided_slice %67 {offsets = [1, 2, 0], sizes = [16, 16, 8], strides = [1, 1, 1]} : vector<18x18x8xf32> to vector<16x16x8xf32>
    %79 = vector.shape_cast %78 : vector<16x16x8xf32> to vector<256x8xf32>
    %80 = vector.extract_strided_slice %67 {offsets = [2, 0, 0], sizes = [16, 16, 8], strides = [1, 1, 1]} : vector<18x18x8xf32> to vector<16x16x8xf32>
    %81 = vector.shape_cast %80 : vector<16x16x8xf32> to vector<256x8xf32>
    %82 = vector.extract_strided_slice %67 {offsets = [2, 1, 0], sizes = [16, 16, 8], strides = [1, 1, 1]} : vector<18x18x8xf32> to vector<16x16x8xf32>
    %83 = vector.shape_cast %82 : vector<16x16x8xf32> to vector<256x8xf32>
    %84 = vector.extract_strided_slice %67 {offsets = [2, 2, 0], sizes = [16, 16, 8], strides = [1, 1, 1]} : vector<18x18x8xf32> to vector<16x16x8xf32>
    %85 = vector.shape_cast %84 : vector<16x16x8xf32> to vector<256x8xf32>
    %86 = tpu.concatenate %69, %71, %73, %75, %77, %79, %81, %83, %85 in 1 : vector<256x8xf32>, vector<256x8xf32>, vector<256x8xf32>, vector<256x8xf32>, vector<256x8xf32>, vector<256x8xf32>, vector<256x8xf32>, vector<256x8xf32>, vector<256x8xf32> -> vector<256x72xf32>
    %c0_151 = arith.constant 0 : index
    %c0_152 = arith.constant 0 : index
    %87 = vector.load %arg4[%c0_151, %c0_152] : memref<72x128xf32, #tpu.memory_space<vmem>>, vector<72x128xf32>
    %cst_153 = arith.constant dense<0.000000e+00> : vector<256x128xf32>
    %88 = tpu.matmul %86, %87, %cst_153 {dimension_numbers = #tpu.dot_dimension_numbers<[1], [0], [0], [1], [0, 0, 1, 1], [], []>} : vector<256x72xf32>, vector<72x128xf32>, vector<256x128xf32> -> vector<256x128xf32>
    %c0_154 = arith.constant 0 : index
    %c0_155 = arith.constant 0 : index
    %89 = vector.load %arg5[%c0_154, %c0_155] : memref<1x128xf32, #tpu.memory_space<vmem>>, vector<1x128xf32>
    %90 = vector.broadcast %89 : vector<1x128xf32> to vector<256x128xf32>
    %91 = arith.addf %88, %90 : vector<256x128xf32>
    %cst_156 = arith.constant 0.000000e+00 : f32
    %92 = vector.broadcast %cst_156 : f32 to vector<256x128xf32>
    %93 = arith.maximumf %91, %92 : vector<256x128xf32>
    %94 = vector.extract_strided_slice %93 {offsets = [0, 0], sizes = [256, 8], strides = [1, 1]} : vector<256x128xf32> to vector<256x8xf32>
    %95 = vector.shape_cast %94 : vector<256x8xf32> to vector<16x16x8xf32>
    %c1 = arith.constant 1 : index
    %c1_157 = arith.constant 1 : index
    %c0_158 = arith.constant 0 : index
    %96 = vector.load %arg31[%c1, %c1_157, %c0_158] : memref<18x18x8xf32, #tpu.memory_space<vmem>>, vector<16x16x8xf32>
    tpu.vector_store %arg31[%c1, %c1_157, %c0_158], %95 {strides = array<i32>} : memref<18x18x8xf32, #tpu.memory_space<vmem>>, vector<16x16x8xf32>,
    %c0_159 = arith.constant 0 : index
    %c0_160 = arith.constant 0 : index
    %c0_161 = arith.constant 0 : index
    %97 = vector.load %arg31[%c0_159, %c0_160, %c0_161] : memref<18x18x8xf32, #tpu.memory_space<vmem>>, vector<16x16x8xf32>
    %98 = vector.shape_cast %97 : vector<16x16x8xf32> to vector<256x8xf32>
    %c0_162 = arith.constant 0 : index
    %c1_163 = arith.constant 1 : index
    %c0_164 = arith.constant 0 : index
    %99 = vector.load %arg31[%c0_162, %c1_163, %c0_164] : memref<18x18x8xf32, #tpu.memory_space<vmem>>, vector<16x16x8xf32>
    %100 = vector.shape_cast %99 : vector<16x16x8xf32> to vector<256x8xf32>
    %c0_165 = arith.constant 0 : index
    %c2 = arith.constant 2 : index
    %c0_166 = arith.constant 0 : index
    %101 = vector.load %arg31[%c0_165, %c2, %c0_166] : memref<18x18x8xf32, #tpu.memory_space<vmem>>, vector<16x16x8xf32>
    %102 = vector.shape_cast %101 : vector<16x16x8xf32> to vector<256x8xf32>
    %c1_167 = arith.constant 1 : index
    %c0_168 = arith.constant 0 : index
    %c0_169 = arith.constant 0 : index
    %103 = vector.load %arg31[%c1_167, %c0_168, %c0_169] : memref<18x18x8xf32, #tpu.memory_space<vmem>>, vector<16x16x8xf32>
    %104 = vector.shape_cast %103 : vector<16x16x8xf32> to vector<256x8xf32>
    %c1_170 = arith.constant 1 : index
    %c1_171 = arith.constant 1 : index
    %c0_172 = arith.constant 0 : index
    %105 = vector.load %arg31[%c1_170, %c1_171, %c0_172] : memref<18x18x8xf32, #tpu.memory_space<vmem>>, vector<16x16x8xf32>
    %106 = vector.shape_cast %105 : vector<16x16x8xf32> to vector<256x8xf32>
    %c1_173 = arith.constant 1 : index
    %c2_174 = arith.constant 2 : index
    %c0_175 = arith.constant 0 : index
    %107 = vector.load %arg31[%c1_173, %c2_174, %c0_175] : memref<18x18x8xf32, #tpu.memory_space<vmem>>, vector<16x16x8xf32>
    %108 = vector.shape_cast %107 : vector<16x16x8xf32> to vector<256x8xf32>
    %c2_176 = arith.constant 2 : index
    %c0_177 = arith.constant 0 : index
    %c0_178 = arith.constant 0 : index
    %109 = vector.load %arg31[%c2_176, %c0_177, %c0_178] : memref<18x18x8xf32, #tpu.memory_space<vmem>>, vector<16x16x8xf32>
    %110 = vector.shape_cast %109 : vector<16x16x8xf32> to vector<256x8xf32>
    %c2_179 = arith.constant 2 : index
    %c1_180 = arith.constant 1 : index
    %c0_181 = arith.constant 0 : index
    %111 = vector.load %arg31[%c2_179, %c1_180, %c0_181] : memref<18x18x8xf32, #tpu.memory_space<vmem>>, vector<16x16x8xf32>
    %112 = vector.shape_cast %111 : vector<16x16x8xf32> to vector<256x8xf32>
    %c2_182 = arith.constant 2 : index
    %c2_183 = arith.constant 2 : index
    %c0_184 = arith.constant 0 : index
    %113 = vector.load %arg31[%c2_182, %c2_183, %c0_184] : memref<18x18x8xf32, #tpu.memory_space<vmem>>, vector<16x16x8xf32>
    %114 = vector.shape_cast %113 : vector<16x16x8xf32> to vector<256x8xf32>
    %115 = tpu.concatenate %98, %100, %102, %104, %106, %108, %110, %112, %114 in 1 : vector<256x8xf32>, vector<256x8xf32>, vector<256x8xf32>, vector<256x8xf32>, vector<256x8xf32>, vector<256x8xf32>, vector<256x8xf32>, vector<256x8xf32>, vector<256x8xf32> -> vector<256x72xf32>
    %c0_185 = arith.constant 0 : index
    %c0_186 = arith.constant 0 : index
    %116 = vector.load %arg6[%c0_185, %c0_186] : memref<72x128xf32, #tpu.memory_space<vmem>>, vector<72x128xf32>
    %cst_187 = arith.constant dense<0.000000e+00> : vector<256x128xf32>
    %117 = tpu.matmul %115, %116, %cst_187 {dimension_numbers = #tpu.dot_dimension_numbers<[1], [0], [0], [1], [0, 0, 1, 1], [], []>} : vector<256x72xf32>, vector<72x128xf32>, vector<256x128xf32> -> vector<256x128xf32>
    %c0_188 = arith.constant 0 : index
    %c0_189 = arith.constant 0 : index
    %118 = vector.load %arg7[%c0_188, %c0_189] : memref<1x128xf32, #tpu.memory_space<vmem>>, vector<1x128xf32>
    %119 = vector.broadcast %118 : vector<1x128xf32> to vector<256x128xf32>
    %120 = arith.addf %117, %119 : vector<256x128xf32>
    %cst_190 = arith.constant 0.000000e+00 : f32
    %121 = vector.broadcast %cst_190 : f32 to vector<256x128xf32>
    %122 = arith.maximumf %120, %121 : vector<256x128xf32>
    %123 = vector.extract_strided_slice %122 {offsets = [0, 0], sizes = [256, 8], strides = [1, 1]} : vector<256x128xf32> to vector<256x8xf32>
    %124 = vector.shape_cast %123 : vector<256x8xf32> to vector<16x16x8xf32>
    %c1_191 = arith.constant 1 : index
    %c1_192 = arith.constant 1 : index
    %c0_193 = arith.constant 0 : index
    %125 = vector.load %arg31[%c1_191, %c1_192, %c0_193] : memref<18x18x8xf32, #tpu.memory_space<vmem>>, vector<16x16x8xf32>
    tpu.vector_store %arg31[%c1_191, %c1_192, %c0_193], %124 {strides = array<i32>} : memref<18x18x8xf32, #tpu.memory_space<vmem>>, vector<16x16x8xf32>,
    %c0_194 = arith.constant 0 : index
    %c0_195 = arith.constant 0 : index
    %c0_196 = arith.constant 0 : index
    %126 = vector.load %arg31[%c0_194, %c0_195, %c0_196] : memref<18x18x8xf32, #tpu.memory_space<vmem>>, vector<16x16x8xf32>
    %127 = vector.shape_cast %126 : vector<16x16x8xf32> to vector<256x8xf32>
    %c0_197 = arith.constant 0 : index
    %c1_198 = arith.constant 1 : index
    %c0_199 = arith.constant 0 : index
    %128 = vector.load %arg31[%c0_197, %c1_198, %c0_199] : memref<18x18x8xf32, #tpu.memory_space<vmem>>, vector<16x16x8xf32>
    %129 = vector.shape_cast %128 : vector<16x16x8xf32> to vector<256x8xf32>
    %c0_200 = arith.constant 0 : index
    %c2_201 = arith.constant 2 : index
    %c0_202 = arith.constant 0 : index
    %130 = vector.load %arg31[%c0_200, %c2_201, %c0_202] : memref<18x18x8xf32, #tpu.memory_space<vmem>>, vector<16x16x8xf32>
    %131 = vector.shape_cast %130 : vector<16x16x8xf32> to vector<256x8xf32>
    %c1_203 = arith.constant 1 : index
    %c0_204 = arith.constant 0 : index
    %c0_205 = arith.constant 0 : index
    %132 = vector.load %arg31[%c1_203, %c0_204, %c0_205] : memref<18x18x8xf32, #tpu.memory_space<vmem>>, vector<16x16x8xf32>
    %133 = vector.shape_cast %132 : vector<16x16x8xf32> to vector<256x8xf32>
    %c1_206 = arith.constant 1 : index
    %c1_207 = arith.constant 1 : index
    %c0_208 = arith.constant 0 : index
    %134 = vector.load %arg31[%c1_206, %c1_207, %c0_208] : memref<18x18x8xf32, #tpu.memory_space<vmem>>, vector<16x16x8xf32>
    %135 = vector.shape_cast %134 : vector<16x16x8xf32> to vector<256x8xf32>
    %c1_209 = arith.constant 1 : index
    %c2_210 = arith.constant 2 : index
    %c0_211 = arith.constant 0 : index
    %136 = vector.load %arg31[%c1_209, %c2_210, %c0_211] : memref<18x18x8xf32, #tpu.memory_space<vmem>>, vector<16x16x8xf32>
    %137 = vector.shape_cast %136 : vector<16x16x8xf32> to vector<256x8xf32>
    %c2_212 = arith.constant 2 : index
    %c0_213 = arith.constant 0 : index
    %c0_214 = arith.constant 0 : index
    %138 = vector.load %arg31[%c2_212, %c0_213, %c0_214] : memref<18x18x8xf32, #tpu.memory_space<vmem>>, vector<16x16x8xf32>
    %139 = vector.shape_cast %138 : vector<16x16x8xf32> to vector<256x8xf32>
    %c2_215 = arith.constant 2 : index
    %c1_216 = arith.constant 1 : index
    %c0_217 = arith.constant 0 : index
    %140 = vector.load %arg31[%c2_215, %c1_216, %c0_217] : memref<18x18x8xf32, #tpu.memory_space<vmem>>, vector<16x16x8xf32>
    %141 = vector.shape_cast %140 : vector<16x16x8xf32> to vector<256x8xf32>
    %c2_218 = arith.constant 2 : index
    %c2_219 = arith.constant 2 : index
    %c0_220 = arith.constant 0 : index
    %142 = vector.load %arg31[%c2_218, %c2_219, %c0_220] : memref<18x18x8xf32, #tpu.memory_space<vmem>>, vector<16x16x8xf32>
    %143 = vector.shape_cast %142 : vector<16x16x8xf32> to vector<256x8xf32>
    %144 = tpu.concatenate %127, %129, %131, %133, %135, %137, %139, %141, %143 in 1 : vector<256x8xf32>, vector<256x8xf32>, vector<256x8xf32>, vector<256x8xf32>, vector<256x8xf32>, vector<256x8xf32>, vector<256x8xf32>, vector<256x8xf32>, vector<256x8xf32> -> vector<256x72xf32>
    %c0_221 = arith.constant 0 : index
    %c0_222 = arith.constant 0 : index
    %145 = vector.load %arg8[%c0_221, %c0_222] : memref<72x128xf32, #tpu.memory_space<vmem>>, vector<72x128xf32>
    %cst_223 = arith.constant dense<0.000000e+00> : vector<256x128xf32>
    %146 = tpu.matmul %144, %145, %cst_223 {dimension_numbers = #tpu.dot_dimension_numbers<[1], [0], [0], [1], [0, 0, 1, 1], [], []>} : vector<256x72xf32>, vector<72x128xf32>, vector<256x128xf32> -> vector<256x128xf32>
    %c0_224 = arith.constant 0 : index
    %c0_225 = arith.constant 0 : index
    %147 = vector.load %arg9[%c0_224, %c0_225] : memref<1x128xf32, #tpu.memory_space<vmem>>, vector<1x128xf32>
    %148 = vector.broadcast %147 : vector<1x128xf32> to vector<256x128xf32>
    %149 = arith.addf %146, %148 : vector<256x128xf32>
    %150 = arith.addf %149, %93 : vector<256x128xf32>
    %c0_226 = arith.constant 0 : index
    %c0_227 = arith.constant 0 : index
    %151 = vector.load %arg10[%c0_226, %c0_227] : memref<1x128xf32, #tpu.memory_space<vmem>>, vector<1x128xf32>
    %152 = vector.broadcast %151 : vector<1x128xf32> to vector<256x128xf32>
    %153 = arith.mulf %150, %152 : vector<256x128xf32>
    %c0_228 = arith.constant 0 : index
    %c0_229 = arith.constant 0 : index
    %154 = vector.load %arg11[%c0_228, %c0_229] : memref<1x128xf32, #tpu.memory_space<vmem>>, vector<1x128xf32>
    %155 = vector.broadcast %154 : vector<1x128xf32> to vector<256x128xf32>
    %156 = arith.addf %153, %155 : vector<256x128xf32>
    %cst_230 = arith.constant 0.000000e+00 : f32
    %157 = vector.broadcast %cst_230 : f32 to vector<256x128xf32>
    %158 = arith.maximumf %156, %157 : vector<256x128xf32>
    %c0_231 = arith.constant 0 : index
    %c0_232 = arith.constant 0 : index
    %159 = vector.load %arg2[%c0_231, %c0_232] : memref<256x256xf32, #tpu.memory_space<vmem>>, vector<256x256xf32>
    %cst_233 = arith.constant dense<0.000000e+00> : vector<256x128xf32>
    %160 = tpu.matmul %159, %158, %cst_233 {dimension_numbers = #tpu.dot_dimension_numbers<[1], [0], [0], [1], [0, 0, 1, 1], [], []>} : vector<256x256xf32>, vector<256x128xf32>, vector<256x128xf32> -> vector<256x128xf32>
    %161 = vector.extract_strided_slice %160 {offsets = [0, 0], sizes = [64, 8], strides = [1, 1]} : vector<256x128xf32> to vector<64x8xf32>
    %162 = vector.shape_cast %161 : vector<64x8xf32> to vector<8x8x8xf32>
    %c1_234 = arith.constant 1 : index
    %c1_235 = arith.constant 1 : index
    %c0_236 = arith.constant 0 : index
    %163 = vector.load %arg32[%c1_234, %c1_235, %c0_236] : memref<9x9x8xf32, #tpu.memory_space<vmem>>, vector<8x8x8xf32>
    tpu.vector_store %arg32[%c1_234, %c1_235, %c0_236], %162 {strides = array<i32>} : memref<9x9x8xf32, #tpu.memory_space<vmem>>, vector<8x8x8xf32>,
    %164 = vector.extract_strided_slice %160 {offsets = [64, 0], sizes = [64, 8], strides = [1, 1]} : vector<256x128xf32> to vector<64x8xf32>
    %165 = vector.shape_cast %164 : vector<64x8xf32> to vector<8x8x8xf32>
    %c1_237 = arith.constant 1 : index
    %c1_238 = arith.constant 1 : index
    %c0_239 = arith.constant 0 : index
    %166 = vector.load %arg33[%c1_237, %c1_238, %c0_239] : memref<9x9x8xf32, #tpu.memory_space<vmem>>, vector<8x8x8xf32>
    tpu.vector_store %arg33[%c1_237, %c1_238, %c0_239], %165 {strides = array<i32>} : memref<9x9x8xf32, #tpu.memory_space<vmem>>, vector<8x8x8xf32>,
    %167 = vector.extract_strided_slice %160 {offsets = [128, 0], sizes = [64, 8], strides = [1, 1]} : vector<256x128xf32> to vector<64x8xf32>
    %168 = vector.shape_cast %167 : vector<64x8xf32> to vector<8x8x8xf32>
    %c1_240 = arith.constant 1 : index
    %c1_241 = arith.constant 1 : index
    %c0_242 = arith.constant 0 : index
    %169 = vector.load %arg34[%c1_240, %c1_241, %c0_242] : memref<9x9x8xf32, #tpu.memory_space<vmem>>, vector<8x8x8xf32>
    tpu.vector_store %arg34[%c1_240, %c1_241, %c0_242], %168 {strides = array<i32>} : memref<9x9x8xf32, #tpu.memory_space<vmem>>, vector<8x8x8xf32>,
    %170 = vector.extract_strided_slice %160 {offsets = [192, 0], sizes = [64, 8], strides = [1, 1]} : vector<256x128xf32> to vector<64x8xf32>
    %171 = vector.shape_cast %170 : vector<64x8xf32> to vector<8x8x8xf32>
    %c1_243 = arith.constant 1 : index
    %c1_244 = arith.constant 1 : index
    %c0_245 = arith.constant 0 : index
    %172 = vector.load %arg35[%c1_243, %c1_244, %c0_245] : memref<9x9x8xf32, #tpu.memory_space<vmem>>, vector<8x8x8xf32>
    tpu.vector_store %arg35[%c1_243, %c1_244, %c0_245], %171 {strides = array<i32>} : memref<9x9x8xf32, #tpu.memory_space<vmem>>, vector<8x8x8xf32>,
    %c0_246 = arith.constant 0 : index
    %c0_247 = arith.constant 0 : index
    %c0_248 = arith.constant 0 : index
    %173 = vector.load %arg35[%c0_246, %c0_247, %c0_248] : memref<9x9x8xf32, #tpu.memory_space<vmem>>, vector<8x8x8xf32>
    %174 = vector.shape_cast %173 : vector<8x8x8xf32> to vector<64x8xf32>
    %c0_249 = arith.constant 0 : index
    %c1_250 = arith.constant 1 : index
    %c0_251 = arith.constant 0 : index
    %175 = vector.load %arg34[%c0_249, %c1_250, %c0_251] : memref<9x9x8xf32, #tpu.memory_space<vmem>>, vector<8x8x8xf32>
    %176 = vector.shape_cast %175 : vector<8x8x8xf32> to vector<64x8xf32>
    %c0_252 = arith.constant 0 : index
    %c1_253 = arith.constant 1 : index
    %c0_254 = arith.constant 0 : index
    %177 = vector.load %arg35[%c0_252, %c1_253, %c0_254] : memref<9x9x8xf32, #tpu.memory_space<vmem>>, vector<8x8x8xf32>
    %178 = vector.shape_cast %177 : vector<8x8x8xf32> to vector<64x8xf32>
    %c1_255 = arith.constant 1 : index
    %c0_256 = arith.constant 0 : index
    %c0_257 = arith.constant 0 : index
    %179 = vector.load %arg33[%c1_255, %c0_256, %c0_257] : memref<9x9x8xf32, #tpu.memory_space<vmem>>, vector<8x8x8xf32>
    %180 = vector.shape_cast %179 : vector<8x8x8xf32> to vector<64x8xf32>
    %c1_258 = arith.constant 1 : index
    %c1_259 = arith.constant 1 : index
    %c0_260 = arith.constant 0 : index
    %181 = vector.load %arg32[%c1_258, %c1_259, %c0_260] : memref<9x9x8xf32, #tpu.memory_space<vmem>>, vector<8x8x8xf32>
    %182 = vector.shape_cast %181 : vector<8x8x8xf32> to vector<64x8xf32>
    %c1_261 = arith.constant 1 : index
    %c1_262 = arith.constant 1 : index
    %c0_263 = arith.constant 0 : index
    %183 = vector.load %arg33[%c1_261, %c1_262, %c0_263] : memref<9x9x8xf32, #tpu.memory_space<vmem>>, vector<8x8x8xf32>
    %184 = vector.shape_cast %183 : vector<8x8x8xf32> to vector<64x8xf32>
    %c1_264 = arith.constant 1 : index
    %c0_265 = arith.constant 0 : index
    %c0_266 = arith.constant 0 : index
    %185 = vector.load %arg35[%c1_264, %c0_265, %c0_266] : memref<9x9x8xf32, #tpu.memory_space<vmem>>, vector<8x8x8xf32>
    %186 = vector.shape_cast %185 : vector<8x8x8xf32> to vector<64x8xf32>
    %c1_267 = arith.constant 1 : index
    %c1_268 = arith.constant 1 : index
    %c0_269 = arith.constant 0 : index
    %187 = vector.load %arg34[%c1_267, %c1_268, %c0_269] : memref<9x9x8xf32, #tpu.memory_space<vmem>>, vector<8x8x8xf32>
    %188 = vector.shape_cast %187 : vector<8x8x8xf32> to vector<64x8xf32>
    %c1_270 = arith.constant 1 : index
    %c1_271 = arith.constant 1 : index
    %c0_272 = arith.constant 0 : index
    %189 = vector.load %arg35[%c1_270, %c1_271, %c0_272] : memref<9x9x8xf32, #tpu.memory_space<vmem>>, vector<8x8x8xf32>
    %190 = vector.shape_cast %189 : vector<8x8x8xf32> to vector<64x8xf32>
    %191 = tpu.concatenate %174, %176, %178, %180, %182, %184, %186, %188, %190 in 1 : vector<64x8xf32>, vector<64x8xf32>, vector<64x8xf32>, vector<64x8xf32>, vector<64x8xf32>, vector<64x8xf32>, vector<64x8xf32>, vector<64x8xf32>, vector<64x8xf32> -> vector<64x72xf32>
    %c0_273 = arith.constant 0 : index
    %c0_274 = arith.constant 0 : index
    %192 = vector.load %arg12[%c0_273, %c0_274] : memref<72x128xf32, #tpu.memory_space<vmem>>, vector<72x128xf32>
    %cst_275 = arith.constant dense<0.000000e+00> : vector<64x128xf32>
    %193 = tpu.matmul %191, %192, %cst_275 {dimension_numbers = #tpu.dot_dimension_numbers<[1], [0], [0], [1], [0, 0, 1, 1], [], []>} : vector<64x72xf32>, vector<72x128xf32>, vector<64x128xf32> -> vector<64x128xf32>
    %c0_276 = arith.constant 0 : index
    %c0_277 = arith.constant 0 : index
    %194 = vector.load %arg13[%c0_276, %c0_277] : memref<1x128xf32, #tpu.memory_space<vmem>>, vector<1x128xf32>
    %195 = vector.broadcast %194 : vector<1x128xf32> to vector<64x128xf32>
    %196 = arith.addf %193, %195 : vector<64x128xf32>
    %cst_278 = arith.constant 0.000000e+00 : f32
    %197 = vector.broadcast %cst_278 : f32 to vector<64x128xf32>
    %198 = arith.maximumf %196, %197 : vector<64x128xf32>
    %199 = vector.extract_strided_slice %198 {offsets = [0, 0], sizes = [64, 16], strides = [1, 1]} : vector<64x128xf32> to vector<64x16xf32>
    %200 = vector.shape_cast %199 : vector<64x16xf32> to vector<8x8x16xf32>
    %c1_279 = arith.constant 1 : index
    %c1_280 = arith.constant 1 : index
    %c0_281 = arith.constant 0 : index
    %201 = vector.load %arg36[%c1_279, %c1_280, %c0_281] : memref<10x10x16xf32, #tpu.memory_space<vmem>>, vector<8x8x16xf32>
    tpu.vector_store %arg36[%c1_279, %c1_280, %c0_281], %200 {strides = array<i32>} : memref<10x10x16xf32, #tpu.memory_space<vmem>>, vector<8x8x16xf32>,
    %c0_282 = arith.constant 0 : index
    %c0_283 = arith.constant 0 : index
    %c0_284 = arith.constant 0 : index
    %202 = vector.load %arg36[%c0_282, %c0_283, %c0_284] : memref<10x10x16xf32, #tpu.memory_space<vmem>>, vector<8x8x16xf32>
    %203 = vector.shape_cast %202 : vector<8x8x16xf32> to vector<64x16xf32>
    %c0_285 = arith.constant 0 : index
    %c1_286 = arith.constant 1 : index
    %c0_287 = arith.constant 0 : index
    %204 = vector.load %arg36[%c0_285, %c1_286, %c0_287] : memref<10x10x16xf32, #tpu.memory_space<vmem>>, vector<8x8x16xf32>
    %205 = vector.shape_cast %204 : vector<8x8x16xf32> to vector<64x16xf32>
    %c0_288 = arith.constant 0 : index
    %c2_289 = arith.constant 2 : index
    %c0_290 = arith.constant 0 : index
    %206 = vector.load %arg36[%c0_288, %c2_289, %c0_290] : memref<10x10x16xf32, #tpu.memory_space<vmem>>, vector<8x8x16xf32>
    %207 = vector.shape_cast %206 : vector<8x8x16xf32> to vector<64x16xf32>
    %c1_291 = arith.constant 1 : index
    %c0_292 = arith.constant 0 : index
    %c0_293 = arith.constant 0 : index
    %208 = vector.load %arg36[%c1_291, %c0_292, %c0_293] : memref<10x10x16xf32, #tpu.memory_space<vmem>>, vector<8x8x16xf32>
    %209 = vector.shape_cast %208 : vector<8x8x16xf32> to vector<64x16xf32>
    %c1_294 = arith.constant 1 : index
    %c1_295 = arith.constant 1 : index
    %c0_296 = arith.constant 0 : index
    %210 = vector.load %arg36[%c1_294, %c1_295, %c0_296] : memref<10x10x16xf32, #tpu.memory_space<vmem>>, vector<8x8x16xf32>
    %211 = vector.shape_cast %210 : vector<8x8x16xf32> to vector<64x16xf32>
    %c1_297 = arith.constant 1 : index
    %c2_298 = arith.constant 2 : index
    %c0_299 = arith.constant 0 : index
    %212 = vector.load %arg36[%c1_297, %c2_298, %c0_299] : memref<10x10x16xf32, #tpu.memory_space<vmem>>, vector<8x8x16xf32>
    %213 = vector.shape_cast %212 : vector<8x8x16xf32> to vector<64x16xf32>
    %c2_300 = arith.constant 2 : index
    %c0_301 = arith.constant 0 : index
    %c0_302 = arith.constant 0 : index
    %214 = vector.load %arg36[%c2_300, %c0_301, %c0_302] : memref<10x10x16xf32, #tpu.memory_space<vmem>>, vector<8x8x16xf32>
    %215 = vector.shape_cast %214 : vector<8x8x16xf32> to vector<64x16xf32>
    %c2_303 = arith.constant 2 : index
    %c1_304 = arith.constant 1 : index
    %c0_305 = arith.constant 0 : index
    %216 = vector.load %arg36[%c2_303, %c1_304, %c0_305] : memref<10x10x16xf32, #tpu.memory_space<vmem>>, vector<8x8x16xf32>
    %217 = vector.shape_cast %216 : vector<8x8x16xf32> to vector<64x16xf32>
    %c2_306 = arith.constant 2 : index
    %c2_307 = arith.constant 2 : index
    %c0_308 = arith.constant 0 : index
    %218 = vector.load %arg36[%c2_306, %c2_307, %c0_308] : memref<10x10x16xf32, #tpu.memory_space<vmem>>, vector<8x8x16xf32>
    %219 = vector.shape_cast %218 : vector<8x8x16xf32> to vector<64x16xf32>
    %220 = tpu.concatenate %203, %205, %207, %209, %211, %213, %215, %217, %219 in 1 : vector<64x16xf32>, vector<64x16xf32>, vector<64x16xf32>, vector<64x16xf32>, vector<64x16xf32>, vector<64x16xf32>, vector<64x16xf32>, vector<64x16xf32>, vector<64x16xf32> -> vector<64x144xf32>
    %c0_309 = arith.constant 0 : index
    %c0_310 = arith.constant 0 : index
    %221 = vector.load %arg14[%c0_309, %c0_310] : memref<144x128xf32, #tpu.memory_space<vmem>>, vector<144x128xf32>
    %cst_311 = arith.constant dense<0.000000e+00> : vector<64x128xf32>
    %222 = tpu.matmul %220, %221, %cst_311 {dimension_numbers = #tpu.dot_dimension_numbers<[1], [0], [0], [1], [0, 0, 1, 1], [], []>} : vector<64x144xf32>, vector<144x128xf32>, vector<64x128xf32> -> vector<64x128xf32>
    %c0_312 = arith.constant 0 : index
    %c0_313 = arith.constant 0 : index
    %223 = vector.load %arg15[%c0_312, %c0_313] : memref<1x128xf32, #tpu.memory_space<vmem>>, vector<1x128xf32>
    %224 = vector.broadcast %223 : vector<1x128xf32> to vector<64x128xf32>
    %225 = arith.addf %222, %224 : vector<64x128xf32>
    %c1_314 = arith.constant 1 : index
    %c1_315 = arith.constant 1 : index
    %c0_316 = arith.constant 0 : index
    %226 = vector.load %arg32[%c1_314, %c1_315, %c0_316] : memref<9x9x8xf32, #tpu.memory_space<vmem>>, vector<8x8x8xf32>
    %227 = vector.shape_cast %226 : vector<8x8x8xf32> to vector<64x8xf32>
    %c0_317 = arith.constant 0 : index
    %c0_318 = arith.constant 0 : index
    %228 = vector.load %arg16[%c0_317, %c0_318] : memref<8x128xf32, #tpu.memory_space<vmem>>, vector<8x128xf32>
    %cst_319 = arith.constant dense<0.000000e+00> : vector<64x128xf32>
    %229 = tpu.matmul %227, %228, %cst_319 {dimension_numbers = #tpu.dot_dimension_numbers<[1], [0], [0], [1], [0, 0, 1, 1], [], []>} : vector<64x8xf32>, vector<8x128xf32>, vector<64x128xf32> -> vector<64x128xf32>
    %c0_320 = arith.constant 0 : index
    %c0_321 = arith.constant 0 : index
    %230 = vector.load %arg17[%c0_320, %c0_321] : memref<1x128xf32, #tpu.memory_space<vmem>>, vector<1x128xf32>
    %231 = vector.broadcast %230 : vector<1x128xf32> to vector<64x128xf32>
    %232 = arith.addf %229, %231 : vector<64x128xf32>
    %233 = arith.addf %225, %232 : vector<64x128xf32>
    %c0_322 = arith.constant 0 : index
    %c0_323 = arith.constant 0 : index
    %234 = vector.load %arg18[%c0_322, %c0_323] : memref<1x128xf32, #tpu.memory_space<vmem>>, vector<1x128xf32>
    %235 = vector.broadcast %234 : vector<1x128xf32> to vector<64x128xf32>
    %236 = arith.mulf %233, %235 : vector<64x128xf32>
    %c0_324 = arith.constant 0 : index
    %c0_325 = arith.constant 0 : index
    %237 = vector.load %arg19[%c0_324, %c0_325] : memref<1x128xf32, #tpu.memory_space<vmem>>, vector<1x128xf32>
    %238 = vector.broadcast %237 : vector<1x128xf32> to vector<64x128xf32>
    %239 = arith.addf %236, %238 : vector<64x128xf32>
    %cst_326 = arith.constant 0.000000e+00 : f32
    %240 = vector.broadcast %cst_326 : f32 to vector<64x128xf32>
    %241 = arith.maximumf %239, %240 : vector<64x128xf32>
    %c0_327 = arith.constant 0 : index
    %c0_328 = arith.constant 0 : index
    %242 = vector.load %arg3[%c0_327, %c0_328] : memref<64x64xf32, #tpu.memory_space<vmem>>, vector<64x64xf32>
    %cst_329 = arith.constant dense<0.000000e+00> : vector<64x128xf32>
    %243 = tpu.matmul %242, %241, %cst_329 {dimension_numbers = #tpu.dot_dimension_numbers<[1], [0], [0], [1], [0, 0, 1, 1], [], []>} : vector<64x64xf32>, vector<64x128xf32>, vector<64x128xf32> -> vector<64x128xf32>
    %244 = vector.extract_strided_slice %243 {offsets = [0, 0], sizes = [16, 16], strides = [1, 1]} : vector<64x128xf32> to vector<16x16xf32>
    %245 = vector.shape_cast %244 : vector<16x16xf32> to vector<4x4x16xf32>
    %c1_330 = arith.constant 1 : index
    %c1_331 = arith.constant 1 : index
    %c0_332 = arith.constant 0 : index
    %246 = vector.load %arg37[%c1_330, %c1_331, %c0_332] : memref<5x5x16xf32, #tpu.memory_space<vmem>>, vector<4x4x16xf32>
    tpu.vector_store %arg37[%c1_330, %c1_331, %c0_332], %245 {strides = array<i32>} : memref<5x5x16xf32, #tpu.memory_space<vmem>>, vector<4x4x16xf32>,
    %247 = vector.extract_strided_slice %243 {offsets = [16, 0], sizes = [16, 16], strides = [1, 1]} : vector<64x128xf32> to vector<16x16xf32>
    %248 = vector.shape_cast %247 : vector<16x16xf32> to vector<4x4x16xf32>
    %c1_333 = arith.constant 1 : index
    %c1_334 = arith.constant 1 : index
    %c0_335 = arith.constant 0 : index
    %249 = vector.load %arg38[%c1_333, %c1_334, %c0_335] : memref<5x5x16xf32, #tpu.memory_space<vmem>>, vector<4x4x16xf32>
    tpu.vector_store %arg38[%c1_333, %c1_334, %c0_335], %248 {strides = array<i32>} : memref<5x5x16xf32, #tpu.memory_space<vmem>>, vector<4x4x16xf32>,
    %250 = vector.extract_strided_slice %243 {offsets = [32, 0], sizes = [16, 16], strides = [1, 1]} : vector<64x128xf32> to vector<16x16xf32>
    %251 = vector.shape_cast %250 : vector<16x16xf32> to vector<4x4x16xf32>
    %c1_336 = arith.constant 1 : index
    %c1_337 = arith.constant 1 : index
    %c0_338 = arith.constant 0 : index
    %252 = vector.load %arg39[%c1_336, %c1_337, %c0_338] : memref<5x5x16xf32, #tpu.memory_space<vmem>>, vector<4x4x16xf32>
    tpu.vector_store %arg39[%c1_336, %c1_337, %c0_338], %251 {strides = array<i32>} : memref<5x5x16xf32, #tpu.memory_space<vmem>>, vector<4x4x16xf32>,
    %253 = vector.extract_strided_slice %243 {offsets = [48, 0], sizes = [16, 16], strides = [1, 1]} : vector<64x128xf32> to vector<16x16xf32>
    %254 = vector.shape_cast %253 : vector<16x16xf32> to vector<4x4x16xf32>
    %c1_339 = arith.constant 1 : index
    %c1_340 = arith.constant 1 : index
    %c0_341 = arith.constant 0 : index
    %255 = vector.load %arg40[%c1_339, %c1_340, %c0_341] : memref<5x5x16xf32, #tpu.memory_space<vmem>>, vector<4x4x16xf32>
    tpu.vector_store %arg40[%c1_339, %c1_340, %c0_341], %254 {strides = array<i32>} : memref<5x5x16xf32, #tpu.memory_space<vmem>>, vector<4x4x16xf32>,
    %c0_342 = arith.constant 0 : index
    %c0_343 = arith.constant 0 : index
    %c0_344 = arith.constant 0 : index
    %256 = vector.load %arg40[%c0_342, %c0_343, %c0_344] : memref<5x5x16xf32, #tpu.memory_space<vmem>>, vector<4x4x16xf32>
    %257 = vector.shape_cast %256 : vector<4x4x16xf32> to vector<16x16xf32>
    %c0_345 = arith.constant 0 : index
    %c1_346 = arith.constant 1 : index
    %c0_347 = arith.constant 0 : index
    %258 = vector.load %arg39[%c0_345, %c1_346, %c0_347] : memref<5x5x16xf32, #tpu.memory_space<vmem>>, vector<4x4x16xf32>
    %259 = vector.shape_cast %258 : vector<4x4x16xf32> to vector<16x16xf32>
    %c0_348 = arith.constant 0 : index
    %c1_349 = arith.constant 1 : index
    %c0_350 = arith.constant 0 : index
    %260 = vector.load %arg40[%c0_348, %c1_349, %c0_350] : memref<5x5x16xf32, #tpu.memory_space<vmem>>, vector<4x4x16xf32>
    %261 = vector.shape_cast %260 : vector<4x4x16xf32> to vector<16x16xf32>
    %c1_351 = arith.constant 1 : index
    %c0_352 = arith.constant 0 : index
    %c0_353 = arith.constant 0 : index
    %262 = vector.load %arg38[%c1_351, %c0_352, %c0_353] : memref<5x5x16xf32, #tpu.memory_space<vmem>>, vector<4x4x16xf32>
    %263 = vector.shape_cast %262 : vector<4x4x16xf32> to vector<16x16xf32>
    %c1_354 = arith.constant 1 : index
    %c1_355 = arith.constant 1 : index
    %c0_356 = arith.constant 0 : index
    %264 = vector.load %arg37[%c1_354, %c1_355, %c0_356] : memref<5x5x16xf32, #tpu.memory_space<vmem>>, vector<4x4x16xf32>
    %265 = vector.shape_cast %264 : vector<4x4x16xf32> to vector<16x16xf32>
    %c1_357 = arith.constant 1 : index
    %c1_358 = arith.constant 1 : index
    %c0_359 = arith.constant 0 : index
    %266 = vector.load %arg38[%c1_357, %c1_358, %c0_359] : memref<5x5x16xf32, #tpu.memory_space<vmem>>, vector<4x4x16xf32>
    %267 = vector.shape_cast %266 : vector<4x4x16xf32> to vector<16x16xf32>
    %c1_360 = arith.constant 1 : index
    %c0_361 = arith.constant 0 : index
    %c0_362 = arith.constant 0 : index
    %268 = vector.load %arg40[%c1_360, %c0_361, %c0_362] : memref<5x5x16xf32, #tpu.memory_space<vmem>>, vector<4x4x16xf32>
    %269 = vector.shape_cast %268 : vector<4x4x16xf32> to vector<16x16xf32>
    %c1_363 = arith.constant 1 : index
    %c1_364 = arith.constant 1 : index
    %c0_365 = arith.constant 0 : index
    %270 = vector.load %arg39[%c1_363, %c1_364, %c0_365] : memref<5x5x16xf32, #tpu.memory_space<vmem>>, vector<4x4x16xf32>
    %271 = vector.shape_cast %270 : vector<4x4x16xf32> to vector<16x16xf32>
    %c1_366 = arith.constant 1 : index
    %c1_367 = arith.constant 1 : index
    %c0_368 = arith.constant 0 : index
    %272 = vector.load %arg40[%c1_366, %c1_367, %c0_368] : memref<5x5x16xf32, #tpu.memory_space<vmem>>, vector<4x4x16xf32>
    %273 = vector.shape_cast %272 : vector<4x4x16xf32> to vector<16x16xf32>
    %274 = tpu.concatenate %257, %259, %261, %263, %265, %267, %269, %271, %273 in 1 : vector<16x16xf32>, vector<16x16xf32>, vector<16x16xf32>, vector<16x16xf32>, vector<16x16xf32>, vector<16x16xf32>, vector<16x16xf32>, vector<16x16xf32>, vector<16x16xf32> -> vector<16x144xf32>
    %c0_369 = arith.constant 0 : index
    %c0_370 = arith.constant 0 : index
    %275 = vector.load %arg20[%c0_369, %c0_370] : memref<144x128xf32, #tpu.memory_space<vmem>>, vector<144x128xf32>
    %cst_371 = arith.constant dense<0.000000e+00> : vector<16x128xf32>
    %276 = tpu.matmul %274, %275, %cst_371 {dimension_numbers = #tpu.dot_dimension_numbers<[1], [0], [0], [1], [0, 0, 1, 1], [], []>} : vector<16x144xf32>, vector<144x128xf32>, vector<16x128xf32> -> vector<16x128xf32>
    %c0_372 = arith.constant 0 : index
    %c0_373 = arith.constant 0 : index
    %277 = vector.load %arg21[%c0_372, %c0_373] : memref<1x128xf32, #tpu.memory_space<vmem>>, vector<1x128xf32>
    %278 = vector.broadcast %277 : vector<1x128xf32> to vector<16x128xf32>
    %279 = arith.addf %276, %278 : vector<16x128xf32>
    %cst_374 = arith.constant 0.000000e+00 : f32
    %280 = vector.broadcast %cst_374 : f32 to vector<16x128xf32>
    %281 = arith.maximumf %279, %280 : vector<16x128xf32>
    %282 = vector.extract_strided_slice %281 {offsets = [0, 0], sizes = [16, 32], strides = [1, 1]} : vector<16x128xf32> to vector<16x32xf32>
    %283 = vector.shape_cast %282 : vector<16x32xf32> to vector<4x4x32xf32>
    %c1_375 = arith.constant 1 : index
    %c1_376 = arith.constant 1 : index
    %c0_377 = arith.constant 0 : index
    %284 = vector.load %arg41[%c1_375, %c1_376, %c0_377] : memref<6x6x32xf32, #tpu.memory_space<vmem>>, vector<4x4x32xf32>
    tpu.vector_store %arg41[%c1_375, %c1_376, %c0_377], %283 {strides = array<i32>} : memref<6x6x32xf32, #tpu.memory_space<vmem>>, vector<4x4x32xf32>,
    %c0_378 = arith.constant 0 : index
    %c0_379 = arith.constant 0 : index
    %c0_380 = arith.constant 0 : index
    %285 = vector.load %arg41[%c0_378, %c0_379, %c0_380] : memref<6x6x32xf32, #tpu.memory_space<vmem>>, vector<4x4x32xf32>
    %286 = vector.shape_cast %285 : vector<4x4x32xf32> to vector<16x32xf32>
    %c0_381 = arith.constant 0 : index
    %c1_382 = arith.constant 1 : index
    %c0_383 = arith.constant 0 : index
    %287 = vector.load %arg41[%c0_381, %c1_382, %c0_383] : memref<6x6x32xf32, #tpu.memory_space<vmem>>, vector<4x4x32xf32>
    %288 = vector.shape_cast %287 : vector<4x4x32xf32> to vector<16x32xf32>
    %c0_384 = arith.constant 0 : index
    %c2_385 = arith.constant 2 : index
    %c0_386 = arith.constant 0 : index
    %289 = vector.load %arg41[%c0_384, %c2_385, %c0_386] : memref<6x6x32xf32, #tpu.memory_space<vmem>>, vector<4x4x32xf32>
    %290 = vector.shape_cast %289 : vector<4x4x32xf32> to vector<16x32xf32>
    %c1_387 = arith.constant 1 : index
    %c0_388 = arith.constant 0 : index
    %c0_389 = arith.constant 0 : index
    %291 = vector.load %arg41[%c1_387, %c0_388, %c0_389] : memref<6x6x32xf32, #tpu.memory_space<vmem>>, vector<4x4x32xf32>
    %292 = vector.shape_cast %291 : vector<4x4x32xf32> to vector<16x32xf32>
    %c1_390 = arith.constant 1 : index
    %c1_391 = arith.constant 1 : index
    %c0_392 = arith.constant 0 : index
    %293 = vector.load %arg41[%c1_390, %c1_391, %c0_392] : memref<6x6x32xf32, #tpu.memory_space<vmem>>, vector<4x4x32xf32>
    %294 = vector.shape_cast %293 : vector<4x4x32xf32> to vector<16x32xf32>
    %c1_393 = arith.constant 1 : index
    %c2_394 = arith.constant 2 : index
    %c0_395 = arith.constant 0 : index
    %295 = vector.load %arg41[%c1_393, %c2_394, %c0_395] : memref<6x6x32xf32, #tpu.memory_space<vmem>>, vector<4x4x32xf32>
    %296 = vector.shape_cast %295 : vector<4x4x32xf32> to vector<16x32xf32>
    %c2_396 = arith.constant 2 : index
    %c0_397 = arith.constant 0 : index
    %c0_398 = arith.constant 0 : index
    %297 = vector.load %arg41[%c2_396, %c0_397, %c0_398] : memref<6x6x32xf32, #tpu.memory_space<vmem>>, vector<4x4x32xf32>
    %298 = vector.shape_cast %297 : vector<4x4x32xf32> to vector<16x32xf32>
    %c2_399 = arith.constant 2 : index
    %c1_400 = arith.constant 1 : index
    %c0_401 = arith.constant 0 : index
    %299 = vector.load %arg41[%c2_399, %c1_400, %c0_401] : memref<6x6x32xf32, #tpu.memory_space<vmem>>, vector<4x4x32xf32>
    %300 = vector.shape_cast %299 : vector<4x4x32xf32> to vector<16x32xf32>
    %c2_402 = arith.constant 2 : index
    %c2_403 = arith.constant 2 : index
    %c0_404 = arith.constant 0 : index
    %301 = vector.load %arg41[%c2_402, %c2_403, %c0_404] : memref<6x6x32xf32, #tpu.memory_space<vmem>>, vector<4x4x32xf32>
    %302 = vector.shape_cast %301 : vector<4x4x32xf32> to vector<16x32xf32>
    %303 = tpu.concatenate %286, %288, %290, %292, %294, %296, %298, %300, %302 in 1 : vector<16x32xf32>, vector<16x32xf32>, vector<16x32xf32>, vector<16x32xf32>, vector<16x32xf32>, vector<16x32xf32>, vector<16x32xf32>, vector<16x32xf32>, vector<16x32xf32> -> vector<16x288xf32>
    %c0_405 = arith.constant 0 : index
    %c0_406 = arith.constant 0 : index
    %304 = vector.load %arg22[%c0_405, %c0_406] : memref<288x128xf32, #tpu.memory_space<vmem>>, vector<288x128xf32>
    %cst_407 = arith.constant dense<0.000000e+00> : vector<16x128xf32>
    %305 = tpu.matmul %303, %304, %cst_407 {dimension_numbers = #tpu.dot_dimension_numbers<[1], [0], [0], [1], [0, 0, 1, 1], [], []>} : vector<16x288xf32>, vector<288x128xf32>, vector<16x128xf32> -> vector<16x128xf32>
    %c0_408 = arith.constant 0 : index
    %c0_409 = arith.constant 0 : index
    %306 = vector.load %arg23[%c0_408, %c0_409] : memref<1x128xf32, #tpu.memory_space<vmem>>, vector<1x128xf32>
    %307 = vector.broadcast %306 : vector<1x128xf32> to vector<16x128xf32>
    %308 = arith.addf %305, %307 : vector<16x128xf32>
    %c1_410 = arith.constant 1 : index
    %c1_411 = arith.constant 1 : index
    %c0_412 = arith.constant 0 : index
    %309 = vector.load %arg37[%c1_410, %c1_411, %c0_412] : memref<5x5x16xf32, #tpu.memory_space<vmem>>, vector<4x4x16xf32>
    %310 = vector.shape_cast %309 : vector<4x4x16xf32> to vector<16x16xf32>
    %c0_413 = arith.constant 0 : index
    %c0_414 = arith.constant 0 : index
    %311 = vector.load %arg24[%c0_413, %c0_414] : memref<16x128xf32, #tpu.memory_space<vmem>>, vector<16x128xf32>
    %cst_415 = arith.constant dense<0.000000e+00> : vector<16x128xf32>
    %312 = tpu.matmul %310, %311, %cst_415 {dimension_numbers = #tpu.dot_dimension_numbers<[1], [0], [0], [1], [0, 0, 1, 1], [], []>} : vector<16x16xf32>, vector<16x128xf32>, vector<16x128xf32> -> vector<16x128xf32>
    %c0_416 = arith.constant 0 : index
    %c0_417 = arith.constant 0 : index
    %313 = vector.load %arg25[%c0_416, %c0_417] : memref<1x128xf32, #tpu.memory_space<vmem>>, vector<1x128xf32>
    %314 = vector.broadcast %313 : vector<1x128xf32> to vector<16x128xf32>
    %315 = arith.addf %312, %314 : vector<16x128xf32>
    %316 = arith.addf %308, %315 : vector<16x128xf32>
    %c0_418 = arith.constant 0 : index
    %c0_419 = arith.constant 0 : index
    %317 = vector.load %arg26[%c0_418, %c0_419] : memref<1x128xf32, #tpu.memory_space<vmem>>, vector<1x128xf32>
    %318 = vector.broadcast %317 : vector<1x128xf32> to vector<16x128xf32>
    %319 = arith.mulf %316, %318 : vector<16x128xf32>
    %c0_420 = arith.constant 0 : index
    %c0_421 = arith.constant 0 : index
    %320 = vector.load %arg27[%c0_420, %c0_421] : memref<1x128xf32, #tpu.memory_space<vmem>>, vector<1x128xf32>
    %321 = vector.broadcast %320 : vector<1x128xf32> to vector<16x128xf32>
    %322 = arith.addf %319, %321 : vector<16x128xf32>
    %cst_422 = arith.constant 0.000000e+00 : f32
    %323 = vector.broadcast %cst_422 : f32 to vector<16x128xf32>
    %324 = arith.maximumf %322, %323 : vector<16x128xf32>
    %cst_423 = arith.constant dense<0.000000e+00> : vector<128xf32>
    %325 = vector.multi_reduction <add>, %324, %cst_423 [0] : vector<16x128xf32> to vector<128xf32>
    %326 = vector.shape_cast %325 : vector<128xf32> to vector<1x128xf32>
    %cst_424 = arith.constant 1.600000e+01 : f32
    %327 = vector.broadcast %cst_424 : f32 to vector<1x128xf32>
    %328 = arith.divf %326, %327 : vector<1x128xf32>
    %c0_425 = arith.constant 0 : index
    %c0_426 = arith.constant 0 : index
    %329 = vector.load %arg28[%c0_425, %c0_426] : memref<128x128xf32, #tpu.memory_space<vmem>>, vector<128x128xf32>
    %cst_427 = arith.constant dense<0.000000e+00> : vector<1x128xf32>
    %330 = tpu.matmul %328, %329, %cst_427 {dimension_numbers = #tpu.dot_dimension_numbers<[1], [0], [0], [1], [0, 0, 1, 1], [], []>} : vector<1x128xf32>, vector<128x128xf32>, vector<1x128xf32> -> vector<1x128xf32>
    %c0_428 = arith.constant 0 : index
    %c0_429 = arith.constant 0 : index
    %331 = vector.load %arg29[%c0_428, %c0_429] : memref<1x128xf32, #tpu.memory_space<vmem>>, vector<1x128xf32>
    %332 = arith.addf %330, %331 : vector<1x128xf32>
    %c0_430 = arith.constant 0 : index
    %c0_431 = arith.constant 0 : index
    %c0_432 = arith.constant 0 : index
    %333 = vector.load %arg30[%c0_430, %c0_431, %c0_432] : memref<1x1x128xf32, #tpu.memory_space<vmem>>, vector<1x1x128xf32>
    %334 = vector.shape_cast %333 : vector<1x1x128xf32> to vector<1x128xf32>
    %335 = vector.shape_cast %332 : vector<1x128xf32> to vector<1x1x128xf32>
    tpu.vector_store %arg30[%c0_430, %c0_431, %c0_432], %335 {strides = array<i32>} : memref<1x1x128xf32, #tpu.memory_space<vmem>>, vector<1x1x128xf32>,
    return
  }
  func.func @transform_0(%arg0: i32) -> (i32, i32, i32, i32) {
    %c0_i32 = arith.constant 0 : i32
    %c0_i32_0 = arith.constant 0 : i32
    %c0_i32_1 = arith.constant 0 : i32
    %c0_i32_2 = arith.constant 0 : i32
    return %arg0, %c0_i32, %c0_i32_0, %c0_i32_1 : i32, i32, i32, i32
  }
  func.func @transform_1(%arg0: i32) -> (i32, i32) {
    %c0_i32 = arith.constant 0 : i32
    %c0_i32_0 = arith.constant 0 : i32
    %c0_i32_1 = arith.constant 0 : i32
    return %c0_i32, %c0_i32_0 : i32, i32
  }
  func.func @transform_2(%arg0: i32) -> (i32, i32) {
    %c0_i32 = arith.constant 0 : i32
    %c0_i32_0 = arith.constant 0 : i32
    %c0_i32_1 = arith.constant 0 : i32
    return %c0_i32, %c0_i32_0 : i32, i32
  }
  func.func @transform_3(%arg0: i32) -> (i32, i32) {
    %c0_i32 = arith.constant 0 : i32
    %c0_i32_0 = arith.constant 0 : i32
    %c0_i32_1 = arith.constant 0 : i32
    return %c0_i32, %c0_i32_0 : i32, i32
  }
  func.func @transform_4(%arg0: i32) -> (i32, i32) {
    %c0_i32 = arith.constant 0 : i32
    %c0_i32_0 = arith.constant 0 : i32
    %c0_i32_1 = arith.constant 0 : i32
    return %c0_i32, %c0_i32_0 : i32, i32
  }
  func.func @transform_5(%arg0: i32) -> (i32, i32) {
    %c0_i32 = arith.constant 0 : i32
    %c0_i32_0 = arith.constant 0 : i32
    %c0_i32_1 = arith.constant 0 : i32
    return %c0_i32, %c0_i32_0 : i32, i32
  }
  func.func @transform_6(%arg0: i32) -> (i32, i32) {
    %c0_i32 = arith.constant 0 : i32
    %c0_i32_0 = arith.constant 0 : i32
    %c0_i32_1 = arith.constant 0 : i32
    return %c0_i32, %c0_i32_0 : i32, i32
  }
  func.func @transform_7(%arg0: i32) -> (i32, i32) {
    %c0_i32 = arith.constant 0 : i32
    %c0_i32_0 = arith.constant 0 : i32
    %c0_i32_1 = arith.constant 0 : i32
    return %c0_i32, %c0_i32_0 : i32, i32
  }
  func.func @transform_8(%arg0: i32) -> (i32, i32) {
    %c0_i32 = arith.constant 0 : i32
    %c0_i32_0 = arith.constant 0 : i32
    %c0_i32_1 = arith.constant 0 : i32
    return %c0_i32, %c0_i32_0 : i32, i32
  }
  func.func @transform_9(%arg0: i32) -> (i32, i32) {
    %c0_i32 = arith.constant 0 : i32
    %c0_i32_0 = arith.constant 0 : i32
    %c0_i32_1 = arith.constant 0 : i32
    return %c0_i32, %c0_i32_0 : i32, i32
  }
  func.func @transform_10(%arg0: i32) -> (i32, i32) {
    %c0_i32 = arith.constant 0 : i32
    %c0_i32_0 = arith.constant 0 : i32
    %c0_i32_1 = arith.constant 0 : i32
    return %c0_i32, %c0_i32_0 : i32, i32
  }
  func.func @transform_11(%arg0: i32) -> (i32, i32) {
    %c0_i32 = arith.constant 0 : i32
    %c0_i32_0 = arith.constant 0 : i32
    %c0_i32_1 = arith.constant 0 : i32
    return %c0_i32, %c0_i32_0 : i32, i32
  }
  func.func @transform_12(%arg0: i32) -> (i32, i32) {
    %c0_i32 = arith.constant 0 : i32
    %c0_i32_0 = arith.constant 0 : i32
    %c0_i32_1 = arith.constant 0 : i32
    return %c0_i32, %c0_i32_0 : i32, i32
  }
  func.func @transform_13(%arg0: i32) -> (i32, i32) {
    %c0_i32 = arith.constant 0 : i32
    %c0_i32_0 = arith.constant 0 : i32
    %c0_i32_1 = arith.constant 0 : i32
    return %c0_i32, %c0_i32_0 : i32, i32
  }
  func.func @transform_14(%arg0: i32) -> (i32, i32) {
    %c0_i32 = arith.constant 0 : i32
    %c0_i32_0 = arith.constant 0 : i32
    %c0_i32_1 = arith.constant 0 : i32
    return %c0_i32, %c0_i32_0 : i32, i32
  }
  func.func @transform_15(%arg0: i32) -> (i32, i32) {
    %c0_i32 = arith.constant 0 : i32
    %c0_i32_0 = arith.constant 0 : i32
    %c0_i32_1 = arith.constant 0 : i32
    return %c0_i32, %c0_i32_0 : i32, i32
  }
  func.func @transform_16(%arg0: i32) -> (i32, i32) {
    %c0_i32 = arith.constant 0 : i32
    %c0_i32_0 = arith.constant 0 : i32
    %c0_i32_1 = arith.constant 0 : i32
    return %c0_i32, %c0_i32_0 : i32, i32
  }
  func.func @transform_17(%arg0: i32) -> (i32, i32) {
    %c0_i32 = arith.constant 0 : i32
    %c0_i32_0 = arith.constant 0 : i32
    %c0_i32_1 = arith.constant 0 : i32
    return %c0_i32, %c0_i32_0 : i32, i32
  }
  func.func @transform_18(%arg0: i32) -> (i32, i32) {
    %c0_i32 = arith.constant 0 : i32
    %c0_i32_0 = arith.constant 0 : i32
    %c0_i32_1 = arith.constant 0 : i32
    return %c0_i32, %c0_i32_0 : i32, i32
  }
  func.func @transform_19(%arg0: i32) -> (i32, i32) {
    %c0_i32 = arith.constant 0 : i32
    %c0_i32_0 = arith.constant 0 : i32
    %c0_i32_1 = arith.constant 0 : i32
    return %c0_i32, %c0_i32_0 : i32, i32
  }
  func.func @transform_20(%arg0: i32) -> (i32, i32) {
    %c0_i32 = arith.constant 0 : i32
    %c0_i32_0 = arith.constant 0 : i32
    %c0_i32_1 = arith.constant 0 : i32
    return %c0_i32, %c0_i32_0 : i32, i32
  }
  func.func @transform_21(%arg0: i32) -> (i32, i32) {
    %c0_i32 = arith.constant 0 : i32
    %c0_i32_0 = arith.constant 0 : i32
    %c0_i32_1 = arith.constant 0 : i32
    return %c0_i32, %c0_i32_0 : i32, i32
  }
  func.func @transform_22(%arg0: i32) -> (i32, i32) {
    %c0_i32 = arith.constant 0 : i32
    %c0_i32_0 = arith.constant 0 : i32
    %c0_i32_1 = arith.constant 0 : i32
    return %c0_i32, %c0_i32_0 : i32, i32
  }
  func.func @transform_23(%arg0: i32) -> (i32, i32) {
    %c0_i32 = arith.constant 0 : i32
    %c0_i32_0 = arith.constant 0 : i32
    %c0_i32_1 = arith.constant 0 : i32
    return %c0_i32, %c0_i32_0 : i32, i32
  }
  func.func @transform_24(%arg0: i32) -> (i32, i32) {
    %c0_i32 = arith.constant 0 : i32
    %c0_i32_0 = arith.constant 0 : i32
    %c0_i32_1 = arith.constant 0 : i32
    return %c0_i32, %c0_i32_0 : i32, i32
  }
  func.func @transform_25(%arg0: i32) -> (i32, i32) {
    %c0_i32 = arith.constant 0 : i32
    %c0_i32_0 = arith.constant 0 : i32
    %c0_i32_1 = arith.constant 0 : i32
    return %c0_i32, %c0_i32_0 : i32, i32
  }
  func.func @transform_26(%arg0: i32) -> (i32, i32) {
    %c0_i32 = arith.constant 0 : i32
    %c0_i32_0 = arith.constant 0 : i32
    %c0_i32_1 = arith.constant 0 : i32
    return %c0_i32, %c0_i32_0 : i32, i32
  }
  func.func @transform_27(%arg0: i32) -> (i32, i32) {
    %c0_i32 = arith.constant 0 : i32
    %c0_i32_0 = arith.constant 0 : i32
    %c0_i32_1 = arith.constant 0 : i32
    return %c0_i32, %c0_i32_0 : i32, i32
  }
  func.func @transform_28(%arg0: i32) -> (i32, i32) {
    %c0_i32 = arith.constant 0 : i32
    %c0_i32_0 = arith.constant 0 : i32
    %c0_i32_1 = arith.constant 0 : i32
    return %c0_i32, %c0_i32_0 : i32, i32
  }
  func.func @transform_29(%arg0: i32) -> (i32, i32, i32) {
    %c0_i32 = arith.constant 0 : i32
    %c0_i32_0 = arith.constant 0 : i32
    %c0_i32_1 = arith.constant 0 : i32
    return %arg0, %c0_i32, %c0_i32_0 : i32, i32, i32
  }
}

</mosaic_0001>

<bundles_post_ra>
// kernel: resnet_forward.1
= control target key start
LH: loop header
LB: loop body
LE: loop exit
PB: predicated region body
PF: predicated region fallthrough
CT: control target
= control target key end

     0   :  { %s10896_s6 = smov 1   ;;  %s10897_s10 = smov 2   ;;  %s16014_s0 = inlined_call_operand.smem [shape: u32[30], index: -1, kind: input, shape index: {}] }
   0x1   :  { %s10948_s5 = sld [smem:[%s16014_s0]]   ;;  %s10898_s14 = smov 3  }
   0x2   :  { %s10953_s9 = sld [smem:[%s16014_s0 + %s10896_s6]]   ;;  %s10899_s18 = smov 4  }
   0x3   :  { %s10958_s13 = sld [smem:[%s16014_s0 + %s10897_s10]]   ;;  %s10900_s22 = smov 5  }
   0x4   :  { %s10963_s17 = sld [smem:[%s16014_s0 + %s10898_s14]]   ;;  %s10901_s26 = smov 6  }
   0x5   :  { %s10968_s21 = sld [smem:[%s16014_s0 + %s10899_s18]]   ;;  %s10902_s30 = smov 7  }
   0x6   :  { %s10973_s25 = sld [smem:[%s16014_s0 + %s10900_s22]]   ;;  %s10903_s4 = smov 8  }
   0x7   :  { %16096 = sst [smem:[#allocation16_spill]] %s10948_s5  ;;  %s10904_s10 = smov 9  }
   0x8   :  { %s10978_s29 = sld [smem:[%s16014_s0 + %s10901_s26]]   ;;  %s10905_s15 = smov 10  }
   0x9   :  { %16097 = sst [smem:[#allocation17_spill]] %s10958_s13  ;;  %s10906_s20 = smov 11  }
   0xa   :  { %16098 = sst [smem:[#allocation18_spill]] %s10963_s17  ;;  %s10907_s26 = smov 12  }
   0xb   :  { %s10983_s3 = sld [smem:[%s16014_s0 + %s10902_s30]]   ;;  %s10908_s1 = smov 13  }
   0xc   :  { %s10988_s8 = sld [smem:[%s16014_s0 + %s10903_s4]]   ;;  %s10909_s7 = smov 14  }
   0xd   :  { %s10993_s14 = sld [smem:[%s16014_s0 + %s10904_s10]]   ;;  %s10911_s22 = smov 16  }
   0xe   :  { %s10998_s19 = sld [smem:[%s16014_s0 + %s10905_s15]]   ;;  %s10910_s15 = smov 15  }
   0xf   :  { %s11003_s24 = sld [smem:[%s16014_s0 + %s10906_s20]]   ;;  %s10912_s28 = smov 17  }
  0x10   :  { %s11008_s30 = sld [smem:[%s16014_s0 + %s10907_s26]]  }
  0x11   :  { %16099 = sst [smem:[#allocation19_spill]] %s10983_s3 }
  0x12   :  { %16100 = sst [smem:[#allocation20_spill]] %s10988_s8 }
  0x13   :  { %s11013_s6 = sld [smem:[%s16014_s0 + %s10908_s1]]  }
  0x14   :  { %s11018_s12 = sld [smem:[%s16014_s0 + %s10909_s7]]   ;;  %s10913_s7 = smov 18  }
  0x15   :  { %s11023_s20 = sld [smem:[%s16014_s0 + %s10910_s15]]   ;;  %s10914_s15 = smov 19  }
  0x16   :  { %s11028_s27 = sld [smem:[%s16014_s0 + %s10911_s22]]   ;;  %s10915_s22 = smov 20  }
  0x17   :  { %s11033_s4 = sld [smem:[%s16014_s0 + %s10912_s28]]   ;;  %s10916_s28 = smov 21  }
  0x18   :  { %s11043_s13 = sld [smem:[%s16014_s0 + %s10914_s15]]   ;;  %s10918_s15 = smov 23  }
  0x19   :  { %16101 = sst [smem:[#allocation21_spill]] %s11013_s6 }
  0x1a   :  { %16102 = sst [smem:[#allocation22_spill]] %s11018_s12 }
  0x1b   :  { %s11038_s12 = sld [smem:[%s16014_s0 + %s10913_s7]]   ;;  %s10917_s7 = smov 22  }
  0x1c   :  { %16103 = sst [smem:[#allocation23_spill]] %s11028_s27 }
  0x1d   :  { %16104 = sst [smem:[#allocation24_spill]] %s11033_s4 }
  0x1e   :  { %16106 = sst [smem:[#allocation26_spill]] %s11043_s13 }
  0x1f   :  { %s11048_s27 = sld [smem:[%s16014_s0 + %s10915_s22]]   ;;  %s10919_s22 = smov 24  }
  0x20   :  { %s11053_s4 = sld [smem:[%s16014_s0 + %s10916_s28]]   ;;  %s10920_s28 = smov 25  }
  0x21   :  { %16105 = sst [smem:[#allocation25_spill]] %s11038_s12 }
  0x22   :  { %s11058_s12 = sld [smem:[%s16014_s0 + %s10917_s7]]   ;;  %s10921_s7 = smov 26  }
  0x23   :  { %s11063_s13 = sld [smem:[%s16014_s0 + %s10918_s15]]   ;;  %s10922_s15 = smov 27  }
  0x25   :  { %16107 = sst [smem:[#allocation27_spill]] %s11048_s27 }
  0x26   :  { %16108 = sst [smem:[#allocation28_spill]] %s11053_s4 }
  0x27   :  { %s11068_s27 = sld [smem:[%s16014_s0 + %s10919_s22]]   ;;  %s10923_s22 = smov 28  }
  0x28   :  { %16109 = sst [smem:[#allocation29_spill]] %s11058_s12 }
  0x29   :  { %16110 = sst [smem:[#allocation30_spill]] %s11063_s13 }
  0x2a   :  { %s11073_s4 = sld [smem:[%s16014_s0 + %s10920_s28]]   ;;  %s10924_s28 = smov 29  }
  0x2b   :  { %s11078_s12 = sld [smem:[%s16014_s0 + %s10921_s7]]  }
  0x2c   :  { %s11083_s13 = sld [smem:[%s16014_s0 + %s10922_s15]]  }
  0x2d   :  { %16111 = sst [smem:[#allocation31_spill]] %s11068_s27 }
  0x2e   :  { %s11088_s27 = sld [smem:[%s16014_s0 + %s10923_s22]]  }
  0x30   :  { %16112 = sst [smem:[#allocation32_spill]] %s11073_s4 }
  0x31   :  { %s11093_s4 = sld [smem:[%s16014_s0 + %s10924_s28]]  }
  0x32   :  { %64 = vsyncpa [#allocation14], 0 }
  0x33   :  { %66 = vsyncpa [#allocation14 + $0x1], 0  ;;  %s11095_s7 = smov 0   ;;  %s11097_s10 = smov 0  }
  0x34   :  { %s11099_s11 = smov 0   ;;  %s11101_s15 = smov 0  }
  0x35 LB: > { %s16113_s8 = sld [smem:[#allocation20_spill]]  ;;  %s16114_s6 = sld [smem:[#allocation21_spill]]  ;;  %s10894_s15 = sphi %s11101_s15, %s16202_s15   ;;  %s10890_s11 = sphi %s11099_s11, %s16204_s11   ;;  %s10886_s10 = sphi %s11097_s10, %s16206_s10   ;;  %s10882_s7 = sphi %s11095_s7, %s16205_s7  }
  0x36   : > { %s16115_s3 = sld [smem:[#allocation19_spill]]  ;;  %s16116_s17 = sld [smem:[#allocation18_spill]] }
  0x37   : > { %16117 = sst [smem:[#allocation33_spill]] %s10890_s11  ;;  %s11116_s0 = sadd.s32 4294967295, %s10894_s15  }
  0x38   : > { %s9558_s16 = sadd.s32 4294967294, %s10894_s15   ;;  %s11120_s18 = sadd.s32 1, %s10894_s15  }
  0x39   : > { %16118 = sst [smem:[#allocation34_spill]] %s11120_s18  ;;  %s693_s22 = sadd.s32 1, %s10890_s11 }
  0x3a   : > { %s690_s23 = ssub.s32 %s10894_s15, %s11120_s18  ;;  %p703_p0 = scmp.ne.s32.totalorder %s10890_s11, %s10886_s10 }
  0x3b   : > { %p691_p1 = scmp.eq.s32.totalorder %s690_s23, 0  ;;  %p704_p2 = scmp.eq.s32.totalorder %s11116_s0, 1 }
  0x3c   : > { %p709_p3 = scmp.ne.s32.totalorder %s10886_s10, %s10882_s7  ;;  %p710_p4 = scmp.eq.s32.totalorder %s9558_s16, 1 }
  0x3d   : > { %s11131_s26 = scalar_select %p691_p1, %s10890_s11, %s693_s22  }
  0x3e   : > { %p11133_p5 = por %p704_p2, %p703_p0  ;;  %p11137_p6 = por %p710_p4, %p709_p3 }
  0x3f   : > { %16119 = sst [smem:[#allocation35_spill]] %s11131_s26  ;;  %p9561_p7 = scmp.ge.s32.totalorder %s10894_s15, 1 }
  0x40   : > { %p820_p8 = scmp.lt.s32.totalorder %s10894_s15, 3 }
  0x42   : > { %p821_p9 = pnand %p9561_p7, %p820_p8 }
  0x44   : > { %824 = sbr.rel (%p821_p9) target bundleno = 4314 (0x10da), region = 136 }
  0x4b   : > { %s16122_s5 = sld [smem:[#allocation16_spill]]  ;;  %p895_p10 = scmp.lt.s32.totalorder %s11116_s0, 1  ;;  %vm1319_vm0 = vcmask 1045504   ;;  %vm1238_vm1 = vcmask 1046528   ;;  %v2456_v24 = vld [vmem:[%s16116_s17] sm:$0xff]  ;;  %v2457_v25 = vld [vmem:[%s16116_s17 + $0x8] sm:$0xff] }
  0x4c   : > { %s16019_s23 = smov 24   ;;  %v10268_v26 = vpack.c.bf16 %v2457_v25, %v2456_v24  ;;  %v2458_v28 = vld [vmem:[%s16116_s17 + $0x10] sm:$0xff]  ;;  %v2459_v29 = vld [vmem:[%s16116_s17 + $0x18] sm:$0xff]  ;;  %v2460_v34 = vld [vmem:[%s16116_s17 + $0x20] sm:$0xff]  ;;  %s16125_s26 = smov 24   ;;  %vm900_vm2 = vcmask 64512  }
  0x4d   : > { %s896_s2 = scalar_select %p895_p10, %s11116_s0, 1  ;;  %v10272_v30 = vpack.c.bf16 %v2459_v29, %v2458_v28  ;;  %v2461_v35 = vld [vmem:[%s16116_s17 + $0x28] sm:$0xff]  ;;  %v2462_v39 = vld [vmem:[%s16116_s17 + $0x30] sm:$0xff]  ;;  %v2463_v40 = vld [vmem:[%s16116_s17 + $0x38] sm:$0xff]  ;;  %vm1038_vm3 = vcmask 130048   ;;  %vm2258_vm4 = vcmask 195584  }
  0x4e   : > { %10269 = vmatprep.subr.bf16.mxu0 %v10268_v26  ;;  %v10276_v36 = vpack.c.bf16 %v2461_v35, %v2460_v34  ;;  %v10280_v42 = vpack.c.bf16 %v2463_v40, %v2462_v39  ;;  %v2464_v44 = vld [vmem:[%s16116_s17 + $0x40] sm:$0xff]  ;;  %s16126_s11 = smov 32   ;;  %s16127_s17 = smov 40   ;;  %vm2291_vm5 = vcmask 261120   ;;  %vm2324_vm6 = vcmask 326656  }
  0x4f   : > { %s10524_s16 = smul.u32 432, %s896_s2  ;;  %s16021_s2 = smov 16   ;;  %10271 = vmatpush3.bf16.msra.mxu0 %v10268_v26  ;;  %vm2357_vm7 = vcmask 392192   ;;  %vm2390_vm8 = vcmask 457728   ;;  %vm2423_vm9 = vcmask 523264   ;;  %vm2472_vm10 = vcmask 588800  }
  0x50   : > { %10273 = vmatprep.subr.bf16.mxu0 %v10272_v30  ;;  %s16130_s18 = smov 64   ;;  %vm909_vm11 = vcmask 57344   ;;  %vm903_vm12 = vcmask 58368   ;;  %vm1045_vm13 = vcmask 122880   ;;  %vm1040_vm14 = vcmask 123904  }
  0x51   : > { %s11146_s22 = scalar_lea.vmem %s16122_s5, %s10524_s16  ;;  %s16023_s16 = smov 8   ;;  %vm8084_vm15 = vcmask 654336  }
  0x52   : > { %v11149_v0 = vld [vmem:[%s11146_s22 + $0x20] sm:$0xff]  ;;  %v11152_v1 = vld [vmem:[%s11146_s22 + $0x18] sm:$0xff]  ;;  %v11162_v3 = vld [vmem:[%s11146_s22 + $0x8] sm:$0xff]  ;;  %s16124_s5 = smov 8  }
  0x53   : > { %v11155_v2 = vld [vmem:[%s11146_s22] sm:$0xff]  ;;  %1620 = vrot.lane.b32.xlu1 %v11149_v0, %s16019_s23  ;;  %1618 = vrot.lane.b32.xlu0 %v11152_v1, %s16019_s23  ;;  %v1138_v6 = vld [vmem:[%s11146_s22 + $0x10] sm:$0x3]  ;;  %v1321_v7 = vrot.slane %v11162_v3, 2  ;;  %v1240_v8 = vrot.slane %v11162_v3, 1  ;;  %v1244_v15 = vrot.slane %v11152_v1, 1 }
  0x54   : > { %v1320_v4 = vrot.slane %v11155_v2, 2  ;;  %v1239_v5 = vrot.slane %v11155_v2, 1  ;;  %v1323_v9 = vrot.slane %v1138_v6, 2  ;;  %v1242_v10 = vrot.slane %v1138_v6, 1  ;;  %v1141_v17 = vld [vmem:[%s11146_s22 + $0x28] sm:$0x3]  ;;  %10275 = vmatpush3.bf16.msra.mxu0 %v10272_v30 }
  0x55   : > { %v1245_v16 = vrot.slane %v11149_v0, 1  ;;  %v1325_v19 = vrot.slane %v11152_v1, 2  ;;  %v1326_v20 = vrot.slane %v11149_v0, 2  ;;  %v1247_v21 = vrot.slane %v1141_v17, 1  ;;  %s16025_s23 = smov 32   ;;  %v11196_v31 = vld [vmem:[%s11146_s22 + $0x30] sm:$0xff]  ;;  %10277 = vmatprep.subr.bf16.mxu0 %v10276_v36 }
  0x56   : > { %v1322_v11 = vsel %vm1319_vm0, %v1320_v4, %v1321_v7  ;;  %v1241_v12 = vsel %vm1238_vm1, %v1239_v5, %v1240_v8  ;;  %v1324_v13 = vsel %vm1319_vm0, %v1321_v7, %v1323_v9  ;;  %v1243_v14 = vsel %vm1238_vm1, %v1240_v8, %v1242_v10  ;;  %v11200_v33 = vld [vmem:[%s11146_s22 + $0x38] sm:$0xff]  ;;  %v1144_v43 = vld [vmem:[%s11146_s22 + $0x40] sm:$0x3]  ;;  %v11237_v52 = vld [vmem:[%s11146_s22 + $0x48] sm:$0xff] }
  0x57   : > { %1522 = vrot.lane.b32.xlu1 %v1322_v11, %s16021_s2  ;;  %1426 = vrot.lane.b32.xlu0 %v1241_v12, %s16023_s16  ;;  %v1246_v18 = vsel %vm1238_vm1, %v1244_v15, %v1245_v16  ;;  %v1327_v22 = vsel %vm1319_vm0, %v1325_v19, %v1326_v20  ;;  %v1248_v23 = vsel %vm1238_vm1, %v1245_v16, %v1247_v21  ;;  %v1328_v27 = vrot.slane %v1141_v17, 2  ;;  %v11240_v53 = vld [vmem:[%s11146_s22 + $0x50] sm:$0xff]  ;;  %v1147_v57 = vld [vmem:[%s11146_s22 + $0x58] sm:$0x3] }
  0x58   : > { %v1249_v37 = vrot.slane %v11196_v31, 1  ;;  %v1250_v38 = vrot.slane %v11200_v33, 1  ;;  %10279 = vmatpush3.bf16.msra.mxu0 %v10276_v36  ;;  %v1330_v45 = vrot.slane %v11196_v31, 2  ;;  %v1331_v46 = vrot.slane %v11200_v33, 2  ;;  %v11272_v5 = vld [vmem:[%s11146_s22 + $0x60] sm:$0xff]  ;;  %v11275_v6 = vld [vmem:[%s11146_s22 + $0x68] sm:$0xff] }
  0x59   : > { %v1329_v32 = vsel %vm1319_vm0, %v1326_v20, %v1328_v27  ;;  %10281 = vmatprep.subr.bf16.mxu0 %v10280_v42  ;;  %v1252_v47 = vrot.slane %v1144_v43, 1  ;;  %v1333_v50 = vrot.slane %v1144_v43, 2  ;;  %v1254_v54 = vrot.slane %v11237_v52, 1  ;;  %v1150_v10 = vld [vmem:[%s11146_s22 + $0x70] sm:$0x3]  ;;  %v11309_v20 = vld [vmem:[%s11146_s22 + $0x78] sm:$0xff] }
  0x5a   : > { %v1251_v41 = vsel %vm1238_vm1, %v1249_v37, %v1250_v38  ;;  %v1332_v48 = vsel %vm1319_vm0, %v1330_v45, %v1331_v46  ;;  %v1255_v55 = vrot.slane %v11240_v53, 1  ;;  %v1335_v58 = vrot.slane %v11237_v52, 2 }
  0x5b   : > { %1524 = vrot.lane.b32.xlu1 %v1324_v13, %s16021_s2  ;;  %1428 = vrot.lane.b32.xlu0 %v1243_v14, %s16023_s16  ;;  %s16027_s2 = smov 40   ;;  %v1253_v49 = vsel %vm1238_vm1, %v1250_v38, %v1252_v47  ;;  %v1334_v51 = vsel %vm1319_vm0, %v1331_v46, %v1333_v50  ;;  %v1336_v59 = vrot.slane %v11240_v53, 2  ;;  %v1257_v60 = vrot.slane %v1147_v57, 1 }
  0x5c   : > { %10283 = vmatpush3.bf16.msra.mxu0 %v10280_v42  ;;  %v1256_v56 = vsel %vm1238_vm1, %v1254_v54, %v1255_v55  ;;  %v1338_v63 = vrot.slane %v1147_v57, 2  ;;  %v1259_v7 = vrot.slane %v11272_v5, 1  ;;  %v1260_v8 = vrot.slane %v11275_v6, 1 }
  0x5d   : > { %9961 = vmatprep.subr.mxu0 %v2464_v44  ;;  %v1337_v61 = vsel %vm1319_vm0, %v1335_v58, %v1336_v59  ;;  %v1258_v62 = vsel %vm1238_vm1, %v1255_v55, %v1257_v60  ;;  %v1340_v11 = vrot.slane %v11272_v5, 2  ;;  %v1341_v12 = vrot.slane %v11275_v6, 2  ;;  %v11353_v55 = vld [vmem:[%s11146_s22 + $0x90] sm:$0xff]  ;;  %v1155_v58 = vld [vmem:[%s11146_s22 + $0x98] sm:$0xff] }
  0x5e   : > { %v1339_v4 = vsel %vm1319_vm0, %v1336_v59, %v1338_v63  ;;  %v1261_v9 = vsel %vm1238_vm1, %v1259_v7, %v1260_v8  ;;  %v1262_v13 = vrot.slane %v1150_v10, 1  ;;  %v1343_v16 = vrot.slane %v1150_v10, 2 }
  0x5f   : > { %1430 = vrot.lane.b32.xlu1 %v1246_v18, %s16023_s16  ;;  %1714 = vrot.lane.b32.xlu0 %v1246_v18, %s16025_s23  ;;  %s16123_s16 = smov 16   ;;  %v1342_v14 = vsel %vm1319_vm0, %v1340_v11, %v1341_v12  ;;  %v1264_v24 = vrot.slane %v11309_v20, 1  ;;  %v1345_v34 = vrot.slane %v11309_v20, 2  ;;  %v1269_v63 = vrot.slane %v11353_v55, 1 }
  0x60   : > { %9962 = vmatpush3.msra.mxu0 %v2464_v44  ;;  %v1263_v15 = vsel %vm1238_vm1, %v1260_v8, %v1262_v13  ;;  %v1344_v17 = vsel %vm1319_vm0, %v1341_v12, %v1343_v16 }
  0x63   : > { %1810 = vrot.lane.b32.xlu1 %v1327_v22, %s16027_s2  ;;  %1716 = vrot.lane.b32.xlu0 %v1248_v23, %s16025_s23  ;;  %s16030_s23 = smov 48  }
  0x67   : > { %1526 = vrot.lane.b32.xlu1 %v1327_v22, %s16123_s16  ;;  %1432 = vrot.lane.b32.xlu0 %v1248_v23, %s16124_s5  ;;  %v1152_v23 = vld [vmem:[%s11146_s22 + $0x80] sm:$0xff] }
  0x68   : > { %v1265_v25 = vrot.slane %v1152_v23, 1  ;;  %v1346_v35 = vrot.slane %v1152_v23, 2 }
  0x6a   : > { %v1266_v28 = vsel %vm1238_vm1, %v1264_v24, %v1265_v25  ;;  %v1347_v39 = vsel %vm1319_vm0, %v1345_v34, %v1346_v35 }
  0x6b   : > { %1906 = vrot.lane.b32.xlu1 %v11196_v31, %s16030_s23  ;;  %1812 = vrot.lane.b32.xlu0 %v1329_v32, %s16027_s2  ;;  %s16033_s2 = smov 56  }
  0x6f   : > { %1622 = vrot.lane.b32.xlu1 %v11196_v31, %s16125_s26  ;;  %1528 = vrot.lane.b32.xlu0 %v1329_v32, %s16123_s16  ;;  %v1153_v32 = vld [vmem:[%s11146_s22 + $0x88] sm:$0x3] }
  0x70   : > { %v1267_v36 = vrot.slane %v1153_v32, 1  ;;  %v1348_v43 = vrot.slane %v1153_v32, 2 }
  0x72   : > { %v1268_v40 = vsel %vm1238_vm1, %v1265_v25, %v1267_v36  ;;  %v1349_v46 = vsel %vm1319_vm0, %v1346_v35, %v1348_v43 }
  0x73   : > { %2002 = vrot.lane.b32.xlu1 %v1251_v41, %s16033_s2  ;;  %1908 = vrot.lane.b32.xlu0 %v11200_v33, %s16030_s23  ;;  %s16035_s23 = smov 64  }
  0x77   : > { %1718 = vrot.lane.b32.xlu1 %v1251_v41, %s16126_s11  ;;  %1624 = vrot.lane.b32.xlu0 %v11200_v33, %s16125_s26 }
  0x7b   : > { %2098 = vrot.lane.b32.xlu1 %v1332_v48, %s16035_s23  ;;  %2004 = vrot.lane.b32.xlu0 %v1253_v49, %s16033_s2  ;;  %s16128_s2 = smov 48  }
  0x7f   : > { %1720 = vrot.lane.b32.xlu1 %v1253_v49, %s16126_s11  ;;  %1434 = vrot.lane.b32.xlu0 %v1251_v41, %s16124_s5 }
  0x83   : > { %2100 = vrot.lane.b32.xlu1 %v1334_v51, %s16035_s23  ;;  %1814 = vrot.lane.b32.xlu0 %v1332_v48, %s16127_s17  ;;  %s16129_s23 = smov 56  }
  0x87   : > { %1530 = vrot.lane.b32.xlu1 %v1332_v48, %s16123_s16  ;;  %1436 = vrot.lane.b32.xlu0 %v1253_v49, %s16124_s5 }
  0x8b   : > { %1910 = vrot.lane.b32.xlu1 %v11237_v52, %s16128_s2  ;;  %1816 = vrot.lane.b32.xlu0 %v1334_v51, %s16127_s17 }
  0x8f   : > { %1626 = vrot.lane.b32.xlu1 %v11237_v52, %s16125_s26  ;;  %1532 = vrot.lane.b32.xlu0 %v1334_v51, %s16123_s16 }
  0x93   : > { %2006 = vrot.lane.b32.xlu1 %v1256_v56, %s16129_s23  ;;  %1912 = vrot.lane.b32.xlu0 %v11240_v53, %s16128_s2 }
  0x97   : > { %1722 = vrot.lane.b32.xlu1 %v1256_v56, %s16126_s11  ;;  %1628 = vrot.lane.b32.xlu0 %v11240_v53, %s16125_s26 }
  0x9b   : > { %2102 = vrot.lane.b32.xlu1 %v1337_v61, %s16130_s18  ;;  %2008 = vrot.lane.b32.xlu0 %v1258_v62, %s16129_s23 }
  0x9f   : > { %1724 = vrot.lane.b32.xlu1 %v1258_v62, %s16126_s11  ;;  %1438 = vrot.lane.b32.xlu0 %v1256_v56, %s16124_s5 }
  0xa3   : > { %2104 = vrot.lane.b32.xlu1 %v1339_v4, %s16130_s18  ;;  %1818 = vrot.lane.b32.xlu0 %v1337_v61, %s16127_s17 }
  0xa7   : > { %1534 = vrot.lane.b32.xlu1 %v1337_v61, %s16123_s16  ;;  %1440 = vrot.lane.b32.xlu0 %v1258_v62, %s16124_s5 }
  0xab   : > { %1914 = vrot.lane.b32.xlu1 %v11272_v5, %s16128_s2  ;;  %1820 = vrot.lane.b32.xlu0 %v1339_v4, %s16127_s17 }
  0xaf   : > { %1630 = vrot.lane.b32.xlu1 %v11272_v5, %s16125_s26  ;;  %1536 = vrot.lane.b32.xlu0 %v1339_v4, %s16123_s16  ;;  %v1270_v4 = vrot.slane %v1155_v58, 1 }
  0xb1   : > { %v1271_v11 = vsel %vm1238_vm1, %v1269_v63, %v1270_v4 }
  0xb3   : > { %2010 = vrot.lane.b32.xlu1 %v1261_v9, %s16129_s23  ;;  %1916 = vrot.lane.b32.xlu0 %v11275_v6, %s16128_s2 }
  0xb7   : > { %1726 = vrot.lane.b32.xlu1 %v1261_v9, %s16126_s11  ;;  %1632 = vrot.lane.b32.xlu0 %v11275_v6, %s16125_s26 }
  0xbb   : > { %2106 = vrot.lane.b32.xlu1 %v1342_v14, %s16130_s18  ;;  %2012 = vrot.lane.b32.xlu0 %v1263_v15, %s16129_s23 }
  0xbf   : > { %1728 = vrot.lane.b32.xlu1 %v1263_v15, %s16126_s11  ;;  %1442 = vrot.lane.b32.xlu0 %v1261_v9, %s16124_s5 }
  0xc3   : > { %2108 = vrot.lane.b32.xlu1 %v1344_v17, %s16130_s18  ;;  %1822 = vrot.lane.b32.xlu0 %v1342_v14, %s16127_s17 }
  0xc5   : > { %v11304_v18 = vpop.permute.xlu1 %1620  ;;  %v1619_v19 = vpop.permute.xlu0 %1618 }
  0xc7   : > { %1538 = vrot.lane.b32.xlu1 %v1342_v14, %s16123_s16  ;;  %1444 = vrot.lane.b32.xlu0 %v1263_v15, %s16124_s5  ;;  %v1156_v15 = vld [vmem:[%s11146_s22 + $0xa0] sm:$0x3] }
  0xc8   : > { %v1353_v34 = vrot.slane %v1156_v15, 2 }
  0xc9   : > { %v1523_v21 = vpop.permute.xlu1 %1522  ;;  %v1427_v22 = vpop.permute.xlu0 %1426 }
  0xca   : > { %v2194_v49 = vsel %vm900_vm2, %v11155_v2, %v1427_v22  ;;  %v1351_v22 = vrot.slane %v1155_v58, 2 }
  0xcb   : > { %1918 = vrot.lane.b32.xlu1 %v11309_v20, %s16128_s2  ;;  %1824 = vrot.lane.b32.xlu0 %v1344_v17, %s16127_s17  ;;  %v2226_v54 = vsel %vm1038_vm3, %v2194_v49, %v1523_v21  ;;  %v1350_v21 = vrot.slane %v11353_v55, 2 }
  0xcc   : > { %v2259_v2 = vsel %vm2258_vm4, %v2226_v54, %v1619_v19  ;;  %v1158_v54 = vld [vmem:[%s11146_s22 + $0xb0] sm:$0xff] }
  0xcd   : > { %v11316_v26 = vpop.permute.xlu1 %1524  ;;  %v1429_v27 = vpop.permute.xlu0 %1428 }
  0xce   : > { %v2195_v60 = vsel %vm900_vm2, %v11162_v3, %v1429_v27  ;;  %v1352_v27 = vsel %vm1319_vm0, %v1350_v21, %v1351_v22 }
  0xcf   : > { %1634 = vrot.lane.b32.xlu1 %v11309_v20, %s16125_s26  ;;  %1540 = vrot.lane.b32.xlu0 %v1344_v17, %s16123_s16  ;;  %v2227_v3 = vsel %vm1038_vm3, %v2195_v60, %v11316_v26 }
  0xd0   : > { %v2260_v12 = vsel %vm2258_vm4, %v2227_v3, %v11304_v18 }
  0xd1   : > { %v11322_v29 = vpop.permute.xlu1 %1430  ;;  %v1715_v30 = vpop.permute.xlu0 %1714 }
  0xd2   : > { %v2292_v59 = vsel %vm2291_vm5, %v2259_v2, %v1715_v30  ;;  %v1275_v2 = vrot.slane %v1158_v54, 1 }
  0xd3   : > { %2014 = vrot.lane.b32.xlu1 %v1266_v28, %s16129_s23  ;;  %1920 = vrot.lane.b32.xlu0 %v1152_v23, %s16128_s2 }
  0xd5   : > { %v1811_v37 = vpop.permute.xlu1 %1810  ;;  %v1717_v38 = vpop.permute.xlu0 %1716 }
  0xd6   : > { %v2325_v61 = vsel %vm2324_vm6, %v2292_v59, %v1811_v37  ;;  %v2293_v16 = vsel %vm2291_vm5, %v2260_v12, %v1717_v38  ;;  %v1354_v37 = vsel %vm1319_vm0, %v1351_v22, %v1353_v34 }
  0xd7   : > { %1730 = vrot.lane.b32.xlu1 %v1266_v28, %s16126_s11  ;;  %1636 = vrot.lane.b32.xlu0 %v1152_v23, %s16125_s26  ;;  %v1272_v23 = vrot.slane %v1156_v15, 1 }
  0xd9   : > { %v11332_v41 = vpop.permute.xlu1 %1526  ;;  %v11334_v42 = vpop.permute.xlu0 %1432 }
  0xdb   : > { %2110 = vrot.lane.b32.xlu1 %v1347_v39, %s16130_s18  ;;  %2016 = vrot.lane.b32.xlu0 %v1268_v40, %s16129_s23 }
  0xdd   : > { %v1907_v44 = vpop.permute.xlu1 %1906  ;;  %v1813_v45 = vpop.permute.xlu0 %1812 }
  0xde   : > { %v2358_v62 = vsel %vm2357_vm7, %v2325_v61, %v1907_v44  ;;  %v2326_v17 = vsel %vm2324_vm6, %v2293_v16, %v1813_v45  ;;  %v2196_v44 = vsel %vm900_vm2, %v11152_v1, %v11322_v29 }
  0xdf   : > { %1732 = vrot.lane.b32.xlu1 %v1268_v40, %s16126_s11  ;;  %1446 = vrot.lane.b32.xlu0 %v1266_v28, %s16124_s5  ;;  %v1273_v28 = vsel %vm1238_vm1, %v1270_v4, %v1272_v23  ;;  %v2228_v45 = vsel %vm1038_vm3, %v2196_v44, %v11332_v41  ;;  %v1161_v44 = vld [vmem:[%s11146_s22 + $0xc8] sm:$0xff] }
  0xe1   : > { %v11341_v47 = vpop.permute.xlu1 %1622  ;;  %v11343_v48 = vpop.permute.xlu0 %1528 }
  0xe2   : > { %v2261_v49 = vsel %vm2258_vm4, %v2228_v45, %v11341_v47 }
  0xe3   : > { %2112 = vrot.lane.b32.xlu1 %v1349_v46, %s16130_s18  ;;  %1826 = vrot.lane.b32.xlu0 %v1347_v39, %s16127_s17 }
  0xe5   : > { %v2003_v50 = vpop.permute.xlu1 %2002  ;;  %v1909_v51 = vpop.permute.xlu0 %1908 }
  0xe6   : > { %v2391_v7 = vsel %vm2390_vm8, %v2358_v62, %v2003_v50  ;;  %v2359_v19 = vsel %vm2357_vm7, %v2326_v17, %v1909_v51 }
  0xe7   : > { %1542 = vrot.lane.b32.xlu1 %v1347_v39, %s16123_s16  ;;  %1448 = vrot.lane.b32.xlu0 %v1268_v40, %s16124_s5 }
  0xe9   : > { %v11356_v56 = vpop.permute.xlu1 %1718  ;;  %v11358_v57 = vpop.permute.xlu0 %1624 }
  0xea   : > { %v2294_v1 = vsel %vm2291_vm5, %v2261_v49, %v11356_v56  ;;  %v2197_v56 = vsel %vm900_vm2, %v11149_v0, %v11334_v42  ;;  %v1159_v0 = vld [vmem:[%s11146_s22 + $0xb8] sm:$0x3]  ;;  %v1280_v49 = vrot.slane %v1161_v44, 1 }
  0xeb   : > { %1922 = vrot.lane.b32.xlu1 %v11353_v55, %s16128_s2  ;;  %1828 = vrot.lane.b32.xlu0 %v1349_v46, %s16127_s17  ;;  %v2229_v62 = vsel %vm1038_vm3, %v2197_v56, %v11343_v48  ;;  %v1358_v22 = vrot.slane %v1159_v0, 2  ;;  %v1361_v56 = vrot.slane %v1161_v44, 2 }
  0xec   : > { %v2262_v4 = vsel %vm2258_vm4, %v2229_v62, %v11358_v57  ;;  %v1277_v57 = vrot.slane %v1159_v0, 1 }
  0xed   : > { %v2099_v8 = vpop.permute.xlu1 %2098  ;;  %v2005_v9 = vpop.permute.xlu0 %2004 }
  0xee   : > { %v2424_v10 = vsel %vm2423_vm9, %v2391_v7, %v2099_v8  ;;  %v2392_v18 = vsel %vm2390_vm8, %v2359_v19, %v2005_v9  ;;  %v1278_v17 = vsel %vm1238_vm1, %v1275_v2, %v1277_v57 }
  0xef   : > { %1638 = vrot.lane.b32.xlu1 %v11353_v55, %s16125_s26  ;;  %1544 = vrot.lane.b32.xlu0 %v1349_v46, %s16123_s16  ;;  %v11422_v46 = vld [vmem:[%s11146_s22 + $0xa8] sm:$0xff] }
  0xf0   : > { %9963 = vmatprep.mubr.msk.f32.mxu0 %vm2472_vm10, %v2424_v10  ;;  %v1274_v47 = vrot.slane %v11422_v46, 1  ;;  %v1355_v3 = vrot.slane %v11422_v46, 2  ;;  %v1356_v10 = vrot.slane %v1158_v54, 2 }
  0xf1   : > { %v11381_v13 = vpop.permute.xlu1 %1720  ;;  %v11383_v14 = vpop.permute.xlu0 %1434 }
  0xf2   : > { %v1276_v63 = vsel %vm1238_vm1, %v1274_v47, %v1275_v2  ;;  %v2295_v42 = vsel %vm2291_vm5, %v2262_v4, %v11381_v13  ;;  %v1357_v13 = vsel %vm1319_vm0, %v1355_v3, %v1356_v10  ;;  %v2198_v34 = vsel %vm900_vm2, %v11196_v31, %v11383_v14 }
  0xf3   : > { %2018 = vrot.lane.b32.xlu1 %v1271_v11, %s16129_s23  ;;  %1924 = vrot.lane.b32.xlu0 %v1155_v58, %s16128_s2 }
  0xf5   : > { %v2101_v24 = vpop.permute.xlu1 %2100  ;;  %v1815_v25 = vpop.permute.xlu0 %1814 }
  0xf6   : > { %v2425_v26 = vsel %vm2423_vm9, %v2392_v18, %v2101_v24  ;;  %v2327_v29 = vsel %vm2324_vm6, %v2294_v1, %v1815_v25  ;;  %v1359_v24 = vsel %vm1319_vm0, %v1356_v10, %v1358_v22 }
  0xf7   : > { %1734 = vrot.lane.b32.xlu1 %v1271_v11, %s16126_s11  ;;  %1640 = vrot.lane.b32.xlu0 %v1155_v58, %s16125_s26 }
  0xf8   : > { %9964 = vmatmul.mubr.msk.f32.vlgmr.msra.gmra.mrb[0].mxu0 %vm2472_vm10, %v2425_v26 }
  0xf9   : > { %v11399_v30 = vpop.permute.xlu1 %1530  ;;  %v11401_v32 = vpop.permute.xlu0 %1436 }
  0xfb   : > { %2114 = vrot.lane.b32.xlu1 %v1352_v27, %s16130_s18  ;;  %2020 = vrot.lane.b32.xlu0 %v1273_v28, %s16129_s23 }
  0xfd   : > { %v1911_v35 = vpop.permute.xlu1 %1910  ;;  %v1817_v36 = vpop.permute.xlu0 %1816 }
  0xfe   : > { %v2360_v41 = vsel %vm2357_vm7, %v2327_v29, %v1911_v35  ;;  %v2328_v9 = vsel %vm2324_vm6, %v2295_v42, %v1817_v36  ;;  %v2230_v35 = vsel %vm1038_vm3, %v2198_v34, %v11399_v30  ;;  %v1160_v36 = vld [vmem:[%s11146_s22 + $0xc0] sm:$0xff] }
  0xff   : > { %1736 = vrot.lane.b32.xlu1 %v1273_v28, %s16126_s11  ;;  %1450 = vrot.lane.b32.xlu0 %v1271_v11, %s16124_s5  ;;  %v1279_v30 = vrot.slane %v1160_v36, 1 }
 0x101   : > { %v11408_v38 = vpop.permute.xlu1 %1626  ;;  %v11410_v39 = vpop.permute.xlu0 %1532  ;;  %v1281_v47 = vsel %vm1238_vm1, %v1279_v30, %v1280_v49  ;;  %v1165_v30 = vld [vmem:[%s11146_s22 + $0xe8] sm:$0x3] }
 0x103   : > { %2116 = vrot.lane.b32.xlu1 %v1354_v37, %s16130_s18  ;;  %1830 = vrot.lane.b32.xlu0 %v1352_v27, %s16127_s17 }
 0x105   : > { %v2007_v40 = vpop.permute.xlu1 %2006  ;;  %v1913_v43 = vpop.permute.xlu0 %1912 }
 0x106   : > { %v2393_v58 = vsel %vm2390_vm8, %v2360_v41, %v2007_v40  ;;  %v2361_v48 = vsel %vm2357_vm7, %v2328_v9, %v1913_v43 }
 0x107   : > { %1546 = vrot.lane.b32.xlu1 %v1352_v27, %s16123_s16  ;;  %1452 = vrot.lane.b32.xlu0 %v1273_v28, %s16124_s5 }
 0x109   : > { %v11426_v50 = vpop.permute.xlu1 %1722  ;;  %v11428_v51 = vpop.permute.xlu0 %1628 }
 0x10b   : > { %1926 = vrot.lane.b32.xlu1 %v11422_v46, %s16128_s2  ;;  %1832 = vrot.lane.b32.xlu0 %v1354_v37, %s16127_s17 }
 0x10d   : > { %v2103_v59 = vpop.permute.xlu1 %2102  ;;  %v2009_v60 = vpop.permute.xlu0 %2008 }
 0x10e   : > { %v2426_v61 = vsel %vm2423_vm9, %v2393_v58, %v2103_v59  ;;  %v2394_v11 = vsel %vm2390_vm8, %v2361_v48, %v2009_v60  ;;  %v1162_v60 = vld [vmem:[%s11146_s22 + $0xd0] sm:$0x3] }
 0x10f   : > { %1642 = vrot.lane.b32.xlu1 %v11422_v46, %s16125_s26  ;;  %1548 = vrot.lane.b32.xlu0 %v1354_v37, %s16123_s16  ;;  %v2263_v37 = vsel %vm2258_vm4, %v2230_v35, %v11408_v38  ;;  %v1282_v62 = vrot.slane %v1162_v60, 1  ;;  %v1363_v3 = vrot.slane %v1162_v60, 2 }
 0x110   : > { %9966 = vmatprep.mubr.msk.f32.mxu0 %vm2472_vm10, %v2426_v61  ;;  %v2296_v45 = vsel %vm2291_vm5, %v2263_v37, %v11426_v50  ;;  %v2199_v50 = vsel %vm900_vm2, %v11200_v33, %v11401_v32  ;;  %v1360_v61 = vrot.slane %v1160_v36, 2 }
 0x111   : > { %v11453_v7 = vpop.permute.xlu1 %1724  ;;  %v11455_v8 = vpop.permute.xlu0 %1438  ;;  %v2231_v41 = vsel %vm1038_vm3, %v2199_v50, %v11410_v39  ;;  %v1283_v42 = vsel %vm1238_vm1, %v1280_v49, %v1282_v62 }
 0x112   : > { %v2264_v2 = vsel %vm2258_vm4, %v2231_v41, %v11428_v51 }
 0x113   : > { %2022 = vrot.lane.b32.xlu1 %v1276_v63, %s16129_s23  ;;  %1928 = vrot.lane.b32.xlu0 %v1158_v54, %s16128_s2  ;;  %v2297_v33 = vsel %vm2291_vm5, %v2264_v2, %v11453_v7  ;;  %v1362_v7 = vsel %vm1319_vm0, %v1360_v61, %v1361_v56 }
 0x115   : > { %v2105_v12 = vpop.permute.xlu1 %2104  ;;  %v1819_v15 = vpop.permute.xlu0 %1818 }
 0x116   : > { %v2427_v16 = vsel %vm2423_vm9, %v2394_v11, %v2105_v12  ;;  %v2329_v31 = vsel %vm2324_vm6, %v2296_v45, %v1819_v15  ;;  %v1364_v11 = vsel %vm1319_vm0, %v1361_v56, %v1363_v3  ;;  %v11868_v3 = vld [vmem:[%s11146_s22 + $0xf0] sm:$0xff] }
 0x117   : > { %1738 = vrot.lane.b32.xlu1 %v1276_v63, %s16126_s11  ;;  %1644 = vrot.lane.b32.xlu0 %v1158_v54, %s16125_s26 }
 0x118   : > { %9967 = vmatmul.mubr.msk.f32.gmra.mrb[2].mxu0 %vm2472_vm10, %v2427_v16 }
 0x119   : > { %v11472_v19 = vpop.permute.xlu1 %1534  ;;  %v11474_v21 = vpop.permute.xlu0 %1440 }
 0x11b   : > { %2118 = vrot.lane.b32.xlu1 %v1357_v13, %s16130_s18  ;;  %2024 = vrot.lane.b32.xlu0 %v1278_v17, %s16129_s23 }
 0x11d   : > { %v1915_v23 = vpop.permute.xlu1 %1914  ;;  %v1821_v18 = vpop.permute.xlu0 %1820 }
 0x11e   : > { %v2362_v14 = vsel %vm2357_vm7, %v2329_v31, %v1915_v23  ;;  %v2330_v32 = vsel %vm2324_vm6, %v2297_v33, %v1821_v18  ;;  %v11566_v23 = vld [vmem:[%s11146_s22 + $0xd8] sm:$0xff] }
 0x11f   : > { %1740 = vrot.lane.b32.xlu1 %v1278_v17, %s16126_s11  ;;  %1454 = vrot.lane.b32.xlu0 %v1276_v63, %s16124_s5 }
 0x121   : > { %v11481_v25 = vpop.permute.xlu1 %1630  ;;  %v11483_v26 = vpop.permute.xlu0 %1536 }
 0x123   : > { %2120 = vrot.lane.b32.xlu1 %v1359_v24, %s16130_s18  ;;  %1834 = vrot.lane.b32.xlu0 %v1357_v13, %s16127_s17 }
 0x125   : > { %v2011_v27 = vpop.permute.xlu1 %2010  ;;  %v1917_v28 = vpop.permute.xlu0 %1916 }
 0x126   : > { %v2395_v38 = vsel %vm2390_vm8, %v2362_v14, %v2011_v27  ;;  %v2363_v39 = vsel %vm2357_vm7, %v2330_v32, %v1917_v28  ;;  %v11575_v28 = vld [vmem:[%s11146_s22 + $0xe0] sm:$0xff]  ;;  %v16039_v14 = vmov 0.0  }
 0x127   : > { %1550 = vrot.lane.b32.xlu1 %v1357_v13, %s16123_s16  ;;  %1456 = vrot.lane.b32.xlu0 %v1278_v17, %s16124_s5  ;;  %v2200_v17 = vsel %vm900_vm2, %v11237_v52, %v11455_v8  ;;  %v1285_v34 = vrot.slane %v11575_v28, 1  ;;  %902 = vst.msk [vmem:[#allocation2 + $0x8] sm:$0xff] %vm900_vm2, %v16039_v14  ;;  %901 = vst.msk [vmem:[#allocation2] sm:$0xff] %vm900_vm2, %v16039_v14 }
 0x128   : > { %v2232_v22 = vsel %vm1038_vm3, %v2200_v17, %v11472_v19  ;;  %906 = vst.msk [vmem:[#allocation2 + $0x198] sm:$0xff] %vm900_vm2, %v16039_v14  ;;  %907 = vst.msk [vmem:[#allocation2 + $0x1a0] sm:$0xff] %vm900_vm2, %v16039_v14 }
 0x129   : > { %v11497_v40 = vpop.permute.xlu1 %1726  ;;  %v11499_v43 = vpop.permute.xlu0 %1632  ;;  %v2265_v18 = vsel %vm2258_vm4, %v2232_v22, %v11481_v25  ;;  %v1284_v25 = vrot.slane %v11566_v23, 1  ;;  %949 = vst.msk [vmem:[#allocation3 + $0x80] sm:$0xff] %vm900_vm2, %v16039_v14  ;;  %972 = vst.msk [vmem:[#allocation4 + $0x80] sm:$0xff] %vm900_vm2, %v16039_v14 }
 0x12a   : > { %v2298_v52 = vsel %vm2291_vm5, %v2265_v18, %v11497_v40  ;;  %992 = vst.msk [vmem:[#allocation5] sm:$0xff] %vm900_vm2, %v16039_v14  ;;  %995 = vst.msk [vmem:[#allocation5 + $0x80] sm:$0xff] %vm900_vm2, %v16039_v14 }
 0x12b   : > { %1930 = vrot.lane.b32.xlu1 %v1160_v36, %s16128_s2  ;;  %1836 = vrot.lane.b32.xlu0 %v1359_v24, %s16127_s17  ;;  %v11604_v31 = vsel %vm1238_vm1, %v1284_v25, %v1285_v34  ;;  %1015 = vst.msk [vmem:[#allocation6] sm:$0xff] %vm900_vm2, %v16039_v14  ;;  %1018 = vst.msk [vmem:[#allocation6 + $0x80] sm:$0xff] %vm900_vm2, %v16039_v14 }
 0x12c   : > { %1039 = vst.msk [vmem:[#allocation7] sm:$0xff] %vm1038_vm3, %v16039_v14  ;;  %1043 = vst.msk [vmem:[#allocation7 + $0x90] sm:$0xff] %vm1038_vm3, %v16039_v14 }
 0x12d   : > { %v2107_v54 = vpop.permute.xlu1 %2106  ;;  %v2013_v1 = vpop.permute.xlu0 %2012  ;;  %911 = vst.msk [vmem:[#allocation2 + $0x18] sm:$0x1] %vm909_vm11, %v16039_v14  ;;  %912 = vst.msk [vmem:[#allocation2 + $0x30] sm:$0x1] %vm909_vm11, %v16039_v14 }
 0x12e   : > { %v2428_v29 = vsel %vm2423_vm9, %v2395_v38, %v2107_v54  ;;  %v2396_v51 = vsel %vm2390_vm8, %v2363_v39, %v2013_v1  ;;  %913 = vst.msk [vmem:[#allocation2 + $0x48] sm:$0x1] %vm909_vm11, %v16039_v14  ;;  %914 = vst.msk [vmem:[#allocation2 + $0x60] sm:$0x1] %vm909_vm11, %v16039_v14  ;;  %v1365_v54 = vrot.slane %v11566_v23, 2  ;;  %v1366_v1 = vrot.slane %v11575_v28, 2 }
 0x12f   : > { %1646 = vrot.lane.b32.xlu1 %v1160_v36, %s16125_s26  ;;  %1552 = vrot.lane.b32.xlu0 %v1359_v24, %s16123_s16  ;;  %915 = vst.msk [vmem:[#allocation2 + $0x78] sm:$0x1] %vm909_vm11, %v16039_v14  ;;  %916 = vst.msk [vmem:[#allocation2 + $0x90] sm:$0x1] %vm909_vm11, %v16039_v14  ;;  %v1368_v39 = vrot.slane %v1165_v30, 2 }
 0x130   : > { %9969 = vmatprep.mubr.msk.f32.mxu0 %vm2472_vm10, %v2428_v29  ;;  %917 = vst.msk [vmem:[#allocation2 + $0xa8] sm:$0x1] %vm909_vm11, %v16039_v14  ;;  %918 = vst.msk [vmem:[#allocation2 + $0xc0] sm:$0x1] %vm909_vm11, %v16039_v14  ;;  %v1287_v29 = vrot.slane %v1165_v30, 1 }
 0x131   : > { %v11521_v58 = vpop.permute.xlu1 %1728  ;;  %v11523_v59 = vpop.permute.xlu0 %1442  ;;  %919 = vst.msk [vmem:[#allocation2 + $0xd8] sm:$0x1] %vm909_vm11, %v16039_v14  ;;  %920 = vst.msk [vmem:[#allocation2 + $0xf0] sm:$0x1] %vm909_vm11, %v16039_v14  ;;  %v1369_v62 = vsel %vm1319_vm0, %v1366_v1, %v1368_v39 }
 0x132   : > { %921 = vst.msk [vmem:[#allocation2 + $0x108] sm:$0x1] %vm909_vm11, %v16039_v14  ;;  %922 = vst.msk [vmem:[#allocation2 + $0x120] sm:$0x1] %vm909_vm11, %v16039_v14  ;;  %v1288_v60 = vsel %vm1238_vm1, %v1285_v34, %v1287_v29 }
 0x133   : > { %2026 = vrot.lane.b32.xlu1 %v1281_v47, %s16129_s23  ;;  %1932 = vrot.lane.b32.xlu0 %v1161_v44, %s16128_s2  ;;  %923 = vst.msk [vmem:[#allocation2 + $0x138] sm:$0x1] %vm909_vm11, %v16039_v14  ;;  %924 = vst.msk [vmem:[#allocation2 + $0x150] sm:$0x1] %vm909_vm11, %v16039_v14 }
 0x134   : > { %925 = vst.msk [vmem:[#allocation2 + $0x168] sm:$0x1] %vm909_vm11, %v16039_v14  ;;  %926 = vst.msk [vmem:[#allocation2 + $0x180] sm:$0x1] %vm909_vm11, %v16039_v14 }
 0x135   : > { %v2109_v63 = vpop.permute.xlu1 %2108  ;;  %v1823_v4 = vpop.permute.xlu0 %1822  ;;  %929 = vst.msk [vmem:[#allocation2 + $0x29] sm:$0x1] %vm909_vm11, %v16039_v14  ;;  %930 = vst.msk [vmem:[#allocation2 + $0x41] sm:$0x1] %vm909_vm11, %v16039_v14 }
 0x136   : > { %v2429_v0 = vsel %vm2423_vm9, %v2396_v51, %v2109_v63  ;;  %v2331_v8 = vsel %vm2324_vm6, %v2298_v52, %v1823_v4  ;;  %931 = vst.msk [vmem:[#allocation2 + $0x59] sm:$0x1] %vm909_vm11, %v16039_v14  ;;  %932 = vst.msk [vmem:[#allocation2 + $0x71] sm:$0x1] %vm909_vm11, %v16039_v14 }
 0x137   : > { %1742 = vrot.lane.b32.xlu1 %v1281_v47, %s16126_s11  ;;  %1648 = vrot.lane.b32.xlu0 %v1161_v44, %s16125_s26  ;;  %v2201_v44 = vsel %vm900_vm2, %v11240_v53, %v11474_v21  ;;  %933 = vst.msk [vmem:[#allocation2 + $0x89] sm:$0x1] %vm909_vm11, %v16039_v14  ;;  %934 = vst.msk [vmem:[#allocation2 + $0xa1] sm:$0x1] %vm909_vm11, %v16039_v14 }
 0x138   : > { %9970 = vmatmul.mubr.msk.f32.gmra.mrb[4].mxu0 %vm2472_vm10, %v2429_v0  ;;  %v11598_v45 = vsel %vm1038_vm3, %v2201_v44, %v11483_v26  ;;  %935 = vst.msk [vmem:[#allocation2 + $0xb9] sm:$0x1] %vm909_vm11, %v16039_v14  ;;  %936 = vst.msk [vmem:[#allocation2 + $0xd1] sm:$0x1] %vm909_vm11, %v16039_v14 }
 0x139   : > { %v11539_v9 = vpop.permute.xlu1 %1538  ;;  %v11541_v48 = vpop.permute.xlu0 %1444  ;;  %937 = vst.msk [vmem:[#allocation2 + $0xe9] sm:$0x1] %vm909_vm11, %v16039_v14  ;;  %938 = vst.msk [vmem:[#allocation2 + $0x101] sm:$0x1] %vm909_vm11, %v16039_v14  ;;  %v2266_v53 = vsel %vm2258_vm4, %v11598_v45, %v11499_v43 }
 0x13a   : > { %939 = vst.msk [vmem:[#allocation2 + $0x119] sm:$0x1] %vm909_vm11, %v16039_v14  ;;  %940 = vst.msk [vmem:[#allocation2 + $0x131] sm:$0x1] %vm909_vm11, %v16039_v14  ;;  %v2299_v43 = vsel %vm2291_vm5, %v2266_v53, %v11521_v58  ;;  %v1367_v58 = vsel %vm1319_vm0, %v1365_v54, %v1366_v1 }
 0x13b   : > { %2122 = vrot.lane.b32.xlu1 %v1362_v7, %s16130_s18  ;;  %2028 = vrot.lane.b32.xlu0 %v1283_v42, %s16129_s23  ;;  %941 = vst.msk [vmem:[#allocation2 + $0x149] sm:$0x1] %vm909_vm11, %v16039_v14  ;;  %942 = vst.msk [vmem:[#allocation2 + $0x161] sm:$0x1] %vm909_vm11, %v16039_v14 }
 0x13c   : > { %943 = vst.msk [vmem:[#allocation2 + $0x179] sm:$0x1] %vm909_vm11, %v16039_v14  ;;  %944 = vst.msk [vmem:[#allocation2 + $0x191] sm:$0x1] %vm909_vm11, %v16039_v14 }
 0x13d   : > { %v1919_v10 = vpop.permute.xlu1 %1918  ;;  %v11545_v57 = vpop.permute.xlu0 %1824  ;;  %950 = vst.msk [vmem:[#allocation3 + $0x88] sm:$0x1] %vm909_vm11, %v16039_v14  ;;  %961 = vst.msk [vmem:[#allocation3 + $0x18] sm:$0x1] %vm909_vm11, %v16039_v14 }
 0x13e   : > { %v2364_v19 = vsel %vm2357_vm7, %v2331_v8, %v1919_v10  ;;  %962 = vst.msk [vmem:[#allocation3 + $0x28] sm:$0x1] %vm909_vm11, %v16039_v14  ;;  %963 = vst.msk [vmem:[#allocation3 + $0x38] sm:$0x1] %vm909_vm11, %v16039_v14  ;;  %v2332_v49 = vsel %vm2324_vm6, %v2299_v43, %v11545_v57 }
 0x13f   : > { %1744 = vrot.lane.b32.xlu1 %v1283_v42, %s16126_s11  ;;  %1458 = vrot.lane.b32.xlu0 %v1281_v47, %s16124_s5  ;;  %964 = vst.msk [vmem:[#allocation3 + $0x48] sm:$0x1] %vm909_vm11, %v16039_v14  ;;  %965 = vst.msk [vmem:[#allocation3 + $0x58] sm:$0x1] %vm909_vm11, %v16039_v14 }
 0x140   : > { %966 = vst.msk [vmem:[#allocation3 + $0x68] sm:$0x1] %vm909_vm11, %v16039_v14  ;;  %967 = vst.msk [vmem:[#allocation3 + $0x78] sm:$0x1] %vm909_vm11, %v16039_v14 }
 0x141   : > { %v11550_v12 = vpop.permute.xlu1 %1634  ;;  %v11552_v15 = vpop.permute.xlu0 %1540  ;;  %973 = vst.msk [vmem:[#allocation4 + $0x88] sm:$0x1] %vm909_vm11, %v16039_v14  ;;  %975 = vst.msk [vmem:[#allocation4 + $0x10] sm:$0x1] %vm909_vm11, %v16039_v14 }
 0x142   : > { %976 = vst.msk [vmem:[#allocation4 + $0x20] sm:$0x1] %vm909_vm11, %v16039_v14  ;;  %977 = vst.msk [vmem:[#allocation4 + $0x30] sm:$0x1] %vm909_vm11, %v16039_v14 }
 0x143   : > { %2124 = vrot.lane.b32.xlu1 %v1364_v11, %s16130_s18  ;;  %1838 = vrot.lane.b32.xlu0 %v1362_v7, %s16127_s17  ;;  %978 = vst.msk [vmem:[#allocation4 + $0x40] sm:$0x1] %vm909_vm11, %v16039_v14  ;;  %979 = vst.msk [vmem:[#allocation4 + $0x50] sm:$0x1] %vm909_vm11, %v16039_v14 }
 0x144   : > { %980 = vst.msk [vmem:[#allocation4 + $0x60] sm:$0x1] %vm909_vm11, %v16039_v14  ;;  %981 = vst.msk [vmem:[#allocation4 + $0x70] sm:$0x1] %vm909_vm11, %v16039_v14 }
 0x145   : > { %v2015_v16 = vpop.permute.xlu1 %2014  ;;  %v11556_v13 = vpop.permute.xlu0 %1920  ;;  %984 = vst.msk [vmem:[#allocation4 + $0x18] sm:$0x1] %vm909_vm11, %v16039_v14  ;;  %985 = vst.msk [vmem:[#allocation4 + $0x28] sm:$0x1] %vm909_vm11, %v16039_v14 }
 0x146   : > { %v2397_v35 = vsel %vm2390_vm8, %v2364_v19, %v2015_v16  ;;  %986 = vst.msk [vmem:[#allocation4 + $0x38] sm:$0x1] %vm909_vm11, %v16039_v14  ;;  %987 = vst.msk [vmem:[#allocation4 + $0x48] sm:$0x1] %vm909_vm11, %v16039_v14  ;;  %v2365_v38 = vsel %vm2357_vm7, %v2332_v49, %v11556_v13  ;;  %v11877_v16 = vld [vmem:[%s11146_s22 + $0xf8] sm:$0xff] }
 0x147   : > { %1554 = vrot.lane.b32.xlu1 %v1362_v7, %s16123_s16  ;;  %1460 = vrot.lane.b32.xlu0 %v1283_v42, %s16124_s5  ;;  %988 = vst.msk [vmem:[#allocation4 + $0x58] sm:$0x1] %vm909_vm11, %v16039_v14  ;;  %989 = vst.msk [vmem:[#allocation4 + $0x68] sm:$0x1] %vm909_vm11, %v16039_v14  ;;  %v2202_v7 = vsel %vm900_vm2, %v11272_v5, %v11523_v59  ;;  %v1290_v13 = vrot.slane %v11877_v16, 1 }
 0x148   : > { %990 = vst.msk [vmem:[#allocation4 + $0x78] sm:$0x1] %vm909_vm11, %v16039_v14  ;;  %993 = vst.msk [vmem:[#allocation5 + $0x8] sm:$0x1] %vm909_vm11, %v16039_v14  ;;  %v2234_v42 = vsel %vm1038_vm3, %v2202_v7, %v11539_v9 }
 0x149   : > { %v11570_v24 = vpop.permute.xlu1 %1730  ;;  %v11572_v27 = vpop.permute.xlu0 %1636  ;;  %996 = vst.msk [vmem:[#allocation5 + $0x88] sm:$0x1] %vm909_vm11, %v16039_v14  ;;  %1007 = vst.msk [vmem:[#allocation5 + $0x18] sm:$0x1] %vm909_vm11, %v16039_v14  ;;  %v2267_v10 = vsel %vm2258_vm4, %v2234_v42, %v11550_v12  ;;  %v1289_v12 = vrot.slane %v11868_v3, 1 }
 0x14a   : > { %1008 = vst.msk [vmem:[#allocation5 + $0x28] sm:$0x1] %vm909_vm11, %v16039_v14  ;;  %1009 = vst.msk [vmem:[#allocation5 + $0x38] sm:$0x1] %vm909_vm11, %v16039_v14  ;;  %v2300_v5 = vsel %vm2291_vm5, %v2267_v10, %v11570_v24  ;;  %v2203_v24 = vsel %vm900_vm2, %v11275_v6, %v11541_v48  ;;  %v1168_v6 = vld [vmem:[%s11146_s22 + $0x100] sm:$0x3] }
 0x14b   : > { %1934 = vrot.lane.b32.xlu1 %v11566_v23, %s16128_s2  ;;  %1840 = vrot.lane.b32.xlu0 %v1364_v11, %s16127_s17  ;;  %1010 = vst.msk [vmem:[#allocation5 + $0x48] sm:$0x1] %vm909_vm11, %v16039_v14  ;;  %1011 = vst.msk [vmem:[#allocation5 + $0x58] sm:$0x1] %vm909_vm11, %v16039_v14  ;;  %v1291_v52 = vsel %vm1238_vm1, %v1289_v12, %v1290_v13  ;;  %v1373_v43 = vrot.slane %v1168_v6, 2  ;;  %v10820_v10 = vld [vmem:[%s11146_s22 + $0x80] sm:$0xff] }
 0x14c   : > { %1012 = vst.msk [vmem:[#allocation5 + $0x68] sm:$0x1] %vm909_vm11, %v16039_v14  ;;  %1013 = vst.msk [vmem:[#allocation5 + $0x78] sm:$0x1] %vm909_vm11, %v16039_v14 }
 0x14d   : > { %v2111_v36 = vpop.permute.xlu1 %2110  ;;  %v11587_v37 = vpop.permute.xlu0 %2016  ;;  %1016 = vst.msk [vmem:[#allocation6 + $0x8] sm:$0x1] %vm909_vm11, %v16039_v14  ;;  %1019 = vst.msk [vmem:[#allocation6 + $0x88] sm:$0x1] %vm909_vm11, %v16039_v14 }
 0x14e   : > { %v2430_v40 = vsel %vm2423_vm9, %v2397_v35, %v2111_v36  ;;  %1021 = vst.msk [vmem:[#allocation6 + $0x10] sm:$0x1] %vm909_vm11, %v16039_v14  ;;  %1022 = vst.msk [vmem:[#allocation6 + $0x20] sm:$0x1] %vm909_vm11, %v16039_v14  ;;  %v2398_v50 = vsel %vm2390_vm8, %v2365_v38, %v11587_v37  ;;  %v1370_v35 = vrot.slane %v11868_v3, 2  ;;  %v1292_v36 = vrot.slane %v1168_v6, 1 }
 0x14f   : > { %1650 = vrot.lane.b32.xlu1 %v11566_v23, %s16125_s26  ;;  %1556 = vrot.lane.b32.xlu0 %v1364_v11, %s16123_s16  ;;  %1023 = vst.msk [vmem:[#allocation6 + $0x30] sm:$0x1] %vm909_vm11, %v16039_v14  ;;  %1024 = vst.msk [vmem:[#allocation6 + $0x40] sm:$0x1] %vm909_vm11, %v16039_v14 }
 0x150   : > { %9972 = vmatprep.mubr.msk.f32.mxu0 %vm2472_vm10, %v2430_v40  ;;  %1025 = vst.msk [vmem:[#allocation6 + $0x50] sm:$0x1] %vm909_vm11, %v16039_v14  ;;  %1026 = vst.msk [vmem:[#allocation6 + $0x60] sm:$0x1] %vm909_vm11, %v16039_v14  ;;  %v1293_v53 = vsel %vm1238_vm1, %v1290_v13, %v1292_v36 }
 0x151   : > { %1027 = vst.msk [vmem:[#allocation6 + $0x70] sm:$0x1] %vm909_vm11, %v16039_v14  ;;  %1030 = vst.msk [vmem:[#allocation6 + $0x18] sm:$0x1] %vm909_vm11, %v16039_v14  ;;  %v11793_v21 = vpop.permute.xlu1 %1732  ;;  %v11795_v26 = vpop.permute.xlu0 %1446 }
 0x152   : > { %1031 = vst.msk [vmem:[#allocation6 + $0x28] sm:$0x1] %vm909_vm11, %v16039_v14  ;;  %1032 = vst.msk [vmem:[#allocation6 + $0x38] sm:$0x1] %vm909_vm11, %v16039_v14 }
 0x153   : > { %1033 = vst.msk [vmem:[#allocation6 + $0x48] sm:$0x1] %vm909_vm11, %v16039_v14  ;;  %1034 = vst.msk [vmem:[#allocation6 + $0x58] sm:$0x1] %vm909_vm11, %v16039_v14  ;;  %2030 = vrot.lane.b32.xlu1 %v11604_v31, %s16129_s23  ;;  %1936 = vrot.lane.b32.xlu0 %v11575_v28, %s16128_s2 }
 0x154   : > { %1035 = vst.msk [vmem:[#allocation6 + $0x68] sm:$0x1] %vm909_vm11, %v16039_v14  ;;  %1036 = vst.msk [vmem:[#allocation6 + $0x78] sm:$0x1] %vm909_vm11, %v16039_v14 }
 0x155   : > { %910 = vst.msk [vmem:[#allocation2] sm:$0x1] %vm909_vm11, %v16039_v14  ;;  %927 = vst.msk [vmem:[#allocation2 + $0x198] sm:$0x1] %vm909_vm11, %v16039_v14  ;;  %v2113_v41 = vpop.permute.xlu1 %2112  ;;  %v1827_v47 = vpop.permute.xlu0 %1826 }
 0x156   : > { %982 = vst.msk [vmem:[#allocation4 + $0x80] sm:$0x1] %vm909_vm11, %v16039_v14  ;;  %1020 = vst.msk [vmem:[#allocation6] sm:$0x1] %vm909_vm11, %v16039_v14  ;;  %v2431_v2 = vsel %vm2423_vm9, %v2398_v50, %v2113_v41  ;;  %v2333_v59 = vsel %vm2324_vm6, %v2300_v5, %v1827_v47  ;;  %v2204_v47 = vsel %vm900_vm2, %v11309_v20, %v11795_v26 }
 0x157   : > { %1028 = vst.msk [vmem:[#allocation6 + $0x80] sm:$0x1] %vm909_vm11, %v16039_v14  ;;  %968 = vst.msk [vmem:[#allocation3 + $0x88] sm:$0x1] %vm909_vm11, %v16039_v14  ;;  %1746 = vrot.lane.b32.xlu1 %v11604_v31, %s16126_s11  ;;  %1652 = vrot.lane.b32.xlu0 %v11575_v28, %s16125_s26  ;;  %v2235_v28 = vsel %vm1038_vm3, %v2203_v24, %v11552_v15 }
 0x158   : > { %991 = vst.msk [vmem:[#allocation4 + $0x88] sm:$0x1] %vm909_vm11, %v16039_v14  ;;  %1006 = vst.msk [vmem:[#allocation5 + $0x8] sm:$0x1] %vm909_vm11, %v16039_v14  ;;  %9973 = vmatmul.mubr.msk.f32.gmra.mrb[6].mxu0 %vm2472_vm10, %v2431_v2  ;;  %v2268_v8 = vsel %vm2258_vm4, %v2235_v28, %v11572_v27  ;;  %v1371_v27 = vrot.slane %v11877_v16, 2 }
 0x159   : > { %1014 = vst.msk [vmem:[#allocation5 + $0x88] sm:$0x1] %vm909_vm11, %v16039_v14  ;;  %1029 = vst.msk [vmem:[#allocation6 + $0x8] sm:$0x1] %vm909_vm11, %v16039_v14  ;;  %v11844_v33 = vpop.permute.xlu1 %1542  ;;  %v11846_v32 = vpop.permute.xlu0 %1448  ;;  %v2301_v48 = vsel %vm2291_vm5, %v2268_v8, %v11793_v21 }
 0x15a   : > { %1037 = vst.msk [vmem:[#allocation6 + $0x88] sm:$0x1] %vm909_vm11, %v16039_v14  ;;  %v1374_v54 = vsel %vm1319_vm0, %v1371_v27, %v1373_v43  ;;  %v2236_v2 = vsel %vm1038_vm3, %v2204_v47, %v11844_v33  ;;  %v12026_v43 = vld [vmem:[%s11146_s22 + $0x120] sm:$0xff] }
 0x15b   : > { %2126 = vrot.lane.b32.xlu1 %v1367_v58, %s16130_s18  ;;  %2032 = vrot.lane.b32.xlu0 %v1288_v60, %s16129_s23  ;;  %904 = vst.msk [vmem:[#allocation2 + $0x10] sm:$0x3] %vm903_vm12, %v16039_v14  ;;  %908 = vst.msk [vmem:[#allocation2 + $0x1a8] sm:$0x3] %vm903_vm12, %v16039_v14 }
 0x15c   : > { %928 = vst.msk [vmem:[#allocation2 + $0x11] sm:$0x1] %vm909_vm11, %v16039_v14  ;;  %945 = vst.msk [vmem:[#allocation2 + $0x1a9] sm:$0x1] %vm909_vm11, %v16039_v14 }
 0x15d   : > { %v1923_v61 = vpop.permute.xlu1 %1922  ;;  %v1829_v56 = vpop.permute.xlu0 %1828 }
 0x15e   : > { %v2366_v9 = vsel %vm2357_vm7, %v2333_v59, %v1923_v61  ;;  %v2334_v34 = vsel %vm2324_vm6, %v2301_v48, %v1829_v56  ;;  %v11956_v56 = vld [vmem:[%s11146_s22 + $0x110] sm:$0xff] }
 0x15f   : > { %1748 = vrot.lane.b32.xlu1 %v1288_v60, %s16126_s11  ;;  %1462 = vrot.lane.b32.xlu0 %v11604_v31, %s16124_s5  ;;  %v1372_v31 = vsel %vm1319_vm0, %v1370_v35, %v1371_v27 }
 0x161   : > { %v11854_v51 = vpop.permute.xlu1 %1638  ;;  %v11856_v63 = vpop.permute.xlu0 %1544 }
 0x163   : > { %2128 = vrot.lane.b32.xlu1 %v1369_v62, %s16130_s18  ;;  %1842 = vrot.lane.b32.xlu0 %v1367_v58, %s16127_s17 }
 0x165   : > { %v2019_v4 = vpop.permute.xlu1 %2018  ;;  %v1925_v0 = vpop.permute.xlu0 %1924 }
 0x166   : > { %v2399_v17 = vsel %vm2390_vm8, %v2366_v9, %v2019_v4  ;;  %v2367_v15 = vsel %vm2357_vm7, %v2334_v34, %v1925_v0 }
 0x167   : > { %1558 = vrot.lane.b32.xlu1 %v1367_v58, %s16123_s16  ;;  %1464 = vrot.lane.b32.xlu0 %v1288_v60, %s16124_s5  ;;  %v11947_v58 = vld [vmem:[%s11146_s22 + $0x108] sm:$0xff]  ;;  %v2269_v60 = vsel %vm2258_vm4, %v2236_v2, %v11854_v51  ;;  %v1295_v51 = vrot.slane %v11956_v56, 1 }
 0x169   : > { %v11872_v57 = vpop.permute.xlu1 %1734  ;;  %v11874_v11 = vpop.permute.xlu0 %1640 }
 0x16a   : > { %v2302_v20 = vsel %vm2291_vm5, %v2269_v60, %v11872_v57  ;;  %v2205_v57 = vsel %vm900_vm2, %v10820_v10, %v11846_v32  ;;  %v1171_v32 = vld [vmem:[%s11146_s22 + $0x118] sm:$0x3]  ;;  %v1380_v10 = vrot.slane %v12026_v43, 2 }
 0x16b   : > { %1938 = vrot.lane.b32.xlu1 %v11868_v3, %s16128_s2  ;;  %1844 = vrot.lane.b32.xlu0 %v1369_v62, %s16127_s17  ;;  %v2237_v5 = vsel %vm1038_vm3, %v2205_v57, %v11856_v63 }
 0x16c   : > { %v2270_v9 = vsel %vm2258_vm4, %v2237_v5, %v11874_v11  ;;  %v1376_v11 = vrot.slane %v11956_v56, 2 }
 0x16d   : > { %v2115_v22 = vpop.permute.xlu1 %2114  ;;  %v2021_v23 = vpop.permute.xlu0 %2020 }
 0x16e   : > { %v2432_v18 = vsel %vm2423_vm9, %v2399_v17, %v2115_v22  ;;  %v2400_v37 = vsel %vm2390_vm8, %v2367_v15, %v2021_v23  ;;  %v1375_v23 = vrot.slane %v11947_v58, 2  ;;  %v1378_v15 = vrot.slane %v1171_v32, 2 }
 0x16f   : > { %1654 = vrot.lane.b32.xlu1 %v11868_v3, %s16125_s26  ;;  %1560 = vrot.lane.b32.xlu0 %v1369_v62, %s16123_s16  ;;  %v1294_v62 = vrot.slane %v11947_v58, 1 }
 0x170   : > { %9975 = vmatprep.mubr.msk.f32.mxu0 %vm2472_vm10, %v2432_v18  ;;  %v1297_v18 = vrot.slane %v1171_v32, 1  ;;  %v1379_v36 = vsel %vm1319_vm0, %v1376_v11, %v1378_v15 }
 0x171   : > { %v11902_v19 = vpop.permute.xlu1 %1736  ;;  %v11904_v25 = vpop.permute.xlu0 %1450  ;;  %v1296_v59 = vsel %vm1238_vm1, %v1294_v62, %v1295_v51 }
 0x172   : > { %v2303_v17 = vsel %vm2291_vm5, %v2270_v9, %v11902_v19  ;;  %v1377_v19 = vsel %vm1319_vm0, %v1375_v23, %v1376_v11  ;;  %v1298_v6 = vsel %vm1238_vm1, %v1295_v51, %v1297_v18 }
 0x173   : > { %2034 = vrot.lane.b32.xlu1 %v1291_v52, %s16129_s23  ;;  %1940 = vrot.lane.b32.xlu0 %v11877_v16, %s16128_s2 }
 0x175   : > { %v2117_v40 = vpop.permute.xlu1 %2116  ;;  %v1831_v44 = vpop.permute.xlu0 %1830 }
 0x176   : > { %v2433_v45 = vsel %vm2423_vm9, %v2400_v37, %v2117_v40  ;;  %v2335_v26 = vsel %vm2324_vm6, %v2302_v20, %v1831_v44  ;;  %v10821_v20 = vld [vmem:[%s11146_s22 + $0x98] sm:$0xff] }
 0x177   : > { %1750 = vrot.lane.b32.xlu1 %v1291_v52, %s16126_s11  ;;  %1656 = vrot.lane.b32.xlu0 %v11877_v16, %s16125_s26 }
 0x178   : > { %9976 = vmatmul.mubr.msk.f32.gmra.mrb[8].mxu0 %vm2472_vm10, %v2433_v45 }
 0x179   : > { %v11924_v21 = vpop.permute.xlu1 %1546  ;;  %v11926_v30 = vpop.permute.xlu0 %1452 }
 0x17b   : > { %2130 = vrot.lane.b32.xlu1 %v1372_v31, %s16130_s18  ;;  %2036 = vrot.lane.b32.xlu0 %v1293_v53, %s16129_s23 }
 0x17d   : > { %v1927_v49 = vpop.permute.xlu1 %1926  ;;  %v1833_v38 = vpop.permute.xlu0 %1832 }
 0x17e   : > { %v2368_v33 = vsel %vm2357_vm7, %v2335_v26, %v1927_v49  ;;  %v2336_v22 = vsel %vm2324_vm6, %v2303_v17, %v1833_v38  ;;  %v2207_v26 = vsel %vm900_vm2, %v10821_v20, %v11926_v30  ;;  %v1174_v30 = vld [vmem:[%s11146_s22 + $0x130] sm:$0x3] }
 0x17f   : > { %1752 = vrot.lane.b32.xlu1 %v1293_v53, %s16126_s11  ;;  %1466 = vrot.lane.b32.xlu0 %v1291_v52, %s16124_s5  ;;  %v1302_v57 = vrot.slane %v1174_v30, 1  ;;  %v1383_v23 = vrot.slane %v1174_v30, 2 }
 0x181   : > { %v11933_v1 = vpop.permute.xlu1 %1642  ;;  %v11935_v29 = vpop.permute.xlu0 %1548 }
 0x183   : > { %2132 = vrot.lane.b32.xlu1 %v1374_v54, %s16130_s18  ;;  %1846 = vrot.lane.b32.xlu0 %v1372_v31, %s16127_s17 }
 0x185   : > { %v2023_v50 = vpop.permute.xlu1 %2022  ;;  %v1929_v41 = vpop.permute.xlu0 %1928 }
 0x186   : > { %v2401_v4 = vsel %vm2390_vm8, %v2368_v33, %v2023_v50  ;;  %v2369_v63 = vsel %vm2357_vm7, %v2336_v22, %v1929_v41  ;;  %v12035_v50 = vld [vmem:[%s11146_s22 + $0x128] sm:$0xff]  ;;  %v2239_v33 = vsel %vm1038_vm3, %v2207_v26, %v11935_v29 }
 0x187   : > { %1562 = vrot.lane.b32.xlu1 %v1372_v31, %s16123_s16  ;;  %1468 = vrot.lane.b32.xlu0 %v1293_v53, %s16124_s5  ;;  %v2206_v31 = vsel %vm900_vm2, %v11353_v55, %v11904_v25  ;;  %v1300_v41 = vrot.slane %v12035_v50, 1 }
 0x188   : > { %v2238_v53 = vsel %vm1038_vm3, %v2206_v31, %v11924_v21  ;;  %v12117_v31 = vld [vmem:[%s11146_s22 + $0x140] sm:$0xff] }
 0x189   : > { %v11951_v39 = vpop.permute.xlu1 %1738  ;;  %v11953_v61 = vpop.permute.xlu0 %1644  ;;  %v2271_v49 = vsel %vm2258_vm4, %v2238_v53, %v11933_v1  ;;  %v1299_v1 = vrot.slane %v12026_v43, 1  ;;  %v1303_v17 = vsel %vm1238_vm1, %v1300_v41, %v1302_v57 }
 0x18a   : > { %v2304_v55 = vsel %vm2291_vm5, %v2271_v49, %v11951_v39  ;;  %v2272_v51 = vsel %vm2258_vm4, %v2239_v33, %v11953_v61  ;;  %v1381_v61 = vrot.slane %v12035_v50, 2 }
 0x18b   : > { %1942 = vrot.lane.b32.xlu1 %v11947_v58, %s16128_s2  ;;  %1848 = vrot.lane.b32.xlu0 %v1374_v54, %s16127_s17  ;;  %v1301_v62 = vsel %vm1238_vm1, %v1299_v1, %v1300_v41 }
 0x18c   : > { %v1382_v32 = vsel %vm1319_vm0, %v1380_v10, %v1381_v61 }
 0x18d   : > { %v2119_v0 = vpop.permute.xlu1 %2118  ;;  %v2025_v7 = vpop.permute.xlu0 %2024 }
 0x18e   : > { %v2434_v42 = vsel %vm2423_vm9, %v2401_v4, %v2119_v0  ;;  %v2402_v24 = vsel %vm2390_vm8, %v2369_v63, %v2025_v7 }
 0x18f   : > { %1658 = vrot.lane.b32.xlu1 %v11947_v58, %s16125_s26  ;;  %1564 = vrot.lane.b32.xlu0 %v1374_v54, %s16123_s16 }
 0x190   : > { %9978 = vmatprep.mubr.msk.f32.mxu0 %vm2472_vm10, %v2434_v42 }
 0x191   : > { %v11981_v12 = vpop.permute.xlu1 %1740  ;;  %v11983_v13 = vpop.permute.xlu0 %1454 }
 0x192   : > { %v2305_v7 = vsel %vm2291_vm5, %v2272_v51, %v11981_v12 }
 0x193   : > { %2038 = vrot.lane.b32.xlu1 %v1296_v59, %s16129_s23  ;;  %1944 = vrot.lane.b32.xlu0 %v11956_v56, %s16128_s2 }
 0x195   : > { %v2121_v28 = vpop.permute.xlu1 %2120  ;;  %v1835_v52 = vpop.permute.xlu0 %1834 }
 0x196   : > { %v2435_v8 = vsel %vm2423_vm9, %v2402_v24, %v2121_v28  ;;  %v2337_v25 = vsel %vm2324_vm6, %v2304_v55, %v1835_v52  ;;  %v1384_v24 = vsel %vm1319_vm0, %v1381_v61, %v1383_v23 }
 0x197   : > { %1754 = vrot.lane.b32.xlu1 %v1296_v59, %s16126_s11  ;;  %1660 = vrot.lane.b32.xlu0 %v11956_v56, %s16125_s26 }
 0x198   : > { %9979 = vmatmul.mubr.msk.f32.gmra.mrb[10].mxu0 %vm2472_vm10, %v2435_v8 }
 0x199   : > { %v12003_v48 = vpop.permute.xlu1 %1550  ;;  %v12005_v34 = vpop.permute.xlu0 %1456 }
 0x19b   : > { %2134 = vrot.lane.b32.xlu1 %v1377_v19, %s16130_s18  ;;  %2040 = vrot.lane.b32.xlu0 %v1298_v6, %s16129_s23 }
 0x19d   : > { %v1931_v35 = vpop.permute.xlu1 %1930  ;;  %v1837_v27 = vpop.permute.xlu0 %1836 }
 0x19e   : > { %v2370_v21 = vsel %vm2357_vm7, %v2337_v25, %v1931_v35  ;;  %v2338_v42 = vsel %vm2324_vm6, %v2305_v7, %v1837_v27  ;;  %v12105_v35 = vld [vmem:[%s11146_s22 + $0x138] sm:$0xff] }
 0x19f   : > { %1756 = vrot.lane.b32.xlu1 %v1298_v6, %s16126_s11  ;;  %1470 = vrot.lane.b32.xlu0 %v1296_v59, %s16124_s5  ;;  %v1304_v55 = vrot.slane %v12105_v35, 1 }
 0x1a1   : > { %v12012_v37 = vpop.permute.xlu1 %1646  ;;  %v12014_v40 = vpop.permute.xlu0 %1552 }
 0x1a3   : > { %2136 = vrot.lane.b32.xlu1 %v1379_v36, %s16130_s18  ;;  %1850 = vrot.lane.b32.xlu0 %v1377_v19, %s16127_s17 }
 0x1a5   : > { %v2027_v44 = vpop.permute.xlu1 %2026  ;;  %v1933_v45 = vpop.permute.xlu0 %1932 }
 0x1a6   : > { %v2403_v47 = vsel %vm2390_vm8, %v2370_v21, %v2027_v44  ;;  %v2371_v29 = vsel %vm2357_vm7, %v2338_v42, %v1933_v45  ;;  %v12114_v45 = vld [vmem:[%s10968_s21] ss:$0 sm:$0xff]  ;;  %v1385_v42 = vrot.slane %v12105_v35, 2 }
 0x1a7   : > { %1566 = vrot.lane.b32.xlu1 %v1377_v19, %s16123_s16  ;;  %1472 = vrot.lane.b32.xlu0 %v1298_v6, %s16124_s5  ;;  %v2208_v6 = vsel %vm900_vm2, %v11422_v46, %v11983_v13 }
 0x1a8   : > { %v2240_v15 = vsel %vm1038_vm3, %v2208_v6, %v12003_v48 }
 0x1a9   : > { %v12030_v38 = vpop.permute.xlu1 %1742  ;;  %v12032_v54 = vpop.permute.xlu0 %1648  ;;  %v2273_v27 = vsel %vm2258_vm4, %v2240_v15, %v12012_v37  ;;  %v10823_v15 = vld [vmem:[%s11146_s22 + $0xc0] sm:$0xff] }
 0x1aa   : > { %v2306_v46 = vsel %vm2291_vm5, %v2273_v27, %v12030_v38  ;;  %v1305_v38 = vrot.slane %v12117_v31, 1 }
 0x1ab   : > { %1946 = vrot.lane.b32.xlu1 %v12026_v43, %s16128_s2  ;;  %1852 = vrot.lane.b32.xlu0 %v1379_v36, %s16127_s17 }
 0x1ac   : > { %v1306_v33 = vsel %vm1238_vm1, %v1304_v55, %v1305_v38  ;;  %v12216_v55 = vld [vmem:[%s11146_s22 + $0x158] sm:$0xff] }
 0x1ad   : > { %v2123_v2 = vpop.permute.xlu1 %2122  ;;  %v2029_v60 = vpop.permute.xlu0 %2028 }
 0x1ae   : > { %v2436_v39 = vsel %vm2423_vm9, %v2403_v47, %v2123_v2  ;;  %v2404_v5 = vsel %vm2390_vm8, %v2371_v29, %v2029_v60  ;;  %v10822_v60 = vld [vmem:[%s11146_s22 + $0xb0] sm:$0xff]  ;;  %v1386_v29 = vrot.slane %v12117_v31, 2 }
 0x1af   : > { %1662 = vrot.lane.b32.xlu1 %v12026_v43, %s16125_s26  ;;  %1568 = vrot.lane.b32.xlu0 %v1379_v36, %s16123_s16 }
 0x1b0   : > { %9981 = vmatprep.mubr.msk.f32.mxu0 %vm2472_vm10, %v2436_v39  ;;  %v2209_v39 = vsel %vm900_vm2, %v10822_v60, %v12005_v34 }
 0x1b1   : > { %v12060_v4 = vpop.permute.xlu1 %1744  ;;  %v12062_v0 = vpop.permute.xlu0 %1458  ;;  %v2241_v26 = vsel %vm1038_vm3, %v2209_v39, %v12014_v40  ;;  %v1177_v40 = vld [vmem:[%s11146_s22 + $0x148] sm:$0x3] }
 0x1b2   : > { %v2274_v34 = vsel %vm2258_vm4, %v2241_v26, %v12032_v54  ;;  %v1307_v10 = vrot.slane %v1177_v40, 1  ;;  %v2210_v27 = vsel %vm900_vm2, %v10823_v15, %v12062_v0 }
 0x1b3   : > { %2042 = vrot.lane.b32.xlu1 %v1301_v62, %s16129_s23  ;;  %1948 = vrot.lane.b32.xlu0 %v12035_v50, %s16128_s2  ;;  %v2307_v30 = vsel %vm2291_vm5, %v2274_v34, %v12060_v4 }
 0x1b5   : > { %v2125_v59 = vpop.permute.xlu1 %2124  ;;  %v1839_v9 = vpop.permute.xlu0 %1838 }
 0x1b6   : > { %v2437_v12 = vsel %vm2423_vm9, %v2404_v5, %v2125_v59  ;;  %v2339_v13 = vsel %vm2324_vm6, %v2306_v46, %v1839_v9  ;;  %v1387_v59 = vsel %vm1319_vm0, %v1385_v42, %v1386_v29  ;;  %v1308_v9 = vsel %vm1238_vm1, %v1305_v38, %v1307_v10 }
 0x1b7   : > { %1758 = vrot.lane.b32.xlu1 %v1301_v62, %s16126_s11  ;;  %1664 = vrot.lane.b32.xlu0 %v12035_v50, %s16125_s26 }
 0x1b8   : > { %9982 = vmatmul.mubr.msk.f32.gmra.mrb[12].mxu0 %vm2472_vm10, %v2437_v12 }
 0x1b9   : > { %v12082_v22 = vpop.permute.xlu1 %1554  ;;  %v12084_v63 = vpop.permute.xlu0 %1460 }
 0x1ba   : > { %v2242_v46 = vsel %vm1038_vm3, %v2210_v27, %v12082_v22 }
 0x1bb   : > { %2138 = vrot.lane.b32.xlu1 %v1382_v32, %s16130_s18  ;;  %2044 = vrot.lane.b32.xlu0 %v1303_v17, %s16129_s23 }
 0x1bd   : > { %v1935_v11 = vpop.permute.xlu1 %1934  ;;  %v1841_v18 = vpop.permute.xlu0 %1840 }
 0x1be   : > { %v2372_v48 = vsel %vm2357_vm7, %v2339_v13, %v1935_v11  ;;  %v2340_v7 = vsel %vm2324_vm6, %v2307_v30, %v1841_v18  ;;  %v12207_v13 = vld [vmem:[%s11146_s22 + $0x150] sm:$0xff] }
 0x1bf   : > { %1760 = vrot.lane.b32.xlu1 %v1303_v17, %s16126_s11  ;;  %1474 = vrot.lane.b32.xlu0 %v1301_v62, %s16124_s5 }
 0x1c1   : > { %v12091_v28 = vpop.permute.xlu1 %1650  ;;  %v12093_v52 = vpop.permute.xlu0 %1556 }
 0x1c3   : > { %2140 = vrot.lane.b32.xlu1 %v1384_v24, %s16130_s18  ;;  %1854 = vrot.lane.b32.xlu0 %v1382_v32, %s16127_s17 }
 0x1c5   : > { %v2031_v8 = vpop.permute.xlu1 %2030  ;;  %v1937_v19 = vpop.permute.xlu0 %1936 }
 0x1c6   : > { %v2405_v25 = vsel %vm2390_vm8, %v2372_v48, %v2031_v8  ;;  %v2373_v54 = vsel %vm2357_vm7, %v2340_v7, %v1937_v19 }
 0x1c7   : > { %1570 = vrot.lane.b32.xlu1 %v1382_v32, %s16123_s16  ;;  %1476 = vrot.lane.b32.xlu0 %v1303_v17, %s16124_s5  ;;  %v1388_v17 = vrot.slane %v1177_v40, 2  ;;  %v10824_v40 = vld [vmem:[%s11146_s22 + $0xc8] sm:$0xff] }
 0x1c8   : > { %v2211_v30 = vsel %vm900_vm2, %v10824_v40, %v12084_v63  ;;  %v12309_v40 = vld [vmem:[%s11146_s22 + $0x170] sm:$0xff] }
 0x1c9   : > { %v12109_v36 = vpop.permute.xlu1 %1746  ;;  %v12111_v44 = vpop.permute.xlu0 %1652  ;;  %v1389_v18 = vsel %vm1319_vm0, %v1386_v29, %v1388_v17 }
 0x1cb   : > { %v9965_v53 = vpop.f32.mrb[0].mxu0  ;;  %1950 = vrot.lane.b32.xlu1 %v12105_v35, %s16128_s2  ;;  %1856 = vrot.lane.b32.xlu0 %v1384_v24, %s16127_s17 }
 0x1cc   : > { %v12127_v37 = vadd.f32 %v9965_v53, %v12114_v45  ;;  %v2635_v49 = vpop.f32.mrb[1].mxu0  ;;  %v2275_v53 = vsel %vm2258_vm4, %v2242_v46, %v12091_v28 }
 0x1cd   : > { %v12135_v21 = vadd.f32 %v12114_v45, %v2635_v49  ;;  %v2127_v1 = vpop.permute.xlu1 %2126  ;;  %v2033_v41 = vpop.permute.xlu0 %2032  ;;  %v2308_v0 = vsel %vm2291_vm5, %v2275_v53, %v12109_v36 }
 0x1ce   : > { %v16064_v47 = vmax.f32 %v12127_v37, 0.0  ;;  %v2438_v2 = vsel %vm2423_vm9, %v2405_v25, %v2127_v1  ;;  %v2406_v61 = vsel %vm2390_vm8, %v2373_v54, %v2033_v41  ;;  %v1309_v41 = vrot.slane %v12207_v13, 1 }
 0x1cf   : > { %v16061_v20 = vmax.f32 %v12135_v21, 0.0  ;;  %1666 = vrot.lane.b32.xlu1 %v12105_v35, %s16125_s26  ;;  %1572 = vrot.lane.b32.xlu0 %v1384_v24, %s16123_s16  ;;  %v2243_v54 = vsel %vm1038_vm3, %v2211_v30, %v12093_v52  ;;  %v1180_v52 = vld [vmem:[%s11146_s22 + $0x160] sm:$0x3] }
 0x1d0   : > { %2828 = vst.msk [vmem:[#allocation2 + $0x21] sm:$0xff] %vm900_vm2, %v16064_v47  ;;  %9984 = vmatprep.mubr.msk.f32.mxu0 %vm2472_vm10, %v2438_v2  ;;  %v1310_v2 = vrot.slane %v12216_v55, 1  ;;  %v2276_v63 = vsel %vm2258_vm4, %v2243_v54, %v12111_v44  ;;  %v1393_v15 = vrot.slane %v1180_v52, 2 }
 0x1d1   : > { %2827 = vst.msk [vmem:[#allocation2 + $0x19] sm:$0xff] %vm900_vm2, %v16061_v20  ;;  %v12162_v62 = vpop.permute.xlu1 %1748  ;;  %v12164_v51 = vpop.permute.xlu0 %1462 }
 0x1d2   : > { %v1311_v42 = vsel %vm1238_vm1, %v1309_v41, %v1310_v2 }
 0x1d3   : > { %2046 = vrot.lane.b32.xlu1 %v1306_v33, %s16129_s23  ;;  %1952 = vrot.lane.b32.xlu0 %v12117_v31, %s16128_s2 }
 0x1d5   : > { %v2129_v57 = vpop.permute.xlu1 %2128  ;;  %v1843_v5 = vpop.permute.xlu0 %1842 }
 0x1d6   : > { %v2439_v4 = vsel %vm2423_vm9, %v2406_v61, %v2129_v57  ;;  %v2341_v38 = vsel %vm2324_vm6, %v2308_v0, %v1843_v5  ;;  %v2309_v61 = vsel %vm2291_vm5, %v2276_v63, %v12162_v62  ;;  %v1390_v5 = vrot.slane %v12207_v13, 2 }
 0x1d7   : > { %1762 = vrot.lane.b32.xlu1 %v1306_v33, %s16126_s11  ;;  %1668 = vrot.lane.b32.xlu0 %v12117_v31, %s16125_s26 }
 0x1d8   : > { %9985 = vmatmul.mubr.msk.f32.gmra.mrb[14].mxu0 %vm2472_vm10, %v2439_v4  ;;  %v1391_v4 = vrot.slane %v12216_v55, 2 }
 0x1d9   : > { %v12184_v12 = vpop.permute.xlu1 %1558  ;;  %v12186_v32 = vpop.permute.xlu0 %1464 }
 0x1da   : > { %v1394_v53 = vsel %vm1319_vm0, %v1391_v4, %v1393_v15 }
 0x1db   : > { %2142 = vrot.lane.b32.xlu1 %v1387_v59, %s16130_s18  ;;  %2048 = vrot.lane.b32.xlu0 %v1308_v9, %s16129_s23 }
 0x1dd   : > { %v1939_v23 = vpop.permute.xlu1 %1938  ;;  %v1845_v11 = vpop.permute.xlu0 %1844 }
 0x1de   : > { %v2374_v22 = vsel %vm2357_vm7, %v2341_v38, %v1939_v23  ;;  %v2342_v57 = vsel %vm2324_vm6, %v2309_v61, %v1845_v11  ;;  %v1392_v11 = vsel %vm1319_vm0, %v1390_v5, %v1391_v4 }
 0x1df   : > { %1764 = vrot.lane.b32.xlu1 %v1308_v9, %s16126_s11  ;;  %1478 = vrot.lane.b32.xlu0 %v1306_v33, %s16124_s5 }
 0x1e1   : > { %v12193_v24 = vpop.permute.xlu1 %1654  ;;  %v12195_v8 = vpop.permute.xlu0 %1560 }
 0x1e3   : > { %2144 = vrot.lane.b32.xlu1 %v1389_v18, %s16130_s18  ;;  %1858 = vrot.lane.b32.xlu0 %v1387_v59, %s16127_s17 }
 0x1e5   : > { %v2035_v19 = vpop.permute.xlu1 %2034  ;;  %v1941_v6 = vpop.permute.xlu0 %1940 }
 0x1e6   : > { %v2407_v36 = vsel %vm2390_vm8, %v2374_v22, %v2035_v19  ;;  %v2375_v44 = vsel %vm2357_vm7, %v2342_v57, %v1941_v6 }
 0x1e7   : > { %1574 = vrot.lane.b32.xlu1 %v1387_v59, %s16123_s16  ;;  %1480 = vrot.lane.b32.xlu0 %v1308_v9, %s16124_s5  ;;  %v1312_v59 = vrot.slane %v1180_v52, 1  ;;  %v1315_v52 = vrot.slane %v12309_v40, 1 }
 0x1e9   : > { %v12211_v48 = vpop.permute.xlu1 %1750  ;;  %v12213_v49 = vpop.permute.xlu0 %1656 }
 0x1eb   : > { %v9968_v25 = vpop.f32.mrb[2].mxu0  ;;  %1954 = vrot.lane.b32.xlu1 %v12207_v13, %s16128_s2  ;;  %1860 = vrot.lane.b32.xlu0 %v1389_v18, %s16127_s17 }
 0x1ec   : > { %v12226_v28 = vadd.f32 %v9968_v25, %v12114_v45  ;;  %v2645_v1 = vpop.f32.mrb[3].mxu0 }
 0x1ed   : > { %v12232_v60 = vadd.f32 %v12114_v45, %v2645_v1  ;;  %v2131_v39 = vpop.permute.xlu1 %2130  ;;  %v2037_v26 = vpop.permute.xlu0 %2036  ;;  %v10825_v1 = vld [vmem:[%s11146_s22 + $0xd8] sm:$0xff] }
 0x1ee   : > { %v16060_v33 = vmax.f32 %v12226_v28, 0.0  ;;  %v2440_v34 = vsel %vm2423_vm9, %v2407_v36, %v2131_v39  ;;  %v2408_v9 = vsel %vm2390_vm8, %v2375_v44, %v2037_v26  ;;  %v2212_v41 = vsel %vm900_vm2, %v10825_v1, %v12164_v51  ;;  %v12300_v36 = vld [vmem:[%s11146_s22 + $0x168] sm:$0xff] }
 0x1ef   : > { %v16057_v7 = vmax.f32 %v12232_v60, 0.0  ;;  %1670 = vrot.lane.b32.xlu1 %v12207_v13, %s16125_s26  ;;  %1576 = vrot.lane.b32.xlu0 %v1389_v18, %s16123_s16  ;;  %v1313_v18 = vsel %vm1238_vm1, %v1310_v2, %v1312_v59  ;;  %v2244_v2 = vsel %vm1038_vm3, %v2212_v41, %v12184_v12  ;;  %v1314_v63 = vrot.slane %v12300_v36, 1  ;;  %v10826_v59 = vld [vmem:[%s11146_s22 + $0xe0] sm:$0xff] }
 0x1f0   : > { %2830 = vst.msk [vmem:[#allocation2 + $0x39] sm:$0xff] %vm900_vm2, %v16060_v33  ;;  %9987 = vmatprep.mubr.msk.f32.mxu0 %vm2472_vm10, %v2440_v34  ;;  %v2277_v39 = vsel %vm2258_vm4, %v2244_v2, %v12193_v24 }
 0x1f1   : > { %2829 = vst.msk [vmem:[#allocation2 + $0x31] sm:$0xff] %vm900_vm2, %v16057_v7  ;;  %v12255_v29 = vpop.permute.xlu1 %1752  ;;  %v12257_v10 = vpop.permute.xlu0 %1466  ;;  %v2310_v51 = vsel %vm2291_vm5, %v2277_v39, %v12211_v48 }
 0x1f3   : > { %2050 = vrot.lane.b32.xlu1 %v1311_v42, %s16129_s23  ;;  %1956 = vrot.lane.b32.xlu0 %v12216_v55, %s16128_s2 }
 0x1f5   : > { %v2133_v17 = vpop.permute.xlu1 %2132  ;;  %v1847_v23 = vpop.permute.xlu0 %1846 }
 0x1f6   : > { %v2441_v62 = vsel %vm2423_vm9, %v2408_v9, %v2133_v17  ;;  %v2343_v30 = vsel %vm2324_vm6, %v2310_v51, %v1847_v23  ;;  %v2213_v9 = vsel %vm900_vm2, %v10826_v59, %v12186_v32 }
 0x1f7   : > { %1766 = vrot.lane.b32.xlu1 %v1311_v42, %s16126_s11  ;;  %1672 = vrot.lane.b32.xlu0 %v12216_v55, %s16125_s26  ;;  %v2245_v23 = vsel %vm1038_vm3, %v2213_v9, %v12195_v8  ;;  %v1183_v8 = vld [vmem:[%s11146_s22 + $0x178] sm:$0x3]  ;;  %v1184_v9 = vld [vmem:[%s11146_s22 + $0x180] sm:$0xff] }
 0x1f8   : > { %9988 = vmatmul.mubr.msk.f32.gmra.mrb[16].mxu0 %vm2472_vm10, %v2441_v62  ;;  %v1316_v62 = vsel %vm1238_vm1, %v1314_v63, %v1315_v52  ;;  %v2278_v32 = vsel %vm2258_vm4, %v2245_v23, %v12213_v49  ;;  %v1317_v1 = vrot.slane %v1183_v8, 1 }
 0x1f9   : > { %v12277_v19 = vpop.permute.xlu1 %1562  ;;  %v12279_v6 = vpop.permute.xlu0 %1468  ;;  %v2311_v15 = vsel %vm2291_vm5, %v2278_v32, %v12255_v29 }
 0x1fb   : > { %2146 = vrot.lane.b32.xlu1 %v1392_v11, %s16130_s18  ;;  %2052 = vrot.lane.b32.xlu0 %v1313_v18, %s16129_s23 }
 0x1fd   : > { %v1943_v27 = vpop.permute.xlu1 %1942  ;;  %v1849_v46 = vpop.permute.xlu0 %1848 }
 0x1fe   : > { %v2376_v12 = vsel %vm2357_vm7, %v2343_v30, %v1943_v27  ;;  %v2344_v27 = vsel %vm2324_vm6, %v2311_v15, %v1849_v46 }
 0x1ff   : > { %1768 = vrot.lane.b32.xlu1 %v1313_v18, %s16126_s11  ;;  %1482 = vrot.lane.b32.xlu0 %v1311_v42, %s16124_s5 }
 0x201   : > { %v12286_v0 = vpop.permute.xlu1 %1658  ;;  %v12288_v38 = vpop.permute.xlu0 %1564 }
 0x203   : > { %2148 = vrot.lane.b32.xlu1 %v1394_v53, %s16130_s18  ;;  %1862 = vrot.lane.b32.xlu0 %v1392_v11, %s16127_s17 }
 0x205   : > { %v2039_v25 = vpop.permute.xlu1 %2038  ;;  %v1945_v22 = vpop.permute.xlu0 %1944 }
 0x206   : > { %v2409_v48 = vsel %vm2390_vm8, %v2376_v12, %v2039_v25  ;;  %v2377_v49 = vsel %vm2357_vm7, %v2344_v27, %v1945_v22  ;;  %v1396_v25 = vrot.slane %v12309_v40, 2  ;;  %v1318_v22 = vsel %vm1238_vm1, %v1315_v52, %v1317_v1 }
 0x207   : > { %1578 = vrot.lane.b32.xlu1 %v1392_v11, %s16123_s16  ;;  %1484 = vrot.lane.b32.xlu0 %v1313_v18, %s16124_s5 }
 0x209   : > { %v12304_v26 = vpop.permute.xlu1 %1754  ;;  %v12306_v34 = vpop.permute.xlu0 %1660 }
 0x20b   : > { %v9971_v54 = vpop.f32.mrb[4].mxu0  ;;  %1958 = vrot.lane.b32.xlu1 %v12300_v36, %s16128_s2  ;;  %1864 = vrot.lane.b32.xlu0 %v1394_v53, %s16127_s17 }
 0x20c   : > { %v12319_v24 = vadd.f32 %v9971_v54, %v12114_v45  ;;  %v2655_v42 = vpop.f32.mrb[5].mxu0  ;;  %v1398_v54 = vrot.slane %v1183_v8, 2  ;;  %v1185_v8 = vld [vmem:[%s11146_s22 + $0x188] sm:$0xff] }
 0x20d   : > { %v12325_v61 = vadd.f32 %v12114_v45, %v2655_v42  ;;  %v2135_v57 = vpop.permute.xlu1 %2134  ;;  %v2041_v44 = vpop.permute.xlu0 %2040 }
 0x20e   : > { %v16054_v5 = vmax.f32 %v12319_v24, 0.0  ;;  %v2442_v4 = vsel %vm2423_vm9, %v2409_v48, %v2135_v57  ;;  %v2410_v41 = vsel %vm2390_vm8, %v2377_v49, %v2041_v44  ;;  %v1399_v63 = vsel %vm1319_vm0, %v1396_v25, %v1398_v54 }
 0x20f   : > { %v16053_v17 = vmax.f32 %v12325_v61, 0.0  ;;  %1674 = vrot.lane.b32.xlu1 %v12300_v36, %s16125_s26  ;;  %1580 = vrot.lane.b32.xlu0 %v1394_v53, %s16123_s16  ;;  %v1395_v53 = vrot.slane %v12300_v36, 2 }
 0x210   : > { %2832 = vst.msk [vmem:[#allocation2 + $0x51] sm:$0xff] %vm900_vm2, %v16054_v5  ;;  %9990 = vmatprep.mubr.msk.f32.mxu0 %vm2472_vm10, %v2442_v4  ;;  %v2214_v4 = vsel %vm900_vm2, %v11868_v3, %v12257_v10 }
 0x211   : > { %2831 = vst.msk [vmem:[#allocation2 + $0x49] sm:$0xff] %vm900_vm2, %v16053_v17  ;;  %v12348_v11 = vpop.permute.xlu1 %1756  ;;  %v12350_v18 = vpop.permute.xlu0 %1470  ;;  %v1397_v46 = vsel %vm1319_vm0, %v1395_v53, %v1396_v25  ;;  %v2246_v59 = vsel %vm1038_vm3, %v2214_v4, %v12277_v19  ;;  %v1404_v53 = vrot.slane %v1185_v8, 1  ;;  %v1408_v4 = vrot.slane %v1184_v9, 2 }
 0x212   : > { %v2279_v23 = vsel %vm2258_vm4, %v2246_v59, %v12286_v0  ;;  %v1403_v0 = vrot.slane %v1184_v9, 1  ;;  %v1409_v59 = vrot.slane %v1185_v8, 2 }
 0x213   : > { %2054 = vrot.lane.b32.xlu1 %v1316_v62, %s16129_s23  ;;  %1960 = vrot.lane.b32.xlu0 %v12309_v40, %s16128_s2  ;;  %v2312_v15 = vsel %vm2291_vm5, %v2279_v23, %v12304_v26 }
 0x214   : > { %v1405_v54 = vsel %vm1238_vm1, %v1403_v0, %v1404_v53 }
 0x215   : > { %v2137_v2 = vpop.permute.xlu1 %2136  ;;  %v1851_v39 = vpop.permute.xlu0 %1850 }
 0x216   : > { %v2443_v29 = vsel %vm2423_vm9, %v2410_v41, %v2137_v2  ;;  %v2345_v3 = vsel %vm2324_vm6, %v2312_v15, %v1851_v39 }
 0x217   : > { %1770 = vrot.lane.b32.xlu1 %v1316_v62, %s16126_s11  ;;  %1676 = vrot.lane.b32.xlu0 %v12309_v40, %s16125_s26 }
 0x218   : > { %9991 = vmatmul.mubr.msk.f32.gmra.mrb[18].mxu0 %vm2472_vm10, %v2443_v29  ;;  %v2215_v29 = vsel %vm900_vm2, %v11877_v16, %v12279_v6 }
 0x219   : > { %v12370_v51 = vpop.permute.xlu1 %1566  ;;  %v12372_v30 = vpop.permute.xlu0 %1472 }
 0x21b   : > { %2150 = vrot.lane.b32.xlu1 %v1397_v46, %s16130_s18  ;;  %2056 = vrot.lane.b32.xlu0 %v1318_v22, %s16129_s23 }
 0x21d   : > { %v1947_v12 = vpop.permute.xlu1 %1946  ;;  %v1853_v42 = vpop.permute.xlu0 %1852 }
 0x21e   : > { %v2378_v19 = vsel %vm2357_vm7, %v2345_v3, %v1947_v12 }
 0x21f   : > { %1772 = vrot.lane.b32.xlu1 %v1318_v22, %s16126_s11  ;;  %1486 = vrot.lane.b32.xlu0 %v1316_v62, %s16124_s5 }
 0x221   : > { %v12379_v52 = vpop.permute.xlu1 %1662  ;;  %v12381_v48 = vpop.permute.xlu0 %1568 }
 0x223   : > { %2152 = vrot.lane.b32.xlu1 %v1399_v63, %s16130_s18  ;;  %1866 = vrot.lane.b32.xlu0 %v1397_v46, %s16127_s17 }
 0x225   : > { %v2043_v57 = vpop.permute.xlu1 %2042  ;;  %v1949_v44 = vpop.permute.xlu0 %1948 }
 0x226   : > { %v2411_v25 = vsel %vm2390_vm8, %v2378_v19, %v2043_v57 }
 0x227   : > { %1582 = vrot.lane.b32.xlu1 %v1397_v46, %s16123_s16  ;;  %1488 = vrot.lane.b32.xlu0 %v1318_v22, %s16124_s5  ;;  %v2247_v22 = vsel %vm1038_vm3, %v2215_v29, %v12288_v38  ;;  %v1186_v38 = vld [vmem:[%s11146_s22 + $0x190] sm:$0x3]  ;;  %v1189_v29 = vld [vmem:[%s11146_s22 + $0x1a8] sm:$0x3] }
 0x228   : > { %v2280_v16 = vsel %vm2258_vm4, %v2247_v22, %v12306_v34  ;;  %v1406_v23 = vrot.slane %v1186_v38, 1  ;;  %v1411_v0 = vrot.slane %v1186_v38, 2 }
 0x229   : > { %v12395_v62 = vpop.permute.xlu1 %1758  ;;  %v12397_v32 = vpop.permute.xlu0 %1664 }
 0x22b   : > { %v9974_v10 = vpop.f32.mrb[6].mxu0  ;;  %1962 = vrot.lane.b32.xlu1 %v1184_v9, %s16128_s2  ;;  %1868 = vrot.lane.b32.xlu0 %v1399_v63, %s16127_s17 }
 0x22c   : > { %v12407_v27 = vadd.f32 %v9974_v10, %v12114_v45  ;;  %v2665_v49 = vpop.f32.mrb[7].mxu0 }
 0x22d   : > { %v12411_v1 = vadd.f32 %v12114_v45, %v2665_v49  ;;  %v2139_v26 = vpop.permute.xlu1 %2138  ;;  %v2045_v41 = vpop.permute.xlu0 %2044 }
 0x22e   : > { %v16052_v2 = vmax.f32 %v12407_v27, 0.0  ;;  %v2444_v39 = vsel %vm2423_vm9, %v2411_v25, %v2139_v26  ;;  %v1412_v25 = vsel %vm1319_vm0, %v1409_v59, %v1411_v0 }
 0x22f   : > { %v16051_v46 = vmax.f32 %v12411_v1, 0.0  ;;  %1678 = vrot.lane.b32.xlu1 %v1184_v9, %s16125_s26  ;;  %1584 = vrot.lane.b32.xlu0 %v1399_v63, %s16123_s16  ;;  %v2313_v63 = vsel %vm2291_vm5, %v2280_v16, %v12348_v11  ;;  %v1410_v11 = vsel %vm1319_vm0, %v1408_v4, %v1409_v59  ;;  %v1419_v16 = vrot.slane %v1189_v29, 1 }
 0x230   : > { %2834 = vst.msk [vmem:[#allocation2 + $0x69] sm:$0xff] %vm900_vm2, %v16052_v2  ;;  %9993 = vmatprep.mubr.msk.f32.mxu0 %vm2472_vm10, %v2444_v39  ;;  %v2346_v57 = vsel %vm2324_vm6, %v2313_v63, %v1853_v42  ;;  %v1407_v42 = vsel %vm1238_vm1, %v1404_v53, %v1406_v23  ;;  %v1187_v39 = vld [vmem:[%s11146_s22 + $0x198] sm:$0xff] }
 0x231   : > { %2833 = vst.msk [vmem:[#allocation2 + $0x61] sm:$0xff] %vm900_vm2, %v16051_v46  ;;  %v12433_v6 = vpop.permute.xlu1 %1760  ;;  %v12435_v12 = vpop.permute.xlu0 %1474  ;;  %v2379_v34 = vsel %vm2357_vm7, %v2346_v57, %v1949_v44  ;;  %v2216_v57 = vsel %vm900_vm2, %v11947_v58, %v12350_v18  ;;  %v1421_v4 = vrot.slane %v1187_v39, 2 }
 0x232   : > { %v2412_v15 = vsel %vm2390_vm8, %v2379_v34, %v2045_v41  ;;  %v1188_v41 = vld [vmem:[%s11146_s22 + $0x1a0] sm:$0xff]  ;;  %v2248_v59 = vsel %vm1038_vm3, %v2216_v57, %v12370_v51  ;;  %s16187_s22 = sld [smem:[#allocation17_spill]] }
 0x233   : > { %2058 = vrot.lane.b32.xlu1 %v1405_v54, %s16129_s23  ;;  %1964 = vrot.lane.b32.xlu0 %v1185_v8, %s16128_s2  ;;  %v1417_v22 = vrot.slane %v1188_v41, 1  ;;  %v1422_v34 = vrot.slane %v1188_v41, 2 }
 0x235   : > { %v2141_v3 = vpop.permute.xlu1 %2140  ;;  %v1855_v10 = vpop.permute.xlu0 %1854  ;;  %v1420_v23 = vsel %vm1238_vm1, %v1417_v22, %v1419_v16 }
 0x236   : > { %v2445_v19 = vsel %vm2423_vm9, %v2412_v15, %v2141_v3  ;;  %v1424_v3 = vrot.slane %v1189_v29, 2 }
 0x237   : > { %1774 = vrot.lane.b32.xlu1 %v1405_v54, %s16126_s11  ;;  %1680 = vrot.lane.b32.xlu0 %v1185_v8, %s16125_s26  ;;  %v1416_v54 = vrot.slane %v1187_v39, 1 }
 0x238   : > { %9994 = vmatmul.mubr.msk.f32.gmra.mrb[20].mxu0 %vm2472_vm10, %v2445_v19  ;;  %v2281_v19 = vsel %vm2258_vm4, %v2248_v59, %v12379_v52 }
 0x239   : > { %v12451_v44 = vpop.permute.xlu1 %1570  ;;  %v12453_v9 = vpop.permute.xlu0 %1476  ;;  %v1418_v15 = vsel %vm1238_vm1, %v1416_v54, %v1417_v22  ;;  %v2314_v18 = vsel %vm2291_vm5, %v2281_v19, %v12395_v62  ;;  %vm8102_vm1 = vcmask 916480  }
 0x23b   : > { %2154 = vrot.lane.b32.xlu1 %v1410_v11, %s16130_s18  ;;  %2060 = vrot.lane.b32.xlu0 %v1407_v42, %s16129_s23 }
 0x23d   : > { %v1951_v49 = vpop.permute.xlu1 %1950  ;;  %v1857_v8 = vpop.permute.xlu0 %1856 }
 0x23f   : > { %1870 = vrot.lane.b32.xlu1 %v1410_v11, %s16127_s17  ;;  %1776 = vrot.lane.b32.xlu0 %v1407_v42, %s16126_s11  ;;  %v2347_v42 = vsel %vm2324_vm6, %v2314_v18, %v1855_v10 }
 0x240   : > { %v2380_v51 = vsel %vm2357_vm7, %v2347_v42, %v1951_v49  ;;  %v2217_v49 = vsel %vm900_vm2, %v11956_v56, %v12372_v30 }
 0x241   : > { %v12460_v26 = vpop.permute.xlu1 %1666  ;;  %v12462_v53 = vpop.permute.xlu0 %1572 }
 0x243   : > { %1872 = vrot.lane.b32.xlu1 %v1412_v25, %s16127_s17  ;;  %2156 = vrot.lane.b32.xlu0 %v1412_v25, %s16130_s18 }
 0x245   : > { %v2047_v38 = vpop.permute.xlu1 %2046  ;;  %v1953_v63 = vpop.permute.xlu0 %1952 }
 0x246   : > { %v2413_v29 = vsel %vm2390_vm8, %v2380_v51, %v2047_v38  ;;  %v2249_v38 = vsel %vm1038_vm3, %v2217_v49, %v12381_v48  ;;  %v12539_v51 = vld [vmem:[#allocation2 + $0x18] sm:$0xff]  ;;  %v4428_v49 = vld [vmem:[%s10973_s25] sm:$0xff] }
 0x247   : > { %1968 = vrot.lane.b32.xlu1 %v1188_v41, %s16128_s2  ;;  %1966 = vrot.lane.b32.xlu0 %v1187_v39, %s16128_s2  ;;  %v1425_v41 = vsel %vm1319_vm0, %v1422_v34, %v1424_v3  ;;  %v1423_v39 = vsel %vm1319_vm0, %v1421_v4, %v1422_v34  ;;  %v2892_v34 = vld [vmem:[#allocation2 + $0x9] sm:$0xff]  ;;  %v2891_v4 = vld [vmem:[#allocation2 + $0x1] sm:$0xff]  ;;  %v2282_v56 = vsel %vm2258_vm4, %v2249_v38, %v12397_v32  ;;  %vm8093_vm0 = vcmask 785408  }
 0x248   : > { %v2315_v48 = vsel %vm2291_vm5, %v2282_v56, %v12433_v6  ;;  %v2924_v32 = vld [vmem:[#allocation2 + $0xa] sm:$0xff]  ;;  %v2923_v3 = vld [vmem:[#allocation2 + $0x2] sm:$0xff] }
 0x249   : > { %v12480_v11 = vpop.permute.xlu1 %1762  ;;  %v12482_v58 = vpop.permute.xlu0 %1668  ;;  %v4429_v38 = vld [vmem:[%s10973_s25 + $0x8] sm:$0xff] }
 0x24b   : > { %v9977_v0 = vpop.f32.mrb[8].mxu0  ;;  %2064 = vrot.lane.b32.xlu1 %v1420_v23, %s16129_s23  ;;  %2062 = vrot.lane.b32.xlu0 %v1418_v15, %s16129_s23  ;;  %v2348_v23 = vsel %vm2324_vm6, %v2315_v48, %v1857_v8  ;;  %v2218_v48 = vsel %vm900_vm2, %v12026_v43, %v12435_v12  ;;  %v12574_v12 = vld [vmem:[#allocation2 + $0x30] sm:$0xff] }
 0x24c   : > { %v12491_v25 = vadd.f32 %v9977_v0, %v12114_v45  ;;  %v2675_v52 = vpop.f32.mrb[9].mxu0  ;;  %v2381_v15 = vsel %vm2357_vm7, %v2348_v23, %v1953_v63  ;;  %v12537_v63 = vld [vmem:[#allocation2 + $0x20] sm:$0xff]  ;;  %v4430_v23 = vld [vmem:[%s10973_s25 + $0x10] sm:$0xff] }
 0x24d   : > { %v12497_v62 = vadd.f32 %v12114_v45, %v2675_v52  ;;  %v2143_v10 = vpop.permute.xlu1 %2142  ;;  %v2049_v22 = vpop.permute.xlu0 %2048 }
 0x24e   : > { %v16050_v54 = vmax.f32 %v12491_v25, 0.0  ;;  %v2446_v16 = vsel %vm2423_vm9, %v2413_v29, %v2143_v10  ;;  %v2414_v19 = vsel %vm2390_vm8, %v2381_v15, %v2049_v22  ;;  %v3019_v22 = vld [vmem:[#allocation2 + $0x1a] sm:$0xff] }
 0x24f   : > { %v16049_v57 = vmax.f32 %v12497_v62, 0.0  ;;  %2160 = vrot.lane.b32.xlu1 %v1425_v41, %s16130_s18  ;;  %2158 = vrot.lane.b32.xlu0 %v1423_v39, %s16130_s18  ;;  %v2893_v39 = vld [vmem:[#allocation2 + $0x19] sm:$0xff] }
 0x250   : > { %2836 = vst.msk [vmem:[#allocation2 + $0x81] sm:$0xff] %vm900_vm2, %v16050_v54  ;;  %9996 = vmatprep.mubr.msk.f32.mxu0 %vm2472_vm10, %v2446_v16  ;;  %v2988_v16 = vld [vmem:[#allocation2 + $0x21] sm:$0xff]  ;;  %v4431_v15 = vld [vmem:[%s10973_s25 + $0x18] sm:$0xff] }
 0x251   : > { %2835 = vst.msk [vmem:[#allocation2 + $0x79] sm:$0xff] %vm900_vm2, %v16049_v57  ;;  %v12518_v30 = vpop.permute.xlu1 %1764  ;;  %v12520_v59 = vpop.permute.xlu0 %1478 }
 0x253   : > { %3182 = vrot.lane.b32.xlu1 %v2892_v34, %s16124_s5  ;;  %3180 = vrot.lane.b32.xlu0 %v2891_v4, %s16124_s5  ;;  %v10284_v34 = vpack.c.bf16 %v4429_v38, %v4428_v49  ;;  %v4433_v38 = vld [vmem:[%s10973_s25 + $0x28] sm:$0xff] }
 0x255   : > { %v2145_v18 = vpop.permute.xlu1 %2144  ;;  %v1859_v42 = vpop.permute.xlu0 %1858  ;;  %10285 = vmatprep.subr.bf16.mxu1 %v10284_v34 }
 0x256   : > { %v2447_v0 = vsel %vm2423_vm9, %v2414_v19, %v2145_v18  ;;  %10287 = vmatpush3.bf16.msra.mxu1 %v10284_v34 }
 0x257   : > { %3310 = vrot.lane.b32.xlu1 %v2924_v32, %s16123_s16  ;;  %3308 = vrot.lane.b32.xlu0 %v2923_v3, %s16123_s16  ;;  %v2250_v32 = vsel %vm1038_vm3, %v2218_v48, %v12451_v44  ;;  %v10288_v3 = vpack.c.bf16 %v4431_v15, %v4430_v23 }
 0x258   : > { %9997 = vmatmul.mubr.msk.f32.gmra.mrb[22].mxu0 %vm2472_vm10, %v2447_v0  ;;  %v2283_v19 = vsel %vm2258_vm4, %v2250_v32, %v12460_v26 }
 0x259   : > { %v12533_v6 = vpop.permute.xlu1 %1574  ;;  %v12535_v8 = vpop.permute.xlu0 %1480  ;;  %v2316_v43 = vsel %vm2291_vm5, %v2283_v19, %v12480_v11  ;;  %10289 = vmatprep.subr.bf16.mxu1 %v10288_v3  ;;  %v4432_v11 = vld [vmem:[%s10973_s25 + $0x20] sm:$0xff] }
 0x25a   : > { %v2349_v44 = vsel %vm2324_vm6, %v2316_v43, %v1859_v42  ;;  %10291 = vmatpush3.bf16.msra.mxu1 %v10288_v3  ;;  %v10292_v15 = vpack.c.bf16 %v4433_v38, %v4432_v11  ;;  %v2219_v3 = vsel %vm900_vm2, %v12035_v50, %v12453_v9  ;;  %v4434_v43 = vld [vmem:[%s10973_s25 + $0x30] sm:$0xff]  ;;  %v4435_v50 = vld [vmem:[%s10973_s25 + $0x38] sm:$0xff] }
 0x25b   : > { %3438 = vrot.lane.b32.xlu1 %v12537_v63, %s16125_s26  ;;  %3436 = vrot.lane.b32.xlu0 %v12539_v51, %s16125_s26 }
 0x25c   : > { %10293 = vmatprep.subr.bf16.mxu1 %v10292_v15 }
 0x25d   : > { %v1955_v52 = vpop.permute.xlu1 %1954  ;;  %v12545_v41 = vpop.permute.xlu0 %1860 }
 0x25e   : > { %v2382_v26 = vsel %vm2357_vm7, %v2349_v44, %v1955_v52  ;;  %10295 = vmatpush3.bf16.msra.mxu1 %v10292_v15  ;;  %v10296_v44 = vpack.c.bf16 %v4435_v50, %v4434_v43 }
 0x25f   : > { %3184 = vrot.lane.b32.xlu1 %v2893_v39, %s16124_s5  ;;  %3564 = vrot.lane.b32.xlu0 %v2893_v39, %s16126_s11  ;;  %v3020_v39 = vld [vmem:[#allocation2 + $0x22] sm:$0xff] }
 0x260   : > { %10297 = vmatprep.subr.bf16.mxu1 %v10296_v44 }
 0x261   : > { %v12549_v29 = vpop.permute.xlu1 %1670  ;;  %v12551_v10 = vpop.permute.xlu0 %1576 }
 0x262   : > { %10299 = vmatpush3.bf16.msra.mxu1 %v10296_v44 }
 0x263   : > { %3692 = vrot.lane.b32.xlu1 %v3019_v22, %s16127_s17  ;;  %3566 = vrot.lane.b32.xlu0 %v2988_v16, %s16126_s11 }
 0x265   : > { %v2051_v4 = vpop.permute.xlu1 %2050  ;;  %v1957_v56 = vpop.permute.xlu0 %1956 }
 0x266   : > { %v2415_v34 = vsel %vm2390_vm8, %v2382_v26, %v2051_v4  ;;  %v2251_v4 = vsel %vm1038_vm3, %v2219_v3, %v12462_v53  ;;  %v3084_v26 = vld [vmem:[#allocation2 + $0x31] sm:$0xff] }
 0x267   : > { %3312 = vrot.lane.b32.xlu1 %v3019_v22, %s16123_s16  ;;  %3186 = vrot.lane.b32.xlu0 %v2988_v16, %s16124_s5  ;;  %v2284_v9 = vsel %vm2258_vm4, %v2251_v4, %v12482_v58  ;;  %v4436_v58 = vld [vmem:[%s10973_s25 + $0x40] sm:$0xff] }
 0x268   : > { %10027 = vmatprep.subr.mxu1 %v4436_v58 }
 0x269   : > { %v12568_v18 = vpop.permute.xlu1 %1766  ;;  %v12570_v0 = vpop.permute.xlu0 %1672  ;;  %10028 = vmatpush3.msra.mxu1 %v4436_v58 }
 0x26b   : > { %v9980_v22 = vpop.f32.mrb[10].mxu0  ;;  %3820 = vrot.lane.b32.xlu1 %v12574_v12, %s16128_s2  ;;  %3694 = vrot.lane.b32.xlu0 %v3020_v39, %s16127_s17 }
 0x26c   : > { %v12582_v16 = vadd.f32 %v9980_v22, %v12114_v45  ;;  %v2685_v49 = vpop.f32.mrb[11].mxu0  ;;  %v2317_v22 = vsel %vm2291_vm5, %v2284_v9, %v12518_v30  ;;  %v3117_v9 = vld [vmem:[#allocation2 + $0x3a] sm:$0xff] }
 0x26d   : > { %v12588_v42 = vadd.f32 %v12114_v45, %v2685_v49  ;;  %v2147_v48 = vpop.permute.xlu1 %2146  ;;  %v2053_v23 = vpop.permute.xlu0 %2052  ;;  %v12618_v49 = vld [vmem:[#allocation2 + $0x38] sm:$0xff]  ;;  %v2350_v11 = vsel %vm2324_vm6, %v2317_v22, %v12545_v41 }
 0x26e   : > { %v16048_v32 = vmax.f32 %v12582_v16, 0.0  ;;  %v2448_v52 = vsel %vm2423_vm9, %v2415_v34, %v2147_v48  ;;  %v2383_v38 = vsel %vm2357_vm7, %v2350_v11, %v1957_v56  ;;  %v3116_v56 = vld [vmem:[#allocation2 + $0x32] sm:$0xff]  ;;  %v2220_v11 = vsel %vm900_vm2, %v12105_v35, %v12520_v59 }
 0x26f   : > { %v16043_v19 = vmax.f32 %v12588_v42, 0.0  ;;  %3440 = vrot.lane.b32.xlu1 %v12574_v12, %s16125_s26  ;;  %3314 = vrot.lane.b32.xlu0 %v3020_v39, %s16123_s16  ;;  %v2416_v34 = vsel %vm2390_vm8, %v2383_v38, %v2053_v23  ;;  %v3085_v23 = vld [vmem:[#allocation2 + $0x39] sm:$0xff] }
 0x270   : > { %2838 = vst.msk [vmem:[#allocation2 + $0x99] sm:$0xff] %vm900_vm2, %v16048_v32  ;;  %9999 = vmatprep.mubr.msk.f32.mxu0 %vm2472_vm10, %v2448_v52 }
 0x271   : > { %2837 = vst.msk [vmem:[#allocation2 + $0x91] sm:$0xff] %vm900_vm2, %v16043_v19  ;;  %v12612_v39 = vpop.permute.xlu1 %1768  ;;  %v12614_v53 = vpop.permute.xlu0 %1482 }
 0x273   : > { %3948 = vrot.lane.b32.xlu1 %v3084_v26, %s16129_s23  ;;  %3822 = vrot.lane.b32.xlu0 %v12618_v49, %s16128_s2 }
 0x275   : > { %v2149_v48 = vpop.permute.xlu1 %2148  ;;  %v1863_v15 = vpop.permute.xlu0 %1862 }
 0x276   : > { %v2449_v30 = vsel %vm2423_vm9, %v2416_v34, %v2149_v48 }
 0x277   : > { %3568 = vrot.lane.b32.xlu1 %v3084_v26, %s16126_s11  ;;  %3442 = vrot.lane.b32.xlu0 %v12618_v49, %s16125_s26 }
 0x278   : > { %10000 = vmatmul.mubr.msk.f32.gmra.mrb[24].mxu0 %vm2472_vm10, %v2449_v30  ;;  %v12662_v30 = vld [vmem:[#allocation2 + $0x48] sm:$0xff]  ;;  %v12887_v2 = vld [vmem:[#allocation2 + $0x90] sm:$0xff] }
 0x279   : > { %v12633_v41 = vpop.permute.xlu1 %1578  ;;  %v12635_v52 = vpop.permute.xlu0 %1484 }
 0x27b   : > { %4076 = vrot.lane.b32.xlu1 %v3116_v56, %s16130_s18  ;;  %3950 = vrot.lane.b32.xlu0 %v3085_v23, %s16129_s23 }
 0x27d   : > { %v1959_v3 = vpop.permute.xlu1 %1958  ;;  %v1865_v4 = vpop.permute.xlu0 %1864 }
 0x27f   : > { %3570 = vrot.lane.b32.xlu1 %v3085_v23, %s16126_s11  ;;  %3188 = vrot.lane.b32.xlu0 %v3084_v26, %s16124_s5  ;;  %v2252_v26 = vsel %vm1038_vm3, %v2220_v11, %v12533_v6 }
 0x280   : > { %v2285_v58 = vsel %vm2258_vm4, %v2252_v26, %v12549_v29 }
 0x281   : > { %v12641_v43 = vpop.permute.xlu1 %1674  ;;  %v12643_v50 = vpop.permute.xlu0 %1580  ;;  %v2318_v48 = vsel %vm2291_vm5, %v2285_v58, %v12568_v18 }
 0x282   : > { %v2351_v35 = vsel %vm2324_vm6, %v2318_v48, %v1863_v15  ;;  %v2221_v48 = vsel %vm900_vm2, %v12117_v31, %v12535_v8 }
 0x283   : > { %4078 = vrot.lane.b32.xlu1 %v3117_v9, %s16130_s18  ;;  %3696 = vrot.lane.b32.xlu0 %v3116_v56, %s16127_s17  ;;  %v2384_v6 = vsel %vm2357_vm7, %v2351_v35, %v1959_v3  ;;  %v12702_v35 = vld [vmem:[#allocation2 + $0x50] sm:$0xff] }
 0x285   : > { %v2055_v44 = vpop.permute.xlu1 %2054  ;;  %v1961_v22 = vpop.permute.xlu0 %1960 }
 0x287   : > { %3316 = vrot.lane.b32.xlu1 %v3116_v56, %s16123_s16  ;;  %3190 = vrot.lane.b32.xlu0 %v3085_v23, %s16124_s5  ;;  %v2417_v23 = vsel %vm2390_vm8, %v2384_v6, %v2055_v44 }
 0x289   : > { %v12656_v38 = vpop.permute.xlu1 %1770  ;;  %v12658_v34 = vpop.permute.xlu0 %1676 }
 0x28b   : > { %v9983_v59 = vpop.f32.mrb[12].mxu0  ;;  %3824 = vrot.lane.b32.xlu1 %v12662_v30, %s16128_s2  ;;  %3698 = vrot.lane.b32.xlu0 %v3117_v9, %s16127_s17 }
 0x28c   : > { %v12670_v29 = vadd.f32 %v9983_v59, %v12114_v45  ;;  %v2695_v56 = vpop.f32.mrb[13].mxu0 }
 0x28d   : > { %v12674_v18 = vadd.f32 %v12114_v45, %v2695_v56  ;;  %v2151_v11 = vpop.permute.xlu1 %2150  ;;  %v2057_v26 = vpop.permute.xlu0 %2056  ;;  %v2253_v45 = vsel %vm1038_vm3, %v2221_v48, %v12551_v10  ;;  %v3087_v48 = vld [vmem:[#allocation2 + $0x51] sm:$0xff] }
 0x28e   : > { %v16042_v15 = vmax.f32 %v12670_v29, 0.0  ;;  %v2450_v58 = vsel %vm2423_vm9, %v2417_v23, %v2151_v11  ;;  %v2286_v44 = vsel %vm2258_vm4, %v2253_v45, %v12570_v0 }
 0x28f   : > { %v16041_v3 = vmax.f32 %v12674_v18, 0.0  ;;  %3444 = vrot.lane.b32.xlu1 %v12662_v30, %s16125_s26  ;;  %3318 = vrot.lane.b32.xlu0 %v3117_v9, %s16123_s16  ;;  %v2319_v10 = vsel %vm2291_vm5, %v2286_v44, %v12612_v39  ;;  %v3086_v9 = vld [vmem:[#allocation2 + $0x49] sm:$0xff] }
 0x290   : > { %2840 = vst.msk [vmem:[#allocation2 + $0xb1] sm:$0xff] %vm900_vm2, %v16042_v15  ;;  %10002 = vmatprep.mubr.msk.f32.mxu0 %vm2472_vm10, %v2450_v58  ;;  %v2352_v59 = vsel %vm2324_vm6, %v2319_v10, %v1865_v4  ;;  %v3118_v58 = vld [vmem:[#allocation2 + $0x4a] sm:$0xff]  ;;  %v3119_v10 = vld [vmem:[#allocation2 + $0x52] sm:$0xff]  ;;  %v12740_v15 = vld [vmem:[#allocation2 + $0x60] sm:$0xff] }
 0x291   : > { %2839 = vst.msk [vmem:[#allocation2 + $0xa9] sm:$0xff] %vm900_vm2, %v16041_v3  ;;  %v12696_v31 = vpop.permute.xlu1 %1772  ;;  %v12698_v8 = vpop.permute.xlu0 %1486  ;;  %v2385_v0 = vsel %vm2357_vm7, %v2352_v59, %v1961_v22 }
 0x292   : > { %v2418_v6 = vsel %vm2390_vm8, %v2385_v0, %v2057_v26 }
 0x293   : > { %3952 = vrot.lane.b32.xlu1 %v3086_v9, %s16129_s23  ;;  %3826 = vrot.lane.b32.xlu0 %v12702_v35, %s16128_s2 }
 0x295   : > { %v2153_v56 = vpop.permute.xlu1 %2152  ;;  %v1867_v23 = vpop.permute.xlu0 %1866 }
 0x296   : > { %v2451_v11 = vsel %vm2423_vm9, %v2418_v6, %v2153_v56  ;;  %v2222_v6 = vsel %vm900_vm2, %v12207_v13, %v12614_v53 }
 0x297   : > { %3572 = vrot.lane.b32.xlu1 %v3086_v9, %s16126_s11  ;;  %3446 = vrot.lane.b32.xlu0 %v12702_v35, %s16125_s26 }
 0x298   : > { %10003 = vmatmul.mubr.msk.f32.gmra.mrb[26].mxu0 %vm2472_vm10, %v2451_v11  ;;  %v12967_v7 = vld [vmem:[#allocation2 + $0xa8] sm:$0xff] }
 0x299   : > { %v12715_v39 = vpop.permute.xlu1 %1582  ;;  %v12717_v4 = vpop.permute.xlu0 %1488 }
 0x29b   : > { %4080 = vrot.lane.b32.xlu1 %v3118_v58, %s16130_s18  ;;  %3954 = vrot.lane.b32.xlu0 %v3087_v48, %s16129_s23 }
 0x29d   : > { %v1963_v22 = vpop.permute.xlu1 %1962  ;;  %v1869_v26 = vpop.permute.xlu0 %1868 }
 0x29f   : > { %3574 = vrot.lane.b32.xlu1 %v3087_v48, %s16126_s11  ;;  %3192 = vrot.lane.b32.xlu0 %v3086_v9, %s16124_s5  ;;  %v2254_v9 = vsel %vm1038_vm3, %v2222_v6, %v12633_v41  ;;  %v12748_v41 = vld [vmem:[%s10968_s21] ss:$0 sm:$0xff] }
 0x2a0   : > { %v2287_v56 = vsel %vm2258_vm4, %v2254_v9, %v12641_v43 }
 0x2a1   : > { %v12723_v45 = vpop.permute.xlu1 %1678  ;;  %v12725_v44 = vpop.permute.xlu0 %1584  ;;  %v2320_v3 = vsel %vm2291_vm5, %v2287_v56, %v12656_v38 }
 0x2a2   : > { %v2353_v19 = vsel %vm2324_vm6, %v2320_v3, %v1867_v23 }
 0x2a3   : > { %4082 = vrot.lane.b32.xlu1 %v3119_v10, %s16130_s18  ;;  %3700 = vrot.lane.b32.xlu0 %v3118_v58, %s16127_s17  ;;  %v2386_v53 = vsel %vm2357_vm7, %v2353_v19, %v1963_v22  ;;  %v2223_v19 = vsel %vm900_vm2, %v12216_v55, %v12635_v52 }
 0x2a5   : > { %v2059_v59 = vpop.permute.xlu1 %2058  ;;  %v1965_v0 = vpop.permute.xlu0 %1964 }
 0x2a6   : > { %v2419_v38 = vsel %vm2390_vm8, %v2386_v53, %v2059_v59  ;;  %v2255_v59 = vsel %vm1038_vm3, %v2223_v19, %v12643_v50  ;;  %v12779_v50 = vld [vmem:[#allocation2 + $0x68] sm:$0xff] }
 0x2a7   : > { %3320 = vrot.lane.b32.xlu1 %v3118_v58, %s16123_s16  ;;  %3194 = vrot.lane.b32.xlu0 %v3087_v48, %s16124_s5  ;;  %v2288_v56 = vsel %vm2258_vm4, %v2255_v59, %v12658_v34  ;;  %v3120_v19 = vld [vmem:[#allocation2 + $0x62] sm:$0xff] }
 0x2a8   : > { %v3089_v59 = vld [vmem:[#allocation2 + $0x69] sm:$0xff] }
 0x2a9   : > { %v1775_v11 = vpop.permute.xlu1 %1774  ;;  %v1681_v14 = vpop.permute.xlu0 %1680 }
 0x2ab   : > { %v9986_v13 = vpop.f32.mrb[14].mxu0  ;;  %3828 = vrot.lane.b32.xlu1 %v12740_v15, %s16128_s2  ;;  %3702 = vrot.lane.b32.xlu0 %v3119_v10, %s16127_s17 }
 0x2ac   : > { %v12751_v43 = vadd.f32 %v12748_v41, %v9986_v13  ;;  %v2705_v58 = vpop.f32.mrb[15].mxu0  ;;  %v3088_v13 = vld [vmem:[#allocation2 + $0x61] sm:$0xff] }
 0x2ad   : > { %v12755_v48 = vadd.f32 %v12748_v41, %v2705_v58  ;;  %v2155_v3 = vpop.permute.xlu1 %2154  ;;  %v2061_v23 = vpop.permute.xlu0 %2060 }
 0x2ae   : > { %v16047_v6 = vmax.f32 %v12751_v43, 0.0  ;;  %v2452_v9 = vsel %vm2423_vm9, %v2419_v38, %v2155_v3 }
 0x2af   : > { %v16046_v22 = vmax.f32 %v12755_v48, 0.0  ;;  %3448 = vrot.lane.b32.xlu1 %v12740_v15, %s16125_s26  ;;  %3322 = vrot.lane.b32.xlu0 %v3119_v10, %s16123_s16  ;;  %v2321_v10 = vsel %vm2291_vm5, %v2288_v56, %v12696_v31 }
 0x2b0   : > { %2842 = vst.msk [vmem:[#allocation2 + $0xc9] sm:$0xff] %vm900_vm2, %v16047_v6  ;;  %10005 = vmatprep.mubr.msk.f32.mxu0 %vm2472_vm10, %v2452_v9  ;;  %v2354_v53 = vsel %vm2324_vm6, %v2321_v10, %v1869_v26 }
 0x2b1   : > { %2841 = vst.msk [vmem:[#allocation2 + $0xc1] sm:$0xff] %vm900_vm2, %v16046_v22  ;;  %v1871_v55 = vpop.permute.xlu1 %1870  ;;  %v1777_v52 = vpop.permute.xlu0 %1776  ;;  %v2387_v34 = vsel %vm2357_vm7, %v2354_v53, %v1965_v0  ;;  %v2224_v0 = vsel %vm900_vm2, %v12300_v36, %v12698_v8 }
 0x2b2   : > { %v2420_v58 = vsel %vm2390_vm8, %v2387_v34, %v2061_v23  ;;  %v2225_v23 = vsel %vm900_vm2, %v12309_v40, %v12717_v4  ;;  %v2256_v56 = vsel %vm1038_vm3, %v2224_v0, %v12715_v39  ;;  %v3121_v0 = vld [vmem:[#allocation2 + $0x6a] sm:$0xff] }
 0x2b3   : > { %3956 = vrot.lane.b32.xlu1 %v3088_v13, %s16129_s23  ;;  %3830 = vrot.lane.b32.xlu0 %v12779_v50, %s16128_s2  ;;  %v2257_v10 = vsel %vm1038_vm3, %v2225_v23, %v12725_v44  ;;  %v2289_v53 = vsel %vm2258_vm4, %v2256_v56, %v12723_v45  ;;  %v12829_v23 = vld [vmem:[#allocation2 + $0x78] sm:$0xff] }
 0x2b4   : > { %v2290_v34 = vsel %vm2258_vm4, %v2257_v10, %v1681_v14 }
 0x2b5   : > { %v1873_v38 = vpop.permute.xlu1 %1872  ;;  %v2157_v3 = vpop.permute.xlu0 %2156  ;;  %v2323_v40 = vsel %vm2291_vm5, %v2290_v34, %v1777_v52 }
 0x2b6   : > { %v2453_v9 = vsel %vm2423_vm9, %v2420_v58, %v2157_v3  ;;  %v2322_v58 = vsel %vm2291_vm5, %v2289_v53, %v1775_v11  ;;  %v2356_v3 = vsel %vm2324_vm6, %v2323_v40, %v1873_v38 }
 0x2b7   : > { %3576 = vrot.lane.b32.xlu1 %v3088_v13, %s16126_s11  ;;  %3450 = vrot.lane.b32.xlu0 %v12779_v50, %s16125_s26  ;;  %v2355_v4 = vsel %vm2324_vm6, %v2322_v58, %v1871_v55 }
 0x2b8   : > { %10006 = vmatmul.mubr.msk.f32.gmra.mrb[28].mxu0 %vm2472_vm10, %v2453_v9  ;;  %v13049_v20 = vld [vmem:[#allocation2 + $0xc0] sm:$0xff] }
 0x2b9   : > { %v1969_v31 = vpop.permute.xlu1 %1968  ;;  %v1967_v26 = vpop.permute.xlu0 %1966 }
 0x2ba   : > { %v2389_v39 = vsel %vm2357_vm7, %v2356_v3, %v1969_v31  ;;  %v2388_v45 = vsel %vm2357_vm7, %v2355_v4, %v1967_v26  ;;  %v3090_v4 = vld [vmem:[#allocation2 + $0x79] sm:$0xff] }
 0x2bb   : > { %4084 = vrot.lane.b32.xlu1 %v3120_v19, %s16130_s18  ;;  %3958 = vrot.lane.b32.xlu0 %v3089_v59, %s16129_s23  ;;  %v12855_v3 = vld [vmem:[#allocation2 + $0x80] sm:$0xff] }
 0x2bd   : > { %v2065_v36 = vpop.permute.xlu1 %2064  ;;  %v2063_v8 = vpop.permute.xlu0 %2062 }
 0x2be   : > { %v2422_v14 = vsel %vm2390_vm8, %v2389_v39, %v2065_v36  ;;  %v2421_v44 = vsel %vm2390_vm8, %v2388_v45, %v2063_v8 }
 0x2bf   : > { %3578 = vrot.lane.b32.xlu1 %v3089_v59, %s16126_s11  ;;  %3196 = vrot.lane.b32.xlu0 %v3088_v13, %s16124_s5 }
 0x2c1   : > { %v2161_v9 = vpop.permute.xlu1 %2160  ;;  %v2159_v11 = vpop.permute.xlu0 %2158 }
 0x2c2   : > { %v2455_v52 = vsel %vm2423_vm9, %v2422_v14, %v2161_v9  ;;  %v2454_v55 = vsel %vm2423_vm9, %v2421_v44, %v2159_v11  ;;  %v3122_v9 = vld [vmem:[#allocation2 + $0x7a] sm:$0xff] }
 0x2c3   : > { %4086 = vrot.lane.b32.xlu1 %v3121_v0, %s16130_s18  ;;  %3704 = vrot.lane.b32.xlu0 %v3120_v19, %s16127_s17  ;;  %v3091_v11 = vld [vmem:[#allocation2 + $0x81] sm:$0xff] }
 0x2c4   : > { %10008 = vmatprep.mubr.msk.f32.mxu0 %vm2472_vm10, %v2454_v55 }
 0x2c5   : > { %10009 = vmatmul.mubr.msk.f32.gmra.mrb[30].mxu0 %vm2472_vm10, %v2455_v52  ;;  %v12823_v13 = vpop.permute.xlu1 %3182  ;;  %v3181_v38 = vpop.permute.xlu0 %3180 }
 0x2c7   : > { %3324 = vrot.lane.b32.xlu1 %v3120_v19, %s16123_s16  ;;  %3198 = vrot.lane.b32.xlu0 %v3089_v59, %s16124_s5 }
 0x2c9   : > { %v12827_v31 = vpop.permute.xlu1 %3310  ;;  %v3309_v26 = vpop.permute.xlu0 %3308 }
 0x2cb   : > { %v9989_v56 = vpop.f32.mrb[16].mxu0  ;;  %3832 = vrot.lane.b32.xlu1 %v12829_v23, %s16128_s2  ;;  %3706 = vrot.lane.b32.xlu0 %v3121_v0, %s16127_s17 }
 0x2cc   : > { %v12835_v10 = vadd.f32 %v12748_v41, %v9989_v56  ;;  %v2715_v53 = vpop.f32.mrb[17].mxu0 }
 0x2cd   : > { %v12838_v34 = vadd.f32 %v12748_v41, %v2715_v53  ;;  %v12840_v19 = vpop.permute.xlu1 %3438  ;;  %v3437_v59 = vpop.permute.xlu0 %3436  ;;  %v3123_v53 = vld [vmem:[#allocation2 + $0x82] sm:$0xff] }
 0x2ce   : > { %v16045_v36 = vmax.f32 %v12835_v10, 0.0 }
 0x2cf   : > { %v16044_v8 = vmax.f32 %v12838_v34, 0.0  ;;  %3452 = vrot.lane.b32.xlu1 %v12829_v23, %s16125_s26  ;;  %3326 = vrot.lane.b32.xlu0 %v3121_v0, %s16123_s16 }
 0x2d0   : > { %2844 = vst.msk [vmem:[#allocation2 + $0xe1] sm:$0xff] %vm900_vm2, %v16045_v36 }
 0x2d1   : > { %2843 = vst.msk [vmem:[#allocation2 + $0xd9] sm:$0xff] %vm900_vm2, %v16044_v8  ;;  %v12853_v58 = vpop.permute.xlu1 %3184  ;;  %v3565_v40 = vpop.permute.xlu0 %3564  ;;  %v2859_v8 = vld [vmem:[#allocation2] sm:$0xff] }
 0x2d2   : > { %v4172_v6 = vsel %vm900_vm2, %v2859_v8, %v3181_v38  ;;  %v2860_v38 = vld [vmem:[#allocation2 + $0x8] sm:$0xff] }
 0x2d3   : > { %3960 = vrot.lane.b32.xlu1 %v3090_v4, %s16129_s23  ;;  %3834 = vrot.lane.b32.xlu0 %v12855_v3, %s16128_s2 }
 0x2d5   : > { %v3693_v39 = vpop.permute.xlu1 %3692  ;;  %v3567_v45 = vpop.permute.xlu0 %3566 }
 0x2d7   : > { %3580 = vrot.lane.b32.xlu1 %v3090_v4, %s16126_s11  ;;  %3454 = vrot.lane.b32.xlu0 %v12855_v3, %s16125_s26 }
 0x2d9   : > { %v12863_v14 = vpop.permute.xlu1 %3312  ;;  %v12865_v44 = vpop.permute.xlu0 %3186 }
 0x2db   : > { %4088 = vrot.lane.b32.xlu1 %v3122_v9, %s16130_s18  ;;  %3962 = vrot.lane.b32.xlu0 %v3091_v11, %s16129_s23 }
 0x2dd   : > { %v3821_v52 = vpop.permute.xlu1 %3820  ;;  %v3695_v55 = vpop.permute.xlu0 %3694 }
 0x2df   : > { %3582 = vrot.lane.b32.xlu1 %v3091_v11, %s16126_s11  ;;  %3200 = vrot.lane.b32.xlu0 %v3090_v4, %s16124_s5  ;;  %v4204_v4 = vsel %vm1038_vm3, %v4172_v6, %v3309_v26 }
 0x2e0   : > { %v4236_v32 = vsel %vm2258_vm4, %v4204_v4, %v3437_v59  ;;  %v12925_v4 = vld [vmem:[#allocation2 + $0x98] sm:$0xff] }
 0x2e1   : > { %v12871_v0 = vpop.permute.xlu1 %3440  ;;  %v12873_v56 = vpop.permute.xlu0 %3314  ;;  %v4268_v46 = vsel %vm2291_vm5, %v4236_v32, %v3565_v40 }
 0x2e2   : > { %v4300_v17 = vsel %vm2324_vm6, %v4268_v46, %v3693_v39 }
 0x2e3   : > { %4090 = vrot.lane.b32.xlu1 %v3123_v53, %s16130_s18  ;;  %3708 = vrot.lane.b32.xlu0 %v3122_v9, %s16127_s17  ;;  %v4332_v6 = vsel %vm2357_vm7, %v4300_v17, %v3821_v52 }
 0x2e5   : > { %v3949_v36 = vpop.permute.xlu1 %3948  ;;  %v3823_v22 = vpop.permute.xlu0 %3822 }
 0x2e6   : > { %v4364_v8 = vsel %vm2390_vm8, %v4332_v6, %v3949_v36 }
 0x2e7   : > { %3328 = vrot.lane.b32.xlu1 %v3122_v9, %s16123_s16  ;;  %3202 = vrot.lane.b32.xlu0 %v3091_v11, %s16124_s5  ;;  %v4173_v11 = vsel %vm900_vm2, %v2860_v38, %v12823_v13 }
 0x2e9   : > { %v12882_v57 = vpop.permute.xlu1 %3568  ;;  %v12884_v54 = vpop.permute.xlu0 %3442 }
 0x2eb   : > { %v9992_v5 = vpop.f32.mrb[18].mxu0  ;;  %3836 = vrot.lane.b32.xlu1 %v12887_v2, %s16128_s2  ;;  %3710 = vrot.lane.b32.xlu0 %v3123_v53, %s16127_s17 }
 0x2ec   : > { %v12895_v26 = vadd.f32 %v12748_v41, %v9992_v5  ;;  %v2725_v59 = vpop.f32.mrb[19].mxu0  ;;  %v4205_v5 = vsel %vm1038_vm3, %v4173_v11, %v12827_v31  ;;  %v3092_v31 = vld [vmem:[#allocation2 + $0x91] sm:$0xff]  ;;  %v3093_v11 = vld [vmem:[#allocation2 + $0x99] sm:$0xff] }
 0x2ed   : > { %v12899_v32 = vadd.f32 %v12748_v41, %v2725_v59  ;;  %v4077_v40 = vpop.permute.xlu1 %4076  ;;  %v3951_v46 = vpop.permute.xlu0 %3950  ;;  %v4237_v36 = vsel %vm2258_vm4, %v4205_v5, %v12840_v19 }
 0x2ee   : > { %v16056_v39 = vmax.f32 %v12895_v26, 0.0  ;;  %v4396_v9 = vsel %vm2423_vm9, %v4364_v8, %v4077_v40 }
 0x2ef   : > { %v16055_v17 = vmax.f32 %v12899_v32, 0.0  ;;  %3456 = vrot.lane.b32.xlu1 %v12887_v2, %s16125_s26  ;;  %3330 = vrot.lane.b32.xlu0 %v3123_v53, %s16123_s16  ;;  %v4269_v53 = vsel %vm2291_vm5, %v4237_v36, %v3567_v45 }
 0x2f0   : > { %2846 = vst.msk [vmem:[#allocation2 + $0xf9] sm:$0xff] %vm900_vm2, %v16056_v39  ;;  %10029 = vmatprep.mubr.msk.f32.mxu1 %vm2472_vm10, %v4396_v9  ;;  %v4301_v38 = vsel %vm2324_vm6, %v4269_v53, %v3695_v55  ;;  %v3124_v9 = vld [vmem:[#allocation2 + $0x92] sm:$0xff]  ;;  %v3125_v53 = vld [vmem:[#allocation2 + $0x9a] sm:$0xff] }
 0x2f1   : > { %2845 = vst.msk [vmem:[#allocation2 + $0xf1] sm:$0xff] %vm900_vm2, %v16055_v17  ;;  %v12920_v13 = vpop.permute.xlu1 %3570  ;;  %v12922_v52 = vpop.permute.xlu0 %3188  ;;  %v4333_v19 = vsel %vm2357_vm7, %v4301_v38, %v3823_v22 }
 0x2f2   : > { %v4365_v6 = vsel %vm2390_vm8, %v4333_v19, %v3951_v46 }
 0x2f3   : > { %3964 = vrot.lane.b32.xlu1 %v3092_v31, %s16129_s23  ;;  %3838 = vrot.lane.b32.xlu0 %v12925_v4, %s16128_s2 }
 0x2f5   : > { %v4079_v59 = vpop.permute.xlu1 %4078  ;;  %v3697_v8 = vpop.permute.xlu0 %3696 }
 0x2f6   : > { %v4397_v40 = vsel %vm2423_vm9, %v4365_v6, %v4079_v59  ;;  %v4174_v6 = vsel %vm900_vm2, %v12539_v51, %v12853_v58 }
 0x2f7   : > { %3584 = vrot.lane.b32.xlu1 %v3092_v31, %s16126_s11  ;;  %3458 = vrot.lane.b32.xlu0 %v12925_v4, %s16125_s26 }
 0x2f8   : > { %10030 = vmatmul.mubr.msk.f32.vlgmr.msra.gmra.mrb[0].mxu1 %vm2472_vm10, %v4397_v40 }
 0x2f9   : > { %v12938_v45 = vpop.permute.xlu1 %3316  ;;  %v12940_v55 = vpop.permute.xlu0 %3190 }
 0x2fb   : > { %4092 = vrot.lane.b32.xlu1 %v3124_v9, %s16130_s18  ;;  %3966 = vrot.lane.b32.xlu0 %v3093_v11, %s16129_s23 }
 0x2fd   : > { %v3825_v22 = vpop.permute.xlu1 %3824  ;;  %v3699_v46 = vpop.permute.xlu0 %3698 }
 0x2ff   : > { %3586 = vrot.lane.b32.xlu1 %v3093_v11, %s16126_s11  ;;  %3204 = vrot.lane.b32.xlu0 %v3092_v31, %s16124_s5  ;;  %v4206_v31 = vsel %vm1038_vm3, %v4174_v6, %v12863_v14 }
 0x300   : > { %v4238_v59 = vsel %vm2258_vm4, %v4206_v31, %v12871_v0 }
 0x301   : > { %v12946_v5 = vpop.permute.xlu1 %3444  ;;  %v12948_v36 = vpop.permute.xlu0 %3318  ;;  %v4270_v39 = vsel %vm2291_vm5, %v4238_v59, %v12882_v57  ;;  %v4175_v59 = vsel %vm900_vm2, %v12537_v63, %v12865_v44 }
 0x302   : > { %v4302_v51 = vsel %vm2324_vm6, %v4270_v39, %v3697_v8 }
 0x303   : > { %4094 = vrot.lane.b32.xlu1 %v3125_v53, %s16130_s18  ;;  %3712 = vrot.lane.b32.xlu0 %v3124_v9, %s16127_s17  ;;  %v4334_v14 = vsel %vm2357_vm7, %v4302_v51, %v3825_v22 }
 0x305   : > { %v3953_v38 = vpop.permute.xlu1 %3952  ;;  %v3827_v19 = vpop.permute.xlu0 %3826 }
 0x307   : > { %3332 = vrot.lane.b32.xlu1 %v3124_v9, %s16123_s16  ;;  %3206 = vrot.lane.b32.xlu0 %v3093_v11, %s16124_s5  ;;  %v4366_v11 = vsel %vm2390_vm8, %v4334_v14, %v3953_v38  ;;  %v4207_v38 = vsel %vm1038_vm3, %v4175_v59, %v12873_v56  ;;  %v3126_v59 = vld [vmem:[#allocation2 + $0xaa] sm:$0xff] }
 0x308   : > { %v4239_v51 = vsel %vm2258_vm4, %v4207_v38, %v12884_v54  ;;  %v3095_v38 = vld [vmem:[#allocation2 + $0xb1] sm:$0xff] }
 0x309   : > { %v12961_v40 = vpop.permute.xlu1 %3572  ;;  %v12963_v17 = vpop.permute.xlu0 %3446  ;;  %v4271_v56 = vsel %vm2291_vm5, %v4239_v51, %v12920_v13 }
 0x30a   : > { %v4303_v14 = vsel %vm2324_vm6, %v4271_v56, %v3699_v46 }
 0x30b   : > { %v9995_v58 = vpop.f32.mrb[20].mxu0  ;;  %3840 = vrot.lane.b32.xlu1 %v12967_v7, %s16128_s2  ;;  %3714 = vrot.lane.b32.xlu0 %v3125_v53, %s16127_s17  ;;  %v4335_v54 = vsel %vm2357_vm7, %v4303_v14, %v3827_v19  ;;  %v3127_v14 = vld [vmem:[#allocation2 + $0xb2] sm:$0xff] }
 0x30c   : > { %v12975_v0 = vadd.f32 %v12748_v41, %v9995_v58  ;;  %v2735_v9 = vpop.f32.mrb[21].mxu0  ;;  %v13007_v58 = vld [vmem:[#allocation2 + $0xb0] sm:$0xff] }
 0x30d   : > { %v12979_v57 = vadd.f32 %v12748_v41, %v2735_v9  ;;  %v4081_v6 = vpop.permute.xlu1 %4080  ;;  %v3955_v31 = vpop.permute.xlu0 %3954 }
 0x30e   : > { %v16059_v39 = vmax.f32 %v12975_v0, 0.0  ;;  %v4398_v8 = vsel %vm2423_vm9, %v4366_v11, %v4081_v6  ;;  %v4367_v9 = vsel %vm2390_vm8, %v4335_v54, %v3955_v31 }
 0x30f   : > { %16131 = vst [vmem:[#allocation36_spill] sm:$0xff] %v12979_v57  ;;  %v16058_v22 = vmax.f32 %v12979_v57, 0.0  ;;  %3460 = vrot.lane.b32.xlu1 %v12967_v7, %s16125_s26  ;;  %3334 = vrot.lane.b32.xlu0 %v3125_v53, %s16123_s16  ;;  %v3094_v53 = vld [vmem:[#allocation2 + $0xa9] sm:$0xff] }
 0x310   : > { %2848 = vst.msk [vmem:[#allocation2 + $0x111] sm:$0xff] %vm900_vm2, %v16059_v39  ;;  %10032 = vmatprep.mubr.msk.f32.mxu1 %vm2472_vm10, %v4398_v8 }
 0x311   : > { %2847 = vst.msk [vmem:[#allocation2 + $0x109] sm:$0xff] %vm900_vm2, %v16058_v22  ;;  %v13001_v63 = vpop.permute.xlu1 %3574  ;;  %v13003_v44 = vpop.permute.xlu0 %3192 }
 0x313   : > { %3968 = vrot.lane.b32.xlu1 %v3094_v53, %s16129_s23  ;;  %3842 = vrot.lane.b32.xlu0 %v13007_v58, %s16128_s2 }
 0x315   : > { %v4083_v11 = vpop.permute.xlu1 %4082  ;;  %v3701_v6 = vpop.permute.xlu0 %3700 }
 0x316   : > { %v4399_v8 = vsel %vm2423_vm9, %v4367_v9, %v4083_v11  ;;  %v4176_v11 = vsel %vm900_vm2, %v12574_v12, %v12922_v52 }
 0x317   : > { %3588 = vrot.lane.b32.xlu1 %v3094_v53, %s16126_s11  ;;  %3462 = vrot.lane.b32.xlu0 %v13007_v58, %s16125_s26 }
 0x318   : > { %10033 = vmatmul.mubr.msk.f32.gmra.mrb[2].mxu1 %vm2472_vm10, %v4399_v8 }
 0x319   : > { %v13020_v13 = vpop.permute.xlu1 %3320  ;;  %v13022_v46 = vpop.permute.xlu0 %3194 }
 0x31b   : > { %4096 = vrot.lane.b32.xlu1 %v3126_v59, %s16130_s18  ;;  %3970 = vrot.lane.b32.xlu0 %v3095_v38, %s16129_s23 }
 0x31d   : > { %v3829_v19 = vpop.permute.xlu1 %3828  ;;  %v3703_v31 = vpop.permute.xlu0 %3702 }
 0x31f   : > { %3590 = vrot.lane.b32.xlu1 %v3095_v38, %s16126_s11  ;;  %3208 = vrot.lane.b32.xlu0 %v3094_v53, %s16124_s5  ;;  %v4208_v53 = vsel %vm1038_vm3, %v4176_v11, %v12938_v45 }
 0x320   : > { %v4240_v8 = vsel %vm2258_vm4, %v4208_v53, %v12946_v5 }
 0x321   : > { %v13028_v51 = vpop.permute.xlu1 %3448  ;;  %v13030_v56 = vpop.permute.xlu0 %3322  ;;  %v4272_v33 = vsel %vm2291_vm5, %v4240_v8, %v12961_v40  ;;  %v4177_v8 = vsel %vm900_vm2, %v12618_v49, %v12940_v55 }
 0x322   : > { %v4304_v12 = vsel %vm2324_vm6, %v4272_v33, %v3701_v6 }
 0x323   : > { %4098 = vrot.lane.b32.xlu1 %v3127_v14, %s16130_s18  ;;  %3716 = vrot.lane.b32.xlu0 %v3126_v59, %s16127_s17  ;;  %v4336_v45 = vsel %vm2357_vm7, %v4304_v12, %v3829_v19 }
 0x325   : > { %v3957_v54 = vpop.permute.xlu1 %3956  ;;  %v3831_v9 = vpop.permute.xlu0 %3830 }
 0x327   : > { %3336 = vrot.lane.b32.xlu1 %v3126_v59, %s16123_s16  ;;  %3210 = vrot.lane.b32.xlu0 %v3095_v38, %s16124_s5  ;;  %v4368_v38 = vsel %vm2390_vm8, %v4336_v45, %v3957_v54  ;;  %v4209_v54 = vsel %vm1038_vm3, %v4177_v8, %v12948_v36  ;;  %v3128_v8 = vld [vmem:[#allocation2 + $0xc2] sm:$0xff] }
 0x328   : > { %v4241_v12 = vsel %vm2258_vm4, %v4209_v54, %v12963_v17  ;;  %v3097_v54 = vld [vmem:[#allocation2 + $0xc9] sm:$0xff] }
 0x329   : > { %v13043_v22 = vpop.permute.xlu1 %3576  ;;  %v13045_v39 = vpop.permute.xlu0 %3450  ;;  %v4273_v36 = vsel %vm2291_vm5, %v4241_v12, %v13001_v63 }
 0x32a   : > { %v4305_v45 = vsel %vm2324_vm6, %v4273_v36, %v3703_v31 }
 0x32b   : > { %v9998_v52 = vpop.f32.mrb[22].mxu0  ;;  %3844 = vrot.lane.b32.xlu1 %v13049_v20, %s16128_s2  ;;  %3718 = vrot.lane.b32.xlu0 %v3127_v14, %s16127_s17  ;;  %v4337_v17 = vsel %vm2357_vm7, %v4305_v45, %v3831_v9  ;;  %v3129_v45 = vld [vmem:[#allocation2 + $0xca] sm:$0xff] }
 0x32c   : > { %v13057_v5 = vadd.f32 %v12748_v41, %v9998_v52  ;;  %v2745_v59 = vpop.f32.mrb[23].mxu0  ;;  %v13089_v52 = vld [vmem:[#allocation2 + $0xc8] sm:$0xff] }
 0x32d   : > { %v13061_v40 = vadd.f32 %v12748_v41, %v2745_v59  ;;  %v4085_v11 = vpop.permute.xlu1 %4084  ;;  %v3959_v53 = vpop.permute.xlu0 %3958 }
 0x32e   : > { %16132 = vst [vmem:[#allocation37_spill] sm:$0xff] %v13057_v5  ;;  %v16063_v33 = vmax.f32 %v13057_v5, 0.0  ;;  %v4400_v6 = vsel %vm2423_vm9, %v4368_v38, %v4085_v11  ;;  %v4369_v59 = vsel %vm2390_vm8, %v4337_v17, %v3959_v53 }
 0x32f   : > { %16133 = vst [vmem:[#allocation38_spill] sm:$0xff] %v13061_v40  ;;  %v16062_v19 = vmax.f32 %v13061_v40, 0.0  ;;  %3464 = vrot.lane.b32.xlu1 %v13049_v20, %s16125_s26  ;;  %3338 = vrot.lane.b32.xlu0 %v3127_v14, %s16123_s16  ;;  %v3096_v14 = vld [vmem:[#allocation2 + $0xc1] sm:$0xff]  ;;  %v13131_v40 = vld [vmem:[#allocation2 + $0xd8] sm:$0xff] }
 0x330   : > { %2850 = vst.msk [vmem:[#allocation2 + $0x129] sm:$0xff] %vm900_vm2, %v16063_v33  ;;  %10035 = vmatprep.mubr.msk.f32.mxu1 %vm2472_vm10, %v4400_v6 }
 0x331   : > { %2849 = vst.msk [vmem:[#allocation2 + $0x121] sm:$0xff] %vm900_vm2, %v16062_v19  ;;  %v13083_v49 = vpop.permute.xlu1 %3578  ;;  %v13085_v55 = vpop.permute.xlu0 %3196 }
 0x333   : > { %3972 = vrot.lane.b32.xlu1 %v3096_v14, %s16129_s23  ;;  %3846 = vrot.lane.b32.xlu0 %v13089_v52, %s16128_s2 }
 0x335   : > { %v4087_v38 = vpop.permute.xlu1 %4086  ;;  %v3705_v11 = vpop.permute.xlu0 %3704 }
 0x336   : > { %v4401_v6 = vsel %vm2423_vm9, %v4369_v59, %v4087_v38  ;;  %v4178_v38 = vsel %vm900_vm2, %v12662_v30, %v13003_v44 }
 0x337   : > { %3592 = vrot.lane.b32.xlu1 %v3096_v14, %s16126_s11  ;;  %3466 = vrot.lane.b32.xlu0 %v13089_v52, %s16125_s26 }
 0x338   : > { %10036 = vmatmul.mubr.msk.f32.gmra.mrb[4].mxu1 %vm2472_vm10, %v4401_v6 }
 0x339   : > { %v13102_v63 = vpop.permute.xlu1 %3324  ;;  %v13104_v31 = vpop.permute.xlu0 %3198 }
 0x33b   : > { %4100 = vrot.lane.b32.xlu1 %v3128_v8, %s16130_s18  ;;  %3974 = vrot.lane.b32.xlu0 %v3097_v54, %s16129_s23 }
 0x33d   : > { %v3833_v9 = vpop.permute.xlu1 %3832  ;;  %v3707_v53 = vpop.permute.xlu0 %3706 }
 0x33f   : > { %3594 = vrot.lane.b32.xlu1 %v3097_v54, %s16126_s11  ;;  %3212 = vrot.lane.b32.xlu0 %v3096_v14, %s16124_s5  ;;  %v4210_v14 = vsel %vm1038_vm3, %v4178_v38, %v13020_v13 }
 0x340   : > { %v4242_v6 = vsel %vm2258_vm4, %v4210_v14, %v13028_v51 }
 0x341   : > { %v13110_v12 = vpop.permute.xlu1 %3452  ;;  %v13112_v36 = vpop.permute.xlu0 %3326  ;;  %v4274_v47 = vsel %vm2291_vm5, %v4242_v6, %v13043_v22  ;;  %v4179_v6 = vsel %vm900_vm2, %v12702_v35, %v13022_v46 }
 0x342   : > { %v4306_v30 = vsel %vm2324_vm6, %v4274_v47, %v3705_v11 }
 0x343   : > { %4102 = vrot.lane.b32.xlu1 %v3129_v45, %s16130_s18  ;;  %3720 = vrot.lane.b32.xlu0 %v3128_v8, %s16127_s17  ;;  %v4338_v13 = vsel %vm2357_vm7, %v4306_v30, %v3833_v9 }
 0x345   : > { %v3961_v17 = vpop.permute.xlu1 %3960  ;;  %v3835_v59 = vpop.permute.xlu0 %3834 }
 0x347   : > { %3340 = vrot.lane.b32.xlu1 %v3128_v8, %s16123_s16  ;;  %3214 = vrot.lane.b32.xlu0 %v3097_v54, %s16124_s5  ;;  %v4370_v54 = vsel %vm2390_vm8, %v4338_v13, %v3961_v17  ;;  %v4211_v17 = vsel %vm1038_vm3, %v4179_v6, %v13030_v56  ;;  %v3130_v6 = vld [vmem:[#allocation2 + $0xda] sm:$0xff] }
 0x348   : > { %v4243_v30 = vsel %vm2258_vm4, %v4211_v17, %v13045_v39  ;;  %v3099_v17 = vld [vmem:[#allocation2 + $0xe1] sm:$0xff] }
 0x349   : > { %v13125_v19 = vpop.permute.xlu1 %3580  ;;  %v13127_v33 = vpop.permute.xlu0 %3454  ;;  %v4275_v56 = vsel %vm2291_vm5, %v4243_v30, %v13083_v49 }
 0x34a   : > { %v4307_v13 = vsel %vm2324_vm6, %v4275_v56, %v3707_v53 }
 0x34b   : > { %v10001_v44 = vpop.f32.mrb[24].mxu0  ;;  %3848 = vrot.lane.b32.xlu1 %v13131_v40, %s16128_s2  ;;  %3722 = vrot.lane.b32.xlu0 %v3129_v45, %s16127_s17  ;;  %v4339_v39 = vsel %vm2357_vm7, %v4307_v13, %v3835_v59  ;;  %v3131_v13 = vld [vmem:[#allocation2 + $0xe2] sm:$0xff] }
 0x34c   : > { %v13139_v51 = vadd.f32 %v12748_v41, %v10001_v44  ;;  %v2755_v8 = vpop.f32.mrb[25].mxu0  ;;  %v13171_v44 = vld [vmem:[#allocation2 + $0xe0] sm:$0xff] }
 0x34d   : > { %v13143_v22 = vadd.f32 %v12748_v41, %v2755_v8  ;;  %v4089_v38 = vpop.permute.xlu1 %4088  ;;  %v3963_v14 = vpop.permute.xlu0 %3962 }
 0x34e   : > { %16134 = vst [vmem:[#allocation39_spill] sm:$0xff] %v13139_v51  ;;  %v16067_v47 = vmax.f32 %v13139_v51, 0.0  ;;  %v4402_v11 = vsel %vm2423_vm9, %v4370_v54, %v4089_v38  ;;  %v4371_v8 = vsel %vm2390_vm8, %v4339_v39, %v3963_v14  ;;  %v13213_v51 = vld [vmem:[#allocation2 + $0xf0] sm:$0xff] }
 0x34f   : > { %16135 = vst [vmem:[#allocation40_spill] sm:$0xff] %v13143_v22  ;;  %v16066_v9 = vmax.f32 %v13143_v22, 0.0  ;;  %3468 = vrot.lane.b32.xlu1 %v13131_v40, %s16125_s26  ;;  %3342 = vrot.lane.b32.xlu0 %v3129_v45, %s16123_s16  ;;  %v3098_v45 = vld [vmem:[#allocation2 + $0xd9] sm:$0xff] }
 0x350   : > { %2852 = vst.msk [vmem:[#allocation2 + $0x141] sm:$0xff] %vm900_vm2, %v16067_v47  ;;  %10038 = vmatprep.mubr.msk.f32.mxu1 %vm2472_vm10, %v4402_v11 }
 0x351   : > { %2851 = vst.msk [vmem:[#allocation2 + $0x139] sm:$0xff] %vm900_vm2, %v16066_v9  ;;  %v13165_v35 = vpop.permute.xlu1 %3582  ;;  %v13167_v46 = vpop.permute.xlu0 %3200 }
 0x353   : > { %3976 = vrot.lane.b32.xlu1 %v3098_v45, %s16129_s23  ;;  %3850 = vrot.lane.b32.xlu0 %v13171_v44, %s16128_s2 }
 0x355   : > { %v4091_v54 = vpop.permute.xlu1 %4090  ;;  %v3709_v38 = vpop.permute.xlu0 %3708 }
 0x356   : > { %v4403_v11 = vsel %vm2423_vm9, %v4371_v8, %v4091_v54  ;;  %v4180_v54 = vsel %vm900_vm2, %v12740_v15, %v13085_v55 }
 0x357   : > { %3596 = vrot.lane.b32.xlu1 %v3098_v45, %s16126_s11  ;;  %3470 = vrot.lane.b32.xlu0 %v13171_v44, %s16125_s26 }
 0x358   : > { %10039 = vmatmul.mubr.msk.f32.gmra.mrb[6].mxu1 %vm2472_vm10, %v4403_v11 }
 0x359   : > { %v13184_v49 = vpop.permute.xlu1 %3328  ;;  %v13186_v53 = vpop.permute.xlu0 %3202 }
 0x35b   : > { %4104 = vrot.lane.b32.xlu1 %v3130_v6, %s16130_s18  ;;  %3978 = vrot.lane.b32.xlu0 %v3099_v17, %s16129_s23 }
 0x35d   : > { %v3837_v59 = vpop.permute.xlu1 %3836  ;;  %v3711_v14 = vpop.permute.xlu0 %3710 }
 0x35f   : > { %3598 = vrot.lane.b32.xlu1 %v3099_v17, %s16126_s11  ;;  %3216 = vrot.lane.b32.xlu0 %v3098_v45, %s16124_s5  ;;  %v4212_v45 = vsel %vm1038_vm3, %v4180_v54, %v13102_v63 }
 0x360   : > { %v4244_v11 = vsel %vm2258_vm4, %v4212_v45, %v13110_v12 }
 0x361   : > { %v13192_v30 = vpop.permute.xlu1 %3456  ;;  %v13194_v56 = vpop.permute.xlu0 %3330  ;;  %v4276_v22 = vsel %vm2291_vm5, %v4244_v11, %v13125_v19  ;;  %v4181_v11 = vsel %vm900_vm2, %v12779_v50, %v13104_v31 }
 0x362   : > { %v4308_v15 = vsel %vm2324_vm6, %v4276_v22, %v3709_v38 }
 0x363   : > { %4106 = vrot.lane.b32.xlu1 %v3131_v13, %s16130_s18  ;;  %3724 = vrot.lane.b32.xlu0 %v3130_v6, %s16127_s17  ;;  %v4340_v63 = vsel %vm2357_vm7, %v4308_v15, %v3837_v59 }
 0x365   : > { %v3965_v39 = vpop.permute.xlu1 %3964  ;;  %v3839_v8 = vpop.permute.xlu0 %3838 }
 0x367   : > { %3344 = vrot.lane.b32.xlu1 %v3130_v6, %s16123_s16  ;;  %3218 = vrot.lane.b32.xlu0 %v3099_v17, %s16124_s5  ;;  %v4372_v17 = vsel %vm2390_vm8, %v4340_v63, %v3965_v39  ;;  %v4213_v39 = vsel %vm1038_vm3, %v4181_v11, %v13112_v36  ;;  %v3132_v11 = vld [vmem:[#allocation2 + $0xf2] sm:$0xff] }
 0x368   : > { %v4245_v15 = vsel %vm2258_vm4, %v4213_v39, %v13127_v33  ;;  %v3101_v39 = vld [vmem:[#allocation2 + $0xf9] sm:$0xff] }
 0x369   : > { %v13207_v9 = vpop.permute.xlu1 %3584  ;;  %v13209_v47 = vpop.permute.xlu0 %3458  ;;  %v4277_v36 = vsel %vm2291_vm5, %v4245_v15, %v13165_v35 }
 0x36a   : > { %v4309_v63 = vsel %vm2324_vm6, %v4277_v36, %v3711_v14 }
 0x36b   : > { %v10004_v55 = vpop.f32.mrb[26].mxu0  ;;  %3852 = vrot.lane.b32.xlu1 %v13213_v51, %s16128_s2  ;;  %3726 = vrot.lane.b32.xlu0 %v3131_v13, %s16127_s17  ;;  %v4341_v33 = vsel %vm2357_vm7, %v4309_v63, %v3839_v8  ;;  %v3133_v63 = vld [vmem:[#allocation2 + $0xfa] sm:$0xff] }
 0x36c   : > { %v13221_v12 = vadd.f32 %v12748_v41, %v10004_v55  ;;  %v2765_v6 = vpop.f32.mrb[27].mxu0  ;;  %v13253_v55 = vld [vmem:[#allocation2 + $0xf8] sm:$0xff] }
 0x36d   : > { %v13225_v19 = vadd.f32 %v12748_v41, %v2765_v6  ;;  %v4093_v54 = vpop.permute.xlu1 %4092  ;;  %v3967_v45 = vpop.permute.xlu0 %3966 }
 0x36e   : > { %16136 = vst [vmem:[#allocation41_spill] sm:$0xff] %v13221_v12  ;;  %v16071_v22 = vmax.f32 %v13221_v12, 0.0  ;;  %v4404_v38 = vsel %vm2423_vm9, %v4372_v17, %v4093_v54  ;;  %v4373_v6 = vsel %vm2390_vm8, %v4341_v33, %v3967_v45  ;;  %v13295_v12 = vld [vmem:[#allocation2 + $0x108] sm:$0xff] }
 0x36f   : > { %16137 = vst [vmem:[#allocation42_spill] sm:$0xff] %v13225_v19  ;;  %v16070_v59 = vmax.f32 %v13225_v19, 0.0  ;;  %3472 = vrot.lane.b32.xlu1 %v13213_v51, %s16125_s26  ;;  %3346 = vrot.lane.b32.xlu0 %v3131_v13, %s16123_s16  ;;  %v3100_v13 = vld [vmem:[#allocation2 + $0xf1] sm:$0xff] }
 0x370   : > { %2854 = vst.msk [vmem:[#allocation2 + $0x159] sm:$0xff] %vm900_vm2, %v16071_v22  ;;  %10041 = vmatprep.mubr.msk.f32.mxu1 %vm2472_vm10, %v4404_v38 }
 0x371   : > { %2853 = vst.msk [vmem:[#allocation2 + $0x151] sm:$0xff] %vm900_vm2, %v16070_v59  ;;  %v13247_v50 = vpop.permute.xlu1 %3586  ;;  %v13249_v31 = vpop.permute.xlu0 %3204 }
 0x373   : > { %3980 = vrot.lane.b32.xlu1 %v3100_v13, %s16129_s23  ;;  %3854 = vrot.lane.b32.xlu0 %v13253_v55, %s16128_s2 }
 0x375   : > { %v4095_v17 = vpop.permute.xlu1 %4094  ;;  %v3713_v54 = vpop.permute.xlu0 %3712 }
 0x376   : > { %v4405_v38 = vsel %vm2423_vm9, %v4373_v6, %v4095_v17  ;;  %v4182_v17 = vsel %vm900_vm2, %v12829_v23, %v13167_v46 }
 0x377   : > { %3600 = vrot.lane.b32.xlu1 %v3100_v13, %s16126_s11  ;;  %3474 = vrot.lane.b32.xlu0 %v13253_v55, %s16125_s26 }
 0x378   : > { %10042 = vmatmul.mubr.msk.f32.gmra.mrb[8].mxu1 %vm2472_vm10, %v4405_v38 }
 0x379   : > { %v13266_v35 = vpop.permute.xlu1 %3332  ;;  %v13268_v14 = vpop.permute.xlu0 %3206 }
 0x37b   : > { %4108 = vrot.lane.b32.xlu1 %v3132_v11, %s16130_s18  ;;  %3982 = vrot.lane.b32.xlu0 %v3101_v39, %s16129_s23 }
 0x37d   : > { %v3841_v8 = vpop.permute.xlu1 %3840  ;;  %v3715_v45 = vpop.permute.xlu0 %3714 }
 0x37f   : > { %3602 = vrot.lane.b32.xlu1 %v3101_v39, %s16126_s11  ;;  %3220 = vrot.lane.b32.xlu0 %v3100_v13, %s16124_s5  ;;  %v4214_v13 = vsel %vm1038_vm3, %v4182_v17, %v13184_v49 }
 0x380   : > { %v4246_v38 = vsel %vm2258_vm4, %v4214_v13, %v13192_v30 }
 0x381   : > { %v13274_v15 = vpop.permute.xlu1 %3460  ;;  %v13276_v36 = vpop.permute.xlu0 %3334  ;;  %v4278_v19 = vsel %vm2291_vm5, %v4246_v38, %v13207_v9  ;;  %v4183_v38 = vsel %vm900_vm2, %v12855_v3, %v13186_v53 }
 0x382   : > { %v4310_v23 = vsel %vm2324_vm6, %v4278_v19, %v3713_v54 }
 0x383   : > { %4110 = vrot.lane.b32.xlu1 %v3133_v63, %s16130_s18  ;;  %3728 = vrot.lane.b32.xlu0 %v3132_v11, %s16127_s17  ;;  %v4342_v49 = vsel %vm2357_vm7, %v4310_v23, %v3841_v8 }
 0x385   : > { %v3969_v33 = vpop.permute.xlu1 %3968  ;;  %v3843_v6 = vpop.permute.xlu0 %3842 }
 0x387   : > { %3348 = vrot.lane.b32.xlu1 %v3132_v11, %s16123_s16  ;;  %3222 = vrot.lane.b32.xlu0 %v3101_v39, %s16124_s5  ;;  %v4374_v39 = vsel %vm2390_vm8, %v4342_v49, %v3969_v33  ;;  %v4215_v33 = vsel %vm1038_vm3, %v4183_v38, %v13194_v56 }
 0x388   : > { %v4247_v23 = vsel %vm2258_vm4, %v4215_v33, %v13209_v47 }
 0x389   : > { %v13289_v59 = vpop.permute.xlu1 %3588  ;;  %v13291_v22 = vpop.permute.xlu0 %3462  ;;  %v4279_v56 = vsel %vm2291_vm5, %v4247_v23, %v13247_v50  ;;  %v3134_v23 = vld [vmem:[#allocation2 + $0x10a] sm:$0xff] }
 0x38a   : > { %v4311_v49 = vsel %vm2324_vm6, %v4279_v56, %v3715_v45  ;;  %v3103_v56 = vld [vmem:[#allocation2 + $0x111] sm:$0xff] }
 0x38b   : > { %v10007_v46 = vpop.f32.mrb[28].mxu0  ;;  %3856 = vrot.lane.b32.xlu1 %v13295_v12, %s16128_s2  ;;  %3730 = vrot.lane.b32.xlu0 %v3133_v63, %s16127_s17  ;;  %v4343_v47 = vsel %vm2357_vm7, %v4311_v49, %v3843_v6 }
 0x38c   : > { %v13303_v30 = vadd.f32 %v12748_v41, %v10007_v46  ;;  %v2775_v11 = vpop.f32.mrb[29].mxu0  ;;  %v13335_v46 = vld [vmem:[#allocation2 + $0x110] sm:$0xff] }
 0x38d   : > { %v13307_v9 = vadd.f32 %v12748_v41, %v2775_v11  ;;  %v4097_v17 = vpop.permute.xlu1 %4096  ;;  %v3971_v13 = vpop.permute.xlu0 %3970 }
 0x38e   : > { %16138 = vst [vmem:[#allocation43_spill] sm:$0xff] %v13303_v30  ;;  %v16077_v19 = vmax.f32 %v13303_v30, 0.0  ;;  %v4406_v54 = vsel %vm2423_vm9, %v4374_v39, %v4097_v17  ;;  %v4375_v11 = vsel %vm2390_vm8, %v4343_v47, %v3971_v13  ;;  %v13459_v30 = vld [vmem:[#allocation2 + $0x138] sm:$0xff] }
 0x38f   : > { %16139 = vst [vmem:[#allocation44_spill] sm:$0xff] %v13307_v9  ;;  %v16076_v8 = vmax.f32 %v13307_v9, 0.0  ;;  %3476 = vrot.lane.b32.xlu1 %v13295_v12, %s16125_s26  ;;  %3350 = vrot.lane.b32.xlu0 %v3133_v63, %s16123_s16  ;;  %v3102_v63 = vld [vmem:[#allocation2 + $0x109] sm:$0xff]  ;;  %v13389_v9 = vld [vmem:[#allocation2 + $0x120] sm:$0xff] }
 0x390   : > { %2856 = vst.msk [vmem:[#allocation2 + $0x171] sm:$0xff] %vm900_vm2, %v16077_v19  ;;  %10044 = vmatprep.mubr.msk.f32.mxu1 %vm2472_vm10, %v4406_v54 }
 0x391   : > { %2855 = vst.msk [vmem:[#allocation2 + $0x169] sm:$0xff] %vm900_vm2, %v16076_v8  ;;  %v13329_v3 = vpop.permute.xlu1 %3590  ;;  %v13331_v53 = vpop.permute.xlu0 %3208 }
 0x393   : > { %3984 = vrot.lane.b32.xlu1 %v3102_v63, %s16129_s23  ;;  %3858 = vrot.lane.b32.xlu0 %v13335_v46, %s16128_s2 }
 0x395   : > { %v4099_v39 = vpop.permute.xlu1 %4098  ;;  %v3717_v17 = vpop.permute.xlu0 %3716 }
 0x396   : > { %v4407_v54 = vsel %vm2423_vm9, %v4375_v11, %v4099_v39 }
 0x397   : > { %3604 = vrot.lane.b32.xlu1 %v3102_v63, %s16126_s11  ;;  %3478 = vrot.lane.b32.xlu0 %v13335_v46, %s16125_s26 }
 0x398   : > { %v10010_v50 = vpop.f32.mrb[30].mxu0  ;;  %10045 = vmatmul.mubr.msk.f32.gmra.mrb[10].mxu1 %vm2472_vm10, %v4407_v54 }
 0x399   : > { %v13349_v45 = vadd.f32 %v12748_v41, %v10010_v50  ;;  %v2785_v38 = vpop.f32.mrb[31].mxu0  ;;  %v13351_v33 = vpop.permute.xlu1 %3336  ;;  %v3135_v50 = vld [vmem:[#allocation2 + $0x112] sm:$0xff] }
 0x39a   : > { %v13354_v6 = vadd.f32 %v12748_v41, %v2785_v38  ;;  %v13356_v13 = vpop.permute.xlu0 %3210 }
 0x39b   : > { %16140 = vst [vmem:[#allocation45_spill] sm:$0xff] %v13349_v45  ;;  %v16074_v49 = vmax.f32 %v13349_v45, 0.0  ;;  %4112 = vrot.lane.b32.xlu1 %v3134_v23, %s16130_s18  ;;  %3986 = vrot.lane.b32.xlu0 %v3103_v56, %s16129_s23 }
 0x39c   : > { %16141 = vst [vmem:[#allocation46_spill] sm:$0xff] %v13354_v6  ;;  %v16075_v47 = vmax.f32 %v13354_v6, 0.0 }
 0x39d   : > { %2858 = vst.msk [vmem:[#allocation2 + $0x189] sm:$0xff] %vm900_vm2, %v16074_v49  ;;  %v3845_v11 = vpop.permute.xlu1 %3844 }
 0x39e   : > { %2857 = vst.msk [vmem:[#allocation2 + $0x181] sm:$0xff] %vm900_vm2, %v16075_v47  ;;  %v3719_v41 = vpop.permute.xlu0 %3718  ;;  %v4184_v47 = vsel %vm900_vm2, %v12887_v2, %v13249_v31 }
 0x39f   : > { %3606 = vrot.lane.b32.xlu1 %v3103_v56, %s16126_s11  ;;  %3224 = vrot.lane.b32.xlu0 %v3102_v63, %s16124_s5  ;;  %v4216_v63 = vsel %vm1038_vm3, %v4184_v47, %v13266_v35 }
 0x3a0   : > { %v4248_v8 = vsel %vm2258_vm4, %v4216_v63, %v13274_v15 }
 0x3a1   : > { %v13370_v39 = vpop.permute.xlu1 %3464  ;;  %v4280_v6 = vsel %vm2291_vm5, %v4248_v8, %v13289_v59  ;;  %v4185_v59 = vsel %vm900_vm2, %v12925_v4, %v13268_v14  ;;  %v3104_v4 = vld [vmem:[#allocation2 + $0x121] sm:$0xff] }
 0x3a2   : > { %v13372_v54 = vpop.permute.xlu0 %3338  ;;  %v4312_v2 = vsel %vm2324_vm6, %v4280_v6, %v3717_v17  ;;  %v4217_v8 = vsel %vm1038_vm3, %v4185_v59, %v13276_v36  ;;  %v13415_v14 = vld [vmem:[#allocation2 + $0x128] sm:$0xff] }
 0x3a3   : > { %4114 = vrot.lane.b32.xlu1 %v3135_v50, %s16130_s18  ;;  %3732 = vrot.lane.b32.xlu0 %v3134_v23, %s16127_s17  ;;  %v4344_v31 = vsel %vm2357_vm7, %v4312_v2, %v3845_v11  ;;  %v4249_v17 = vsel %vm2258_vm4, %v4217_v8, %v13291_v22  ;;  %v3137_v59 = vld [vmem:[#allocation2 + $0x12a] sm:$0xff] }
 0x3a4   : > { %v4281_v47 = vsel %vm2291_vm5, %v4249_v17, %v13329_v3 }
 0x3a5   : > { %v3973_v38 = vpop.permute.xlu1 %3972 }
 0x3a6   : > { %v3847_v49 = vpop.permute.xlu0 %3846  ;;  %v4376_v35 = vsel %vm2390_vm8, %v4344_v31, %v3973_v38  ;;  %v3136_v31 = vld [vmem:[#allocation2 + $0x122] sm:$0xff] }
 0x3a7   : > { %3352 = vrot.lane.b32.xlu1 %v3134_v23, %s16123_s16  ;;  %3226 = vrot.lane.b32.xlu0 %v3103_v56, %s16124_s5 }
 0x3a9   : > { %v3593_v19 = vpop.permute.xlu1 %3592 }
 0x3aa   : > { %v13387_v45 = vpop.permute.xlu0 %3466 }
 0x3ab   : > { %3860 = vrot.lane.b32.xlu1 %v13389_v9, %s16128_s2  ;;  %3734 = vrot.lane.b32.xlu0 %v3135_v50, %s16127_s17 }
 0x3ad   : > { %v4101_v15 = vpop.permute.xlu1 %4100 }
 0x3ae   : > { %v4408_v23 = vsel %vm2423_vm9, %v4376_v35, %v4101_v15  ;;  %v3975_v56 = vpop.permute.xlu0 %3974  ;;  %v3105_v35 = vld [vmem:[#allocation2 + $0x129] sm:$0xff] }
 0x3af   : > { %3480 = vrot.lane.b32.xlu1 %v13389_v9, %s16125_s26  ;;  %3354 = vrot.lane.b32.xlu0 %v3135_v50, %s16123_s16  ;;  %v4313_v50 = vsel %vm2324_vm6, %v4281_v47, %v3719_v41  ;;  %v4186_v47 = vsel %vm900_vm2, %v12967_v7, %v13331_v53 }
 0x3b0   : > { %10047 = vmatprep.mubr.msk.f32.mxu1 %vm2472_vm10, %v4408_v23  ;;  %v4345_v36 = vsel %vm2357_vm7, %v4313_v50, %v3847_v49 }
 0x3b1   : > { %v13409_v6 = vpop.permute.xlu1 %3594  ;;  %v4377_v22 = vsel %vm2390_vm8, %v4345_v36, %v3975_v56 }
 0x3b2   : > { %v13413_v11 = vpop.permute.xlu0 %3212 }
 0x3b3   : > { %3988 = vrot.lane.b32.xlu1 %v3104_v4, %s16129_s23  ;;  %3862 = vrot.lane.b32.xlu0 %v13415_v14, %s16128_s2 }
 0x3b5   : > { %v4103_v38 = vpop.permute.xlu1 %4102 }
 0x3b6   : > { %v4409_v63 = vsel %vm2423_vm9, %v4377_v22, %v4103_v38  ;;  %v3721_v3 = vpop.permute.xlu0 %3720  ;;  %v13454_v22 = vld [vmem:[%s10978_s29] ss:$0 sm:$0xff] }
 0x3b7   : > { %3608 = vrot.lane.b32.xlu1 %v3104_v4, %s16126_s11  ;;  %3482 = vrot.lane.b32.xlu0 %v13415_v14, %s16125_s26 }
 0x3b8   : > { %10048 = vmatmul.mubr.msk.f32.gmra.mrb[12].mxu1 %vm2472_vm10, %v4409_v63 }
 0x3b9   : > { %v13428_v41 = vpop.permute.xlu1 %3340 }
 0x3ba   : > { %v13430_v2 = vpop.permute.xlu0 %3214 }
 0x3bb   : > { %4116 = vrot.lane.b32.xlu1 %v3136_v31, %s16130_s18  ;;  %3990 = vrot.lane.b32.xlu0 %v3105_v35, %s16129_s23 }
 0x3bd   : > { %v3849_v49 = vpop.permute.xlu1 %3848 }
 0x3be   : > { %v3723_v15 = vpop.permute.xlu0 %3722 }
 0x3bf   : > { %3610 = vrot.lane.b32.xlu1 %v3105_v35, %s16126_s11  ;;  %3228 = vrot.lane.b32.xlu0 %v3104_v4, %s16124_s5  ;;  %v4218_v4 = vsel %vm1038_vm3, %v4186_v47, %v13351_v33 }
 0x3c0   : > { %v4250_v50 = vsel %vm2258_vm4, %v4218_v4, %v13370_v39 }
 0x3c1   : > { %v13436_v23 = vpop.permute.xlu1 %3468  ;;  %v4282_v38 = vsel %vm2291_vm5, %v4250_v50, %v3593_v19 }
 0x3c2   : > { %v13438_v56 = vpop.permute.xlu0 %3342  ;;  %v4314_v7 = vsel %vm2324_vm6, %v4282_v38, %v3721_v3  ;;  %v4187_v38 = vsel %vm900_vm2, %v13007_v58, %v13356_v13 }
 0x3c3   : > { %4118 = vrot.lane.b32.xlu1 %v3137_v59, %s16130_s18  ;;  %3736 = vrot.lane.b32.xlu0 %v3136_v31, %s16127_s17  ;;  %v4346_v33 = vsel %vm2357_vm7, %v4314_v7, %v3849_v49  ;;  %v4219_v49 = vsel %vm1038_vm3, %v4187_v38, %v13372_v54 }
 0x3c5   : > { %v3977_v8 = vpop.permute.xlu1 %3976 }
 0x3c6   : > { %v3851_v17 = vpop.permute.xlu0 %3850 }
 0x3c7   : > { %3356 = vrot.lane.b32.xlu1 %v3136_v31, %s16123_s16  ;;  %3230 = vrot.lane.b32.xlu0 %v3105_v35, %s16124_s5  ;;  %v4378_v35 = vsel %vm2390_vm8, %v4346_v33, %v3977_v8  ;;  %v4251_v8 = vsel %vm2258_vm4, %v4219_v49, %v13387_v45 }
 0x3c8   : > { %v4283_v58 = vsel %vm2291_vm5, %v4251_v8, %v13409_v6  ;;  %v4188_v8 = vsel %vm900_vm2, %v13049_v20, %v13413_v11 }
 0x3c9   : > { %v13451_v36 = vpop.permute.xlu1 %3596  ;;  %v4315_v54 = vsel %vm2324_vm6, %v4283_v58, %v3723_v15  ;;  %v4220_v58 = vsel %vm1038_vm3, %v4188_v8, %v13428_v41 }
 0x3ca   : > { %v13457_v63 = vpop.permute.xlu0 %3470  ;;  %v4347_v45 = vsel %vm2357_vm7, %v4315_v54, %v3851_v17 }
 0x3cb   : > { %v10031_v53 = vpop.f32.mrb[0].mxu1  ;;  %3864 = vrot.lane.b32.xlu1 %v13459_v30, %s16128_s2  ;;  %3738 = vrot.lane.b32.xlu0 %v3137_v59, %s16127_s17 }
 0x3cc   : > { %v4612_v39 = vadd.f32 %v10031_v53, %v13454_v22  ;;  %v4606_v31 = vpop.f32.mrb[1].mxu1  ;;  %v13489_v53 = vld [vmem:[#allocation2 + $0x140] sm:$0xff] }
 0x3cd   : > { %v4607_v19 = vadd.f32 %v13454_v22, %v4606_v31  ;;  %v4105_v47 = vpop.permute.xlu1 %4104 }
 0x3ce   : > { %v4766_v4 = vmax.f32 %v4612_v39, 0.0  ;;  %v4410_v50 = vsel %vm2423_vm9, %v4378_v35, %v4105_v47  ;;  %v3979_v3 = vpop.permute.xlu0 %3978  ;;  %v3138_v35 = vld [vmem:[#allocation2 + $0x13a] sm:$0xff] }
 0x3cf   : > { %v4765_v5 = vmax.f32 %v4607_v19, 0.0  ;;  %3484 = vrot.lane.b32.xlu1 %v13459_v30, %s16125_s26  ;;  %3358 = vrot.lane.b32.xlu0 %v3137_v59, %s16123_s16  ;;  %v3106_v59 = vld [vmem:[#allocation2 + $0x139] sm:$0xff]  ;;  %v3107_v19 = vld [vmem:[#allocation2 + $0x141] sm:$0xff] }
 0x3d0   : > { %4798 = vst.msk [vmem:[#allocation2 + $0x21] sm:$0xff] %vm900_vm2, %v4766_v4  ;;  %10050 = vmatprep.mubr.msk.f32.mxu1 %vm2472_vm10, %v4410_v50 }
 0x3d1   : > { %4797 = vst.msk [vmem:[#allocation2 + $0x19] sm:$0xff] %vm900_vm2, %v4765_v5  ;;  %v13483_v7 = vpop.permute.xlu1 %3598  ;;  %v4379_v5 = vsel %vm2390_vm8, %v4347_v45, %v3979_v3  ;;  %v3139_v3 = vld [vmem:[#allocation2 + $0x142] sm:$0xff] }
 0x3d2   : > { %v13487_v13 = vpop.permute.xlu0 %3216 }
 0x3d3   : > { %3992 = vrot.lane.b32.xlu1 %v3106_v59, %s16129_s23  ;;  %3866 = vrot.lane.b32.xlu0 %v13489_v53, %s16128_s2 }
 0x3d5   : > { %v4107_v33 = vpop.permute.xlu1 %4106 }
 0x3d6   : > { %v4411_v39 = vsel %vm2423_vm9, %v4379_v5, %v4107_v33  ;;  %v3725_v6 = vpop.permute.xlu0 %3724  ;;  %v13531_v33 = vld [vmem:[#allocation2 + $0x150] sm:$0xff] }
 0x3d7   : > { %3612 = vrot.lane.b32.xlu1 %v3106_v59, %s16126_s11  ;;  %3486 = vrot.lane.b32.xlu0 %v13489_v53, %s16125_s26 }
 0x3d8   : > { %10051 = vmatmul.mubr.msk.f32.gmra.mrb[14].mxu1 %vm2472_vm10, %v4411_v39 }
 0x3d9   : > { %v13502_v15 = vpop.permute.xlu1 %3344 }
 0x3da   : > { %v13504_v31 = vpop.permute.xlu0 %3218 }
 0x3db   : > { %4120 = vrot.lane.b32.xlu1 %v3138_v35, %s16130_s18  ;;  %3994 = vrot.lane.b32.xlu0 %v3107_v19, %s16129_s23 }
 0x3dd   : > { %v3853_v17 = vpop.permute.xlu1 %3852 }
 0x3de   : > { %v3727_v47 = vpop.permute.xlu0 %3726 }
 0x3df   : > { %3614 = vrot.lane.b32.xlu1 %v3107_v19, %s16126_s11  ;;  %3232 = vrot.lane.b32.xlu0 %v3106_v59, %s16124_s5  ;;  %v4252_v59 = vsel %vm2258_vm4, %v4220_v58, %v13436_v23 }
 0x3e0   : > { %v4284_v45 = vsel %vm2291_vm5, %v4252_v59, %v13451_v36  ;;  %v4189_v59 = vsel %vm900_vm2, %v13089_v52, %v13430_v2 }
 0x3e1   : > { %v13510_v4 = vpop.permute.xlu1 %3472  ;;  %v4316_v20 = vsel %vm2324_vm6, %v4284_v45, %v3725_v6 }
 0x3e2   : > { %v13512_v50 = vpop.permute.xlu0 %3346  ;;  %v4348_v41 = vsel %vm2357_vm7, %v4316_v20, %v3853_v17  ;;  %v4221_v17 = vsel %vm1038_vm3, %v4189_v59, %v13438_v56  ;;  %v3141_v59 = vld [vmem:[#allocation2 + $0x15a] sm:$0xff] }
 0x3e3   : > { %4122 = vrot.lane.b32.xlu1 %v3139_v3, %s16130_s18  ;;  %3740 = vrot.lane.b32.xlu0 %v3138_v35, %s16127_s17 }
 0x3e5   : > { %v3981_v38 = vpop.permute.xlu1 %3980 }
 0x3e6   : > { %v3855_v49 = vpop.permute.xlu0 %3854 }
 0x3e7   : > { %3360 = vrot.lane.b32.xlu1 %v3138_v35, %s16123_s16  ;;  %3234 = vrot.lane.b32.xlu0 %v3107_v19, %s16124_s5  ;;  %v4380_v35 = vsel %vm2390_vm8, %v4348_v41, %v3981_v38  ;;  %v4253_v38 = vsel %vm2258_vm4, %v4221_v17, %v13457_v63 }
 0x3e8   : > { %v4285_v52 = vsel %vm2291_vm5, %v4253_v38, %v13483_v7  ;;  %v4190_v38 = vsel %vm900_vm2, %v13131_v40, %v13487_v13 }
 0x3e9   : > { %v13525_v54 = vpop.permute.xlu1 %3600  ;;  %v4317_v56 = vsel %vm2324_vm6, %v4285_v52, %v3727_v47  ;;  %v4222_v52 = vsel %vm1038_vm3, %v4190_v38, %v13502_v15 }
 0x3ea   : > { %v13529_v5 = vpop.permute.xlu0 %3474  ;;  %v4349_v63 = vsel %vm2357_vm7, %v4317_v56, %v3855_v49 }
 0x3eb   : > { %v10034_v11 = vpop.f32.mrb[2].mxu1  ;;  %3868 = vrot.lane.b32.xlu1 %v13531_v33, %s16128_s2  ;;  %3742 = vrot.lane.b32.xlu0 %v3139_v3, %s16127_s17 }
 0x3ec   : > { %v4622_v23 = vadd.f32 %v10034_v11, %v13454_v22  ;;  %v4616_v39 = vpop.f32.mrb[3].mxu1  ;;  %v13561_v11 = vld [vmem:[#allocation2 + $0x158] sm:$0xff] }
 0x3ed   : > { %v4617_v36 = vadd.f32 %v13454_v22, %v4616_v39  ;;  %v4109_v19 = vpop.permute.xlu1 %4108 }
 0x3ee   : > { %v4768_v8 = vmax.f32 %v4622_v23, 0.0  ;;  %v4412_v58 = vsel %vm2423_vm9, %v4380_v35, %v4109_v19  ;;  %v3983_v6 = vpop.permute.xlu0 %3982  ;;  %v3109_v19 = vld [vmem:[#allocation2 + $0x159] sm:$0xff] }
 0x3ef   : > { %v4767_v45 = vmax.f32 %v4617_v36, 0.0  ;;  %3488 = vrot.lane.b32.xlu1 %v13531_v33, %s16125_s26  ;;  %3362 = vrot.lane.b32.xlu0 %v3139_v3, %s16123_s16  ;;  %v3108_v3 = vld [vmem:[#allocation2 + $0x151] sm:$0xff]  ;;  %v4381_v41 = vsel %vm2390_vm8, %v4349_v63, %v3983_v6 }
 0x3f0   : > { %4800 = vst.msk [vmem:[#allocation2 + $0x39] sm:$0xff] %vm900_vm2, %v4768_v8  ;;  %10053 = vmatprep.mubr.msk.f32.mxu1 %vm2472_vm10, %v4412_v58  ;;  %v3140_v36 = vld [vmem:[#allocation2 + $0x152] sm:$0xff] }
 0x3f1   : > { %4799 = vst.msk [vmem:[#allocation2 + $0x31] sm:$0xff] %vm900_vm2, %v4767_v45  ;;  %v13555_v20 = vpop.permute.xlu1 %3602 }
 0x3f2   : > { %v13559_v2 = vpop.permute.xlu0 %3220 }
 0x3f3   : > { %3996 = vrot.lane.b32.xlu1 %v3108_v3, %s16129_s23  ;;  %3870 = vrot.lane.b32.xlu0 %v13561_v11, %s16128_s2 }
 0x3f5   : > { %v4111_v23 = vpop.permute.xlu1 %4110 }
 0x3f6   : > { %v4413_v39 = vsel %vm2423_vm9, %v4381_v41, %v4111_v23  ;;  %v3729_v7 = vpop.permute.xlu0 %3728  ;;  %v13603_v23 = vld [vmem:[#allocation2 + $0x168] sm:$0xff] }
 0x3f7   : > { %3616 = vrot.lane.b32.xlu1 %v3108_v3, %s16126_s11  ;;  %3490 = vrot.lane.b32.xlu0 %v13561_v11, %s16125_s26 }
 0x3f8   : > { %10054 = vmatmul.mubr.msk.f32.gmra.mrb[16].mxu1 %vm2472_vm10, %v4413_v39 }
 0x3f9   : > { %v13574_v47 = vpop.permute.xlu1 %3348 }
 0x3fa   : > { %v13576_v35 = vpop.permute.xlu0 %3222 }
 0x3fb   : > { %4124 = vrot.lane.b32.xlu1 %v3140_v36, %s16130_s18  ;;  %3998 = vrot.lane.b32.xlu0 %v3109_v19, %s16129_s23 }
 0x3fd   : > { %v3857_v49 = vpop.permute.xlu1 %3856 }
 0x3fe   : > { %v3731_v8 = vpop.permute.xlu0 %3730 }
 0x3ff   : > { %3618 = vrot.lane.b32.xlu1 %v3109_v19, %s16126_s11  ;;  %3236 = vrot.lane.b32.xlu0 %v3108_v3, %s16124_s5  ;;  %v4254_v3 = vsel %vm2258_vm4, %v4222_v52, %v13510_v4 }
 0x400   : > { %v4286_v63 = vsel %vm2291_vm5, %v4254_v3, %v13525_v54  ;;  %v4191_v3 = vsel %vm900_vm2, %v13171_v44, %v13504_v31 }
 0x401   : > { %v13582_v58 = vpop.permute.xlu1 %3476  ;;  %v4318_v40 = vsel %vm2324_vm6, %v4286_v63, %v3729_v7 }
 0x402   : > { %v13584_v6 = vpop.permute.xlu0 %3350  ;;  %v4350_v15 = vsel %vm2357_vm7, %v4318_v40, %v3857_v49  ;;  %v4223_v49 = vsel %vm1038_vm3, %v4191_v3, %v13512_v50  ;;  %v3143_v3 = vld [vmem:[#allocation2 + $0x172] sm:$0xff] }
 0x403   : > { %4126 = vrot.lane.b32.xlu1 %v3141_v59, %s16130_s18  ;;  %3744 = vrot.lane.b32.xlu0 %v3140_v36, %s16127_s17 }
 0x405   : > { %v3985_v45 = vpop.permute.xlu1 %3984 }
 0x406   : > { %v3859_v17 = vpop.permute.xlu0 %3858 }
 0x407   : > { %3364 = vrot.lane.b32.xlu1 %v3140_v36, %s16123_s16  ;;  %3238 = vrot.lane.b32.xlu0 %v3109_v19, %s16124_s5  ;;  %v4382_v36 = vsel %vm2390_vm8, %v4350_v15, %v3985_v45  ;;  %v4255_v45 = vsel %vm2258_vm4, %v4223_v49, %v13529_v5 }
 0x408   : > { %v4287_v44 = vsel %vm2291_vm5, %v4255_v45, %v13555_v20  ;;  %v4192_v45 = vsel %vm900_vm2, %v13213_v51, %v13559_v2 }
 0x409   : > { %v13597_v56 = vpop.permute.xlu1 %3604  ;;  %v4319_v50 = vsel %vm2324_vm6, %v4287_v44, %v3731_v8  ;;  %v4224_v44 = vsel %vm1038_vm3, %v4192_v45, %v13574_v47 }
 0x40a   : > { %v13601_v41 = vpop.permute.xlu0 %3478  ;;  %v4351_v5 = vsel %vm2357_vm7, %v4319_v50, %v3859_v17 }
 0x40b   : > { %v10037_v13 = vpop.f32.mrb[4].mxu1  ;;  %3872 = vrot.lane.b32.xlu1 %v13603_v23, %s16128_s2  ;;  %3746 = vrot.lane.b32.xlu0 %v3141_v59, %s16127_s17 }
 0x40c   : > { %v4632_v4 = vadd.f32 %v10037_v13, %v13454_v22  ;;  %v4626_v39 = vpop.f32.mrb[5].mxu1  ;;  %v13633_v13 = vld [vmem:[#allocation2 + $0x170] sm:$0xff] }
 0x40d   : > { %v4627_v54 = vadd.f32 %v13454_v22, %v4626_v39  ;;  %v4113_v19 = vpop.permute.xlu1 %4112 }
 0x40e   : > { %v4770_v38 = vmax.f32 %v4632_v4, 0.0  ;;  %v4414_v52 = vsel %vm2423_vm9, %v4382_v36, %v4113_v19  ;;  %v3987_v7 = vpop.permute.xlu0 %3986  ;;  %v3111_v19 = vld [vmem:[#allocation2 + $0x171] sm:$0xff] }
 0x40f   : > { %v4769_v63 = vmax.f32 %v4627_v54, 0.0  ;;  %3492 = vrot.lane.b32.xlu1 %v13603_v23, %s16125_s26  ;;  %3366 = vrot.lane.b32.xlu0 %v3141_v59, %s16123_s16  ;;  %v3110_v59 = vld [vmem:[#allocation2 + $0x169] sm:$0xff]  ;;  %v4383_v15 = vsel %vm2390_vm8, %v4351_v5, %v3987_v7 }
 0x410   : > { %4802 = vst.msk [vmem:[#allocation2 + $0x51] sm:$0xff] %vm900_vm2, %v4770_v38  ;;  %10056 = vmatprep.mubr.msk.f32.mxu1 %vm2472_vm10, %v4414_v52  ;;  %v3142_v54 = vld [vmem:[#allocation2 + $0x16a] sm:$0xff] }
 0x411   : > { %4801 = vst.msk [vmem:[#allocation2 + $0x49] sm:$0xff] %vm900_vm2, %v4769_v63  ;;  %v13627_v40 = vpop.permute.xlu1 %3606 }
 0x412   : > { %v13631_v31 = vpop.permute.xlu0 %3224 }
 0x413   : > { %4000 = vrot.lane.b32.xlu1 %v3110_v59, %s16129_s23  ;;  %3874 = vrot.lane.b32.xlu0 %v13633_v13, %s16128_s2 }
 0x415   : > { %v4115_v4 = vpop.permute.xlu1 %4114 }
 0x416   : > { %v4415_v39 = vsel %vm2423_vm9, %v4383_v15, %v4115_v4  ;;  %v3733_v20 = vpop.permute.xlu0 %3732  ;;  %v3080_v4 = vld [vmem:[#allocation2 + $0x180] sm:$0xff] }
 0x417   : > { %3620 = vrot.lane.b32.xlu1 %v3110_v59, %s16126_s11  ;;  %3494 = vrot.lane.b32.xlu0 %v13633_v13, %s16125_s26 }
 0x418   : > { %10057 = vmatmul.mubr.msk.f32.gmra.mrb[18].mxu1 %vm2472_vm10, %v4415_v39 }
 0x419   : > { %v13646_v8 = vpop.permute.xlu1 %3352 }
 0x41a   : > { %v13648_v36 = vpop.permute.xlu0 %3226 }
 0x41b   : > { %4128 = vrot.lane.b32.xlu1 %v3142_v54, %s16130_s18  ;;  %4002 = vrot.lane.b32.xlu0 %v3111_v19, %s16129_s23 }
 0x41d   : > { %v3861_v17 = vpop.permute.xlu1 %3860 }
 0x41e   : > { %v3735_v38 = vpop.permute.xlu0 %3734 }
 0x41f   : > { %3622 = vrot.lane.b32.xlu1 %v3111_v19, %s16126_s11  ;;  %3240 = vrot.lane.b32.xlu0 %v3110_v59, %s16124_s5  ;;  %v4256_v59 = vsel %vm2258_vm4, %v4224_v44, %v13582_v58 }
 0x420   : > { %v4288_v5 = vsel %vm2291_vm5, %v4256_v59, %v13597_v56 }
 0x421   : > { %v13654_v52 = vpop.permute.xlu1 %3480  ;;  %v4320_v51 = vsel %vm2324_vm6, %v4288_v5, %v3733_v20  ;;  %v4193_v20 = vsel %vm900_vm2, %v13253_v55, %v13576_v35 }
 0x422   : > { %v13656_v7 = vpop.permute.xlu0 %3354  ;;  %v4352_v47 = vsel %vm2357_vm7, %v4320_v51, %v3861_v17  ;;  %v4225_v17 = vsel %vm1038_vm3, %v4193_v20, %v13584_v6  ;;  %v3083_v20 = vld [vmem:[#allocation2 + $0x1a0] sm:$0xff] }
 0x423   : > { %4130 = vrot.lane.b32.xlu1 %v3143_v3, %s16130_s18  ;;  %3748 = vrot.lane.b32.xlu0 %v3142_v54, %s16127_s17 }
 0x425   : > { %v3989_v63 = vpop.permute.xlu1 %3988 }
 0x426   : > { %v3863_v49 = vpop.permute.xlu0 %3862 }
 0x427   : > { %3368 = vrot.lane.b32.xlu1 %v3142_v54, %s16123_s16  ;;  %3242 = vrot.lane.b32.xlu0 %v3111_v19, %s16124_s5  ;;  %v4384_v54 = vsel %vm2390_vm8, %v4352_v47, %v3989_v63  ;;  %v4257_v63 = vsel %vm2258_vm4, %v4225_v17, %v13601_v41 }
 0x428   : > { %v4289_v55 = vsel %vm2291_vm5, %v4257_v63, %v13627_v40 }
 0x429   : > { %v13669_v50 = vpop.permute.xlu1 %3608  ;;  %v4321_v6 = vsel %vm2324_vm6, %v4289_v55, %v3735_v38  ;;  %v4194_v55 = vsel %vm900_vm2, %v13295_v12, %v13631_v31 }
 0x42a   : > { %v13673_v15 = vpop.permute.xlu0 %3482 }
 0x42b   : > { %v10040_v2 = vpop.f32.mrb[6].mxu1  ;;  %3876 = vrot.lane.b32.xlu1 %v3080_v4, %s16128_s2  ;;  %3750 = vrot.lane.b32.xlu0 %v3143_v3, %s16127_s17 }
 0x42c   : > { %v4642_v39 = vadd.f32 %v10040_v2, %v13454_v22  ;;  %v4636_v58 = vpop.f32.mrb[7].mxu1  ;;  %v4353_v2 = vsel %vm2357_vm7, %v4321_v6, %v3863_v49  ;;  %v3114_v6 = vld [vmem:[#allocation2 + $0x199] sm:$0xff] }
 0x42d   : > { %v4637_v19 = vadd.f32 %v13454_v22, %v4636_v58  ;;  %v4117_v56 = vpop.permute.xlu1 %4116 }
 0x42e   : > { %v4772_v45 = vmax.f32 %v4642_v39, 0.0  ;;  %v4416_v44 = vsel %vm2423_vm9, %v4384_v54, %v4117_v56  ;;  %v3991_v59 = vpop.permute.xlu0 %3990  ;;  %v3144_v54 = vld [vmem:[#allocation2 + $0x182] sm:$0xff] }
 0x42f   : > { %v4771_v5 = vmax.f32 %v4637_v19, 0.0  ;;  %3496 = vrot.lane.b32.xlu1 %v3080_v4, %s16125_s26  ;;  %3370 = vrot.lane.b32.xlu0 %v3143_v3, %s16123_s16  ;;  %v3112_v3 = vld [vmem:[#allocation2 + $0x181] sm:$0xff]  ;;  %v4385_v41 = vsel %vm2390_vm8, %v4353_v2, %v3991_v59  ;;  %v3113_v19 = vld [vmem:[#allocation2 + $0x189] sm:$0xff] }
 0x430   : > { %4804 = vst.msk [vmem:[#allocation2 + $0x69] sm:$0xff] %vm900_vm2, %v4772_v45  ;;  %10059 = vmatprep.mubr.msk.f32.mxu1 %vm2472_vm10, %v4416_v44  ;;  %v3081_v4 = vld [vmem:[#allocation2 + $0x188] sm:$0xff] }
 0x431   : > { %4803 = vst.msk [vmem:[#allocation2 + $0x61] sm:$0xff] %vm900_vm2, %v4771_v5  ;;  %v13695_v51 = vpop.permute.xlu1 %3610  ;;  %v3050_v59 = vld [vmem:[#allocation2 + $0x18a] sm:$0xff]  ;;  %v3082_v5 = vld [vmem:[#allocation2 + $0x198] sm:$0xff] }
 0x432   : > { %v13699_v35 = vpop.permute.xlu0 %3228 }
 0x433   : > { %4004 = vrot.lane.b32.xlu1 %v3112_v3, %s16129_s23  ;;  %3878 = vrot.lane.b32.xlu0 %v3081_v4, %s16128_s2 }
 0x435   : > { %v4119_v47 = vpop.permute.xlu1 %4118 }
 0x436   : > { %v4417_v39 = vsel %vm2423_vm9, %v4385_v41, %v4119_v47  ;;  %v3737_v58 = vpop.permute.xlu0 %3736 }
 0x437   : > { %3624 = vrot.lane.b32.xlu1 %v3112_v3, %s16126_s11  ;;  %3498 = vrot.lane.b32.xlu0 %v3081_v4, %s16125_s26  ;;  %v4226_v3 = vsel %vm1038_vm3, %v4194_v55, %v13646_v8  ;;  %v3115_v4 = vld [vmem:[#allocation2 + $0x1a1] sm:$0xff] }
 0x438   : > { %10060 = vmatmul.mubr.msk.f32.gmra.mrb[20].mxu1 %vm2472_vm10, %v4417_v39  ;;  %v4258_v2 = vsel %vm2258_vm4, %v4226_v3, %v13654_v52  ;;  %v3147_v52 = vld [vmem:[#allocation2 + $0x1a2] sm:$0xff] }
 0x439   : > { %v13710_v40 = vpop.permute.xlu1 %3356  ;;  %v4290_v47 = vsel %vm2291_vm5, %v4258_v2, %v13669_v50  ;;  %v4861_v2 = vld [vmem:[#allocation2 + $0x1] sm:$0xff] }
 0x43a   : > { %v13712_v38 = vpop.permute.xlu0 %3230  ;;  %v4322_v12 = vsel %vm2324_vm6, %v4290_v47, %v3737_v58 }
 0x43b   : > { %4132 = vrot.lane.b32.xlu1 %v3144_v54, %s16130_s18  ;;  %4006 = vrot.lane.b32.xlu0 %v3113_v19, %s16129_s23 }
 0x43d   : > { %v3865_v49 = vpop.permute.xlu1 %3864 }
 0x43e   : > { %v3739_v56 = vpop.permute.xlu0 %3738  ;;  %v4354_v8 = vsel %vm2357_vm7, %v4322_v12, %v3865_v49 }
 0x43f   : > { %3752 = vrot.lane.b32.xlu1 %v3144_v54, %s16127_s17  ;;  %3626 = vrot.lane.b32.xlu0 %v3113_v19, %s16126_s11 }
 0x441   : > { %v13718_v45 = vpop.permute.xlu1 %3484 }
 0x442   : > { %v13720_v44 = vpop.permute.xlu0 %3358 }
 0x443   : > { %3754 = vrot.lane.b32.xlu1 %v3050_v59, %s16127_s17  ;;  %4134 = vrot.lane.b32.xlu0 %v3050_v59, %s16130_s18  ;;  %v3146_v59 = vld [vmem:[#allocation2 + $0x19a] sm:$0xff] }
 0x445   : > { %v3993_v17 = vpop.permute.xlu1 %3992 }
 0x446   : > { %v3867_v63 = vpop.permute.xlu0 %3866 }
 0x447   : > { %3882 = vrot.lane.b32.xlu1 %v3083_v20, %s16128_s2  ;;  %3880 = vrot.lane.b32.xlu0 %v3082_v5, %s16128_s2  ;;  %v4386_v20 = vsel %vm2390_vm8, %v4354_v8, %v3993_v17  ;;  %v4862_v17 = vld [vmem:[#allocation2 + $0x9] sm:$0xff] }
 0x448   : > { %v4894_v8 = vld [vmem:[#allocation2 + $0xa] sm:$0xff] }
 0x449   : > { %v13733_v41 = vpop.permute.xlu1 %3612 }
 0x44a   : > { %v13737_v39 = vpop.permute.xlu0 %3486 }
 0x44b   : > { %v10043_v31 = vpop.f32.mrb[8].mxu1  ;;  %4010 = vrot.lane.b32.xlu1 %v3115_v4, %s16129_s23  ;;  %4008 = vrot.lane.b32.xlu0 %v3114_v6, %s16129_s23  ;;  %v4195_v4 = vsel %vm900_vm2, %v13335_v46, %v13648_v36 }
 0x44c   : > { %v4652_v54 = vadd.f32 %v10043_v31, %v13454_v22  ;;  %v4646_v19 = vpop.f32.mrb[9].mxu1  ;;  %v4227_v49 = vsel %vm1038_vm3, %v4195_v4, %v13656_v7  ;;  %v4989_v4 = vld [vmem:[#allocation2 + $0x1a] sm:$0xff] }
 0x44d   : > { %v4647_v50 = vadd.f32 %v13454_v22, %v4646_v19  ;;  %v4121_v5 = vpop.permute.xlu1 %4120  ;;  %v4259_v47 = vsel %vm2258_vm4, %v4227_v49, %v13673_v15  ;;  %v6397_v49 = vld [vmem:[%s16115_s3] sm:$0xff] }
 0x44e   : > { %v4774_v55 = vmax.f32 %v4652_v54, 0.0  ;;  %v4418_v58 = vsel %vm2423_vm9, %v4386_v20, %v4121_v5  ;;  %v3995_v3 = vpop.permute.xlu0 %3994  ;;  %v4291_v36 = vsel %vm2291_vm5, %v4259_v47, %v13695_v51  ;;  %v4893_v54 = vld [vmem:[#allocation2 + $0x2] sm:$0xff]  ;;  %v13780_v20 = vld [vmem:[#allocation2 + $0x18] sm:$0xff] }
 0x44f   : > { %v4773_v6 = vmax.f32 %v4647_v50, 0.0  ;;  %4138 = vrot.lane.b32.xlu1 %v3147_v52, %s16130_s18  ;;  %4136 = vrot.lane.b32.xlu0 %v3146_v59, %s16130_s18  ;;  %v4323_v7 = vsel %vm2324_vm6, %v4291_v36, %v3739_v56 }
 0x450   : > { %4806 = vst.msk [vmem:[#allocation2 + $0x81] sm:$0xff] %vm900_vm2, %v4774_v55  ;;  %10062 = vmatprep.mubr.msk.f32.mxu1 %vm2472_vm10, %v4418_v58  ;;  %v4355_v31 = vsel %vm2357_vm7, %v4323_v7, %v3867_v63  ;;  %v13778_v63 = vld [vmem:[#allocation2 + $0x20] sm:$0xff]  ;;  %v4196_v7 = vsel %vm900_vm2, %v13389_v9, %v13699_v35  ;;  %v13815_v35 = vld [vmem:[#allocation2 + $0x30] sm:$0xff] }
 0x451   : > { %4805 = vst.msk [vmem:[#allocation2 + $0x79] sm:$0xff] %vm900_vm2, %v4773_v6  ;;  %v13759_v46 = vpop.permute.xlu1 %3614  ;;  %v4387_v15 = vsel %vm2390_vm8, %v4355_v31, %v3995_v3  ;;  %v4863_v55 = vld [vmem:[#allocation2 + $0x19] sm:$0xff]  ;;  %v4958_v6 = vld [vmem:[#allocation2 + $0x21] sm:$0xff]  ;;  %v6399_v31 = vld [vmem:[%s16115_s3 + $0x10] sm:$0xff] }
 0x452   : > { %v13763_v12 = vpop.permute.xlu0 %3232 }
 0x453   : > { %5151 = vrot.lane.b32.xlu1 %v4862_v17, %s16124_s5  ;;  %5149 = vrot.lane.b32.xlu0 %v4861_v2, %s16124_s5  ;;  %v6398_v17 = vld [vmem:[%s16115_s3 + $0x8] sm:$0xff] }
 0x454   : > { %v10300_v2 = vpack.c.bf16 %v6398_v17, %v6397_v49 }
 0x455   : > { %v4123_v19 = vpop.permute.xlu1 %4122 }
 0x456   : > { %v4419_v52 = vsel %vm2423_vm9, %v4387_v15, %v4123_v19  ;;  %v3741_v59 = vpop.permute.xlu0 %3740  ;;  %10301 = vmatprep.subr.bf16.mxu0 %v10300_v2 }
 0x457   : > { %5279 = vrot.lane.b32.xlu1 %v4894_v8, %s16123_s16  ;;  %5277 = vrot.lane.b32.xlu0 %v4893_v54, %s16123_s16  ;;  %v6400_v8 = vld [vmem:[%s16115_s3 + $0x18] sm:$0xff]  ;;  %v4228_v54 = vsel %vm1038_vm3, %v4196_v7, %v13710_v40 }
 0x458   : > { %10063 = vmatmul.mubr.msk.f32.gmra.mrb[22].mxu1 %vm2472_vm10, %v4419_v52  ;;  %10303 = vmatpush3.bf16.msra.mxu0 %v10300_v2  ;;  %v10304_v15 = vpack.c.bf16 %v6400_v8, %v6399_v31  ;;  %v4260_v19 = vsel %vm2258_vm4, %v4228_v54, %v13718_v45  ;;  %v6401_v31 = vld [vmem:[%s16115_s3 + $0x20] sm:$0xff]  ;;  %v6402_v8 = vld [vmem:[%s16115_s3 + $0x28] sm:$0xff] }
 0x459   : > { %v13774_v51 = vpop.permute.xlu1 %3360 }
 0x45a   : > { %v13776_v56 = vpop.permute.xlu0 %3234  ;;  %10305 = vmatprep.subr.bf16.mxu0 %v10304_v15 }
 0x45b   : > { %5407 = vrot.lane.b32.xlu1 %v13778_v63, %s16125_s26  ;;  %5405 = vrot.lane.b32.xlu0 %v13780_v20, %s16125_s26 }
 0x45c   : > { %10307 = vmatpush3.bf16.msra.mxu0 %v10304_v15 }
 0x45d   : > { %v3869_v50 = vpop.permute.xlu1 %3868 }
 0x45e   : > { %v13786_v5 = vpop.permute.xlu0 %3742 }
 0x45f   : > { %5153 = vrot.lane.b32.xlu1 %v4863_v55, %s16124_s5  ;;  %5533 = vrot.lane.b32.xlu0 %v4863_v55, %s16126_s11  ;;  %v4292_v55 = vsel %vm2291_vm5, %v4260_v19, %v13733_v41 }
 0x460   : > { %v4324_v40 = vsel %vm2324_vm6, %v4292_v55, %v3741_v59  ;;  %v10308_v55 = vpack.c.bf16 %v6402_v8, %v6401_v31 }
 0x461   : > { %v13790_v58 = vpop.permute.xlu1 %3488  ;;  %v4356_v45 = vsel %vm2357_vm7, %v4324_v40, %v3869_v50  ;;  %v4197_v50 = vsel %vm900_vm2, %v13415_v14, %v13712_v38  ;;  %v6403_v38 = vld [vmem:[%s16115_s3 + $0x30] sm:$0xff] }
 0x462   : > { %v13792_v3 = vpop.permute.xlu0 %3362  ;;  %10309 = vmatprep.subr.bf16.mxu0 %v10308_v55 }
 0x463   : > { %5661 = vrot.lane.b32.xlu1 %v4989_v4, %s16127_s17  ;;  %5535 = vrot.lane.b32.xlu0 %v4958_v6, %s16126_s11 }
 0x464   : > { %10311 = vmatpush3.bf16.msra.mxu0 %v10308_v55 }
 0x465   : > { %v3997_v47 = vpop.permute.xlu1 %3996 }
 0x466   : > { %v3871_v36 = vpop.permute.xlu0 %3870  ;;  %v4388_v17 = vsel %vm2390_vm8, %v4356_v45, %v3997_v47  ;;  %v4229_v47 = vsel %vm1038_vm3, %v4197_v50, %v13720_v44  ;;  %v5053_v45 = vld [vmem:[#allocation2 + $0x31] sm:$0xff] }
 0x467   : > { %5281 = vrot.lane.b32.xlu1 %v4989_v4, %s16123_s16  ;;  %5155 = vrot.lane.b32.xlu0 %v4958_v6, %s16124_s5  ;;  %v4990_v4 = vld [vmem:[#allocation2 + $0x22] sm:$0xff]  ;;  %v4261_v15 = vsel %vm2258_vm4, %v4229_v47, %v13737_v39  ;;  %v5086_v47 = vld [vmem:[#allocation2 + $0x3a] sm:$0xff] }
 0x468   : > { %v6405_v39 = vld [vmem:[%s16115_s3 + $0x40] sm:$0xff] }
 0x469   : > { %v13809_v52 = vpop.permute.xlu1 %3616 }
 0x46a   : > { %v13813_v9 = vpop.permute.xlu0 %3490 }
 0x46b   : > { %v10046_v6 = vpop.f32.mrb[10].mxu1  ;;  %5789 = vrot.lane.b32.xlu1 %v13815_v35, %s16128_s2  ;;  %5663 = vrot.lane.b32.xlu0 %v4990_v4, %s16127_s17 }
 0x46c   : > { %v4662_v41 = vadd.f32 %v10046_v6, %v13454_v22  ;;  %v4656_v49 = vpop.f32.mrb[11].mxu1  ;;  %v6404_v6 = vld [vmem:[%s16115_s3 + $0x38] sm:$0xff] }
 0x46d   : > { %v4657_v2 = vadd.f32 %v13454_v22, %v4656_v49  ;;  %v4125_v7 = vpop.permute.xlu1 %4124  ;;  %v10312_v49 = vpack.c.bf16 %v6404_v6, %v6403_v38  ;;  %v4198_v6 = vsel %vm900_vm2, %v13459_v30, %v13763_v12 }
 0x46e   : > { %v4776_v59 = vmax.f32 %v4662_v41, 0.0  ;;  %v4420_v54 = vsel %vm2423_vm9, %v4388_v17, %v4125_v7  ;;  %v3999_v19 = vpop.permute.xlu0 %3998  ;;  %v13849_v41 = vld [vmem:[#allocation2 + $0x38] sm:$0xff] }
 0x46f   : > { %v4775_v40 = vmax.f32 %v4657_v2, 0.0  ;;  %5409 = vrot.lane.b32.xlu1 %v13815_v35, %s16125_s26  ;;  %5283 = vrot.lane.b32.xlu0 %v4990_v4, %s16123_s16  ;;  %v4293_v4 = vsel %vm2291_vm5, %v4261_v15, %v13759_v46 }
 0x470   : > { %4808 = vst.msk [vmem:[#allocation2 + $0x99] sm:$0xff] %vm900_vm2, %v4776_v59  ;;  %10065 = vmatprep.mubr.msk.f32.mxu1 %vm2472_vm10, %v4420_v54  ;;  %v4325_v17 = vsel %vm2324_vm6, %v4293_v4, %v13786_v5  ;;  %10313 = vmatprep.subr.bf16.mxu0 %v10312_v49  ;;  %v5085_v59 = vld [vmem:[#allocation2 + $0x32] sm:$0xff]  ;;  %v4230_v4 = vsel %vm1038_vm3, %v4198_v6, %v13774_v51 }
 0x471   : > { %4807 = vst.msk [vmem:[#allocation2 + $0x91] sm:$0xff] %vm900_vm2, %v4775_v40  ;;  %v13841_v14 = vpop.permute.xlu1 %3618  ;;  %v4357_v2 = vsel %vm2357_vm7, %v4325_v17, %v3871_v36  ;;  %10315 = vmatpush3.bf16.msra.mxu0 %v10312_v49  ;;  %v5054_v54 = vld [vmem:[#allocation2 + $0x39] sm:$0xff]  ;;  %v4199_v6 = vsel %vm900_vm2, %v13489_v53, %v13776_v56 }
 0x472   : > { %v13847_v44 = vpop.permute.xlu0 %3236  ;;  %v4389_v46 = vsel %vm2390_vm8, %v4357_v2, %v3999_v19  ;;  %10093 = vmatprep.subr.mxu0 %v6405_v39  ;;  %v13893_v2 = vld [vmem:[#allocation2 + $0x48] sm:$0xff] }
 0x473   : > { %5917 = vrot.lane.b32.xlu1 %v5053_v45, %s16129_s23  ;;  %5791 = vrot.lane.b32.xlu0 %v13849_v41, %s16128_s2 }
 0x475   : > { %v4127_v7 = vpop.permute.xlu1 %4126  ;;  %10094 = vmatpush3.msra.mxu0 %v6405_v39 }
 0x476   : > { %v4421_v31 = vsel %vm2423_vm9, %v4389_v46, %v4127_v7  ;;  %v3745_v8 = vpop.permute.xlu0 %3744 }
 0x477   : > { %5537 = vrot.lane.b32.xlu1 %v5053_v45, %s16126_s11  ;;  %5411 = vrot.lane.b32.xlu0 %v13849_v41, %s16125_s26 }
 0x478   : > { %10066 = vmatmul.mubr.msk.f32.gmra.mrb[24].mxu1 %vm2472_vm10, %v4421_v31 }
 0x479   : > { %v13864_v5 = vpop.permute.xlu1 %3364 }
 0x47a   : > { %v13866_v36 = vpop.permute.xlu0 %3238 }
 0x47b   : > { %6045 = vrot.lane.b32.xlu1 %v5085_v59, %s16130_s18  ;;  %5919 = vrot.lane.b32.xlu0 %v5054_v54, %s16129_s23 }
 0x47d   : > { %v3873_v19 = vpop.permute.xlu1 %3872 }
 0x47e   : > { %v3747_v55 = vpop.permute.xlu0 %3746 }
 0x47f   : > { %5539 = vrot.lane.b32.xlu1 %v5054_v54, %s16126_s11  ;;  %5157 = vrot.lane.b32.xlu0 %v5053_v45, %s16124_s5  ;;  %v4262_v45 = vsel %vm2258_vm4, %v4230_v4, %v13790_v58 }
 0x480   : > { %v4294_v17 = vsel %vm2291_vm5, %v4262_v45, %v13809_v52 }
 0x481   : > { %v13872_v50 = vpop.permute.xlu1 %3492  ;;  %v4326_v30 = vsel %vm2324_vm6, %v4294_v17, %v3745_v8  ;;  %v13923_v17 = vld [vmem:[#allocation2 + $0x50] sm:$0xff] }
 0x482   : > { %v13874_v40 = vpop.permute.xlu0 %3366  ;;  %v4358_v51 = vsel %vm2357_vm7, %v4326_v30, %v3873_v19  ;;  %v4231_v19 = vsel %vm1038_vm3, %v4199_v6, %v13792_v3 }
 0x483   : > { %6047 = vrot.lane.b32.xlu1 %v5086_v47, %s16130_s18  ;;  %5665 = vrot.lane.b32.xlu0 %v5085_v59, %s16127_s17 }
 0x485   : > { %v4001_v15 = vpop.permute.xlu1 %4000 }
 0x486   : > { %v3875_v38 = vpop.permute.xlu0 %3874  ;;  %v4390_v7 = vsel %vm2390_vm8, %v4358_v51, %v4001_v15  ;;  %v4263_v15 = vsel %vm2258_vm4, %v4231_v19, %v13813_v9 }
 0x487   : > { %5285 = vrot.lane.b32.xlu1 %v5085_v59, %s16123_s16  ;;  %5159 = vrot.lane.b32.xlu0 %v5054_v54, %s16124_s5  ;;  %v4295_v53 = vsel %vm2291_vm5, %v4263_v15, %v13841_v14 }
 0x488   : > { %v4327_v3 = vsel %vm2324_vm6, %v4295_v53, %v3747_v55 }
 0x489   : > { %v13887_v49 = vpop.permute.xlu1 %3620  ;;  %v4359_v9 = vsel %vm2357_vm7, %v4327_v3, %v3875_v38 }
 0x48a   : > { %v13891_v39 = vpop.permute.xlu0 %3494 }
 0x48b   : > { %v10049_v12 = vpop.f32.mrb[12].mxu1  ;;  %5793 = vrot.lane.b32.xlu1 %v13893_v2, %s16128_s2  ;;  %5667 = vrot.lane.b32.xlu0 %v5086_v47, %s16127_s17 }
 0x48c   : > { %v4672_v58 = vadd.f32 %v10049_v12, %v13454_v22  ;;  %v4666_v46 = vpop.f32.mrb[13].mxu1 }
 0x48d   : > { %v4667_v52 = vadd.f32 %v13454_v22, %v4666_v46  ;;  %v4129_v31 = vpop.permute.xlu1 %4128  ;;  %v5087_v46 = vld [vmem:[#allocation2 + $0x4a] sm:$0xff] }
 0x48e   : > { %v4778_v59 = vmax.f32 %v4672_v58, 0.0  ;;  %v4422_v54 = vsel %vm2423_vm9, %v4390_v7, %v4129_v31  ;;  %v4003_v8 = vpop.permute.xlu0 %4002  ;;  %v5056_v7 = vld [vmem:[#allocation2 + $0x51] sm:$0xff] }
 0x48f   : > { %v4777_v4 = vmax.f32 %v4667_v52, 0.0  ;;  %5413 = vrot.lane.b32.xlu1 %v13893_v2, %s16125_s26  ;;  %5287 = vrot.lane.b32.xlu0 %v5086_v47, %s16123_s16  ;;  %v5055_v47 = vld [vmem:[#allocation2 + $0x49] sm:$0xff]  ;;  %v4391_v30 = vsel %vm2390_vm8, %v4359_v9, %v4003_v8  ;;  %v13959_v9 = vld [vmem:[#allocation2 + $0x60] sm:$0xff] }
 0x490   : > { %4810 = vst.msk [vmem:[#allocation2 + $0xb1] sm:$0xff] %vm900_vm2, %v4778_v59  ;;  %10068 = vmatprep.mubr.msk.f32.mxu1 %vm2472_vm10, %v4422_v54  ;;  %v5088_v54 = vld [vmem:[#allocation2 + $0x52] sm:$0xff] }
 0x491   : > { %4809 = vst.msk [vmem:[#allocation2 + $0xa9] sm:$0xff] %vm900_vm2, %v4777_v4  ;;  %v13917_v45 = vpop.permute.xlu1 %3622  ;;  %v4200_v4 = vsel %vm900_vm2, %v13531_v33, %v13847_v44 }
 0x492   : > { %v13921_v56 = vpop.permute.xlu0 %3240  ;;  %v4232_v19 = vsel %vm1038_vm3, %v4200_v4, %v13864_v5 }
 0x493   : > { %5921 = vrot.lane.b32.xlu1 %v5055_v47, %s16129_s23  ;;  %5795 = vrot.lane.b32.xlu0 %v13923_v17, %s16128_s2  ;;  %v4264_v15 = vsel %vm2258_vm4, %v4232_v19, %v13872_v50 }
 0x495   : > { %v4131_v12 = vpop.permute.xlu1 %4130 }
 0x496   : > { %v4423_v51 = vsel %vm2423_vm9, %v4391_v30, %v4131_v12  ;;  %v3749_v14 = vpop.permute.xlu0 %3748 }
 0x497   : > { %5541 = vrot.lane.b32.xlu1 %v5055_v47, %s16126_s11  ;;  %5415 = vrot.lane.b32.xlu0 %v13923_v17, %s16125_s26 }
 0x498   : > { %10069 = vmatmul.mubr.msk.f32.gmra.mrb[26].mxu1 %vm2472_vm10, %v4423_v51 }
 0x499   : > { %v13936_v55 = vpop.permute.xlu1 %3368 }
 0x49a   : > { %v13938_v58 = vpop.permute.xlu0 %3242 }
 0x49b   : > { %6049 = vrot.lane.b32.xlu1 %v5087_v46, %s16130_s18  ;;  %5923 = vrot.lane.b32.xlu0 %v5056_v7, %s16129_s23 }
 0x49d   : > { %v3877_v38 = vpop.permute.xlu1 %3876 }
 0x49e   : > { %v3751_v52 = vpop.permute.xlu0 %3750 }
 0x49f   : > { %5543 = vrot.lane.b32.xlu1 %v5056_v7, %s16126_s11  ;;  %5161 = vrot.lane.b32.xlu0 %v5055_v47, %s16124_s5  ;;  %v4296_v47 = vsel %vm2291_vm5, %v4264_v15, %v13887_v49 }
 0x4a0   : > { %v4328_v30 = vsel %vm2324_vm6, %v4296_v47, %v3749_v14  ;;  %v5057_v47 = vld [vmem:[#allocation2 + $0x61] sm:$0xff] }
 0x4a1   : > { %v13944_v31 = vpop.permute.xlu1 %3496  ;;  %v4360_v44 = vsel %vm2357_vm7, %v4328_v30, %v3877_v38  ;;  %v4201_v38 = vsel %vm900_vm2, %v13561_v11, %v13866_v36 }
 0x4a2   : > { %v3371_v59 = vpop.permute.xlu0 %3370 }
 0x4a3   : > { %6051 = vrot.lane.b32.xlu1 %v5088_v54, %s16130_s18  ;;  %5669 = vrot.lane.b32.xlu0 %v5087_v46, %s16127_s17 }
 0x4a5   : > { %v4005_v8 = vpop.permute.xlu1 %4004 }
 0x4a6   : > { %v3879_v6 = vpop.permute.xlu0 %3878  ;;  %v4392_v12 = vsel %vm2390_vm8, %v4360_v44, %v4005_v8 }
 0x4a7   : > { %5289 = vrot.lane.b32.xlu1 %v5087_v46, %s16123_s16  ;;  %5163 = vrot.lane.b32.xlu0 %v5056_v7, %s16124_s5 }
 0x4a9   : > { %v3625_v53 = vpop.permute.xlu1 %3624 }
 0x4aa   : > { %v3499_v3 = vpop.permute.xlu0 %3498 }
 0x4ab   : > { %v10052_v33 = vpop.f32.mrb[14].mxu1  ;;  %5797 = vrot.lane.b32.xlu1 %v13959_v9, %s16128_s2  ;;  %5671 = vrot.lane.b32.xlu0 %v5088_v54, %s16127_s17 }
 0x4ac   : > { %v4682_v5 = vadd.f32 %v10052_v33, %v13454_v22  ;;  %v4676_v50 = vpop.f32.mrb[15].mxu1 }
 0x4ad   : > { %v4677_v49 = vadd.f32 %v13454_v22, %v4676_v50  ;;  %v4133_v51 = vpop.permute.xlu1 %4132  ;;  %v4233_v22 = vsel %vm1038_vm3, %v4201_v38, %v13874_v40  ;;  %v5089_v50 = vld [vmem:[#allocation2 + $0x62] sm:$0xff] }
 0x4ae   : > { %v4780_v46 = vmax.f32 %v4682_v5, 0.0  ;;  %v4424_v7 = vsel %vm2423_vm9, %v4392_v12, %v4133_v51  ;;  %v4007_v14 = vpop.permute.xlu0 %4006  ;;  %v4265_v19 = vsel %vm2258_vm4, %v4233_v22, %v13891_v39  ;;  %v5058_v12 = vld [vmem:[#allocation2 + $0x69] sm:$0xff] }
 0x4af   : > { %v4779_v4 = vmax.f32 %v4677_v49, 0.0  ;;  %5417 = vrot.lane.b32.xlu1 %v13959_v9, %s16125_s26  ;;  %5291 = vrot.lane.b32.xlu0 %v5088_v54, %s16123_s16  ;;  %v13983_v54 = vld [vmem:[#allocation2 + $0x68] sm:$0xff]  ;;  %v4297_v11 = vsel %vm2291_vm5, %v4265_v19, %v13917_v45 }
 0x4b0   : > { %4812 = vst.msk [vmem:[#allocation2 + $0xc9] sm:$0xff] %vm900_vm2, %v4780_v46  ;;  %10071 = vmatprep.mubr.msk.f32.mxu1 %vm2472_vm10, %v4424_v7  ;;  %v4329_v36 = vsel %vm2324_vm6, %v4297_v11, %v3751_v52  ;;  %v4203_v52 = vsel %vm900_vm2, %v13633_v13, %v13938_v58  ;;  %v5090_v19 = vld [vmem:[#allocation2 + $0x6a] sm:$0xff] }
 0x4b1   : > { %4811 = vst.msk [vmem:[#allocation2 + $0xc1] sm:$0xff] %vm900_vm2, %v4779_v4  ;;  %v3753_v8 = vpop.permute.xlu1 %3752  ;;  %v4361_v40 = vsel %vm2357_vm7, %v4329_v36, %v3879_v6  ;;  %v4202_v6 = vsel %vm900_vm2, %v13603_v23, %v13921_v56  ;;  %v4235_v49 = vsel %vm1038_vm3, %v4203_v52, %v3371_v59 }
 0x4b2   : > { %v3627_v15 = vpop.permute.xlu0 %3626  ;;  %v4393_v33 = vsel %vm2390_vm8, %v4361_v40, %v4007_v14  ;;  %v4234_v51 = vsel %vm1038_vm3, %v4202_v6, %v13936_v55  ;;  %v4267_v46 = vsel %vm2258_vm4, %v4235_v49, %v3499_v3  ;;  %v14034_v40 = vld [vmem:[#allocation2 + $0x78] sm:$0xff] }
 0x4b3   : > { %5925 = vrot.lane.b32.xlu1 %v5057_v47, %s16129_s23  ;;  %5799 = vrot.lane.b32.xlu0 %v13983_v54, %s16128_s2  ;;  %v4266_v14 = vsel %vm2258_vm4, %v4234_v51, %v13944_v31  ;;  %v4299_v13 = vsel %vm2291_vm5, %v4267_v46, %v3627_v15  ;;  %v5059_v51 = vld [vmem:[#allocation2 + $0x79] sm:$0xff] }
 0x4b4   : > { %v4298_v4 = vsel %vm2291_vm5, %v4266_v14, %v3625_v53  ;;  %v14053_v46 = vld [vmem:[#allocation2 + $0x80] sm:$0xff] }
 0x4b5   : > { %v3755_v30 = vpop.permute.xlu1 %3754  ;;  %v4330_v23 = vsel %vm2324_vm6, %v4298_v4, %v3753_v8  ;;  %v5091_v4 = vld [vmem:[#allocation2 + $0x7a] sm:$0xff] }
 0x4b6   : > { %v4135_v39 = vpop.permute.xlu0 %4134  ;;  %v4331_v38 = vsel %vm2324_vm6, %v4299_v13, %v3755_v30 }
 0x4b7   : > { %v4425_v44 = vsel %vm2423_vm9, %v4393_v33, %v4135_v39  ;;  %5545 = vrot.lane.b32.xlu1 %v5057_v47, %s16126_s11  ;;  %5419 = vrot.lane.b32.xlu0 %v13983_v54, %s16125_s26  ;;  %v14040_v33 = vld [vmem:[%s10978_s29] ss:$0 sm:$0xff] }
 0x4b8   : > { %10072 = vmatmul.mubr.msk.f32.gmra.mrb[28].mxu1 %vm2472_vm10, %v4425_v44 }
 0x4b9   : > { %v3883_v45 = vpop.permute.xlu1 %3882 }
 0x4ba   : > { %v3881_v5 = vpop.permute.xlu0 %3880  ;;  %v4363_v56 = vsel %vm2357_vm7, %v4331_v38, %v3883_v45  ;;  %v5060_v38 = vld [vmem:[#allocation2 + $0x81] sm:$0xff] }
 0x4bb   : > { %6053 = vrot.lane.b32.xlu1 %v5089_v50, %s16130_s18  ;;  %5927 = vrot.lane.b32.xlu0 %v5058_v12, %s16129_s23  ;;  %v4362_v55 = vsel %vm2357_vm7, %v4330_v23, %v3881_v5 }
 0x4bd   : > { %v4011_v7 = vpop.permute.xlu1 %4010 }
 0x4be   : > { %v4009_v58 = vpop.permute.xlu0 %4008  ;;  %v4395_v59 = vsel %vm2390_vm8, %v4363_v56, %v4011_v7 }
 0x4bf   : > { %5547 = vrot.lane.b32.xlu1 %v5058_v12, %s16126_s11  ;;  %5165 = vrot.lane.b32.xlu0 %v5057_v47, %s16124_s5  ;;  %v4394_v3 = vsel %vm2390_vm8, %v4362_v55, %v4009_v58 }
 0x4c1   : > { %v4139_v31 = vpop.permute.xlu1 %4138 }
 0x4c2   : > { %v4427_v22 = vsel %vm2423_vm9, %v4395_v59, %v4139_v31  ;;  %v4137_v53 = vpop.permute.xlu0 %4136  ;;  %v5092_v31 = vld [vmem:[#allocation2 + $0x82] sm:$0xff] }
 0x4c3   : > { %v4426_v15 = vsel %vm2423_vm9, %v4394_v3, %v4137_v53  ;;  %6055 = vrot.lane.b32.xlu1 %v5090_v19, %s16130_s18  ;;  %5673 = vrot.lane.b32.xlu0 %v5089_v50, %s16127_s17  ;;  %v4829_v3 = vld [vmem:[#allocation2] sm:$0xff] }
 0x4c4   : > { %10074 = vmatprep.mubr.msk.f32.mxu1 %vm2472_vm10, %v4426_v15 }
 0x4c5   : > { %10075 = vmatmul.mubr.msk.f32.gmra.mrb[30].mxu1 %vm2472_vm10, %v4427_v22  ;;  %v14028_v8 = vpop.permute.xlu1 %5151 }
 0x4c6   : > { %v5150_v47 = vpop.permute.xlu0 %5149 }
 0x4c7   : > { %5293 = vrot.lane.b32.xlu1 %v5089_v50, %s16123_s16  ;;  %5167 = vrot.lane.b32.xlu0 %v5058_v12, %s16124_s5 }
 0x4c9   : > { %v14032_v11 = vpop.permute.xlu1 %5279 }
 0x4ca   : > { %v5278_v36 = vpop.permute.xlu0 %5277 }
 0x4cb   : > { %v10055_v30 = vpop.f32.mrb[16].mxu1  ;;  %5801 = vrot.lane.b32.xlu1 %v14034_v40, %s16128_s2  ;;  %5675 = vrot.lane.b32.xlu0 %v5090_v19, %s16127_s17 }
 0x4cc   : > { %v4692_v39 = vadd.f32 %v14040_v33, %v10055_v30  ;;  %v4686_v44 = vpop.f32.mrb[17].mxu1 }
 0x4cd   : > { %v4687_v45 = vadd.f32 %v14040_v33, %v4686_v44  ;;  %v14044_v5 = vpop.permute.xlu1 %5407 }
 0x4ce   : > { %v4782_v50 = vmax.f32 %v4692_v39, 0.0  ;;  %v5406_v12 = vpop.permute.xlu0 %5405 }
 0x4cf   : > { %v4781_v52 = vmax.f32 %v4687_v45, 0.0  ;;  %5421 = vrot.lane.b32.xlu1 %v14034_v40, %s16125_s26  ;;  %5295 = vrot.lane.b32.xlu0 %v5090_v19, %s16123_s16  ;;  %v6141_v19 = vsel %vm900_vm2, %v4829_v3, %v5150_v47  ;;  %v4830_v47 = vld [vmem:[#allocation2 + $0x8] sm:$0xff] }
 0x4d0   : > { %4814 = vst.msk [vmem:[#allocation2 + $0xe1] sm:$0xff] %vm900_vm2, %v4782_v50  ;;  %v6173_v15 = vsel %vm1038_vm3, %v6141_v19, %v5278_v36  ;;  %v14085_v50 = vld [vmem:[#allocation2 + $0x90] sm:$0xff] }
 0x4d1   : > { %4813 = vst.msk [vmem:[#allocation2 + $0xd9] sm:$0xff] %vm900_vm2, %v4781_v52  ;;  %v14051_v6 = vpop.permute.xlu1 %5153  ;;  %v6205_v30 = vsel %vm2258_vm4, %v6173_v15, %v5406_v12 }
 0x4d2   : > { %v5534_v49 = vpop.permute.xlu0 %5533 }
 0x4d3   : > { %5929 = vrot.lane.b32.xlu1 %v5059_v51, %s16129_s23  ;;  %5803 = vrot.lane.b32.xlu0 %v14053_v46, %s16128_s2  ;;  %v6237_v44 = vsel %vm2291_vm5, %v6205_v30, %v5534_v49  ;;  %v6142_v30 = vsel %vm900_vm2, %v4830_v47, %v14028_v8  ;;  %v5061_v47 = vld [vmem:[#allocation2 + $0x91] sm:$0xff] }
 0x4d5   : > { %v5662_v7 = vpop.permute.xlu1 %5661 }
 0x4d6   : > { %v5536_v14 = vpop.permute.xlu0 %5535  ;;  %v6269_v52 = vsel %vm2324_vm6, %v6237_v44, %v5662_v7 }
 0x4d7   : > { %5549 = vrot.lane.b32.xlu1 %v5059_v51, %s16126_s11  ;;  %5423 = vrot.lane.b32.xlu0 %v14053_v46, %s16125_s26 }
 0x4d9   : > { %v14061_v13 = vpop.permute.xlu1 %5281 }
 0x4da   : > { %v14063_v58 = vpop.permute.xlu0 %5155 }
 0x4db   : > { %6057 = vrot.lane.b32.xlu1 %v5091_v4, %s16130_s18  ;;  %5931 = vrot.lane.b32.xlu0 %v5060_v38, %s16129_s23 }
 0x4dd   : > { %v5790_v23 = vpop.permute.xlu1 %5789 }
 0x4de   : > { %v5664_v56 = vpop.permute.xlu0 %5663  ;;  %v6301_v36 = vsel %vm2357_vm7, %v6269_v52, %v5790_v23  ;;  %v6174_v23 = vsel %vm1038_vm3, %v6142_v30, %v14032_v11  ;;  %v5094_v30 = vld [vmem:[#allocation2 + $0x9a] sm:$0xff] }
 0x4df   : > { %5551 = vrot.lane.b32.xlu1 %v5060_v38, %s16126_s11  ;;  %5169 = vrot.lane.b32.xlu0 %v5059_v51, %s16124_s5 }
 0x4e1   : > { %v14069_v55 = vpop.permute.xlu1 %5409 }
 0x4e2   : > { %v14071_v59 = vpop.permute.xlu0 %5283 }
 0x4e3   : > { %6059 = vrot.lane.b32.xlu1 %v5092_v31, %s16130_s18  ;;  %5677 = vrot.lane.b32.xlu0 %v5091_v4, %s16127_s17 }
 0x4e5   : > { %v5918_v22 = vpop.permute.xlu1 %5917 }
 0x4e6   : > { %v5792_v53 = vpop.permute.xlu0 %5791  ;;  %v6333_v49 = vsel %vm2390_vm8, %v6301_v36, %v5918_v22  ;;  %v6206_v22 = vsel %vm2258_vm4, %v6174_v23, %v14044_v5 }
 0x4e7   : > { %5297 = vrot.lane.b32.xlu1 %v5091_v4, %s16123_s16  ;;  %5171 = vrot.lane.b32.xlu0 %v5060_v38, %s16124_s5  ;;  %v6238_v8 = vsel %vm2291_vm5, %v6206_v22, %v5536_v14  ;;  %v6143_v22 = vsel %vm900_vm2, %v13780_v20, %v14051_v6 }
 0x4e8   : > { %v6270_v11 = vsel %vm2324_vm6, %v6238_v8, %v5664_v56  ;;  %v6175_v8 = vsel %vm1038_vm3, %v6143_v22, %v14061_v13 }
 0x4e9   : > { %v14080_v39 = vpop.permute.xlu1 %5537  ;;  %v6302_v5 = vsel %vm2357_vm7, %v6270_v11, %v5792_v53 }
 0x4ea   : > { %v14083_v45 = vpop.permute.xlu0 %5411 }
 0x4eb   : > { %v10058_v51 = vpop.f32.mrb[18].mxu1  ;;  %5805 = vrot.lane.b32.xlu1 %v14085_v50, %s16128_s2  ;;  %5679 = vrot.lane.b32.xlu0 %v5092_v31, %s16127_s17 }
 0x4ec   : > { %v4702_v12 = vadd.f32 %v14040_v33, %v10058_v51  ;;  %v4696_v4 = vpop.f32.mrb[19].mxu1 }
 0x4ed   : > { %v4697_v38 = vadd.f32 %v14040_v33, %v4696_v4  ;;  %v6046_v3 = vpop.permute.xlu1 %6045 }
 0x4ee   : > { %v4784_v19 = vmax.f32 %v4702_v12, 0.0  ;;  %v6365_v7 = vsel %vm2423_vm9, %v6333_v49, %v6046_v3  ;;  %v5920_v15 = vpop.permute.xlu0 %5919  ;;  %v5062_v3 = vld [vmem:[#allocation2 + $0x99] sm:$0xff] }
 0x4ef   : > { %v4783_v44 = vmax.f32 %v4697_v38, 0.0  ;;  %5425 = vrot.lane.b32.xlu1 %v14085_v50, %s16125_s26  ;;  %5299 = vrot.lane.b32.xlu0 %v5092_v31, %s16123_s16  ;;  %v14113_v31 = vld [vmem:[#allocation2 + $0x98] sm:$0xff]  ;;  %v6334_v36 = vsel %vm2390_vm8, %v6302_v5, %v5920_v15 }
 0x4f0   : > { %4816 = vst.msk [vmem:[#allocation2 + $0xf9] sm:$0xff] %vm900_vm2, %v4784_v19  ;;  %10095 = vmatprep.mubr.msk.f32.mxu0 %vm2472_vm10, %v6365_v7  ;;  %v5093_v38 = vld [vmem:[#allocation2 + $0x92] sm:$0xff] }
 0x4f1   : > { %4815 = vst.msk [vmem:[#allocation2 + $0xf1] sm:$0xff] %vm900_vm2, %v4783_v44  ;;  %v14108_v52 = vpop.permute.xlu1 %5539 }
 0x4f2   : > { %v14111_v51 = vpop.permute.xlu0 %5157 }
 0x4f3   : > { %5933 = vrot.lane.b32.xlu1 %v5061_v47, %s16129_s23  ;;  %5807 = vrot.lane.b32.xlu0 %v14113_v31, %s16128_s2 }
 0x4f5   : > { %v6048_v12 = vpop.permute.xlu1 %6047 }
 0x4f6   : > { %v6366_v4 = vsel %vm2423_vm9, %v6334_v36, %v6048_v12  ;;  %v5666_v14 = vpop.permute.xlu0 %5665  ;;  %v14155_v12 = vld [vmem:[#allocation2 + $0xa8] sm:$0xff] }
 0x4f7   : > { %5553 = vrot.lane.b32.xlu1 %v5061_v47, %s16126_s11  ;;  %5427 = vrot.lane.b32.xlu0 %v14113_v31, %s16125_s26 }
 0x4f8   : > { %10096 = vmatmul.mubr.msk.f32.vlgmr.msra.gmra.mrb[32].mxu0 %vm2472_vm10, %v6366_v4 }
 0x4f9   : > { %v14126_v56 = vpop.permute.xlu1 %5285 }
 0x4fa   : > { %v14128_v49 = vpop.permute.xlu0 %5159 }
 0x4fb   : > { %6061 = vrot.lane.b32.xlu1 %v5093_v38, %s16130_s18  ;;  %5935 = vrot.lane.b32.xlu0 %v5062_v3, %s16129_s23 }
 0x4fd   : > { %v5794_v53 = vpop.permute.xlu1 %5793 }
 0x4fe   : > { %v5668_v19 = vpop.permute.xlu0 %5667 }
 0x4ff   : > { %5555 = vrot.lane.b32.xlu1 %v5062_v3, %s16126_s11  ;;  %5173 = vrot.lane.b32.xlu0 %v5061_v47, %s16124_s5  ;;  %v6207_v47 = vsel %vm2258_vm4, %v6175_v8, %v14069_v55 }
 0x500   : > { %v6239_v5 = vsel %vm2291_vm5, %v6207_v47, %v14080_v39  ;;  %v6144_v47 = vsel %vm900_vm2, %v13778_v63, %v14063_v58 }
 0x501   : > { %v14134_v7 = vpop.permute.xlu1 %5413  ;;  %v6271_v20 = vsel %vm2324_vm6, %v6239_v5, %v5666_v14 }
 0x502   : > { %v14136_v15 = vpop.permute.xlu0 %5287  ;;  %v6303_v13 = vsel %vm2357_vm7, %v6271_v20, %v5794_v53  ;;  %v6176_v53 = vsel %vm1038_vm3, %v6144_v47, %v14071_v59  ;;  %v5096_v47 = vld [vmem:[#allocation2 + $0xb2] sm:$0xff] }
 0x503   : > { %6063 = vrot.lane.b32.xlu1 %v5094_v30, %s16130_s18  ;;  %5681 = vrot.lane.b32.xlu0 %v5093_v38, %s16127_s17 }
 0x505   : > { %v5922_v44 = vpop.permute.xlu1 %5921 }
 0x506   : > { %v5796_v23 = vpop.permute.xlu0 %5795 }
 0x507   : > { %5301 = vrot.lane.b32.xlu1 %v5093_v38, %s16123_s16  ;;  %5175 = vrot.lane.b32.xlu0 %v5062_v3, %s16124_s5  ;;  %v6335_v38 = vsel %vm2390_vm8, %v6303_v13, %v5922_v44  ;;  %v6208_v44 = vsel %vm2258_vm4, %v6176_v53, %v14083_v45 }
 0x508   : > { %v6240_v63 = vsel %vm2291_vm5, %v6208_v44, %v14108_v52  ;;  %v6145_v44 = vsel %vm900_vm2, %v13815_v35, %v14111_v51 }
 0x509   : > { %v14149_v11 = vpop.permute.xlu1 %5541  ;;  %v6272_v59 = vsel %vm2324_vm6, %v6240_v63, %v5668_v19  ;;  %v6177_v63 = vsel %vm1038_vm3, %v6145_v44, %v14126_v56 }
 0x50a   : > { %v14153_v36 = vpop.permute.xlu0 %5415  ;;  %v6304_v45 = vsel %vm2357_vm7, %v6272_v59, %v5796_v23 }
 0x50b   : > { %v10061_v6 = vpop.f32.mrb[20].mxu1  ;;  %5809 = vrot.lane.b32.xlu1 %v14155_v12, %s16128_s2  ;;  %5683 = vrot.lane.b32.xlu0 %v5094_v30, %s16127_s17 }
 0x50c   : > { %v4712_v55 = vadd.f32 %v14040_v33, %v10061_v6  ;;  %v4706_v4 = vpop.f32.mrb[21].mxu1  ;;  %v14185_v6 = vld [vmem:[#allocation2 + $0xb0] sm:$0xff] }
 0x50d   : > { %v4707_v39 = vadd.f32 %v14040_v33, %v4706_v4  ;;  %v6050_v3 = vpop.permute.xlu1 %6049 }
 0x50e   : > { %v4786_v22 = vmax.f32 %v4712_v55, 0.0  ;;  %v6367_v8 = vsel %vm2423_vm9, %v6335_v38, %v6050_v3  ;;  %v5924_v14 = vpop.permute.xlu0 %5923  ;;  %v5064_v3 = vld [vmem:[#allocation2 + $0xb1] sm:$0xff] }
 0x50f   : > { %v4785_v5 = vmax.f32 %v4707_v39, 0.0  ;;  %5429 = vrot.lane.b32.xlu1 %v14155_v12, %s16125_s26  ;;  %5303 = vrot.lane.b32.xlu0 %v5094_v30, %s16123_s16  ;;  %v5063_v30 = vld [vmem:[#allocation2 + $0xa9] sm:$0xff]  ;;  %v6336_v13 = vsel %vm2390_vm8, %v6304_v45, %v5924_v14 }
 0x510   : > { %4818 = vst.msk [vmem:[#allocation2 + $0x111] sm:$0xff] %vm900_vm2, %v4786_v22  ;;  %10098 = vmatprep.mubr.msk.f32.mxu0 %vm2472_vm10, %v6367_v8  ;;  %v5095_v39 = vld [vmem:[#allocation2 + $0xaa] sm:$0xff] }
 0x511   : > { %4817 = vst.msk [vmem:[#allocation2 + $0x109] sm:$0xff] %vm900_vm2, %v4785_v5  ;;  %v14179_v20 = vpop.permute.xlu1 %5543 }
 0x512   : > { %v14183_v58 = vpop.permute.xlu0 %5161 }
 0x513   : > { %5937 = vrot.lane.b32.xlu1 %v5063_v30, %s16129_s23  ;;  %5811 = vrot.lane.b32.xlu0 %v14185_v6, %s16128_s2 }
 0x515   : > { %v6052_v55 = vpop.permute.xlu1 %6051 }
 0x516   : > { %v6368_v4 = vsel %vm2423_vm9, %v6336_v13, %v6052_v55  ;;  %v5670_v52 = vpop.permute.xlu0 %5669  ;;  %v14227_v55 = vld [vmem:[#allocation2 + $0xc0] sm:$0xff] }
 0x517   : > { %5557 = vrot.lane.b32.xlu1 %v5063_v30, %s16126_s11  ;;  %5431 = vrot.lane.b32.xlu0 %v14185_v6, %s16125_s26 }
 0x518   : > { %10099 = vmatmul.mubr.msk.f32.gmra.mrb[34].mxu0 %vm2472_vm10, %v6368_v4 }
 0x519   : > { %v14198_v19 = vpop.permute.xlu1 %5289 }
 0x51a   : > { %v14200_v38 = vpop.permute.xlu0 %5163 }
 0x51b   : > { %6065 = vrot.lane.b32.xlu1 %v5095_v39, %s16130_s18  ;;  %5939 = vrot.lane.b32.xlu0 %v5064_v3, %s16129_s23 }
 0x51d   : > { %v5798_v23 = vpop.permute.xlu1 %5797 }
 0x51e   : > { %v5672_v22 = vpop.permute.xlu0 %5671 }
 0x51f   : > { %5559 = vrot.lane.b32.xlu1 %v5064_v3, %s16126_s11  ;;  %5177 = vrot.lane.b32.xlu0 %v5063_v30, %s16124_s5  ;;  %v6209_v30 = vsel %vm2258_vm4, %v6177_v63, %v14134_v7 }
 0x520   : > { %v6241_v45 = vsel %vm2291_vm5, %v6209_v30, %v14149_v11  ;;  %v6146_v30 = vsel %vm900_vm2, %v13849_v41, %v14128_v49 }
 0x521   : > { %v14206_v8 = vpop.permute.xlu1 %5417  ;;  %v6273_v35 = vsel %vm2324_vm6, %v6241_v45, %v5670_v52 }
 0x522   : > { %v14208_v14 = vpop.permute.xlu0 %5291  ;;  %v6305_v56 = vsel %vm2357_vm7, %v6273_v35, %v5798_v23  ;;  %v6178_v23 = vsel %vm1038_vm3, %v6146_v30, %v14136_v15  ;;  %v5098_v30 = vld [vmem:[#allocation2 + $0xca] sm:$0xff] }
 0x523   : > { %6067 = vrot.lane.b32.xlu1 %v5096_v47, %s16130_s18  ;;  %5685 = vrot.lane.b32.xlu0 %v5095_v39, %s16127_s17 }
 0x525   : > { %v5926_v5 = vpop.permute.xlu1 %5925 }
 0x526   : > { %v5800_v53 = vpop.permute.xlu0 %5799 }
 0x527   : > { %5305 = vrot.lane.b32.xlu1 %v5095_v39, %s16123_s16  ;;  %5179 = vrot.lane.b32.xlu0 %v5064_v3, %s16124_s5  ;;  %v6337_v39 = vsel %vm2390_vm8, %v6305_v56, %v5926_v5  ;;  %v6210_v5 = vsel %vm2258_vm4, %v6178_v23, %v14153_v36 }
 0x528   : > { %v6242_v41 = vsel %vm2291_vm5, %v6210_v5, %v14179_v20  ;;  %v6147_v5 = vsel %vm900_vm2, %v13893_v2, %v14183_v58 }
 0x529   : > { %v14221_v59 = vpop.permute.xlu1 %5545  ;;  %v6274_v15 = vsel %vm2324_vm6, %v6242_v41, %v5672_v22  ;;  %v6179_v41 = vsel %vm1038_vm3, %v6147_v5, %v14198_v19 }
 0x52a   : > { %v14225_v13 = vpop.permute.xlu0 %5419  ;;  %v6306_v36 = vsel %vm2357_vm7, %v6274_v15, %v5800_v53 }
 0x52b   : > { %v10064_v51 = vpop.f32.mrb[22].mxu1  ;;  %5813 = vrot.lane.b32.xlu1 %v14227_v55, %s16128_s2  ;;  %5687 = vrot.lane.b32.xlu0 %v5096_v47, %s16127_s17 }
 0x52c   : > { %v4722_v7 = vadd.f32 %v14040_v33, %v10064_v51  ;;  %v4716_v4 = vpop.f32.mrb[23].mxu1  ;;  %v14257_v51 = vld [vmem:[#allocation2 + $0xc8] sm:$0xff] }
 0x52d   : > { %v4717_v11 = vadd.f32 %v14040_v33, %v4716_v4  ;;  %v6054_v3 = vpop.permute.xlu1 %6053 }
 0x52e   : > { %v4788_v44 = vmax.f32 %v4722_v7, 0.0  ;;  %v6369_v63 = vsel %vm2423_vm9, %v6337_v39, %v6054_v3  ;;  %v5928_v52 = vpop.permute.xlu0 %5927  ;;  %v5066_v3 = vld [vmem:[#allocation2 + $0xc9] sm:$0xff] }
 0x52f   : > { %v4787_v45 = vmax.f32 %v4717_v11, 0.0  ;;  %5433 = vrot.lane.b32.xlu1 %v14227_v55, %s16125_s26  ;;  %5307 = vrot.lane.b32.xlu0 %v5096_v47, %s16123_s16  ;;  %v5065_v47 = vld [vmem:[#allocation2 + $0xc1] sm:$0xff]  ;;  %v6338_v56 = vsel %vm2390_vm8, %v6306_v36, %v5928_v52 }
 0x530   : > { %4820 = vst.msk [vmem:[#allocation2 + $0x129] sm:$0xff] %vm900_vm2, %v4788_v44  ;;  %10101 = vmatprep.mubr.msk.f32.mxu0 %vm2472_vm10, %v6369_v63  ;;  %v5097_v11 = vld [vmem:[#allocation2 + $0xc2] sm:$0xff] }
 0x531   : > { %4819 = vst.msk [vmem:[#allocation2 + $0x121] sm:$0xff] %vm900_vm2, %v4787_v45  ;;  %v14251_v35 = vpop.permute.xlu1 %5547 }
 0x532   : > { %v14255_v49 = vpop.permute.xlu0 %5165 }
 0x533   : > { %5941 = vrot.lane.b32.xlu1 %v5065_v47, %s16129_s23  ;;  %5815 = vrot.lane.b32.xlu0 %v14257_v51, %s16128_s2 }
 0x535   : > { %v6056_v7 = vpop.permute.xlu1 %6055 }
 0x536   : > { %v6370_v4 = vsel %vm2423_vm9, %v6338_v56, %v6056_v7  ;;  %v5674_v20 = vpop.permute.xlu0 %5673  ;;  %v14299_v7 = vld [vmem:[#allocation2 + $0xd8] sm:$0xff] }
 0x537   : > { %5561 = vrot.lane.b32.xlu1 %v5065_v47, %s16126_s11  ;;  %5435 = vrot.lane.b32.xlu0 %v14257_v51, %s16125_s26 }
 0x538   : > { %10102 = vmatmul.mubr.msk.f32.gmra.mrb[36].mxu0 %vm2472_vm10, %v6370_v4 }
 0x539   : > { %v14270_v22 = vpop.permute.xlu1 %5293 }
 0x53a   : > { %v14272_v39 = vpop.permute.xlu0 %5167 }
 0x53b   : > { %6069 = vrot.lane.b32.xlu1 %v5097_v11, %s16130_s18  ;;  %5943 = vrot.lane.b32.xlu0 %v5066_v3, %s16129_s23 }
 0x53d   : > { %v5802_v53 = vpop.permute.xlu1 %5801 }
 0x53e   : > { %v5676_v44 = vpop.permute.xlu0 %5675 }
 0x53f   : > { %5563 = vrot.lane.b32.xlu1 %v5066_v3, %s16126_s11  ;;  %5181 = vrot.lane.b32.xlu0 %v5065_v47, %s16124_s5  ;;  %v6211_v47 = vsel %vm2258_vm4, %v6179_v41, %v14206_v8 }
 0x540   : > { %v6243_v36 = vsel %vm2291_vm5, %v6211_v47, %v14221_v59  ;;  %v6148_v47 = vsel %vm900_vm2, %v13923_v17, %v14200_v38 }
 0x541   : > { %v14278_v63 = vpop.permute.xlu1 %5421  ;;  %v6275_v2 = vsel %vm2324_vm6, %v6243_v36, %v5674_v20 }
 0x542   : > { %v14280_v52 = vpop.permute.xlu0 %5295  ;;  %v6307_v19 = vsel %vm2357_vm7, %v6275_v2, %v5802_v53  ;;  %v6180_v53 = vsel %vm1038_vm3, %v6148_v47, %v14208_v14 }
 0x543   : > { %6071 = vrot.lane.b32.xlu1 %v5098_v30, %s16130_s18  ;;  %5689 = vrot.lane.b32.xlu0 %v5097_v11, %s16127_s17 }
 0x545   : > { %v5930_v45 = vpop.permute.xlu1 %5929 }
 0x546   : > { %v5804_v23 = vpop.permute.xlu0 %5803 }
 0x547   : > { %5309 = vrot.lane.b32.xlu1 %v5097_v11, %s16123_s16  ;;  %5183 = vrot.lane.b32.xlu0 %v5066_v3, %s16124_s5  ;;  %v6339_v11 = vsel %vm2390_vm8, %v6307_v19, %v5930_v45  ;;  %v6212_v45 = vsel %vm2258_vm4, %v6180_v53, %v14225_v13 }
 0x548   : > { %v6244_v17 = vsel %vm2291_vm5, %v6212_v45, %v14251_v35 }
 0x549   : > { %v14293_v15 = vpop.permute.xlu1 %5549  ;;  %v6276_v14 = vsel %vm2324_vm6, %v6244_v17, %v5676_v44  ;;  %v16083_v44 = vmov 0.0|0.0   ;;  %v6149_v17 = vsel %vm900_vm2, %v13959_v9, %v14255_v49 }
 0x54a   : > { %v14297_v56 = vpop.permute.xlu0 %5423  ;;  %v6308_v13 = vsel %vm2357_vm7, %v6276_v14, %v5804_v23  ;;  %10316 = vmatprep.subr.bf16.mxu1 %v16083_v44  ;;  %v5099_v23 = vld [vmem:[#allocation2 + $0xda] sm:$0xff] }
 0x54b   : > { %v10067_v58 = vpop.f32.mrb[24].mxu1  ;;  %5817 = vrot.lane.b32.xlu1 %v14299_v7, %s16128_s2  ;;  %5691 = vrot.lane.b32.xlu0 %v5098_v30, %s16127_s17 }
 0x54c   : > { %v4732_v8 = vadd.f32 %v14040_v33, %v10067_v58  ;;  %v4726_v4 = vpop.f32.mrb[25].mxu1  ;;  %v14329_v58 = vld [vmem:[#allocation2 + $0xe0] sm:$0xff] }
 0x54d   : > { %v4727_v59 = vadd.f32 %v14040_v33, %v4726_v4  ;;  %v6058_v3 = vpop.permute.xlu1 %6057 }
 0x54e   : > { %v4790_v5 = vmax.f32 %v4732_v8, 0.0  ;;  %v6371_v41 = vsel %vm2423_vm9, %v6339_v11, %v6058_v3  ;;  %v5932_v20 = vpop.permute.xlu0 %5931  ;;  %v5068_v3 = vld [vmem:[#allocation2 + $0xe1] sm:$0xff] }
 0x54f   : > { %v4789_v36 = vmax.f32 %v4727_v59, 0.0  ;;  %5437 = vrot.lane.b32.xlu1 %v14299_v7, %s16125_s26  ;;  %5311 = vrot.lane.b32.xlu0 %v5098_v30, %s16123_s16  ;;  %v5067_v30 = vld [vmem:[#allocation2 + $0xd9] sm:$0xff]  ;;  %v6340_v19 = vsel %vm2390_vm8, %v6308_v13, %v5932_v20 }
 0x550   : > { %4822 = vst.msk [vmem:[#allocation2 + $0x141] sm:$0xff] %vm900_vm2, %v4790_v5  ;;  %10104 = vmatprep.mubr.msk.f32.mxu0 %vm2472_vm10, %v6371_v41 }
 0x551   : > { %4821 = vst.msk [vmem:[#allocation2 + $0x139] sm:$0xff] %vm900_vm2, %v4789_v36  ;;  %v14323_v2 = vpop.permute.xlu1 %5551  ;;  %v5100_v36 = vld [vmem:[#allocation2 + $0xe2] sm:$0xff] }
 0x552   : > { %v14327_v38 = vpop.permute.xlu0 %5169 }
 0x553   : > { %5945 = vrot.lane.b32.xlu1 %v5067_v30, %s16129_s23  ;;  %5819 = vrot.lane.b32.xlu0 %v14329_v58, %s16128_s2 }
 0x555   : > { %v6060_v8 = vpop.permute.xlu1 %6059 }
 0x556   : > { %v6372_v4 = vsel %vm2423_vm9, %v6340_v19, %v6060_v8  ;;  %v5678_v35 = vpop.permute.xlu0 %5677 }
 0x557   : > { %5565 = vrot.lane.b32.xlu1 %v5067_v30, %s16126_s11  ;;  %5439 = vrot.lane.b32.xlu0 %v14329_v58, %s16125_s26 }
 0x558   : > { %10105 = vmatmul.mubr.msk.f32.gmra.mrb[38].mxu0 %vm2472_vm10, %v6372_v4  ;;  %v14372_v4 = vld [vmem:[#allocation2 + $0xf0] sm:$0xff] }
 0x559   : > { %v14343_v11 = vpop.permute.xlu1 %5297 }
 0x55a   : > { %v14345_v59 = vpop.permute.xlu0 %5171 }
 0x55b   : > { %6073 = vrot.lane.b32.xlu1 %v5099_v23, %s16130_s18  ;;  %5947 = vrot.lane.b32.xlu0 %v5068_v3, %s16129_s23 }
 0x55d   : > { %v5806_v5 = vpop.permute.xlu1 %5805 }
 0x55e   : > { %v5680_v41 = vpop.permute.xlu0 %5679 }
 0x55f   : > { %5567 = vrot.lane.b32.xlu1 %v5068_v3, %s16126_s11  ;;  %5185 = vrot.lane.b32.xlu0 %v5067_v30, %s16124_s5  ;;  %v6181_v30 = vsel %vm1038_vm3, %v6149_v17, %v14270_v22 }
 0x560   : > { %v6213_v14 = vsel %vm2258_vm4, %v6181_v30, %v14278_v63 }
 0x561   : > { %v14351_v20 = vpop.permute.xlu1 %5425  ;;  %v6245_v19 = vsel %vm2291_vm5, %v6213_v14, %v14293_v15 }
 0x562   : > { %v14353_v47 = vpop.permute.xlu0 %5299  ;;  %v6277_v9 = vsel %vm2324_vm6, %v6245_v19, %v5678_v35  ;;  %v6150_v19 = vsel %vm900_vm2, %v13983_v54, %v14272_v39 }
 0x563   : > { %6075 = vrot.lane.b32.xlu1 %v5100_v36, %s16130_s18  ;;  %5693 = vrot.lane.b32.xlu0 %v5099_v23, %s16127_s17  ;;  %v6309_v22 = vsel %vm2357_vm7, %v6277_v9, %v5806_v5  ;;  %v6182_v5 = vsel %vm1038_vm3, %v6150_v19, %v14280_v52 }
 0x565   : > { %v5934_v53 = vpop.permute.xlu1 %5933 }
 0x566   : > { %v5808_v45 = vpop.permute.xlu0 %5807 }
 0x567   : > { %5313 = vrot.lane.b32.xlu1 %v5099_v23, %s16123_s16  ;;  %5187 = vrot.lane.b32.xlu0 %v5068_v3, %s16124_s5  ;;  %v6341_v3 = vsel %vm2390_vm8, %v6309_v22, %v5934_v53  ;;  %v6214_v53 = vsel %vm2258_vm4, %v6182_v5, %v14297_v56 }
 0x568   : > { %v6246_v54 = vsel %vm2291_vm5, %v6214_v53, %v14323_v2  ;;  %v6151_v53 = vsel %vm900_vm2, %v14034_v40, %v14327_v38 }
 0x569   : > { %v14366_v13 = vpop.permute.xlu1 %5553  ;;  %v6278_v52 = vsel %vm2324_vm6, %v6246_v54, %v5680_v41  ;;  %v6183_v54 = vsel %vm1038_vm3, %v6151_v53, %v14343_v11 }
 0x56a   : > { %v14370_v8 = vpop.permute.xlu0 %5427  ;;  %v6310_v56 = vsel %vm2357_vm7, %v6278_v52, %v5808_v45 }
 0x56b   : > { %v10070_v49 = vpop.f32.mrb[26].mxu1  ;;  %5821 = vrot.lane.b32.xlu1 %v14372_v4, %s16128_s2  ;;  %5695 = vrot.lane.b32.xlu0 %v5100_v36, %s16127_s17 }
 0x56c   : > { %v4742_v63 = vadd.f32 %v14040_v33, %v10070_v49  ;;  %v4736_v23 = vpop.f32.mrb[27].mxu1  ;;  %v14402_v49 = vld [vmem:[#allocation2 + $0xf8] sm:$0xff] }
 0x56d   : > { %v4737_v15 = vadd.f32 %v14040_v33, %v4736_v23  ;;  %v6062_v17 = vpop.permute.xlu1 %6061 }
 0x56e   : > { %v4792_v30 = vmax.f32 %v4742_v63, 0.0  ;;  %v6373_v14 = vsel %vm2423_vm9, %v6341_v3, %v6062_v17  ;;  %v5936_v35 = vpop.permute.xlu0 %5935  ;;  %v5101_v3 = vld [vmem:[#allocation2 + $0xf2] sm:$0xff] }
 0x56f   : > { %v4791_v44 = vmax.f32 %v4737_v15, 0.0  ;;  %5441 = vrot.lane.b32.xlu1 %v14372_v4, %s16125_s26  ;;  %5315 = vrot.lane.b32.xlu0 %v5100_v36, %s16123_s16  ;;  %v5069_v36 = vld [vmem:[#allocation2 + $0xf1] sm:$0xff]  ;;  %v5070_v15 = vld [vmem:[#allocation2 + $0xf9] sm:$0xff] }
 0x570   : > { %4824 = vst.msk [vmem:[#allocation2 + $0x159] sm:$0xff] %vm900_vm2, %v4792_v30  ;;  %10107 = vmatprep.mubr.msk.f32.mxu0 %vm2472_vm10, %v6373_v14 }
 0x571   : > { %4823 = vst.msk [vmem:[#allocation2 + $0x151] sm:$0xff] %vm900_vm2, %v4791_v44  ;;  %v14396_v9 = vpop.permute.xlu1 %5555  ;;  %v6342_v44 = vsel %vm2390_vm8, %v6310_v56, %v5936_v35  ;;  %v5102_v35 = vld [vmem:[#allocation2 + $0xfa] sm:$0xff] }
 0x572   : > { %v14400_v39 = vpop.permute.xlu0 %5173 }
 0x573   : > { %5949 = vrot.lane.b32.xlu1 %v5069_v36, %s16129_s23  ;;  %5823 = vrot.lane.b32.xlu0 %v14402_v49, %s16128_s2 }
 0x575   : > { %v6064_v22 = vpop.permute.xlu1 %6063 }
 0x576   : > { %v6374_v63 = vsel %vm2423_vm9, %v6342_v44, %v6064_v22  ;;  %v5682_v2 = vpop.permute.xlu0 %5681  ;;  %v14444_v22 = vld [vmem:[#allocation2 + $0x108] sm:$0xff] }
 0x577   : > { %5569 = vrot.lane.b32.xlu1 %v5069_v36, %s16126_s11  ;;  %5443 = vrot.lane.b32.xlu0 %v14402_v49, %s16125_s26 }
 0x578   : > { %10108 = vmatmul.mubr.msk.f32.gmra.mrb[40].mxu0 %vm2472_vm10, %v6374_v63 }
 0x579   : > { %v14415_v41 = vpop.permute.xlu1 %5301 }
 0x57a   : > { %v14417_v23 = vpop.permute.xlu0 %5175 }
 0x57b   : > { %6077 = vrot.lane.b32.xlu1 %v5101_v3, %s16130_s18  ;;  %5951 = vrot.lane.b32.xlu0 %v5070_v15, %s16129_s23 }
 0x57d   : > { %v5810_v45 = vpop.permute.xlu1 %5809 }
 0x57e   : > { %v5684_v17 = vpop.permute.xlu0 %5683 }
 0x57f   : > { %5571 = vrot.lane.b32.xlu1 %v5070_v15, %s16126_s11  ;;  %5189 = vrot.lane.b32.xlu0 %v5069_v36, %s16124_s5  ;;  %v6215_v36 = vsel %vm2258_vm4, %v6183_v54, %v14351_v20 }
 0x580   : > { %v6247_v56 = vsel %vm2291_vm5, %v6215_v36, %v14366_v13  ;;  %v6152_v36 = vsel %vm900_vm2, %v14053_v46, %v14345_v59 }
 0x581   : > { %v14423_v30 = vpop.permute.xlu1 %5429  ;;  %v6279_v40 = vsel %vm2324_vm6, %v6247_v56, %v5682_v2 }
 0x582   : > { %v14425_v14 = vpop.permute.xlu0 %5303  ;;  %v6311_v11 = vsel %vm2357_vm7, %v6279_v40, %v5810_v45  ;;  %v6184_v45 = vsel %vm1038_vm3, %v6152_v36, %v14353_v47 }
 0x583   : > { %6079 = vrot.lane.b32.xlu1 %v5102_v35, %s16130_s18  ;;  %5697 = vrot.lane.b32.xlu0 %v5101_v3, %s16127_s17 }
 0x585   : > { %v5938_v19 = vpop.permute.xlu1 %5937 }
 0x586   : > { %v5812_v5 = vpop.permute.xlu0 %5811 }
 0x587   : > { %5317 = vrot.lane.b32.xlu1 %v5101_v3, %s16123_s16  ;;  %5191 = vrot.lane.b32.xlu0 %v5070_v15, %s16124_s5  ;;  %v6343_v3 = vsel %vm2390_vm8, %v6311_v11, %v5938_v19  ;;  %v6216_v19 = vsel %vm2258_vm4, %v6184_v45, %v14370_v8 }
 0x588   : > { %v6248_v46 = vsel %vm2291_vm5, %v6216_v19, %v14396_v9 }
 0x589   : > { %v14438_v52 = vpop.permute.xlu1 %5557  ;;  %v6280_v47 = vsel %vm2324_vm6, %v6248_v46, %v5684_v17 }
 0x58a   : > { %v14442_v44 = vpop.permute.xlu0 %5431  ;;  %v6312_v8 = vsel %vm2357_vm7, %v6280_v47, %v5812_v5  ;;  %v5104_v47 = vld [vmem:[#allocation2 + $0x112] sm:$0xff] }
 0x58b   : > { %v10073_v38 = vpop.f32.mrb[28].mxu1  ;;  %5825 = vrot.lane.b32.xlu1 %v14444_v22, %s16128_s2  ;;  %5699 = vrot.lane.b32.xlu0 %v5102_v35, %s16127_s17 }
 0x58c   : > { %v4752_v20 = vadd.f32 %v14040_v33, %v10073_v38  ;;  %v4746_v63 = vpop.f32.mrb[29].mxu1  ;;  %v14474_v38 = vld [vmem:[#allocation2 + $0x110] sm:$0xff] }
 0x58d   : > { %v4747_v13 = vadd.f32 %v14040_v33, %v4746_v63  ;;  %v6066_v15 = vpop.permute.xlu1 %6065 }
 0x58e   : > { %v4794_v53 = vmax.f32 %v4752_v20, 0.0  ;;  %v6375_v54 = vsel %vm2423_vm9, %v6343_v3, %v6066_v15  ;;  %v5940_v2 = vpop.permute.xlu0 %5939 }
 0x58f   : > { %v4793_v56 = vmax.f32 %v4747_v13, 0.0  ;;  %5445 = vrot.lane.b32.xlu1 %v14444_v22, %s16125_s26  ;;  %5319 = vrot.lane.b32.xlu0 %v5102_v35, %s16123_s16  ;;  %v5071_v35 = vld [vmem:[#allocation2 + $0x109] sm:$0xff]  ;;  %v6344_v11 = vsel %vm2390_vm8, %v6312_v8, %v5940_v2  ;;  %v5072_v2 = vld [vmem:[#allocation2 + $0x111] sm:$0xff] }
 0x590   : > { %4826 = vst.msk [vmem:[#allocation2 + $0x171] sm:$0xff] %vm900_vm2, %v4794_v53  ;;  %10110 = vmatprep.mubr.msk.f32.mxu0 %vm2472_vm10, %v6375_v54  ;;  %v5103_v54 = vld [vmem:[#allocation2 + $0x10a] sm:$0xff] }
 0x591   : > { %4825 = vst.msk [vmem:[#allocation2 + $0x169] sm:$0xff] %vm900_vm2, %v4793_v56  ;;  %v14468_v40 = vpop.permute.xlu1 %5559 }
 0x592   : > { %v14472_v59 = vpop.permute.xlu0 %5177 }
 0x593   : > { %5953 = vrot.lane.b32.xlu1 %v5071_v35, %s16129_s23  ;;  %5827 = vrot.lane.b32.xlu0 %v14474_v38, %s16128_s2 }
 0x595   : > { %v6068_v20 = vpop.permute.xlu1 %6067 }
 0x596   : > { %v6376_v63 = vsel %vm2423_vm9, %v6344_v11, %v6068_v20  ;;  %v5686_v9 = vpop.permute.xlu0 %5685  ;;  %v6153_v20 = vsel %vm900_vm2, %v14085_v50, %v14400_v39 }
 0x597   : > { %5573 = vrot.lane.b32.xlu1 %v5071_v35, %s16126_s11  ;;  %5447 = vrot.lane.b32.xlu0 %v14474_v38, %s16125_s26 }
 0x598   : > { %v10076_v3 = vpop.f32.mrb[30].mxu1  ;;  %10111 = vmatmul.mubr.msk.f32.gmra.mrb[42].mxu0 %vm2472_vm10, %v6376_v63 }
 0x599   : > { %v4762_v17 = vadd.f32 %v14040_v33, %v10076_v3  ;;  %v4756_v13 = vpop.f32.mrb[31].mxu1  ;;  %v14488_v15 = vpop.permute.xlu1 %5305 }
 0x59a   : > { %v4757_v5 = vadd.f32 %v14040_v33, %v4756_v13  ;;  %v14491_v53 = vpop.permute.xlu0 %5179 }
 0x59b   : > { %v4796_v36 = vmax.f32 %v4762_v17, 0.0  ;;  %6081 = vrot.lane.b32.xlu1 %v5103_v54, %s16130_s18  ;;  %5955 = vrot.lane.b32.xlu0 %v5072_v2, %s16129_s23 }
 0x59c   : > { %v4795_v56 = vmax.f32 %v4757_v5, 0.0  ;;  %v14518_v5 = vld [vmem:[#allocation2 + $0x120] sm:$0xff] }
 0x59d   : > { %4828 = vst.msk [vmem:[#allocation2 + $0x189] sm:$0xff] %vm900_vm2, %v4796_v36  ;;  %v5814_v45 = vpop.permute.xlu1 %5813 }
 0x59e   : > { %4827 = vst.msk [vmem:[#allocation2 + $0x181] sm:$0xff] %vm900_vm2, %v4795_v56  ;;  %v5688_v19 = vpop.permute.xlu0 %5687 }
 0x59f   : > { %5575 = vrot.lane.b32.xlu1 %v5072_v2, %s16126_s11  ;;  %5193 = vrot.lane.b32.xlu0 %v5071_v35, %s16124_s5  ;;  %v6185_v35 = vsel %vm1038_vm3, %v6153_v20, %v14415_v41 }
 0x5a0   : > { %v6217_v63 = vsel %vm2258_vm4, %v6185_v35, %v14423_v30 }
 0x5a1   : > { %v14499_v33 = vpop.permute.xlu1 %5433  ;;  %v6249_v17 = vsel %vm2291_vm5, %v6217_v63, %v14438_v52  ;;  %v6154_v52 = vsel %vm900_vm2, %v14113_v31, %v14417_v23  ;;  %v5073_v31 = vld [vmem:[#allocation2 + $0x121] sm:$0xff] }
 0x5a2   : > { %v14501_v46 = vpop.permute.xlu0 %5307  ;;  %v6281_v50 = vsel %vm2324_vm6, %v6249_v17, %v5686_v9  ;;  %v6186_v9 = vsel %vm1038_vm3, %v6154_v52, %v14425_v14  ;;  %v14544_v23 = vld [vmem:[#allocation2 + $0x128] sm:$0xff] }
 0x5a3   : > { %6083 = vrot.lane.b32.xlu1 %v5104_v47, %s16130_s18  ;;  %5701 = vrot.lane.b32.xlu0 %v5103_v54, %s16127_s17  ;;  %v6313_v39 = vsel %vm2357_vm7, %v6281_v50, %v5814_v45  ;;  %v6218_v36 = vsel %vm2258_vm4, %v6186_v9, %v14442_v44  ;;  %v5105_v17 = vld [vmem:[#allocation2 + $0x122] sm:$0xff]  ;;  %v6155_v9 = vsel %vm900_vm2, %v14155_v12, %v14472_v59  ;;  %v14588_v12 = vld [vmem:[#allocation2 + $0x138] sm:$0xff] }
 0x5a4   : > { %v6250_v45 = vsel %vm2291_vm5, %v6218_v36, %v14468_v40  ;;  %v5074_v50 = vld [vmem:[#allocation2 + $0x129] sm:$0xff]  ;;  %v6187_v36 = vsel %vm1038_vm3, %v6155_v9, %v14488_v15 }
 0x5a5   : > { %v5942_v8 = vpop.permute.xlu1 %5941 }
 0x5a6   : > { %v5816_v11 = vpop.permute.xlu0 %5815  ;;  %v6345_v41 = vsel %vm2390_vm8, %v6313_v39, %v5942_v8 }
 0x5a7   : > { %5321 = vrot.lane.b32.xlu1 %v5103_v54, %s16123_s16  ;;  %5195 = vrot.lane.b32.xlu0 %v5072_v2, %s16124_s5 }
 0x5a9   : > { %v5562_v3 = vpop.permute.xlu1 %5561 }
 0x5aa   : > { %v14516_v13 = vpop.permute.xlu0 %5435 }
 0x5ab   : > { %5829 = vrot.lane.b32.xlu1 %v14518_v5, %s16128_s2  ;;  %5703 = vrot.lane.b32.xlu0 %v5104_v47, %s16127_s17 }
 0x5ad   : > { %v6070_v30 = vpop.permute.xlu1 %6069 }
 0x5ae   : > { %v6377_v54 = vsel %vm2423_vm9, %v6345_v41, %v6070_v30  ;;  %v5944_v2 = vpop.permute.xlu0 %5943 }
 0x5af   : > { %5449 = vrot.lane.b32.xlu1 %v14518_v5, %s16125_s26  ;;  %5323 = vrot.lane.b32.xlu0 %v5104_v47, %s16123_s16  ;;  %v6282_v47 = vsel %vm2324_vm6, %v6250_v45, %v5688_v19  ;;  %v6219_v45 = vsel %vm2258_vm4, %v6187_v36, %v14499_v33 }
 0x5b0   : > { %10113 = vmatprep.mubr.msk.f32.mxu0 %vm2472_vm10, %v6377_v54  ;;  %v6314_v14 = vsel %vm2357_vm7, %v6282_v47, %v5816_v11  ;;  %v5106_v54 = vld [vmem:[#allocation2 + $0x12a] sm:$0xff]  ;;  %v14583_v47 = vld [vmem:[%s16113_s8] ss:$0 sm:$0xff] }
 0x5b1   : > { %v14538_v56 = vpop.permute.xlu1 %5563  ;;  %v6346_v44 = vsel %vm2390_vm8, %v6314_v14, %v5944_v2  ;;  %v6251_v14 = vsel %vm2291_vm5, %v6219_v45, %v5562_v3 }
 0x5b2   : > { %v14542_v8 = vpop.permute.xlu0 %5181 }
 0x5b3   : > { %5957 = vrot.lane.b32.xlu1 %v5073_v31, %s16129_s23  ;;  %5831 = vrot.lane.b32.xlu0 %v14544_v23, %s16128_s2 }
 0x5b5   : > { %v6072_v20 = vpop.permute.xlu1 %6071 }
 0x5b6   : > { %v6378_v35 = vsel %vm2423_vm9, %v6346_v44, %v6072_v20  ;;  %v5690_v40 = vpop.permute.xlu0 %5689 }
 0x5b7   : > { %5577 = vrot.lane.b32.xlu1 %v5073_v31, %s16126_s11  ;;  %5451 = vrot.lane.b32.xlu0 %v14544_v23, %s16125_s26  ;;  %v6283_v59 = vsel %vm2324_vm6, %v6251_v14, %v5690_v40  ;;  %v16142_v40 = vmax.f32 %v12127_v37, 0.0 }
 0x5b8   : > { %10114 = vmatmul.mubr.msk.f32.gmra.mrb[44].mxu0 %vm2472_vm10, %v6378_v35 }
 0x5b9   : > { %v14557_v19 = vpop.permute.xlu1 %5309 }
 0x5ba   : > { %v14559_v63 = vpop.permute.xlu0 %5183 }
 0x5bb   : > { %6085 = vrot.lane.b32.xlu1 %v5105_v17, %s16130_s18  ;;  %5959 = vrot.lane.b32.xlu0 %v5074_v50, %s16129_s23  ;;  %v6158_v57 = vsel %vm900_vm2, %v14257_v51, %v14559_v63 }
 0x5bd   : > { %v5818_v11 = vpop.permute.xlu1 %5817 }
 0x5be   : > { %v5692_v39 = vpop.permute.xlu0 %5691  ;;  %v6315_v15 = vsel %vm2357_vm7, %v6283_v59, %v5818_v11  ;;  %v6156_v11 = vsel %vm900_vm2, %v14185_v6, %v14491_v53  ;;  %v14608_v59 = vld [vmem:[%s10998_s19] ss:$0 sm:$0xff] }
 0x5bf   : > { %5579 = vrot.lane.b32.xlu1 %v5074_v50, %s16126_s11  ;;  %5197 = vrot.lane.b32.xlu0 %v5073_v31, %s16124_s5  ;;  %v6188_v37 = vsel %vm1038_vm3, %v6156_v11, %v14501_v46  ;;  %v14629_v46 = vld [vmem:[#allocation2 + $0x140] sm:$0xff] }
 0x5c0   : > { %v6220_v6 = vsel %vm2258_vm4, %v6188_v37, %v14516_v13  ;;  %v5107_v37 = vld [vmem:[#allocation2 + $0x13a] sm:$0xff] }
 0x5c1   : > { %v14565_v41 = vpop.permute.xlu1 %5437 }
 0x5c2   : > { %v14567_v30 = vpop.permute.xlu0 %5311 }
 0x5c3   : > { %6087 = vrot.lane.b32.xlu1 %v5106_v54, %s16130_s18  ;;  %5705 = vrot.lane.b32.xlu0 %v5105_v17, %s16127_s17 }
 0x5c5   : > { %v5946_v2 = vpop.permute.xlu1 %5945 }
 0x5c6   : > { %v5820_v52 = vpop.permute.xlu0 %5819  ;;  %v6347_v3 = vsel %vm2390_vm8, %v6315_v15, %v5946_v2 }
 0x5c7   : > { %5325 = vrot.lane.b32.xlu1 %v5105_v17, %s16123_s16  ;;  %5199 = vrot.lane.b32.xlu0 %v5074_v50, %s16124_s5  ;;  %v14598_v17 = vld [vmem:[%s10993_s14] ss:$0 sm:$0xff] }
 0x5c9   : > { %v14580_v31 = vpop.permute.xlu1 %5565 }
 0x5ca   : > { %v14586_v44 = vpop.permute.xlu0 %5439 }
 0x5cb   : > { %v10097_v20 = vpop.f32.mrb[32].mxu0  ;;  %5833 = vrot.lane.b32.xlu1 %v14588_v12, %s16128_s2  ;;  %5707 = vrot.lane.b32.xlu0 %v5106_v54, %s16127_s17 }
 0x5cc   : > { %v6581_v33 = vadd.f32 %v10097_v20, %v14583_v47  ;;  %v6575_v35 = vpop.f32.mrb[33].mxu0  ;;  %v16143_v20 = vmax.f32 %v12135_v21, 0.0  ;;  %v6252_v21 = vsel %vm2291_vm5, %v6220_v6, %v14538_v56 }
 0x5cd   : > { %v6576_v50 = vadd.f32 %v14583_v47, %v6575_v35  ;;  %v6074_v9 = vpop.permute.xlu1 %6073 }
 0x5ce   : > { %v6735_v36 = vadd.f32 %v6581_v33, %v16142_v40  ;;  %v6379_v45 = vsel %vm2423_vm9, %v6347_v3, %v6074_v9  ;;  %v5948_v14 = vpop.permute.xlu0 %5947  ;;  %v5075_v3 = vld [vmem:[#allocation2 + $0x139] sm:$0xff] }
 0x5cf   : > { %v6734_v2 = vadd.f32 %v6576_v50, %v16143_v20  ;;  %5453 = vrot.lane.b32.xlu1 %v14588_v12, %s16125_s26  ;;  %5327 = vrot.lane.b32.xlu0 %v5106_v54, %s16123_s16  ;;  %v6284_v50 = vsel %vm2324_vm6, %v6252_v21, %v5692_v39 }
 0x5d0   : > { %v6774_v15 = vmul.f32 %v14598_v17, %v6735_v36  ;;  %10116 = vmatprep.mubr.msk.f32.mxu0 %vm2472_vm10, %v6379_v45  ;;  %v6316_v13 = vsel %vm2357_vm7, %v6284_v50, %v5820_v52  ;;  %v5108_v50 = vld [vmem:[#allocation2 + $0x142] sm:$0xff] }
 0x5d1   : > { %v6773_v53 = vmul.f32 %v14598_v17, %v6734_v2  ;;  %v14622_v33 = vpop.permute.xlu1 %5567  ;;  %v6348_v36 = vsel %vm2390_vm8, %v6316_v13, %v5948_v14  ;;  %v16144_v14 = vmov 0.0|0.0  }
 0x5d2   : > { %v6813_v35 = vadd.f32 %v14608_v59, %v6774_v15  ;;  %v14627_v54 = vpop.permute.xlu0 %5185  ;;  %v5076_v15 = vld [vmem:[#allocation2 + $0x141] sm:$0xff] }
 0x5d3   : > { %v6812_v9 = vadd.f32 %v14608_v59, %v6773_v53  ;;  %5961 = vrot.lane.b32.xlu1 %v5075_v3, %s16129_s23  ;;  %5835 = vrot.lane.b32.xlu0 %v14629_v46, %s16128_s2 }
 0x5d4   : > { %v6845_v40 = vmax.f32 %v6813_v35, 0.0 }
 0x5d5   : > { %v6844_v56 = vmax.f32 %v6812_v9, 0.0  ;;  %v6076_v45 = vpop.permute.xlu1 %6075 }
 0x5d6   : > { %v6380_v11 = vsel %vm2423_vm9, %v6348_v36, %v6076_v45  ;;  %v5694_v20 = vpop.permute.xlu0 %5693 }
 0x5d7   : > { %5581 = vrot.lane.b32.xlu1 %v5075_v3, %s16126_s11  ;;  %5455 = vrot.lane.b32.xlu0 %v14629_v46, %s16125_s26  ;;  %v10317_v39 = vpack.c.bf16 %v6845_v40, %v6844_v56  ;;  %v6157_v40 = vsel %vm900_vm2, %v14227_v55, %v14542_v8 }
 0x5d8   : > { %10117 = vmatmul.mubr.msk.f32.gmra.mrb[46].mxu0 %vm2472_vm10, %v6380_v11 }
 0x5d9   : > { %10318 = vmatpush1.bf16.msra.mxu1 %v10317_v39  ;;  %v14643_v2 = vpop.permute.xlu1 %5313  ;;  %v14673_v39 = vld [vmem:[#allocation2 + $0x150] sm:$0xff] }
 0x5da   : > { %v14645_v52 = vpop.permute.xlu0 %5187  ;;  %10319 = vmatprep.subr.bf16.mxu1 %v16144_v14 }
 0x5db   : > { %6089 = vrot.lane.b32.xlu1 %v5107_v37, %s16130_s18  ;;  %5963 = vrot.lane.b32.xlu0 %v5076_v15, %s16129_s23 }
 0x5dd   : > { %v5822_v6 = vpop.permute.xlu1 %5821 }
 0x5de   : > { %v5696_v53 = vpop.permute.xlu0 %5695 }
 0x5df   : > { %5583 = vrot.lane.b32.xlu1 %v5076_v15, %s16126_s11  ;;  %5201 = vrot.lane.b32.xlu0 %v5075_v3, %s16124_s5  ;;  %v6189_v3 = vsel %vm1038_vm3, %v6157_v40, %v14557_v19 }
 0x5e0   : > { %v6221_v56 = vsel %vm2258_vm4, %v6189_v3, %v14565_v41  ;;  %v16145_v3 = vmax.f32 %v12226_v28, 0.0 }
 0x5e1   : > { %v14652_v21 = vpop.permute.xlu1 %5441  ;;  %v6253_v45 = vsel %vm2291_vm5, %v6221_v56, %v14580_v31 }
 0x5e2   : > { %v14654_v35 = vpop.permute.xlu0 %5315  ;;  %v6285_v55 = vsel %vm2324_vm6, %v6253_v45, %v5694_v20 }
 0x5e3   : > { %6091 = vrot.lane.b32.xlu1 %v5108_v50, %s16130_s18  ;;  %5709 = vrot.lane.b32.xlu0 %v5107_v37, %s16127_s17  ;;  %v6317_v19 = vsel %vm2357_vm7, %v6285_v55, %v5822_v6  ;;  %v16146_v6 = vmax.f32 %v12232_v60, 0.0 }
 0x5e5   : > { %v5950_v9 = vpop.permute.xlu1 %5949 }
 0x5e6   : > { %v5824_v13 = vpop.permute.xlu0 %5823 }
 0x5e7   : > { %5329 = vrot.lane.b32.xlu1 %v5107_v37, %s16123_s16  ;;  %5203 = vrot.lane.b32.xlu0 %v5076_v15, %s16124_s5  ;;  %v6349_v15 = vsel %vm2390_vm8, %v6317_v19, %v5950_v9  ;;  %v6190_v9 = vsel %vm1038_vm3, %v6158_v57, %v14567_v30  ;;  %v14708_v57 = vld [vmem:[#allocation2 + $0x158] sm:$0xff] }
 0x5e9   : > { %v14667_v36 = vpop.permute.xlu1 %5569 }
 0x5ea   : > { %v14671_v11 = vpop.permute.xlu0 %5443 }
 0x5eb   : > { %v10100_v8 = vpop.f32.mrb[34].mxu0  ;;  %5837 = vrot.lane.b32.xlu1 %v14673_v39, %s16128_s2  ;;  %5711 = vrot.lane.b32.xlu0 %v5108_v50, %s16127_s17 }
 0x5ec   : > { %v6591_v41 = vadd.f32 %v10100_v8, %v14583_v47  ;;  %v6585_v37 = vpop.f32.mrb[35].mxu0  ;;  %v6222_v8 = vsel %vm2258_vm4, %v6190_v9, %v14586_v44 }
 0x5ed   : > { %v6586_v31 = vadd.f32 %v14583_v47, %v6585_v37  ;;  %v6078_v40 = vpop.permute.xlu1 %6077  ;;  %v6254_v60 = vsel %vm2291_vm5, %v6222_v8, %v14622_v33 }
 0x5ee   : > { %v6737_v56 = vadd.f32 %v6591_v41, %v16145_v3  ;;  %v6381_v20 = vsel %vm2423_vm9, %v6349_v15, %v6078_v40  ;;  %v5952_v45 = vpop.permute.xlu0 %5951  ;;  %v5077_v41 = vld [vmem:[#allocation2 + $0x151] sm:$0xff]  ;;  %v6286_v30 = vsel %vm2324_vm6, %v6254_v60, %v5696_v53 }
 0x5ef   : > { %v6736_v55 = vadd.f32 %v6586_v31, %v16146_v6  ;;  %5457 = vrot.lane.b32.xlu1 %v14673_v39, %s16125_s26  ;;  %5331 = vrot.lane.b32.xlu0 %v5108_v50, %s16123_s16  ;;  %v6318_v44 = vsel %vm2357_vm7, %v6286_v30, %v5824_v13  ;;  %v5109_v6 = vld [vmem:[#allocation2 + $0x152] sm:$0xff]  ;;  %v6159_v30 = vsel %vm900_vm2, %v14299_v7, %v14627_v54 }
 0x5f0   : > { %v6776_v28 = vmul.f32 %v14598_v17, %v6737_v56  ;;  %10119 = vmatprep.mubr.msk.f32.mxu0 %vm2472_vm10, %v6381_v20  ;;  %v6350_v31 = vsel %vm2390_vm8, %v6318_v44, %v5952_v45 }
 0x5f1   : > { %v6775_v51 = vmul.f32 %v14598_v17, %v6736_v55  ;;  %v14701_v63 = vpop.permute.xlu1 %5571  ;;  %v5078_v55 = vld [vmem:[#allocation2 + $0x159] sm:$0xff] }
 0x5f2   : > { %v6815_v19 = vadd.f32 %v14608_v59, %v6776_v28  ;;  %v14706_v50 = vpop.permute.xlu0 %5189 }
 0x5f3   : > { %v6814_v37 = vadd.f32 %v14608_v59, %v6775_v51  ;;  %5965 = vrot.lane.b32.xlu1 %v5077_v41, %s16129_s23  ;;  %5839 = vrot.lane.b32.xlu0 %v14708_v57, %s16128_s2  ;;  %v5110_v51 = vld [vmem:[#allocation2 + $0x15a] sm:$0xff] }
 0x5f4   : > { %v6847_v15 = vmax.f32 %v6815_v19, 0.0 }
 0x5f5   : > { %v6846_v33 = vmax.f32 %v6814_v37, 0.0  ;;  %v6080_v40 = vpop.permute.xlu1 %6079 }
 0x5f6   : > { %v6382_v3 = vsel %vm2423_vm9, %v6350_v31, %v6080_v40  ;;  %v5698_v56 = vpop.permute.xlu0 %5697  ;;  %v14752_v31 = vld [vmem:[#allocation2 + $0x168] sm:$0xff] }
 0x5f7   : > { %5585 = vrot.lane.b32.xlu1 %v5077_v41, %s16126_s11  ;;  %5459 = vrot.lane.b32.xlu0 %v14708_v57, %s16125_s26  ;;  %v10320_v53 = vpack.c.bf16 %v6847_v15, %v6846_v33 }
 0x5f8   : > { %10120 = vmatmul.mubr.msk.f32.gmra.mrb[48].mxu0 %vm2472_vm10, %v6382_v3 }
 0x5f9   : > { %10321 = vmatpush1.bf16.msra.mxu1 %v10320_v53  ;;  %v14722_v20 = vpop.permute.xlu1 %5317 }
 0x5fa   : > { %v14724_v13 = vpop.permute.xlu0 %5191  ;;  %10322 = vmatprep.subr.bf16.mxu1 %v16144_v14 }
 0x5fb   : > { %6093 = vrot.lane.b32.xlu1 %v5109_v6, %s16130_s18  ;;  %5967 = vrot.lane.b32.xlu0 %v5078_v55, %s16129_s23 }
 0x5fd   : > { %v5826_v45 = vpop.permute.xlu1 %5825 }
 0x5fe   : > { %v5700_v9 = vpop.permute.xlu0 %5699 }
 0x5ff   : > { %5587 = vrot.lane.b32.xlu1 %v5078_v55, %s16126_s11  ;;  %5205 = vrot.lane.b32.xlu0 %v5077_v41, %s16124_s5  ;;  %v6191_v41 = vsel %vm1038_vm3, %v6159_v30, %v14643_v2 }
 0x600   : > { %v6223_v37 = vsel %vm2258_vm4, %v6191_v41, %v14652_v21  ;;  %v6160_v41 = vsel %vm900_vm2, %v14329_v58, %v14645_v52 }
 0x601   : > { %v14731_v28 = vpop.permute.xlu1 %5445  ;;  %v6255_v15 = vsel %vm2291_vm5, %v6223_v37, %v14667_v36 }
 0x602   : > { %v14733_v8 = vpop.permute.xlu0 %5319  ;;  %v6287_v7 = vsel %vm2324_vm6, %v6255_v15, %v5698_v56 }
 0x603   : > { %6095 = vrot.lane.b32.xlu1 %v5110_v51, %s16130_s18  ;;  %5713 = vrot.lane.b32.xlu0 %v5109_v6, %s16127_s17  ;;  %v6319_v2 = vsel %vm2357_vm7, %v6287_v7, %v5826_v45  ;;  %v16148_v45 = vmax.f32 %v12325_v61, 0.0 }
 0x605   : > { %v5954_v60 = vpop.permute.xlu1 %5953 }
 0x606   : > { %v5828_v19 = vpop.permute.xlu0 %5827  ;;  %v6351_v3 = vsel %vm2390_vm8, %v6319_v2, %v5954_v60  ;;  %v6192_v60 = vsel %vm1038_vm3, %v6160_v41, %v14654_v35  ;;  %v14787_v35 = vld [vmem:[#allocation2 + $0x170] sm:$0xff] }
 0x607   : > { %5333 = vrot.lane.b32.xlu1 %v5109_v6, %s16123_s16  ;;  %5207 = vrot.lane.b32.xlu0 %v5078_v55, %s16124_s5  ;;  %v16147_v6 = vmax.f32 %v12319_v24, 0.0  ;;  %v6224_v15 = vsel %vm2258_vm4, %v6192_v60, %v14671_v11  ;;  %v5080_v41 = vld [vmem:[#allocation2 + $0x171] sm:$0xff] }
 0x608   : > { %v6256_v61 = vsel %vm2291_vm5, %v6224_v15, %v14701_v63 }
 0x609   : > { %v14746_v44 = vpop.permute.xlu1 %5573  ;;  %v6288_v2 = vsel %vm2324_vm6, %v6256_v61, %v5700_v9  ;;  %v6161_v61 = vsel %vm900_vm2, %v14372_v4, %v14706_v50 }
 0x60a   : > { %v14750_v33 = vpop.permute.xlu0 %5447  ;;  %v6320_v11 = vsel %vm2357_vm7, %v6288_v2, %v5828_v19 }
 0x60b   : > { %v10103_v54 = vpop.f32.mrb[36].mxu0  ;;  %5841 = vrot.lane.b32.xlu1 %v14752_v31, %s16128_s2  ;;  %5715 = vrot.lane.b32.xlu0 %v5110_v51, %s16127_s17 }
 0x60c   : > { %v6601_v21 = vadd.f32 %v10103_v54, %v14583_v47  ;;  %v6595_v40 = vpop.f32.mrb[37].mxu0  ;;  %v5079_v54 = vld [vmem:[#allocation2 + $0x169] sm:$0xff] }
 0x60d   : > { %v6596_v36 = vadd.f32 %v14583_v47, %v6595_v40  ;;  %v6082_v53 = vpop.permute.xlu1 %6081 }
 0x60e   : > { %v6739_v55 = vadd.f32 %v6601_v21, %v16147_v6  ;;  %v6383_v56 = vsel %vm2423_vm9, %v6351_v3, %v6082_v53  ;;  %v5956_v30 = vpop.permute.xlu0 %5955 }
 0x60f   : > { %v6738_v37 = vadd.f32 %v6596_v36, %v16148_v45  ;;  %5461 = vrot.lane.b32.xlu1 %v14752_v31, %s16125_s26  ;;  %5335 = vrot.lane.b32.xlu0 %v5110_v51, %s16123_s16  ;;  %v6352_v3 = vsel %vm2390_vm8, %v6320_v11, %v5956_v30 }
 0x610   : > { %v6778_v24 = vmul.f32 %v14598_v17, %v6739_v55  ;;  %10122 = vmatprep.mubr.msk.f32.mxu0 %vm2472_vm10, %v6383_v56  ;;  %v5111_v56 = vld [vmem:[#allocation2 + $0x16a] sm:$0xff] }
 0x611   : > { %v6777_v58 = vmul.f32 %v14598_v17, %v6738_v37  ;;  %v14780_v52 = vpop.permute.xlu1 %5575 }
 0x612   : > { %v6817_v7 = vadd.f32 %v14608_v59, %v6778_v24  ;;  %v14785_v51 = vpop.permute.xlu0 %5193  ;;  %v5112_v24 = vld [vmem:[#allocation2 + $0x172] sm:$0xff] }
 0x613   : > { %v6816_v21 = vadd.f32 %v14608_v59, %v6777_v58  ;;  %5969 = vrot.lane.b32.xlu1 %v5079_v54, %s16129_s23  ;;  %5843 = vrot.lane.b32.xlu0 %v14787_v35, %s16128_s2 }
 0x614   : > { %v6849_v40 = vmax.f32 %v6817_v7, 0.0  ;;  %v6193_v7 = vsel %vm1038_vm3, %v6161_v61, %v14722_v20 }
 0x615   : > { %v6848_v63 = vmax.f32 %v6816_v21, 0.0  ;;  %v6084_v36 = vpop.permute.xlu1 %6083 }
 0x616   : > { %v6384_v53 = vsel %vm2423_vm9, %v6352_v3, %v6084_v36  ;;  %v5702_v6 = vpop.permute.xlu0 %5701 }
 0x617   : > { %5589 = vrot.lane.b32.xlu1 %v5079_v54, %s16126_s11  ;;  %5463 = vrot.lane.b32.xlu0 %v14787_v35, %s16125_s26  ;;  %v10323_v9 = vpack.c.bf16 %v6849_v40, %v6848_v63  ;;  %v5049_v40 = vld [vmem:[#allocation2 + $0x180] sm:$0xff] }
 0x618   : > { %10123 = vmatmul.mubr.msk.f32.gmra.mrb[50].mxu0 %vm2472_vm10, %v6384_v53  ;;  %v16149_v53 = vmax.f32 %v12407_v27, 0.0 }
 0x619   : > { %10324 = vmatpush1.bf16.msra.mxu1 %v10323_v9  ;;  %v14801_v55 = vpop.permute.xlu1 %5321 }
 0x61a   : > { %v14803_v19 = vpop.permute.xlu0 %5195  ;;  %10325 = vmatprep.subr.bf16.mxu1 %v16144_v14 }
 0x61b   : > { %6097 = vrot.lane.b32.xlu1 %v5111_v56, %s16130_s18  ;;  %5971 = vrot.lane.b32.xlu0 %v5080_v41, %s16129_s23 }
 0x61d   : > { %v5830_v30 = vpop.permute.xlu1 %5829 }
 0x61e   : > { %v5704_v45 = vpop.permute.xlu0 %5703 }
 0x61f   : > { %5591 = vrot.lane.b32.xlu1 %v5080_v41, %s16126_s11  ;;  %5209 = vrot.lane.b32.xlu0 %v5079_v54, %s16124_s5  ;;  %v6225_v54 = vsel %vm2258_vm4, %v6193_v7, %v14731_v28 }
 0x620   : > { %v6257_v21 = vsel %vm2291_vm5, %v6225_v54, %v14746_v44 }
 0x621   : > { %v14810_v37 = vpop.permute.xlu1 %5449  ;;  %v6289_v4 = vsel %vm2324_vm6, %v6257_v21, %v5702_v6  ;;  %v5081_v21 = vld [vmem:[#allocation2 + $0x181] sm:$0xff] }
 0x622   : > { %v14812_v60 = vpop.permute.xlu0 %5323  ;;  %v6321_v20 = vsel %vm2357_vm7, %v6289_v4, %v5830_v30  ;;  %v16150_v30 = vmax.f32 %v12411_v1, 0.0 }
 0x623   : > { %6099 = vrot.lane.b32.xlu1 %v5112_v24, %s16130_s18  ;;  %5717 = vrot.lane.b32.xlu0 %v5111_v56, %s16127_s17 }
 0x625   : > { %v5958_v15 = vpop.permute.xlu1 %5957 }
 0x626   : > { %v5832_v58 = vpop.permute.xlu0 %5831  ;;  %v6353_v3 = vsel %vm2390_vm8, %v6321_v20, %v5958_v15 }
 0x627   : > { %5337 = vrot.lane.b32.xlu1 %v5111_v56, %s16123_s16  ;;  %5211 = vrot.lane.b32.xlu0 %v5080_v41, %s16124_s5  ;;  %v6162_v41 = vsel %vm900_vm2, %v14402_v49, %v14724_v13 }
 0x628   : > { %v6194_v15 = vsel %vm1038_vm3, %v6162_v41, %v14733_v8  ;;  %v5050_v8 = vld [vmem:[#allocation2 + $0x188] sm:$0xff] }
 0x629   : > { %v14825_v2 = vpop.permute.xlu1 %5577  ;;  %v6226_v7 = vsel %vm2258_vm4, %v6194_v15, %v14750_v33  ;;  %v5051_v15 = vld [vmem:[#allocation2 + $0x198] sm:$0xff] }
 0x62a   : > { %v14829_v11 = vpop.permute.xlu0 %5451  ;;  %v6258_v1 = vsel %vm2291_vm5, %v6226_v7, %v14780_v52 }
 0x62b   : > { %v10106_v50 = vpop.f32.mrb[38].mxu0  ;;  %5845 = vrot.lane.b32.xlu1 %v5049_v40, %s16128_s2  ;;  %5719 = vrot.lane.b32.xlu0 %v5112_v24, %s16127_s17 }
 0x62c   : > { %v6611_v63 = vadd.f32 %v10106_v50, %v14583_v47  ;;  %v6605_v28 = vpop.f32.mrb[39].mxu0 }
 0x62d   : > { %v6606_v36 = vadd.f32 %v14583_v47, %v6605_v28  ;;  %v6086_v44 = vpop.permute.xlu1 %6085 }
 0x62e   : > { %v6741_v9 = vadd.f32 %v6611_v63, %v16149_v53  ;;  %v6385_v6 = vsel %vm2423_vm9, %v6353_v3, %v6086_v44  ;;  %v5960_v56 = vpop.permute.xlu0 %5959  ;;  %v5082_v53 = vld [vmem:[#allocation2 + $0x189] sm:$0xff] }
 0x62f   : > { %v6740_v61 = vadd.f32 %v6606_v36, %v16150_v30  ;;  %5465 = vrot.lane.b32.xlu1 %v5049_v40, %s16125_s26  ;;  %5339 = vrot.lane.b32.xlu0 %v5112_v24, %s16123_s16  ;;  %v6290_v40 = vsel %vm2324_vm6, %v6258_v1, %v5704_v45  ;;  %v5020_v30 = vld [vmem:[#allocation2 + $0x18a] sm:$0xff] }
 0x630   : > { %v6780_v27 = vmul.f32 %v14598_v17, %v6741_v9  ;;  %10125 = vmatprep.mubr.msk.f32.mxu0 %vm2472_vm10, %v6385_v6  ;;  %v6322_v33 = vsel %vm2357_vm7, %v6290_v40, %v5832_v58  ;;  %v5113_v58 = vld [vmem:[#allocation2 + $0x182] sm:$0xff] }
 0x631   : > { %v6779_v54 = vmul.f32 %v14598_v17, %v6740_v61  ;;  %v14855_v49 = vpop.permute.xlu1 %5579  ;;  %v6354_v52 = vsel %vm2390_vm8, %v6322_v33, %v5960_v56  ;;  %v5052_v61 = vld [vmem:[#allocation2 + $0x1a0] sm:$0xff] }
 0x632   : > { %v6819_v13 = vadd.f32 %v14608_v59, %v6780_v27  ;;  %v14860_v24 = vpop.permute.xlu0 %5197 }
 0x633   : > { %v6818_v4 = vadd.f32 %v14608_v59, %v6779_v54  ;;  %5973 = vrot.lane.b32.xlu1 %v5081_v21, %s16129_s23  ;;  %5847 = vrot.lane.b32.xlu0 %v5050_v8, %s16128_s2  ;;  %v6163_v54 = vsel %vm900_vm2, %v14444_v22, %v14785_v51 }
 0x634   : > { %v6851_v50 = vmax.f32 %v6819_v13, 0.0  ;;  %v6195_v1 = vsel %vm1038_vm3, %v6163_v54, %v14801_v55  ;;  %v5084_v13 = vld [vmem:[#allocation2 + $0x1a1] sm:$0xff] }
 0x635   : > { %v6850_v20 = vmax.f32 %v6818_v4, 0.0  ;;  %v6088_v63 = vpop.permute.xlu1 %6087 }
 0x636   : > { %v6386_v28 = vsel %vm2423_vm9, %v6354_v52, %v6088_v63  ;;  %v5706_v3 = vpop.permute.xlu0 %5705  ;;  %v5116_v52 = vld [vmem:[#allocation2 + $0x1a2] sm:$0xff] }
 0x637   : > { %5593 = vrot.lane.b32.xlu1 %v5081_v21, %s16126_s11  ;;  %5467 = vrot.lane.b32.xlu0 %v5050_v8, %s16125_s26  ;;  %v10326_v45 = vpack.c.bf16 %v6851_v50, %v6850_v20  ;;  %v5083_v21 = vld [vmem:[#allocation2 + $0x199] sm:$0xff]  ;;  %v6227_v8 = vsel %vm2258_vm4, %v6195_v1, %v14810_v37 }
 0x638   : > { %10126 = vmatmul.mubr.msk.f32.gmra.mrb[52].mxu0 %vm2472_vm10, %v6386_v28  ;;  %v6259_v4 = vsel %vm2291_vm5, %v6227_v8, %v14825_v2  ;;  %v5115_v37 = vld [vmem:[#allocation2 + $0x19a] sm:$0xff] }
 0x639   : > { %10327 = vmatpush1.bf16.msra.mxu1 %v10326_v45  ;;  %v14872_v36 = vpop.permute.xlu1 %5325  ;;  %v6291_v22 = vsel %vm2324_vm6, %v6259_v4, %v5706_v3  ;;  %v16151_v45 = vmax.f32 %v12491_v25, 0.0 }
 0x63a   : > { %v14874_v44 = vpop.permute.xlu0 %5199  ;;  %10328 = vmatprep.subr.bf16.mxu1 %v16144_v14 }
 0x63b   : > { %6101 = vrot.lane.b32.xlu1 %v5113_v58, %s16130_s18  ;;  %5975 = vrot.lane.b32.xlu0 %v5082_v53, %s16129_s23 }
 0x63d   : > { %v5834_v9 = vpop.permute.xlu1 %5833 }
 0x63e   : > { %v5708_v6 = vpop.permute.xlu0 %5707  ;;  %v6323_v55 = vsel %vm2357_vm7, %v6291_v22, %v5834_v9  ;;  %v6164_v9 = vsel %vm900_vm2, %v14474_v38, %v14803_v19 }
 0x63f   : > { %5721 = vrot.lane.b32.xlu1 %v5113_v58, %s16127_s17  ;;  %5595 = vrot.lane.b32.xlu0 %v5082_v53, %s16126_s11 }
 0x641   : > { %v14881_v56 = vpop.permute.xlu1 %5453 }
 0x642   : > { %v14883_v41 = vpop.permute.xlu0 %5327 }
 0x643   : > { %5723 = vrot.lane.b32.xlu1 %v5020_v30, %s16127_s17  ;;  %6103 = vrot.lane.b32.xlu0 %v5020_v30, %s16130_s18  ;;  %v16152_v30 = vmax.f32 %v12497_v62, 0.0 }
 0x645   : > { %v5962_v27 = vpop.permute.xlu1 %5961 }
 0x646   : > { %v5836_v7 = vpop.permute.xlu0 %5835  ;;  %v6355_v63 = vsel %vm2390_vm8, %v6323_v55, %v5962_v27 }
 0x647   : > { %5851 = vrot.lane.b32.xlu1 %v5052_v61, %s16128_s2  ;;  %5849 = vrot.lane.b32.xlu0 %v5051_v15, %s16128_s2  ;;  %v6196_v15 = vsel %vm1038_vm3, %v6164_v9, %v14812_v60 }
 0x648   : > { %v6228_v27 = vsel %vm2258_vm4, %v6196_v15, %v14829_v11 }
 0x649   : > { %v5582_v40 = vpop.permute.xlu1 %5581  ;;  %v6260_v62 = vsel %vm2291_vm5, %v6228_v27, %v14855_v49 }
 0x64a   : > { %v14898_v33 = vpop.permute.xlu0 %5455 }
 0x64b   : > { %v10109_v51 = vpop.f32.mrb[40].mxu0  ;;  %5979 = vrot.lane.b32.xlu1 %v5084_v13, %s16129_s23  ;;  %5977 = vrot.lane.b32.xlu0 %v5083_v21, %s16129_s23  ;;  %v6292_v13 = vsel %vm2324_vm6, %v6260_v62, %v5708_v6 }
 0x64c   : > { %v6621_v50 = vadd.f32 %v10109_v51, %v14583_v47  ;;  %v6615_v20 = vpop.f32.mrb[41].mxu0  ;;  %v6324_v21 = vsel %vm2357_vm7, %v6292_v13, %v5836_v7  ;;  %v16154_v13 = vmax.f32 %v12588_v42, 0.0 }
 0x64d   : > { %v6616_v2 = vadd.f32 %v14583_v47, %v6615_v20  ;;  %v6090_v28 = vpop.permute.xlu1 %6089 }
 0x64e   : > { %v6743_v3 = vadd.f32 %v6621_v50, %v16151_v45  ;;  %v6387_v58 = vsel %vm2423_vm9, %v6355_v63, %v6090_v28  ;;  %v5964_v53 = vpop.permute.xlu0 %5963  ;;  %v6165_v28 = vsel %vm900_vm2, %v14518_v5, %v14860_v24 }
 0x64f   : > { %v6742_v61 = vadd.f32 %v6616_v2, %v16152_v30  ;;  %6107 = vrot.lane.b32.xlu1 %v5116_v52, %s16130_s18  ;;  %6105 = vrot.lane.b32.xlu0 %v5115_v37, %s16130_s18  ;;  %v6356_v11 = vsel %vm2390_vm8, %v6324_v21, %v5964_v53  ;;  %v6197_v45 = vsel %vm1038_vm3, %v6165_v28, %v14872_v36 }
 0x650   : > { %v6782_v25 = vmul.f32 %v14598_v17, %v6743_v3  ;;  %10128 = vmatprep.mubr.msk.f32.mxu0 %vm2472_vm10, %v6387_v58  ;;  %v6229_v3 = vsel %vm2258_vm4, %v6197_v45, %v14881_v56  ;;  %v16153_v56 = vmax.f32 %v12582_v16, 0.0 }
 0x651   : > { %v6781_v54 = vmul.f32 %v14598_v17, %v6742_v61  ;;  %v5584_v38 = vpop.permute.xlu1 %5583  ;;  %v6261_v53 = vsel %vm2291_vm5, %v6229_v3, %v5582_v40 }
 0x652   : > { %v6821_v19 = vadd.f32 %v14608_v59, %v6782_v25  ;;  %v14927_v1 = vpop.permute.xlu0 %5201 }
 0x653   : > { %v6820_v60 = vadd.f32 %v14608_v59, %v6781_v54 }
 0x654   : > { %v6853_v8 = vmax.f32 %v6821_v19, 0.0  ;;  %v6166_v19 = vsel %vm900_vm2, %v14544_v23, %v14874_v44 }
 0x655   : > { %v6852_v4 = vmax.f32 %v6820_v60, 0.0  ;;  %v6092_v22 = vpop.permute.xlu1 %6091  ;;  %v6198_v21 = vsel %vm1038_vm3, %v6166_v19, %v14883_v41 }
 0x656   : > { %v6388_v51 = vsel %vm2423_vm9, %v6356_v11, %v6092_v22  ;;  %v5710_v55 = vpop.permute.xlu0 %5709  ;;  %v6230_v16 = vsel %vm2258_vm4, %v6198_v21, %v14898_v33 }
 0x657   : > { %10129 = vmatmul.mubr.msk.f32.gmra.mrb[54].mxu0 %vm2472_vm10, %v6388_v51  ;;  %v10329_v49 = vpack.c.bf16 %v6853_v8, %v6852_v4  ;;  %v6293_v30 = vsel %vm2324_vm6, %v6261_v53, %v5710_v55  ;;  %v6262_v22 = vsel %vm2291_vm5, %v6230_v16, %v5584_v38  ;;  %v16156_v16 = vmax.f32 %v12674_v18, 0.0 }
 0x659   : > { %10330 = vmatpush1.bf16.msra.mxu1 %v10329_v49  ;;  %v5330_v50 = vpop.permute.xlu1 %5329 }
 0x65a   : > { %v14935_v20 = vpop.permute.xlu0 %5203  ;;  %10331 = vmatprep.subr.bf16.mxu1 %v16144_v14 }
 0x65d   : > { %v5838_v6 = vpop.permute.xlu1 %5837 }
 0x65e   : > { %v5712_v52 = vpop.permute.xlu0 %5711  ;;  %v6325_v15 = vsel %vm2357_vm7, %v6293_v30, %v5838_v6 }
 0x65f   : > { %v6294_v42 = vsel %vm2324_vm6, %v6262_v22, %v5712_v52 }
 0x661   : > { %v5458_v7 = vpop.permute.xlu1 %5457 }
 0x662   : > { %v14938_v37 = vpop.permute.xlu0 %5331 }
 0x665   : > { %v5966_v63 = vpop.permute.xlu1 %5965 }
 0x666   : > { %v5840_v2 = vpop.permute.xlu0 %5839  ;;  %v6357_v5 = vsel %vm2390_vm8, %v6325_v15, %v5966_v63 }
 0x667   : > { %v6326_v41 = vsel %vm2357_vm7, %v6294_v42, %v5840_v2 }
 0x669   : > { %v5586_v58 = vpop.permute.xlu1 %5585 }
 0x66a   : > { %v14948_v9 = vpop.permute.xlu0 %5459 }
 0x66b   : > { %v10112_v61 = vpop.f32.mrb[42].mxu0 }
 0x66c   : > { %v6631_v25 = vadd.f32 %v10112_v61, %v14583_v47  ;;  %v6625_v27 = vpop.f32.mrb[43].mxu0 }
 0x66d   : > { %v6626_v24 = vadd.f32 %v14583_v47, %v6625_v27  ;;  %v6094_v36 = vpop.permute.xlu1 %6093 }
 0x66e   : > { %v6745_v54 = vadd.f32 %v6631_v25, %v16153_v56  ;;  %v6389_v40 = vsel %vm2423_vm9, %v6357_v5, %v6094_v36  ;;  %v5968_v62 = vpop.permute.xlu0 %5967  ;;  %v6167_v25 = vsel %vm900_vm2, %v14588_v12, %v14927_v1 }
 0x66f   : > { %v6744_v60 = vadd.f32 %v6626_v24, %v16154_v13  ;;  %10131 = vmatprep.mubr.msk.f32.mxu0 %vm2472_vm10, %v6389_v40  ;;  %v6358_v6 = vsel %vm2390_vm8, %v6326_v41, %v5968_v62  ;;  %v6199_v27 = vsel %vm1038_vm3, %v6167_v25, %v5330_v50  ;;  %v16155_v50 = vmax.f32 %v12670_v29, 0.0 }
 0x670   : > { %v6784_v8 = vmul.f32 %v14598_v17, %v6745_v54  ;;  %v6231_v5 = vsel %vm2258_vm4, %v6199_v27, %v5458_v7 }
 0x671   : > { %v6783_v4 = vmul.f32 %v14598_v17, %v6744_v60  ;;  %v5588_v11 = vpop.permute.xlu1 %5587  ;;  %v6263_v36 = vsel %vm2291_vm5, %v6231_v5, %v5586_v58 }
 0x672   : > { %v6823_v23 = vadd.f32 %v14608_v59, %v6784_v8  ;;  %v14972_v44 = vpop.permute.xlu0 %5205  ;;  %v6168_v8 = vsel %vm900_vm2, %v14629_v46, %v14935_v20 }
 0x673   : > { %v6822_v51 = vadd.f32 %v14608_v59, %v6783_v4  ;;  %v6200_v22 = vsel %vm1038_vm3, %v6168_v8, %v14938_v37  ;;  %v16158_v8 = vmax.f32 %v12755_v48, 0.0 }
 0x674   : > { %v6855_v55 = vmax.f32 %v6823_v23, 0.0  ;;  %v6232_v29 = vsel %vm2258_vm4, %v6200_v22, %v14948_v9 }
 0x675   : > { %v6854_v49 = vmax.f32 %v6822_v51, 0.0  ;;  %v6096_v33 = vpop.permute.xlu1 %6095  ;;  %v6264_v41 = vsel %vm2291_vm5, %v6232_v29, %v5588_v11 }
 0x676   : > { %v6390_v63 = vsel %vm2423_vm9, %v6358_v6, %v6096_v33  ;;  %v5714_v28 = vpop.permute.xlu0 %5713 }
 0x677   : > { %10132 = vmatmul.mubr.msk.f32.gmra.mrb[56].mxu0 %vm2472_vm10, %v6390_v63  ;;  %v10332_v38 = vpack.c.bf16 %v6855_v55, %v6854_v49  ;;  %v6295_v54 = vsel %vm2324_vm6, %v6263_v36, %v5714_v28  ;;  %v6169_v36 = vsel %vm900_vm2, %v14673_v39, %v14972_v44 }
 0x679   : > { %10333 = vmatpush1.bf16.msra.mxu1 %v10332_v38  ;;  %v5334_v45 = vpop.permute.xlu1 %5333 }
 0x67a   : > { %v14980_v3 = vpop.permute.xlu0 %5207  ;;  %10334 = vmatprep.subr.bf16.mxu1 %v16144_v14 }
 0x67d   : > { %v5842_v52 = vpop.permute.xlu1 %5841 }
 0x67e   : > { %v5716_v53 = vpop.permute.xlu0 %5715  ;;  %v6327_v62 = vsel %vm2357_vm7, %v6295_v54, %v5842_v52  ;;  %v6201_v54 = vsel %vm1038_vm3, %v6169_v36, %v5334_v45  ;;  %v16157_v45 = vmax.f32 %v12751_v43, 0.0 }
 0x67f   : > { %v6296_v18 = vsel %vm2324_vm6, %v6264_v41, %v5716_v53 }
 0x681   : > { %v5462_v2 = vpop.permute.xlu1 %5461 }
 0x682   : > { %v14983_v30 = vpop.permute.xlu0 %5335 }
 0x685   : > { %v5970_v61 = vpop.permute.xlu1 %5969 }
 0x686   : > { %v5844_v15 = vpop.permute.xlu0 %5843  ;;  %v6359_v60 = vsel %vm2390_vm8, %v6327_v62, %v5970_v61 }
 0x687   : > { %v6328_v37 = vsel %vm2357_vm7, %v6296_v18, %v5844_v15 }
 0x689   : > { %v5590_v24 = vpop.permute.xlu1 %5589 }
 0x68a   : > { %v14991_v56 = vpop.permute.xlu0 %5463 }
 0x68b   : > { %v10115_v40 = vpop.f32.mrb[44].mxu0 }
 0x68c   : > { %v6641_v19 = vadd.f32 %v10115_v40, %v14583_v47  ;;  %v6635_v13 = vpop.f32.mrb[45].mxu0  ;;  %v6233_v40 = vsel %vm2258_vm4, %v6201_v54, %v5462_v2 }
 0x68d   : > { %v6636_v12 = vadd.f32 %v14583_v47, %v6635_v13  ;;  %v6098_v1 = vpop.permute.xlu1 %6097 }
 0x68e   : > { %v6747_v7 = vadd.f32 %v6641_v19, %v16155_v50  ;;  %v6391_v58 = vsel %vm2423_vm9, %v6359_v60, %v6098_v1  ;;  %v5972_v21 = vpop.permute.xlu0 %5971  ;;  %v6265_v19 = vsel %vm2291_vm5, %v6233_v40, %v5590_v24 }
 0x68f   : > { %v6746_v4 = vadd.f32 %v6636_v12, %v16156_v16  ;;  %10134 = vmatprep.mubr.msk.f32.mxu0 %vm2472_vm10, %v6391_v58  ;;  %v6360_v33 = vsel %vm2390_vm8, %v6328_v37, %v5972_v21 }
 0x690   : > { %v6786_v23 = vmul.f32 %v14598_v17, %v6747_v7 }
 0x691   : > { %v6785_v42 = vmul.f32 %v14598_v17, %v6746_v4  ;;  %v5592_v51 = vpop.permute.xlu1 %5591  ;;  %v6170_v4 = vsel %vm900_vm2, %v14708_v57, %v14980_v3 }
 0x692   : > { %v6825_v46 = vadd.f32 %v14608_v59, %v6786_v23  ;;  %v15015_v20 = vpop.permute.xlu0 %5209  ;;  %v6202_v23 = vsel %vm1038_vm3, %v6170_v4, %v14983_v30 }
 0x693   : > { %v6824_v55 = vadd.f32 %v14608_v59, %v6785_v42  ;;  %v6234_v42 = vsel %vm2258_vm4, %v6202_v23, %v14991_v56 }
 0x694   : > { %v6857_v49 = vmax.f32 %v6825_v46, 0.0  ;;  %v6266_v46 = vsel %vm2291_vm5, %v6234_v42, %v5592_v51 }
 0x695   : > { %v6856_v6 = vmax.f32 %v6824_v55, 0.0  ;;  %v6100_v9 = vpop.permute.xlu1 %6099 }
 0x696   : > { %v6392_v63 = vsel %vm2423_vm9, %v6360_v33, %v6100_v9  ;;  %v5718_v28 = vpop.permute.xlu0 %5717 }
 0x697   : > { %10135 = vmatmul.mubr.msk.f32.gmra.mrb[58].mxu0 %vm2472_vm10, %v6392_v63  ;;  %v10335_v11 = vpack.c.bf16 %v6857_v49, %v6856_v6  ;;  %v6297_v60 = vsel %vm2324_vm6, %v6265_v19, %v5718_v28  ;;  %v6171_v28 = vsel %vm900_vm2, %v14752_v31, %v15015_v20 }
 0x699   : > { %10336 = vmatpush1.bf16.msra.mxu1 %v10335_v11  ;;  %v5338_v38 = vpop.permute.xlu1 %5337 }
 0x69a   : > { %v5212_v52 = vpop.permute.xlu0 %5211  ;;  %10337 = vmatprep.subr.bf16.mxu1 %v16144_v14 }
 0x69b   : > { %v6172_v63 = vsel %vm900_vm2, %v14787_v35, %v5212_v52 }
 0x69d   : > { %v5846_v53 = vpop.permute.xlu1 %5845 }
 0x69e   : > { %v5720_v61 = vpop.permute.xlu0 %5719  ;;  %v6329_v1 = vsel %vm2357_vm7, %v6297_v60, %v5846_v53  ;;  %v6203_v53 = vsel %vm1038_vm3, %v6171_v28, %v5338_v38  ;;  %v15117_v28 = vld [vmem:[%s10998_s19] ss:$0 sm:$0xff] }
 0x69f   : > { %v6298_v57 = vsel %vm2324_vm6, %v6266_v46, %v5720_v61 }
 0x6a1   : > { %v5466_v25 = vpop.permute.xlu1 %5465 }
 0x6a2   : > { %v5340_v15 = vpop.permute.xlu0 %5339 }
 0x6a3   : > { %v6204_v11 = vsel %vm1038_vm3, %v6172_v63, %v5340_v15 }
 0x6a5   : > { %v5974_v27 = vpop.permute.xlu1 %5973 }
 0x6a6   : > { %v5848_v5 = vpop.permute.xlu0 %5847  ;;  %v6361_v58 = vsel %vm2390_vm8, %v6329_v1, %v5974_v27 }
 0x6a7   : > { %v6330_v55 = vsel %vm2357_vm7, %v6298_v57, %v5848_v5  ;;  %v6235_v5 = vsel %vm2258_vm4, %v6203_v53, %v5466_v25 }
 0x6a9   : > { %v5594_v62 = vpop.permute.xlu1 %5593 }
 0x6aa   : > { %v5468_v13 = vpop.permute.xlu0 %5467  ;;  %v6267_v40 = vsel %vm2291_vm5, %v6235_v5, %v5594_v62 }
 0x6ab   : > { %v10118_v12 = vpop.f32.mrb[46].mxu0  ;;  %v6236_v61 = vsel %vm2258_vm4, %v6204_v11, %v5468_v13 }
 0x6ac   : > { %v6651_v50 = vadd.f32 %v10118_v12, %v14583_v47  ;;  %v6645_v7 = vpop.f32.mrb[47].mxu0 }
 0x6ad   : > { %v6646_v39 = vadd.f32 %v14583_v47, %v6645_v7  ;;  %v6102_v44 = vpop.permute.xlu1 %6101  ;;  %v16159_v7 = vmax.f32 %v12835_v10, 0.0 }
 0x6ae   : > { %v6749_v2 = vadd.f32 %v6651_v50, %v16157_v45  ;;  %v6393_v21 = vsel %vm2423_vm9, %v6361_v58, %v6102_v44  ;;  %v5976_v24 = vpop.permute.xlu0 %5975 }
 0x6af   : > { %v6748_v16 = vadd.f32 %v6646_v39, %v16158_v8  ;;  %10137 = vmatprep.mubr.msk.f32.mxu0 %vm2472_vm10, %v6393_v21  ;;  %v6362_v49 = vsel %vm2390_vm8, %v6330_v55, %v5976_v24  ;;  %v16160_v39 = vmax.f32 %v12838_v34, 0.0 }
 0x6b0   : > { %v6788_v22 = vmul.f32 %v14598_v17, %v6749_v2 }
 0x6b1   : > { %v6787_v43 = vmul.f32 %v14598_v17, %v6748_v16  ;;  %v5722_v29 = vpop.permute.xlu1 %5721 }
 0x6b2   : > { %v6827_v48 = vadd.f32 %v14608_v59, %v6788_v22  ;;  %v5596_v41 = vpop.permute.xlu0 %5595  ;;  %v6299_v52 = vsel %vm2324_vm6, %v6267_v40, %v5722_v29  ;;  %v16162_v29 = vmax.f32 %v12899_v32, 0.0 }
 0x6b3   : > { %v6826_v18 = vadd.f32 %v14608_v59, %v6787_v43  ;;  %v6268_v36 = vsel %vm2291_vm5, %v6236_v61, %v5596_v41 }
 0x6b4   : > { %v6859_v3 = vmax.f32 %v6827_v48, 0.0  ;;  %v15101_v48 = vld [vmem:[%s10993_s14] ss:$0 sm:$0xff] }
 0x6b5   : > { %v6858_v37 = vmax.f32 %v6826_v18, 0.0  ;;  %v5724_v30 = vpop.permute.xlu1 %5723 }
 0x6b6   : > { %v6104_v6 = vpop.permute.xlu0 %6103  ;;  %v6300_v35 = vsel %vm2324_vm6, %v6268_v36, %v5724_v30 }
 0x6b7   : > { %v6394_v33 = vsel %vm2423_vm9, %v6362_v49, %v6104_v6  ;;  %v10338_v56 = vpack.c.bf16 %v6859_v3, %v6858_v37  ;;  %v16163_v6 = vmax.f32 %v12975_v0, 0.0  ;;  %v6877_v0 = vld [vmem:[%s10953_s9 + $0x8] sm:$0xff] }
 0x6b8   : > { %10138 = vmatmul.mubr.msk.f32.gmra.mrb[60].mxu0 %vm2472_vm10, %v6394_v33  ;;  %7004 = vmatprep.mubr.f32.mxu1 %v6877_v0 }
 0x6b9   : > { %10339 = vmatpush1.bf16.msra.mxu1 %v10338_v56  ;;  %v5852_v9 = vpop.permute.xlu1 %5851  ;;  %v16164_v56 = vld [vmem:[#allocation36_spill] sm:$0xff] }
 0x6ba   : > { %v5850_v51 = vpop.permute.xlu0 %5849  ;;  %10340 = vmatprep.subr.bf16.mxu1 %v16144_v14  ;;  %v6332_v31 = vsel %vm2357_vm7, %v6300_v35, %v5852_v9  ;;  %v16165_v9 = vmax.f32 %v16164_v56, 0.0 }
 0x6bb   : > { %v6331_v20 = vsel %vm2357_vm7, %v6299_v52, %v5850_v51  ;;  %v16166_v52 = vld [vmem:[#allocation37_spill] sm:$0xff] }
 0x6bd   : > { %v5980_v27 = vpop.permute.xlu1 %5979 }
 0x6be   : > { %v5978_v54 = vpop.permute.xlu0 %5977  ;;  %v6364_v38 = vsel %vm2390_vm8, %v6332_v31, %v5980_v27  ;;  %v16167_v31 = vmax.f32 %v16166_v52, 0.0 }
 0x6bf   : > { %v6363_v19 = vsel %vm2390_vm8, %v6331_v20, %v5978_v54 }
 0x6c1   : > { %v6108_v15 = vpop.permute.xlu1 %6107 }
 0x6c2   : > { %v6396_v25 = vsel %vm2423_vm9, %v6364_v38, %v6108_v15  ;;  %v6106_v13 = vpop.permute.xlu0 %6105  ;;  %v16168_v38 = vld [vmem:[#allocation38_spill] sm:$0xff] }
 0x6c3   : > { %v6395_v60 = vsel %vm2423_vm9, %v6363_v19, %v6106_v13  ;;  %v16169_v15 = vmax.f32 %v16168_v38, 0.0 }
 0x6c4   : > { %10140 = vmatprep.mubr.msk.f32.mxu0 %vm2472_vm10, %v6395_v60 }
 0x6c5   : > { %10141 = vmatmul.mubr.msk.f32.gmra.mrb[62].mxu0 %vm2472_vm10, %v6396_v25 }
 0x6cb   : > { %v10121_v62 = vpop.f32.mrb[48].mxu0 }
 0x6cc   : > { %v6661_v12 = vadd.f32 %v10121_v62, %v14583_v47  ;;  %v6655_v1 = vpop.f32.mrb[49].mxu0 }
 0x6cd   : > { %v6656_v50 = vadd.f32 %v14583_v47, %v6655_v1  ;;  %v15092_v47 = vld [vmem:[%s16113_s8] ss:$0 sm:$0xff] }
 0x6ce   : > { %v6751_v58 = vadd.f32 %v6661_v12, %v16159_v7 }
 0x6cf   : > { %v6750_v44 = vadd.f32 %v6656_v50, %v16160_v39 }
 0x6d0   : > { %v6790_v45 = vmul.f32 %v14598_v17, %v6751_v58 }
 0x6d1   : > { %v6789_v2 = vmul.f32 %v14598_v17, %v6750_v44  ;;  %v16161_v17 = vmax.f32 %v12895_v26, 0.0 }
 0x6d2   : > { %v6829_v21 = vadd.f32 %v14608_v59, %v6790_v45  ;;  %v16170_v45 = vld [vmem:[#allocation39_spill] sm:$0xff] }
 0x6d3   : > { %v6828_v24 = vadd.f32 %v14608_v59, %v6789_v2  ;;  %v16171_v2 = vmax.f32 %v16170_v45, 0.0 }
 0x6d4   : > { %v6861_v8 = vmax.f32 %v6829_v21, 0.0 }
 0x6d5   : > { %v6860_v16 = vmax.f32 %v6828_v24, 0.0  ;;  %v16172_v24 = vld [vmem:[#allocation40_spill] sm:$0xff] }
 0x6d7   : > { %v10341_v4 = vpack.c.bf16 %v6861_v8, %v6860_v16  ;;  %v16173_v8 = vmax.f32 %v16172_v24, 0.0  ;;  %v6876_v24 = vld [vmem:[%s10953_s9] sm:$0xff] }
 0x6d9   : > { %10342 = vmatpush1.bf16.msra.mxu1 %v10341_v4 }
 0x6da   : > { %10343 = vmatprep.subr.bf16.mxu1 %v16144_v14 }
 0x6eb   : > { %v10124_v10 = vpop.f32.mrb[50].mxu0 }
 0x6ec   : > { %v6671_v34 = vadd.f32 %v15092_v47, %v10124_v10  ;;  %v6665_v22 = vpop.f32.mrb[51].mxu0 }
 0x6ed   : > { %v6666_v23 = vadd.f32 %v15092_v47, %v6665_v22 }
 0x6ee   : > { %v6753_v43 = vadd.f32 %v6671_v34, %v16161_v17 }
 0x6ef   : > { %v6752_v42 = vadd.f32 %v6666_v23, %v16162_v29 }
 0x6f0   : > { %v6792_v41 = vmul.f32 %v15101_v48, %v6753_v43 }
 0x6f1   : > { %v6791_v46 = vmul.f32 %v15101_v48, %v6752_v42 }
 0x6f2   : > { %v6831_v18 = vadd.f32 %v14608_v59, %v6792_v41 }
 0x6f3   : > { %v6830_v57 = vadd.f32 %v14608_v59, %v6791_v46 }
 0x6f4   : > { %v6863_v3 = vmax.f32 %v6831_v18, 0.0  ;;  %v16174_v18 = vld [vmem:[#allocation41_spill] sm:$0xff] }
 0x6f5   : > { %v6862_v55 = vmax.f32 %v6830_v57, 0.0  ;;  %v16175_v57 = vmax.f32 %v16174_v18, 0.0  ;;  %v6892_v18 = vld [vmem:[%s10953_s9 + $0x80] sm:$0xff] }
 0x6f7   : > { %v10344_v37 = vpack.c.bf16 %v6863_v3, %v6862_v55  ;;  %v16176_v55 = vld [vmem:[#allocation42_spill] sm:$0xff] }
 0x6f9   : > { %10345 = vmatpush1.bf16.msra.mxu1 %v10344_v37  ;;  %v16177_v37 = vmax.f32 %v16176_v55, 0.0  ;;  %v6897_v55 = vld [vmem:[%s10953_s9 + $0xa8] sm:$0xff] }
 0x6fa   : > { %10346 = vmatprep.subr.bf16.mxu1 %v16144_v14 }
 0x70b   : > { %v10127_v26 = vpop.f32.mrb[52].mxu0 }
 0x70c   : > { %v6681_v32 = vadd.f32 %v15092_v47, %v10127_v26  ;;  %v6675_v30 = vpop.f32.mrb[53].mxu0 }
 0x70d   : > { %v6676_v49 = vadd.f32 %v15092_v47, %v6675_v30 }
 0x70e   : > { %v6755_v33 = vadd.f32 %v6681_v32, %v16163_v6 }
 0x70f   : > { %v6754_v51 = vadd.f32 %v6676_v49, %v16165_v9 }
 0x710   : > { %v6794_v59 = vmul.f32 %v15101_v48, %v6755_v33 }
 0x711   : > { %v6793_v63 = vmul.f32 %v15101_v48, %v6754_v51 }
 0x712   : > { %v6833_v11 = vadd.f32 %v15117_v28, %v6794_v59 }
 0x713   : > { %v6832_v53 = vadd.f32 %v15117_v28, %v6793_v63 }
 0x714   : > { %v6865_v61 = vmax.f32 %v6833_v11, 0.0 }
 0x715   : > { %v6864_v27 = vmax.f32 %v6832_v53, 0.0  ;;  %v16178_v53 = vld [vmem:[#allocation43_spill] sm:$0xff] }
 0x717   : > { %v10347_v5 = vpack.c.bf16 %v6865_v61, %v6864_v27  ;;  %v16179_v61 = vmax.f32 %v16178_v53, 0.0  ;;  %v6911_v53 = vld [vmem:[%s10953_s9 + $0x118] sm:$0xff] }
 0x719   : > { %10348 = vmatpush1.bf16.msra.mxu1 %v10347_v5  ;;  %v16180_v5 = vld [vmem:[#allocation44_spill] sm:$0xff] }
 0x71a   : > { %10349 = vmatprep.subr.bf16.mxu1 %v16144_v14  ;;  %v16181_v0 = vmax.f32 %v16180_v5, 0.0  ;;  %v6912_v5 = vld [vmem:[%s10953_s9 + $0x120] sm:$0xff] }
 0x72a   : > { %v10130_v36 = vpop.f32.mrb[54].mxu0 }
 0x72b   : > { %v6691_v54 = vadd.f32 %v15092_v47, %v10130_v36  ;;  %v6685_v40 = vpop.f32.mrb[55].mxu0 }
 0x72c   : > { %v6686_v35 = vadd.f32 %v15092_v47, %v6685_v40 }
 0x72d   : > { %v6757_v20 = vadd.f32 %v6691_v54, %v16167_v31 }
 0x72e   : > { %v6756_v19 = vadd.f32 %v6686_v35, %v16169_v15 }
 0x72f   : > { %v6796_v25 = vmul.f32 %v15101_v48, %v6757_v20 }
 0x730   : > { %v6795_v13 = vmul.f32 %v15101_v48, %v6756_v19 }
 0x731   : > { %v6835_v60 = vadd.f32 %v15117_v28, %v6796_v25 }
 0x732   : > { %v6834_v62 = vadd.f32 %v15117_v28, %v6795_v13 }
 0x733   : > { %v6867_v12 = vmax.f32 %v6835_v60, 0.0  ;;  %v16182_v60 = vld [vmem:[#allocation45_spill] sm:$0xff] }
 0x734   : > { %v6866_v1 = vmax.f32 %v6834_v62, 0.0  ;;  %v16183_v62 = vmax.f32 %v16182_v60, 0.0  ;;  %v6926_v60 = vld [vmem:[%s10953_s9 + $0x190] sm:$0xff] }
 0x736   : > { %v10350_v50 = vpack.c.bf16 %v6867_v12, %v6866_v1  ;;  %v16184_v1 = vld [vmem:[#allocation46_spill] sm:$0xff] }
 0x738   : > { %10351 = vmatpush1.bf16.msra.mxu1 %v10350_v50  ;;  %v16185_v50 = vmax.f32 %v16184_v1, 0.0  ;;  %v6931_v1 = vld [vmem:[%s10953_s9 + $0x1b8] sm:$0xff] }
 0x739   : > { %10352 = vmatprep.subr.bf16.mxu1 %v16144_v14 }
 0x74a   : > { %v10133_v7 = vpop.f32.mrb[56].mxu0 }
 0x74b   : > { %v6701_v58 = vadd.f32 %v15092_v47, %v10133_v7  ;;  %v6695_v39 = vpop.f32.mrb[57].mxu0 }
 0x74c   : > { %v6696_v44 = vadd.f32 %v15092_v47, %v6695_v39 }
 0x74d   : > { %v6759_v21 = vadd.f32 %v6701_v58, %v16171_v2 }
 0x74e   : > { %v6758_v16 = vadd.f32 %v6696_v44, %v16173_v8  ;;  %v6879_v8 = vld [vmem:[%s10953_s9 + $0x18] sm:$0xff] }
 0x74f   : > { %v6798_v4 = vmul.f32 %v15101_v48, %v6759_v21 }
 0x750   : > { %v6797_v10 = vmul.f32 %v15101_v48, %v6758_v16  ;;  %v6881_v16 = vld [vmem:[%s10953_s9 + $0x28] sm:$0xff] }
 0x751   : > { %v6837_v34 = vadd.f32 %v15117_v28, %v6798_v4  ;;  %v6883_v4 = vld [vmem:[%s10953_s9 + $0x38] sm:$0xff] }
 0x752   : > { %v6836_v22 = vadd.f32 %v15117_v28, %v6797_v10  ;;  %v6882_v10 = vld [vmem:[%s10953_s9 + $0x30] sm:$0xff] }
 0x753   : > { %v6869_v23 = vmax.f32 %v6837_v34, 0.0  ;;  %v6885_v34 = vld [vmem:[%s10953_s9 + $0x48] sm:$0xff] }
 0x754   : > { %v6868_v17 = vmax.f32 %v6836_v22, 0.0  ;;  %v6884_v22 = vld [vmem:[%s10953_s9 + $0x40] sm:$0xff] }
 0x756   : > { %v10353_v43 = vpack.c.bf16 %v6869_v23, %v6868_v17  ;;  %v6887_v23 = vld [vmem:[%s10953_s9 + $0x58] sm:$0xff]  ;;  %v6886_v17 = vld [vmem:[%s10953_s9 + $0x50] sm:$0xff] }
 0x758   : > { %10354 = vmatpush1.bf16.msra.mxu1 %v10353_v43  ;;  %v6889_v43 = vld [vmem:[%s10953_s9 + $0x68] sm:$0xff] }
 0x759   : > { %10355 = vmatprep.subr.bf16.mxu1 %v16144_v14 }
 0x76a   : > { %v10136_v29 = vpop.f32.mrb[58].mxu0 }
 0x76b   : > { %v6711_v42 = vadd.f32 %v15092_v47, %v10136_v29  ;;  %v6705_v41 = vpop.f32.mrb[59].mxu0  ;;  %v6888_v29 = vld [vmem:[%s10953_s9 + $0x60] sm:$0xff] }
 0x76c   : > { %v6706_v46 = vadd.f32 %v15092_v47, %v6705_v41  ;;  %v6890_v41 = vld [vmem:[%s10953_s9 + $0x70] sm:$0xff] }
 0x76d   : > { %v6761_v3 = vadd.f32 %v6711_v42, %v16175_v57  ;;  %v6891_v42 = vld [vmem:[%s10953_s9 + $0x78] sm:$0xff] }
 0x76e   : > { %v6760_v26 = vadd.f32 %v6706_v46, %v16177_v37  ;;  %v6893_v46 = vld [vmem:[%s10953_s9 + $0x88] sm:$0xff]  ;;  %v6895_v57 = vld [vmem:[%s10953_s9 + $0x98] sm:$0xff]  ;;  %v6896_v37 = vld [vmem:[%s10953_s9 + $0xa0] sm:$0xff] }
 0x76f   : > { %v6800_v32 = vmul.f32 %v15101_v48, %v6761_v3  ;;  %v6894_v3 = vld [vmem:[%s10953_s9 + $0x90] sm:$0xff] }
 0x770   : > { %v6799_v30 = vmul.f32 %v15101_v48, %v6760_v26  ;;  %v6899_v26 = vld [vmem:[%s10953_s9 + $0xb8] sm:$0xff] }
 0x771   : > { %v6839_v49 = vadd.f32 %v15117_v28, %v6800_v32  ;;  %v6898_v32 = vld [vmem:[%s10953_s9 + $0xb0] sm:$0xff] }
 0x772   : > { %v6838_v6 = vadd.f32 %v15117_v28, %v6799_v30  ;;  %v6901_v30 = vld [vmem:[%s10953_s9 + $0xc8] sm:$0xff] }
 0x773   : > { %v6871_v33 = vmax.f32 %v6839_v49, 0.0  ;;  %v6900_v49 = vld [vmem:[%s10953_s9 + $0xc0] sm:$0xff] }
 0x774   : > { %v6870_v56 = vmax.f32 %v6838_v6, 0.0  ;;  %v6903_v6 = vld [vmem:[%s10953_s9 + $0xd8] sm:$0xff] }
 0x776   : > { %v10356_v9 = vpack.c.bf16 %v6871_v33, %v6870_v56  ;;  %v6902_v33 = vld [vmem:[%s10953_s9 + $0xd0] sm:$0xff]  ;;  %v6905_v56 = vld [vmem:[%s10953_s9 + $0xe8] sm:$0xff] }
 0x778   : > { %10357 = vmatpush1.bf16.msra.mxu1 %v10356_v9  ;;  %v6904_v9 = vld [vmem:[%s10953_s9 + $0xe0] sm:$0xff] }
 0x779   : > { %10358 = vmatprep.subr.bf16.mxu1 %v16144_v14 }
 0x78b   : > { %v10139_v51 = vpop.f32.mrb[60].mxu0 }
 0x78c   : > { %v6721_v59 = vadd.f32 %v15092_v47, %v10139_v51  ;;  %v6715_v63 = vpop.f32.mrb[61].mxu0  ;;  %v6907_v51 = vld [vmem:[%s10953_s9 + $0xf8] sm:$0xff] }
 0x78d   : > { %v6716_v11 = vadd.f32 %v15092_v47, %v6715_v63  ;;  %v6909_v63 = vld [vmem:[%s10953_s9 + $0x108] sm:$0xff] }
 0x78e   : > { %v6763_v27 = vadd.f32 %v6721_v59, %v16179_v61  ;;  %v6906_v59 = vld [vmem:[%s10953_s9 + $0xf0] sm:$0xff] }
 0x78f   : > { %v6762_v36 = vadd.f32 %v6716_v11, %v16181_v0  ;;  %v6908_v11 = vld [vmem:[%s10953_s9 + $0x100] sm:$0xff]  ;;  %v6910_v61 = vld [vmem:[%s10953_s9 + $0x110] sm:$0xff]  ;;  %v6915_v0 = vld [vmem:[%s10953_s9 + $0x138] sm:$0xff] }
 0x790   : > { %v6802_v54 = vmul.f32 %v15101_v48, %v6763_v27  ;;  %v6913_v27 = vld [vmem:[%s10953_s9 + $0x128] sm:$0xff] }
 0x791   : > { %v6801_v40 = vmul.f32 %v15101_v48, %v6762_v36  ;;  %v6914_v36 = vld [vmem:[%s10953_s9 + $0x130] sm:$0xff] }
 0x792   : > { %v6841_v35 = vadd.f32 %v15117_v28, %v6802_v54  ;;  %v6917_v54 = vld [vmem:[%s10953_s9 + $0x148] sm:$0xff] }
 0x793   : > { %v6840_v52 = vadd.f32 %v15117_v28, %v6801_v40  ;;  %v6916_v40 = vld [vmem:[%s10953_s9 + $0x140] sm:$0xff] }
 0x794   : > { %v6873_v31 = vmax.f32 %v6841_v35, 0.0  ;;  %v6919_v35 = vld [vmem:[%s10953_s9 + $0x158] sm:$0xff] }
 0x795   : > { %v6872_v20 = vmax.f32 %v6840_v52, 0.0  ;;  %v6918_v52 = vld [vmem:[%s10953_s9 + $0x150] sm:$0xff] }
 0x797   : > { %v10359_v38 = vpack.c.bf16 %v6873_v31, %v6872_v20  ;;  %v6921_v31 = vld [vmem:[%s10953_s9 + $0x168] sm:$0xff]  ;;  %v6920_v20 = vld [vmem:[%s10953_s9 + $0x160] sm:$0xff] }
 0x798   : > { %v10142_v15 = vpop.f32.mrb[62].mxu0 }
 0x799   : > { %v6731_v19 = vadd.f32 %v15092_v47, %v10142_v15  ;;  %v6725_v25 = vpop.f32.mrb[63].mxu0  ;;  %10360 = vmatpush1.bf16.msra.mxu1 %v10359_v38  ;;  %v6923_v38 = vld [vmem:[%s10953_s9 + $0x178] sm:$0xff]  ;;  %v6922_v15 = vld [vmem:[%s10953_s9 + $0x170] sm:$0xff] }
 0x79a   : > { %v6726_v13 = vadd.f32 %v15092_v47, %v6725_v25  ;;  %10361 = vmatprep.subr.bf16.mxu1 %v16144_v14  ;;  %v6924_v25 = vld [vmem:[%s10953_s9 + $0x180] sm:$0xff] }
 0x79b   : > { %v6765_v12 = vadd.f32 %v6731_v19, %v16183_v62  ;;  %v6925_v19 = vld [vmem:[%s10953_s9 + $0x188] sm:$0xff] }
 0x79c   : > { %v6764_v7 = vadd.f32 %v6726_v13, %v16185_v50  ;;  %v6927_v13 = vld [vmem:[%s10953_s9 + $0x198] sm:$0xff]  ;;  %v6929_v62 = vld [vmem:[%s10953_s9 + $0x1a8] sm:$0xff]  ;;  %v6930_v50 = vld [vmem:[%s10953_s9 + $0x1b0] sm:$0xff] }
 0x79d   : > { %v6804_v58 = vmul.f32 %v15101_v48, %v6765_v12  ;;  %v6928_v12 = vld [vmem:[%s10953_s9 + $0x1a0] sm:$0xff] }
 0x79e   : > { %v6803_v39 = vmul.f32 %v15101_v48, %v6764_v7  ;;  %v6878_v48 = vld [vmem:[%s10953_s9 + $0x10] sm:$0xff]  ;;  %v6933_v7 = vld [vmem:[%s10953_s9 + $0x1c8] sm:$0xff] }
 0x79f   : > { %v6843_v44 = vadd.f32 %v15117_v28, %v6804_v58  ;;  %v6932_v58 = vld [vmem:[%s10953_s9 + $0x1c0] sm:$0xff] }
 0x7a0   : > { %v6842_v47 = vadd.f32 %v15117_v28, %v6803_v39  ;;  %v6880_v28 = vld [vmem:[%s10953_s9 + $0x20] sm:$0xff]  ;;  %v6935_v39 = vld [vmem:[%s10953_s9 + $0x1d8] sm:$0xff] }
 0x7a1   : > { %v6875_v45 = vmax.f32 %v6843_v44, 0.0  ;;  %v6934_v44 = vld [vmem:[%s10953_s9 + $0x1d0] sm:$0xff] }
 0x7a2   : > { %v6874_v2 = vmax.f32 %v6842_v47, 0.0  ;;  %v6937_v47 = vld [vmem:[%s10953_s9 + $0x1e8] sm:$0xff] }
 0x7a4   : > { %v10362_v21 = vpack.c.bf16 %v6875_v45, %v6874_v2  ;;  %v7209_v45 = vld [vmem:[#allocation5 + $0x1] sm:$0xff]  ;;  %v6936_v2 = vld [vmem:[%s10953_s9 + $0x1e0] sm:$0xff] }
 0x7a5   : > { %7281 = vrot.lane.b32.xlu0 %v7209_v45, %s16124_s5 }
 0x7a6   : > { %10363 = vmatpush1.bf16.msra.mxu1 %v10362_v21  ;;  %v6939_v21 = vld [vmem:[%s10953_s9 + $0x1f8] sm:$0xff] }
 0x7a7   : > { %10423 = vmatprep.subr.bf16.mxu1 %v16144_v14 }
 0x7a9   : > { %7005 = vmatmul.mubr.f32.vlgmr.msra.gmra.mrb[32].mxu1 %v6876_v24  ;;  %v7217_v24 = vld [vmem:[#allocation6 + $0x1] sm:$0xff] }
 0x7aa   : > { %7009 = vmatprep.mubr.f32.mxu1 %v6879_v8  ;;  %v6938_v8 = vld [vmem:[%s10953_s9 + $0x1f0] sm:$0xff]  ;;  %7313 = vrot.lane.b32.xlu0 %v7217_v24, %s16123_s16 }
 0x7ad   : > { %7010 = vmatmul.mubr.f32.gmra.mrb[34].mxu1 %v6878_v48 }
 0x7ae   : > { %7014 = vmatprep.mubr.f32.mxu1 %v6881_v16 }
 0x7b1   : > { %7015 = vmatmul.mubr.f32.gmra.mrb[36].mxu1 %v6880_v28 }
 0x7b2   : > { %7019 = vmatprep.mubr.f32.mxu1 %v6883_v4 }
 0x7b5   : > { %7020 = vmatmul.mubr.f32.gmra.mrb[38].mxu1 %v6882_v10 }
 0x7b6   : > { %7024 = vmatprep.mubr.f32.mxu1 %v6885_v34 }
 0x7b9   : > { %7025 = vmatmul.mubr.f32.gmra.mrb[40].mxu1 %v6884_v22 }
 0x7ba   : > { %7029 = vmatprep.mubr.f32.mxu1 %v6887_v23 }
 0x7bd   : > { %7030 = vmatmul.mubr.f32.gmra.mrb[42].mxu1 %v6886_v17 }
 0x7be   : > { %7034 = vmatprep.mubr.f32.mxu1 %v6889_v43 }
 0x7c1   : > { %7035 = vmatmul.mubr.f32.gmra.mrb[44].mxu1 %v6888_v29 }
 0x7c2   : > { %7039 = vmatprep.mubr.f32.mxu1 %v6891_v42 }
 0x7c5   : > { %7040 = vmatmul.mubr.f32.gmra.mrb[46].mxu1 %v6890_v41 }
 0x7c6   : > { %7044 = vmatprep.mubr.f32.mxu1 %v6893_v46 }
 0x7c9   : > { %7045 = vmatmul.mubr.f32.gmra.mrb[48].mxu1 %v6892_v18 }
 0x7ca   : > { %7049 = vmatprep.mubr.f32.mxu1 %v6895_v57 }
 0x7cd   : > { %7050 = vmatmul.mubr.f32.gmra.mrb[50].mxu1 %v6894_v3 }
 0x7ce   : > { %7054 = vmatprep.mubr.f32.mxu1 %v6897_v55 }
 0x7d1   : > { %7055 = vmatmul.mubr.f32.gmra.mrb[52].mxu1 %v6896_v37 }
 0x7d2   : > { %7059 = vmatprep.mubr.f32.mxu1 %v6899_v26 }
 0x7d5   : > { %7060 = vmatmul.mubr.f32.gmra.mrb[54].mxu1 %v6898_v32 }
 0x7d6   : > { %7064 = vmatprep.mubr.f32.mxu1 %v6901_v30 }
 0x7d9   : > { %7065 = vmatmul.mubr.f32.gmra.mrb[56].mxu1 %v6900_v49 }
 0x7da   : > { %7069 = vmatprep.mubr.f32.mxu1 %v6903_v6 }
 0x7dd   : > { %7070 = vmatmul.mubr.f32.gmra.mrb[58].mxu1 %v6902_v33 }
 0x7de   : > { %7074 = vmatprep.mubr.f32.mxu1 %v6905_v56 }
 0x7e1   : > { %7075 = vmatmul.mubr.f32.gmra.mrb[60].mxu1 %v6904_v9 }
 0x7e2   : > { %7079 = vmatprep.mubr.f32.mxu1 %v6907_v51 }
 0x7e5   : > { %7080 = vmatmul.mubr.f32.gmra.mrb[62].mxu1 %v6906_v59 }
 0x7e6   : > { %7084 = vmatprep.mubr.f32.mxu1 %v6909_v63 }
 0x7e9   : > { %7085 = vmatmul.mubr.f32.gmra.mrb[64].mxu1 %v6908_v11 }
 0x7ea   : > { %7089 = vmatprep.mubr.f32.mxu1 %v6911_v53 }
 0x7ed   : > { %7090 = vmatmul.mubr.f32.gmra.mrb[66].mxu1 %v6910_v61 }
 0x7ee   : > { %7094 = vmatprep.mubr.f32.mxu1 %v6913_v27 }
 0x7f1   : > { %7095 = vmatmul.mubr.f32.gmra.mrb[68].mxu1 %v6912_v5 }
 0x7f2   : > { %7099 = vmatprep.mubr.f32.mxu1 %v6915_v0 }
 0x7f5   : > { %7100 = vmatmul.mubr.f32.gmra.mrb[70].mxu1 %v6914_v36 }
 0x7f6   : > { %7104 = vmatprep.mubr.f32.mxu1 %v6917_v54 }
 0x7f9   : > { %7105 = vmatmul.mubr.f32.gmra.mrb[72].mxu1 %v6916_v40 }
 0x7fa   : > { %7109 = vmatprep.mubr.f32.mxu1 %v6919_v35 }
 0x7fd   : > { %7110 = vmatmul.mubr.f32.gmra.mrb[74].mxu1 %v6918_v52 }
 0x7fe   : > { %7114 = vmatprep.mubr.f32.mxu1 %v6921_v31 }
 0x801   : > { %7115 = vmatmul.mubr.f32.gmra.mrb[76].mxu1 %v6920_v20 }
 0x802   : > { %7119 = vmatprep.mubr.f32.mxu1 %v6923_v38 }
 0x805   : > { %7120 = vmatmul.mubr.f32.gmra.mrb[78].mxu1 %v6922_v15 }
 0x806   : > { %7124 = vmatprep.mubr.f32.mxu1 %v6925_v19 }
 0x809   : > { %7125 = vmatmul.mubr.f32.gmra.mrb[80].mxu1 %v6924_v25 }
 0x80a   : > { %7129 = vmatprep.mubr.f32.mxu1 %v6927_v13 }
 0x80d   : > { %7130 = vmatmul.mubr.f32.gmra.mrb[82].mxu1 %v6926_v60 }
 0x80e   : > { %7134 = vmatprep.mubr.f32.mxu1 %v6929_v62 }
 0x811   : > { %7135 = vmatmul.mubr.f32.gmra.mrb[84].mxu1 %v6928_v12 }
 0x812   : > { %7139 = vmatprep.mubr.f32.mxu1 %v6931_v1 }
 0x815   : > { %7140 = vmatmul.mubr.f32.gmra.mrb[86].mxu1 %v6930_v50 }
 0x816   : > { %7144 = vmatprep.mubr.f32.mxu1 %v6933_v7 }
 0x819   : > { %7145 = vmatmul.mubr.f32.gmra.mrb[88].mxu1 %v6932_v58  ;;  %v7593_v58 = vld [vmem:[%s11003_s24] sm:$0xff] }
 0x81a   : > { %7149 = vmatprep.mubr.f32.mxu1 %v6935_v39  ;;  %v7594_v39 = vld [vmem:[%s11003_s24 + $0x8] sm:$0xff] }
 0x81d   : > { %7150 = vmatmul.mubr.f32.gmra.mrb[90].mxu1 %v6934_v44 }
 0x81e   : > { %7154 = vmatprep.mubr.f32.mxu1 %v6937_v47  ;;  %v10364_v47 = vpack.c.bf16 %v7594_v39, %v7593_v58 }
 0x820   : > { %10365 = vmatprep.subr.bf16.mxu0 %v10364_v47 }
 0x821   : > { %7155 = vmatmul.mubr.f32.gmra.mrb[92].mxu1 %v6936_v2  ;;  %10367 = vmatpush3.bf16.msra.mxu0 %v10364_v47  ;;  %v7595_v2 = vld [vmem:[%s11003_s24 + $0x10] sm:$0xff] }
 0x822   : > { %7159 = vmatprep.mubr.f32.mxu1 %v6939_v21  ;;  %v7596_v21 = vld [vmem:[%s11003_s24 + $0x18] sm:$0xff] }
 0x825   : > { %7160 = vmatmul.mubr.f32.gmra.mrb[94].mxu1 %v6938_v8 }
 0x87c   : > { %v7006_v48 = vpop.f32.mrb[32].mxu1 }
 0x87d   : > { %7166 = vst.msk [vmem:[#allocation3 + $0x11] sm:$0xff] %vm900_vm2, %v7006_v48  ;;  %v7008_v16 = vpop.f32.mrb[33].mxu1 }
 0x87e   : > { %v10368_v16 = vpack.c.bf16 %v7596_v21, %v7595_v2 }
 0x880   : > { %v7011_v28 = vpop.f32.mrb[34].mxu1  ;;  %10369 = vmatprep.subr.bf16.mxu0 %v10368_v16 }
 0x881   : > { %7167 = vst.msk [vmem:[#allocation3 + $0x21] sm:$0xff] %vm900_vm2, %v7011_v28  ;;  %v7013_v4 = vpop.f32.mrb[35].mxu1  ;;  %10371 = vmatpush3.bf16.msra.mxu0 %v10368_v16 }
 0x882   : > { %v7597_v4 = vld [vmem:[%s11003_s24 + $0x20] sm:$0xff] }
 0x884   : > { %v7016_v10 = vpop.f32.mrb[36].mxu1  ;;  %v7233_v33 = vld [vmem:[#allocation3 + $0x11] sm:$0xff] }
 0x885   : > { %7168 = vst.msk [vmem:[#allocation3 + $0x31] sm:$0xff] %vm900_vm2, %v7016_v10  ;;  %v7018_v34 = vpop.f32.mrb[37].mxu1  ;;  %v7598_v10 = vld [vmem:[%s11003_s24 + $0x28] sm:$0xff] }
 0x888   : > { %v7021_v22 = vpop.f32.mrb[38].mxu1 }
 0x889   : > { %7169 = vst.msk [vmem:[#allocation3 + $0x41] sm:$0xff] %vm900_vm2, %v7021_v22  ;;  %v7023_v23 = vpop.f32.mrb[39].mxu1 }
 0x88a   : > { %v10372_v23 = vpack.c.bf16 %v7598_v10, %v7597_v4 }
 0x88c   : > { %v7026_v17 = vpop.f32.mrb[40].mxu1  ;;  %10373 = vmatprep.subr.bf16.mxu0 %v10372_v23 }
 0x88d   : > { %7170 = vst.msk [vmem:[#allocation3 + $0x51] sm:$0xff] %vm900_vm2, %v7026_v17  ;;  %v7028_v43 = vpop.f32.mrb[41].mxu1  ;;  %10375 = vmatpush3.bf16.msra.mxu0 %v10372_v23 }
 0x88e   : > { %v7599_v43 = vld [vmem:[%s11003_s24 + $0x30] sm:$0xff] }
 0x890   : > { %v7031_v29 = vpop.f32.mrb[42].mxu1 }
 0x891   : > { %7171 = vst.msk [vmem:[#allocation3 + $0x61] sm:$0xff] %vm900_vm2, %v7031_v29  ;;  %v7033_v42 = vpop.f32.mrb[43].mxu1  ;;  %v7600_v29 = vld [vmem:[%s11003_s24 + $0x38] sm:$0xff] }
 0x894   : > { %v7036_v41 = vpop.f32.mrb[44].mxu1 }
 0x895   : > { %7172 = vst.msk [vmem:[#allocation3 + $0x71] sm:$0xff] %vm900_vm2, %v7036_v41  ;;  %v7038_v46 = vpop.f32.mrb[45].mxu1  ;;  %v7234_v41 = vld [vmem:[#allocation3 + $0x21] sm:$0xff] }
 0x898   : > { %v7041_v18 = vpop.f32.mrb[46].mxu1 }
 0x899   : > { %7173 = vst.msk [vmem:[#allocation3 + $0x81] sm:$0xff] %vm900_vm2, %v7041_v18  ;;  %v7043_v57 = vpop.f32.mrb[47].mxu1  ;;  %v10376_v18 = vpack.c.bf16 %v7600_v29, %v7599_v43 }
 0x89b   : > { %10377 = vmatprep.subr.bf16.mxu0 %v10376_v18 }
 0x89c   : > { %v7046_v3 = vpop.f32.mrb[48].mxu1  ;;  %10379 = vmatpush3.bf16.msra.mxu0 %v10376_v18 }
 0x89d   : > { %7175 = vst.msk [vmem:[#allocation4 + $0x11] sm:$0xff] %vm900_vm2, %v7046_v3  ;;  %v7048_v55 = vpop.f32.mrb[49].mxu1 }
 0x8a0   : > { %v7051_v37 = vpop.f32.mrb[50].mxu1  ;;  %v7240_v21 = vld [vmem:[#allocation3 + $0x81] sm:$0xff] }
 0x8a1   : > { %7176 = vst.msk [vmem:[#allocation4 + $0x21] sm:$0xff] %vm900_vm2, %v7051_v37  ;;  %v7053_v26 = vpop.f32.mrb[51].mxu1 }
 0x8a2   : > { %v7601_v26 = vld [vmem:[%s11003_s24 + $0x40] sm:$0xff] }
 0x8a3   : > { %10159 = vmatprep.subr.mxu0 %v7601_v26 }
 0x8a4   : > { %v7056_v32 = vpop.f32.mrb[52].mxu1  ;;  %v7225_v30 = vld [vmem:[#allocation4 + $0x10] sm:$0xff]  ;;  %10160 = vmatpush3.msra.mxu0 %v7601_v26 }
 0x8a5   : > { %7177 = vst.msk [vmem:[#allocation4 + $0x31] sm:$0xff] %vm900_vm2, %v7056_v32  ;;  %7345 = vrot.lane.b32.xlu0 %v7225_v30, %s16125_s26  ;;  %v7058_v49 = vpop.f32.mrb[53].mxu1  ;;  %v7241_v51 = vld [vmem:[#allocation4 + $0x11] sm:$0xff]  ;;  %10380 = vmatprep.subr.bf16.mxu0 %v16144_v14 }
 0x8a8   : > { %v7061_v6 = vpop.f32.mrb[54].mxu1  ;;  %v7226_v34 = vld [vmem:[#allocation4 + $0x20] sm:$0xff] }
 0x8a9   : > { %7178 = vst.msk [vmem:[#allocation4 + $0x41] sm:$0xff] %vm900_vm2, %v7061_v6  ;;  %7377 = vrot.lane.b32.xlu0 %v7233_v33, %s16126_s11  ;;  %v7063_v56 = vpop.f32.mrb[55].mxu1  ;;  %v7242_v55 = vld [vmem:[#allocation4 + $0x21] sm:$0xff] }
 0x8ac   : > { %v7066_v9 = vpop.f32.mrb[56].mxu1  ;;  %v7227_v56 = vld [vmem:[#allocation4 + $0x30] sm:$0xff] }
 0x8ad   : > { %7179 = vst.msk [vmem:[#allocation4 + $0x51] sm:$0xff] %vm900_vm2, %v7066_v9  ;;  %7409 = vrot.lane.b32.xlu0 %v7241_v51, %s16127_s17  ;;  %v7068_v59 = vpop.f32.mrb[57].mxu1 }
 0x8ae   : > { %v7235_v59 = vld [vmem:[#allocation3 + $0x31] sm:$0xff] }
 0x8b0   : > { %v7071_v63 = vpop.f32.mrb[58].mxu1 }
 0x8b1   : > { %7180 = vst.msk [vmem:[#allocation4 + $0x61] sm:$0xff] %vm900_vm2, %v7071_v63  ;;  %v7073_v11 = vpop.f32.mrb[59].mxu1  ;;  %v7243_v63 = vld [vmem:[#allocation4 + $0x31] sm:$0xff] }
 0x8b4   : > { %v7076_v53 = vpop.f32.mrb[60].mxu1 }
 0x8b5   : > { %7181 = vst.msk [vmem:[#allocation4 + $0x71] sm:$0xff] %vm900_vm2, %v7076_v53  ;;  %v7078_v61 = vpop.f32.mrb[61].mxu1 }
 0x8b6   : > { %v7228_v61 = vld [vmem:[#allocation4 + $0x40] sm:$0xff] }
 0x8b8   : > { %v7081_v27 = vpop.f32.mrb[62].mxu1 }
 0x8b9   : > { %7182 = vst.msk [vmem:[#allocation4 + $0x81] sm:$0xff] %vm900_vm2, %v7081_v27  ;;  %v7083_v5 = vpop.f32.mrb[63].mxu1  ;;  %v7236_v27 = vld [vmem:[#allocation3 + $0x41] sm:$0xff] }
 0x8bc   : > { %v7086_v0 = vpop.f32.mrb[64].mxu1  ;;  %v7247_v58 = vld [vmem:[#allocation4 + $0x71] sm:$0xff] }
 0x8bd   : > { %7184 = vst.msk [vmem:[#allocation5 + $0x11] sm:$0xff] %vm900_vm2, %v7086_v0  ;;  %v7088_v36 = vpop.f32.mrb[65].mxu1  ;;  %v7244_v0 = vld [vmem:[#allocation4 + $0x41] sm:$0xff] }
 0x8c0   : > { %v7091_v54 = vpop.f32.mrb[66].mxu1  ;;  %v7232_v2 = vld [vmem:[#allocation4 + $0x80] sm:$0xff] }
 0x8c1   : > { %7185 = vst.msk [vmem:[#allocation5 + $0x21] sm:$0xff] %vm900_vm2, %v7091_v54  ;;  %v7093_v40 = vpop.f32.mrb[67].mxu1 }
 0x8c2   : > { %v7229_v40 = vld [vmem:[#allocation4 + $0x50] sm:$0xff] }
 0x8c4   : > { %v7096_v35 = vpop.f32.mrb[68].mxu1  ;;  %v7210_v52 = vld [vmem:[#allocation5 + $0x11] sm:$0xff] }
 0x8c5   : > { %7186 = vst.msk [vmem:[#allocation5 + $0x31] sm:$0xff] %vm900_vm2, %v7096_v35  ;;  %7283 = vrot.lane.b32.xlu1 %v7210_v52, %s16124_s5  ;;  %v7098_v31 = vpop.f32.mrb[69].mxu1  ;;  %v7237_v35 = vld [vmem:[#allocation3 + $0x51] sm:$0xff] }
 0x8c6   : > { %v7245_v31 = vld [vmem:[#allocation4 + $0x51] sm:$0xff] }
 0x8c8   : > { %v7101_v20 = vpop.f32.mrb[70].mxu1  ;;  %v7258_v42 = vld [vmem:[#allocation5 + $0x21] sm:$0xff] }
 0x8c9   : > { %7187 = vst.msk [vmem:[#allocation5 + $0x41] sm:$0xff] %vm900_vm2, %v7101_v20  ;;  %v7103_v38 = vpop.f32.mrb[71].mxu1 }
 0x8cc   : > { %v7106_v15 = vpop.f32.mrb[72].mxu1  ;;  %v7212_v3 = vld [vmem:[#allocation5 + $0x31] sm:$0xff] }
 0x8cd   : > { %7188 = vst.msk [vmem:[#allocation5 + $0x51] sm:$0xff] %vm900_vm2, %v7106_v15  ;;  %v7108_v19 = vpop.f32.mrb[73].mxu1  ;;  %v7230_v15 = vld [vmem:[#allocation4 + $0x60] sm:$0xff] }
 0x8ce   : > { %v7238_v19 = vld [vmem:[#allocation3 + $0x61] sm:$0xff] }
 0x8d0   : > { %v7111_v25 = vpop.f32.mrb[74].mxu1  ;;  %v7260_v54 = vld [vmem:[#allocation5 + $0x41] sm:$0xff] }
 0x8d1   : > { %7189 = vst.msk [vmem:[#allocation5 + $0x61] sm:$0xff] %vm900_vm2, %v7111_v25  ;;  %v7113_v13 = vpop.f32.mrb[75].mxu1 }
 0x8d2   : > { %v7246_v13 = vld [vmem:[#allocation4 + $0x61] sm:$0xff] }
 0x8d4   : > { %v7116_v60 = vpop.f32.mrb[76].mxu1 }
 0x8d5   : > { %7190 = vst.msk [vmem:[#allocation5 + $0x71] sm:$0xff] %vm900_vm2, %v7116_v60  ;;  %v7118_v62 = vpop.f32.mrb[77].mxu1 }
 0x8d8   : > { %v7121_v12 = vpop.f32.mrb[78].mxu1  ;;  %v7262_v62 = vld [vmem:[#allocation5 + $0x61] sm:$0xff] }
 0x8d9   : > { %7191 = vst.msk [vmem:[#allocation5 + $0x81] sm:$0xff] %vm900_vm2, %v7121_v12  ;;  %v7123_v1 = vpop.f32.mrb[79].mxu1  ;;  %v7231_v12 = vld [vmem:[#allocation4 + $0x70] sm:$0xff] }
 0x8da   : > { %v7282_v1 = vpop.permute.xlu0 %7281 }
 0x8dc   : > { %v7126_v50 = vpop.f32.mrb[80].mxu1 }
 0x8dd   : > { %7193 = vst.msk [vmem:[#allocation6 + $0x11] sm:$0xff] %vm900_vm2, %v7126_v50  ;;  %v7128_v7 = vpop.f32.mrb[81].mxu1  ;;  %v7239_v50 = vld [vmem:[#allocation3 + $0x71] sm:$0xff] }
 0x8de   : > { %v7216_v7 = vld [vmem:[#allocation5 + $0x71] sm:$0xff]  ;;  %v7314_v39 = vpop.permute.xlu0 %7313 }
 0x8e0   : > { %v7131_v44 = vpop.f32.mrb[82].mxu1 }
 0x8e1   : > { %7194 = vst.msk [vmem:[#allocation6 + $0x21] sm:$0xff] %vm900_vm2, %v7131_v44  ;;  %v7133_v45 = vpop.f32.mrb[83].mxu1 }
 0x8e4   : > { %v15277_v24 = vld [vmem:[#allocation6 + $0x10] sm:$0xff]  ;;  %v7136_v48 = vpop.f32.mrb[84].mxu1 }
 0x8e5   : > { %v7218_v8 = vld [vmem:[#allocation6 + $0x11] sm:$0xff]  ;;  %7441 = vrot.lane.b32.xlu0 %v15277_v24, %s16128_s2  ;;  %7195 = vst.msk [vmem:[#allocation6 + $0x31] sm:$0xff] %vm900_vm2, %v7136_v48  ;;  %v7138_v28 = vpop.f32.mrb[85].mxu1  ;;  %v7248_v48 = vld [vmem:[#allocation4 + $0x81] sm:$0xff] }
 0x8e6   : > { %7315 = vrot.lane.b32.xlu1 %v7218_v8, %s16123_s16 }
 0x8e8   : > { %v7141_v22 = vpop.f32.mrb[86].mxu1  ;;  %v7266_v30 = vld [vmem:[#allocation6 + $0x21] sm:$0xff] }
 0x8e9   : > { %7473 = vrot.lane.b32.xlu0 %v7210_v52, %s16129_s23  ;;  %7196 = vst.msk [vmem:[#allocation6 + $0x41] sm:$0xff] %vm900_vm2, %v7141_v22  ;;  %v7143_v17 = vpop.f32.mrb[87].mxu1  ;;  %v15297_v49 = vld [vmem:[#allocation6 + $0x20] sm:$0xff]  ;;  %v7264_v22 = vld [vmem:[#allocation5 + $0x81] sm:$0xff] }
 0x8ea   : > { %7347 = vrot.lane.b32.xlu1 %v7226_v34, %s16125_s26  ;;  %v7214_v52 = vld [vmem:[#allocation5 + $0x51] sm:$0xff] }
 0x8ec   : > { %v7146_v46 = vpop.f32.mrb[88].mxu1  ;;  %v15311_v11 = vld [vmem:[#allocation6 + $0x30] sm:$0xff] }
 0x8ed   : > { %7475 = vrot.lane.b32.xlu0 %v7258_v42, %s16129_s23  ;;  %7197 = vst.msk [vmem:[#allocation6 + $0x51] sm:$0xff] %vm900_vm2, %v7146_v46  ;;  %v7148_v57 = vpop.f32.mrb[89].mxu1  ;;  %v7220_v53 = vld [vmem:[#allocation6 + $0x31] sm:$0xff] }
 0x8ee   : > { %7379 = vrot.lane.b32.xlu1 %v7234_v41, %s16126_s11  ;;  %v7201_v41 = vld [vmem:[#allocation6] sm:$0xff] }
 0x8ef   : > { %v7529_v57 = vsel %vm900_vm2, %v7201_v41, %v7282_v1 }
 0x8f0   : > { %v7151_v37 = vpop.f32.mrb[90].mxu1  ;;  %v7268_v5 = vld [vmem:[#allocation6 + $0x41] sm:$0xff] }
 0x8f1   : > { %7287 = vrot.lane.b32.xlu0 %v7212_v3, %s16124_s5  ;;  %7198 = vst.msk [vmem:[#allocation6 + $0x61] sm:$0xff] %vm900_vm2, %v7151_v37  ;;  %v7153_v32 = vpop.f32.mrb[91].mxu1  ;;  %v15322_v36 = vld [vmem:[#allocation6 + $0x40] sm:$0xff] }
 0x8f2   : > { %7411 = vrot.lane.b32.xlu1 %v7242_v55, %s16127_s17  ;;  %v7537_v32 = vsel %vm1038_vm3, %v7529_v57, %v7314_v39 }
 0x8f4   : > { %v7156_v6 = vpop.f32.mrb[92].mxu1  ;;  %v15333_v20 = vld [vmem:[#allocation6 + $0x50] sm:$0xff] }
 0x8f5   : > { %7507 = vrot.lane.b32.xlu0 %v7266_v30, %s16130_s18  ;;  %7199 = vst.msk [vmem:[#allocation6 + $0x71] sm:$0xff] %vm900_vm2, %v7156_v6  ;;  %v7158_v33 = vpop.f32.mrb[93].mxu1  ;;  %v7222_v38 = vld [vmem:[#allocation6 + $0x51] sm:$0xff] }
 0x8f6   : > { %7443 = vrot.lane.b32.xlu1 %v15297_v49, %s16128_s2 }
 0x8f8   : > { %v7161_v9 = vpop.f32.mrb[94].mxu1  ;;  %v7270_v25 = vld [vmem:[#allocation6 + $0x61] sm:$0xff] }
 0x8f9   : > { %7349 = vrot.lane.b32.xlu0 %v7227_v56, %s16125_s26  ;;  %7200 = vst.msk [vmem:[#allocation6 + $0x81] sm:$0xff] %vm900_vm2, %v7161_v9  ;;  %v7163_v51 = vpop.f32.mrb[95].mxu1  ;;  %v15344_v60 = vld [vmem:[#allocation6 + $0x60] sm:$0xff] }
 0x8fa   : > { %7285 = vrot.lane.b32.xlu1 %v7258_v42, %s16124_s5 }
 0x8fc   : > { %v15355_v44 = vld [vmem:[#allocation6 + $0x70] sm:$0xff] }
 0x8fd   : > { %7381 = vrot.lane.b32.xlu0 %v7235_v59, %s16126_s11  ;;  %v7224_v47 = vld [vmem:[#allocation6 + $0x71] sm:$0xff] }
 0x8fe   : > { %7505 = vrot.lane.b32.xlu1 %v7218_v8, %s16130_s18 }
 0x900   : > { %v7256_v16 = vld [vmem:[#allocation6 + $0x80] sm:$0xff] }
 0x901   : > { %7413 = vrot.lane.b32.xlu0 %v7243_v63, %s16127_s17  ;;  %v7272_v43 = vld [vmem:[#allocation6 + $0x81] sm:$0xff] }
 0x902   : > { %7317 = vrot.lane.b32.xlu1 %v7266_v30, %s16123_s16 }
 0x905   : > { %7445 = vrot.lane.b32.xlu0 %v15311_v11, %s16128_s2 }
 0x906   : > { %7319 = vrot.lane.b32.xlu1 %v7220_v53, %s16123_s16 }
 0x909   : > { %7477 = vrot.lane.b32.xlu0 %v7212_v3, %s16129_s23 }
 0x90a   : > { %7351 = vrot.lane.b32.xlu1 %v7228_v61, %s16125_s26 }
 0x90d   : > { %7509 = vrot.lane.b32.xlu0 %v7220_v53, %s16130_s18 }
 0x90e   : > { %7383 = vrot.lane.b32.xlu1 %v7236_v27, %s16126_s11 }
 0x911   : > { %7511 = vrot.lane.b32.xlu0 %v7268_v5, %s16130_s18 }
 0x912   : > { %7415 = vrot.lane.b32.xlu1 %v7244_v0, %s16127_s17 }
 0x915   : > { %7321 = vrot.lane.b32.xlu0 %v7268_v5, %s16123_s16 }
 0x916   : > { %7447 = vrot.lane.b32.xlu1 %v15322_v36, %s16128_s2 }
 0x917   : > { %v7346_v45 = vpop.permute.xlu0 %7345 }
 0x918   : > { %v7545_v56 = vsel %vm2258_vm4, %v7537_v32, %v7346_v45 }
 0x919   : > { %7353 = vrot.lane.b32.xlu0 %v7229_v40, %s16125_s26 }
 0x91a   : > { %7479 = vrot.lane.b32.xlu1 %v7260_v54, %s16129_s23 }
 0x91b   : > { %v7378_v8 = vpop.permute.xlu0 %7377 }
 0x91d   : > { %7385 = vrot.lane.b32.xlu0 %v7237_v35, %s16126_s11 }
 0x91e   : > { %7289 = vrot.lane.b32.xlu1 %v7260_v54, %s16124_s5 }
 0x91f   : > { %v7410_v28 = vpop.permute.xlu0 %7409 }
 0x921   : > { %7417 = vrot.lane.b32.xlu0 %v7245_v31, %s16127_s17 }
 0x922   : > { %7291 = vrot.lane.b32.xlu1 %v7214_v52, %s16124_s5 }
 0x925   : > { %7449 = vrot.lane.b32.xlu0 %v15333_v20, %s16128_s2 }
 0x926   : > { %7323 = vrot.lane.b32.xlu1 %v7222_v38, %s16123_s16 }
 0x929   : > { %7481 = vrot.lane.b32.xlu0 %v7214_v52, %s16129_s23 }
 0x92a   : > { %7355 = vrot.lane.b32.xlu1 %v7230_v15, %s16125_s26 }
 0x92d   : > { %7513 = vrot.lane.b32.xlu0 %v7222_v38, %s16130_s18 }
 0x92e   : > { %7387 = vrot.lane.b32.xlu1 %v7238_v19, %s16126_s11 }
 0x931   : > { %7515 = vrot.lane.b32.xlu0 %v7270_v25, %s16130_s18 }
 0x932   : > { %7419 = vrot.lane.b32.xlu1 %v7246_v13, %s16127_s17 }
 0x935   : > { %7325 = vrot.lane.b32.xlu0 %v7270_v25, %s16123_s16 }
 0x936   : > { %7451 = vrot.lane.b32.xlu1 %v15344_v60, %s16128_s2 }
 0x937   : > { %v7284_v4 = vpop.permute.xlu1 %7283 }
 0x938   : > { %v7530_v3 = vsel %vm900_vm2, %v15277_v24, %v7284_v4  ;;  %v7553_v24 = vsel %vm2291_vm5, %v7545_v56, %v7378_v8 }
 0x939   : > { %7357 = vrot.lane.b32.xlu0 %v7231_v12, %s16125_s26  ;;  %v7561_v63 = vsel %vm2324_vm6, %v7553_v24, %v7410_v28 }
 0x93a   : > { %7483 = vrot.lane.b32.xlu1 %v7262_v62, %s16129_s23 }
 0x93d   : > { %7389 = vrot.lane.b32.xlu0 %v7239_v50, %s16126_s11 }
 0x93e   : > { %7293 = vrot.lane.b32.xlu1 %v7262_v62, %s16124_s5 }
 0x941   : > { %7421 = vrot.lane.b32.xlu0 %v7247_v58, %s16127_s17 }
 0x942   : > { %7295 = vrot.lane.b32.xlu1 %v7216_v7, %s16124_s5  ;;  %s16090_s5 = smov 80  }
 0x945   : > { %7453 = vrot.lane.b32.xlu0 %v15355_v44, %s16128_s2 }
 0x946   : > { %7327 = vrot.lane.b32.xlu1 %v7224_v47, %s16123_s16 }
 0x949   : > { %7485 = vrot.lane.b32.xlu0 %v7216_v7, %s16129_s23 }
 0x94a   : > { %7359 = vrot.lane.b32.xlu1 %v7232_v2, %s16125_s26  ;;  %s16086_s26 = smov 96  }
 0x94d   : > { %7517 = vrot.lane.b32.xlu0 %v7224_v47, %s16130_s18 }
 0x94e   : > { %7391 = vrot.lane.b32.xlu1 %v7240_v21, %s16126_s11 }
 0x952   : > { %7423 = vrot.lane.b32.xlu1 %v7248_v48, %s16127_s17  ;;  %s16088_s17 = smov 112  }
 0x956   : > { %7455 = vrot.lane.b32.xlu1 %v7256_v16, %s16128_s2 }
 0x957   : > { %v7442_v34 = vpop.permute.xlu0 %7441 }
 0x958   : > { %v7316_v10 = vpop.permute.xlu1 %7315  ;;  %v7569_v53 = vsel %vm2357_vm7, %v7561_v63, %v7442_v34 }
 0x959   : > { %v7538_v55 = vsel %vm1038_vm3, %v7530_v3, %v7316_v10 }
 0x95a   : > { %7487 = vrot.lane.b32.xlu1 %v7264_v22, %s16129_s23  ;;  %s16188_s23 = sld [smem:[#allocation23_spill]] }
 0x95b   : > { %v7474_v17 = vpop.permute.xlu0 %7473 }
 0x95c   : > { %v7348_v23 = vpop.permute.xlu1 %7347  ;;  %v7577_v27 = vsel %vm2390_vm8, %v7569_v53, %v7474_v17 }
 0x95d   : > { %v7546_v30 = vsel %vm2258_vm4, %v7538_v55, %v7348_v23 }
 0x95e   : > { %7519 = vrot.lane.b32.xlu1 %v7272_v43, %s16130_s18 }
 0x95f   : > { %v7476_v42 = vpop.permute.xlu0 %7475 }
 0x960   : > { %v7380_v29 = vpop.permute.xlu1 %7379 }
 0x961   : > { %v7554_v6 = vsel %vm2291_vm5, %v7546_v30, %v7380_v29 }
 0x963   : > { %v7288_v18 = vpop.permute.xlu0 %7287 }
 0x964   : > { %v7412_v46 = vpop.permute.xlu1 %7411  ;;  %v7532_v2 = vsel %vm900_vm2, %v15311_v11, %v7288_v18 }
 0x965   : > { %v7562_v33 = vsel %vm2324_vm6, %v7554_v6, %v7412_v46 }
 0x967   : > { %v7508_v26 = vpop.permute.xlu0 %7507 }
 0x968   : > { %v7444_v37 = vpop.permute.xlu1 %7443 }
 0x969   : > { %v7570_v9 = vsel %vm2357_vm7, %v7562_v33, %v7444_v37 }
 0x96a   : > { %v7578_v61 = vsel %vm2390_vm8, %v7570_v9, %v7476_v42 }
 0x96b   : > { %v7350_v59 = vpop.permute.xlu0 %7349  ;;  %v7586_v40 = vsel %vm2423_vm9, %v7578_v61, %v7508_v26 }
 0x96c   : > { %v7286_v51 = vpop.permute.xlu1 %7285 }
 0x96d   : > { %v7531_v35 = vsel %vm900_vm2, %v15297_v49, %v7286_v51 }
 0x96f   : > { %v7382_v0 = vpop.permute.xlu0 %7381 }
 0x970   : > { %v7506_v5 = vpop.permute.xlu1 %7505 }
 0x971   : > { %v7585_v54 = vsel %vm2423_vm9, %v7577_v27, %v7506_v5 }
 0x972   : > { %10161 = vmatprep.mubr.msk.f32.mxu0 %vm2472_vm10, %v7585_v54 }
 0x973   : > { %10162 = vmatmul.mubr.msk.f32.vlgmr.msra.gmra.mrb[64].mxu0 %vm2472_vm10, %v7586_v40  ;;  %v7414_v31 = vpop.permute.xlu0 %7413 }
 0x974   : > { %v7318_v52 = vpop.permute.xlu1 %7317 }
 0x975   : > { %v7539_v38 = vsel %vm1038_vm3, %v7531_v35, %v7318_v52 }
 0x976   : > { %v7547_v15 = vsel %vm2258_vm4, %v7539_v38, %v7350_v59 }
 0x977   : > { %v7446_v25 = vpop.permute.xlu0 %7445  ;;  %v7555_v13 = vsel %vm2291_vm5, %v7547_v15, %v7382_v0 }
 0x978   : > { %v7320_v19 = vpop.permute.xlu1 %7319  ;;  %v7563_v62 = vsel %vm2324_vm6, %v7555_v13, %v7414_v31 }
 0x979   : > { %v7571_v50 = vsel %vm2357_vm7, %v7563_v62, %v7446_v25  ;;  %v7540_v21 = vsel %vm1038_vm3, %v7532_v2, %v7320_v19 }
 0x97b   : > { %v7478_v1 = vpop.permute.xlu0 %7477 }
 0x97c   : > { %v7352_v12 = vpop.permute.xlu1 %7351  ;;  %v7579_v7 = vsel %vm2390_vm8, %v7571_v50, %v7478_v1 }
 0x97d   : > { %v7548_v16 = vsel %vm2258_vm4, %v7540_v21, %v7352_v12 }
 0x97f   : > { %v7510_v49 = vpop.permute.xlu0 %7509 }
 0x980   : > { %v7384_v58 = vpop.permute.xlu1 %7383  ;;  %v7587_v39 = vsel %vm2423_vm9, %v7579_v7, %v7510_v49 }
 0x981   : > { %10164 = vmatprep.mubr.msk.f32.mxu0 %vm2472_vm10, %v7587_v39  ;;  %v7556_v28 = vsel %vm2291_vm5, %v7548_v16, %v7384_v58 }
 0x983   : > { %v7512_v45 = vpop.permute.xlu0 %7511 }
 0x984   : > { %v7416_v47 = vpop.permute.xlu1 %7415 }
 0x985   : > { %v7564_v4 = vsel %vm2324_vm6, %v7556_v28, %v7416_v47 }
 0x987   : > { %v7322_v48 = vpop.permute.xlu0 %7321 }
 0x988   : > { %v7448_v8 = vpop.permute.xlu1 %7447 }
 0x989   : > { %v7572_v10 = vsel %vm2357_vm7, %v7564_v4, %v7448_v8 }
 0x98b   : > { %v7354_v22 = vpop.permute.xlu0 %7353 }
 0x98c   : > { %v7480_v34 = vpop.permute.xlu1 %7479 }
 0x98d   : > { %v7580_v23 = vsel %vm2390_vm8, %v7572_v10, %v7480_v34  ;;  %v16186_v10 = vmov 0.0  }
 0x98e   : > { %v7588_v17 = vsel %vm2423_vm9, %v7580_v23, %v7512_v45  ;;  %1058 = vst.msk [vmem:[#allocation7 + $0x29] sm:$0x1] %vm1045_vm13, %v16186_v10  ;;  %1046 = vst.msk [vmem:[#allocation7] sm:$0x1] %vm1045_vm13, %v16186_v10 }
 0x98f   : > { %10165 = vmatmul.mubr.msk.f32.gmra.mrb[66].mxu0 %vm2472_vm10, %v7588_v17  ;;  %v7386_v43 = vpop.permute.xlu0 %7385  ;;  %1047 = vst.msk [vmem:[#allocation7 + $0x10] sm:$0x1] %vm1045_vm13, %v16186_v10  ;;  %1048 = vst.msk [vmem:[#allocation7 + $0x20] sm:$0x1] %vm1045_vm13, %v16186_v10 }
 0x990   : > { %v7290_v11 = vpop.permute.xlu1 %7289  ;;  %1049 = vst.msk [vmem:[#allocation7 + $0x30] sm:$0x1] %vm1045_vm13, %v16186_v10  ;;  %1050 = vst.msk [vmem:[#allocation7 + $0x40] sm:$0x1] %vm1045_vm13, %v16186_v10 }
 0x991   : > { %v7533_v29 = vsel %vm900_vm2, %v15322_v36, %v7290_v11  ;;  %1051 = vst.msk [vmem:[#allocation7 + $0x50] sm:$0x1] %vm1045_vm13, %v16186_v10  ;;  %1052 = vst.msk [vmem:[#allocation7 + $0x60] sm:$0x1] %vm1045_vm13, %v16186_v10  ;;  %v15528_v11 = vld [vmem:[%s11008_s30] ss:$0 sm:$0xff] }
 0x992   : > { %v7541_v46 = vsel %vm1038_vm3, %v7533_v29, %v7322_v48  ;;  %1053 = vst.msk [vmem:[#allocation7 + $0x70] sm:$0x1] %vm1045_vm13, %v16186_v10  ;;  %1054 = vst.msk [vmem:[#allocation7 + $0x80] sm:$0x1] %vm1045_vm13, %v16186_v10  ;;  %v8112_v29 = vld [vmem:[%s16114_s6 + $0x8] sm:$0xff] }
 0x993   : > { %v7418_v41 = vpop.permute.xlu0 %7417  ;;  %v7549_v18 = vsel %vm2258_vm4, %v7541_v46, %v7354_v22  ;;  %1055 = vst.msk [vmem:[#allocation7 + $0x90] sm:$0x1] %vm1045_vm13, %v16186_v10  ;;  %1057 = vst.msk [vmem:[#allocation7 + $0x19] sm:$0x1] %vm1045_vm13, %v16186_v10 }
 0x994   : > { %v7292_v42 = vpop.permute.xlu1 %7291  ;;  %v7557_v55 = vsel %vm2291_vm5, %v7549_v18, %v7386_v43  ;;  %1059 = vst.msk [vmem:[#allocation7 + $0x39] sm:$0x1] %vm1045_vm13, %v16186_v10  ;;  %1060 = vst.msk [vmem:[#allocation7 + $0x49] sm:$0x1] %vm1045_vm13, %v16186_v10  ;;  %v8111_v43 = vld [vmem:[%s16114_s6] sm:$0xff] }
 0x995   : > { %v7565_v32 = vsel %vm2324_vm6, %v7557_v55, %v7418_v41  ;;  %v7534_v59 = vsel %vm900_vm2, %v15333_v20, %v7292_v42  ;;  %1061 = vst.msk [vmem:[#allocation7 + $0x59] sm:$0x1] %vm1045_vm13, %v16186_v10  ;;  %1062 = vst.msk [vmem:[#allocation7 + $0x69] sm:$0x1] %vm1045_vm13, %v16186_v10  ;;  %v10381_v41 = vpack.c.bf16 %v8112_v29, %v8111_v43  ;;  %v8113_v55 = vld [vmem:[%s16114_s6 + $0x10] sm:$0xff] }
 0x996   : > { %1063 = vst.msk [vmem:[#allocation7 + $0x79] sm:$0x1] %vm1045_vm13, %v16186_v10  ;;  %1064 = vst.msk [vmem:[#allocation7 + $0x89] sm:$0x1] %vm1045_vm13, %v16186_v10 }
 0x997   : > { %v7450_v3 = vpop.permute.xlu0 %7449  ;;  %1076 = vst.msk [vmem:[#allocation8 + $0xc] sm:$0x1] %vm1045_vm13, %v16186_v10  ;;  %1077 = vst.msk [vmem:[#allocation8 + $0x14] sm:$0x1] %vm1045_vm13, %v16186_v10  ;;  %10382 = vmatpush1.bf16.msra.mxu0 %v10381_v41 }
 0x998   : > { %v7324_v57 = vpop.permute.xlu1 %7323  ;;  %v7573_v30 = vsel %vm2357_vm7, %v7565_v32, %v7450_v3  ;;  %1078 = vst.msk [vmem:[#allocation8 + $0x1c] sm:$0x1] %vm1045_vm13, %v16186_v10  ;;  %1084 = vst.msk [vmem:[#allocation9 + $0x8] sm:$0x1] %vm1045_vm13, %v16186_v10  ;;  %10383 = vmatprep.subr.bf16.mxu0 %v16144_v14 }
 0x999   : > { %v7542_v24 = vsel %vm1038_vm3, %v7534_v59, %v7324_v57  ;;  %1085 = vst.msk [vmem:[#allocation9 + $0x10] sm:$0x1] %vm1045_vm13, %v16186_v10  ;;  %1086 = vst.msk [vmem:[#allocation9 + $0x18] sm:$0x1] %vm1045_vm13, %v16186_v10 }
 0x99a   : > { %1089 = vst.msk [vmem:[#allocation9 + $0xc] sm:$0x1] %vm1045_vm13, %v16186_v10  ;;  %1090 = vst.msk [vmem:[#allocation9 + $0x14] sm:$0x1] %vm1045_vm13, %v16186_v10 }
 0x99b   : > { %v7482_v26 = vpop.permute.xlu0 %7481  ;;  %1091 = vst.msk [vmem:[#allocation9 + $0x1c] sm:$0x1] %vm1045_vm13, %v16186_v10  ;;  %1102 = vst.msk [vmem:[#allocation10 + $0xc] sm:$0x1] %vm1045_vm13, %v16186_v10 }
 0x99c   : > { %v7356_v37 = vpop.permute.xlu1 %7355  ;;  %v7581_v6 = vsel %vm2390_vm8, %v7573_v30, %v7482_v26  ;;  %1103 = vst.msk [vmem:[#allocation10 + $0x14] sm:$0x1] %vm1045_vm13, %v16186_v10  ;;  %1104 = vst.msk [vmem:[#allocation10 + $0x1c] sm:$0x1] %vm1045_vm13, %v16186_v10  ;;  %v8115_v30 = vld [vmem:[%s16114_s6 + $0x20] sm:$0xff] }
 0x99d   : > { %v7550_v61 = vsel %vm2258_vm4, %v7542_v24, %v7356_v37  ;;  %1110 = vst.msk [vmem:[#allocation11 + $0x8] sm:$0x1] %vm1045_vm13, %v16186_v10  ;;  %1111 = vst.msk [vmem:[#allocation11 + $0x10] sm:$0x1] %vm1045_vm13, %v16186_v10  ;;  %v8114_v37 = vld [vmem:[%s16114_s6 + $0x18] sm:$0xff] }
 0x99e   : > { %1112 = vst.msk [vmem:[#allocation11 + $0x18] sm:$0x1] %vm1045_vm13, %v16186_v10  ;;  %1115 = vst.msk [vmem:[#allocation11 + $0xc] sm:$0x1] %vm1045_vm13, %v16186_v10  ;;  %v10384_v32 = vpack.c.bf16 %v8114_v37, %v8113_v55 }
 0x99f   : > { %v7514_v36 = vpop.permute.xlu0 %7513  ;;  %1116 = vst.msk [vmem:[#allocation11 + $0x14] sm:$0x1] %vm1045_vm13, %v16186_v10  ;;  %1117 = vst.msk [vmem:[#allocation11 + $0x1c] sm:$0x1] %vm1045_vm13, %v16186_v10 }
 0x9a0   : > { %v7388_v33 = vpop.permute.xlu1 %7387  ;;  %v7589_v56 = vsel %vm2423_vm9, %v7581_v6, %v7514_v36  ;;  %1041 = vst.msk [vmem:[#allocation7 + $0x8] sm:$0x3] %vm1040_vm14, %v16186_v10  ;;  %1044 = vst.msk [vmem:[#allocation7 + $0x98] sm:$0x3] %vm1040_vm14, %v16186_v10  ;;  %10385 = vmatpush1.bf16.msra.mxu0 %v10384_v32  ;;  %v8116_v6 = vld [vmem:[%s16114_s6 + $0x28] sm:$0xff] }
 0x9a1   : > { %10167 = vmatprep.mubr.msk.f32.mxu0 %vm2472_vm10, %v7589_v56  ;;  %v7558_v27 = vsel %vm2291_vm5, %v7550_v61, %v7388_v33  ;;  %1056 = vst.msk [vmem:[#allocation7 + $0x9] sm:$0x1] %vm1045_vm13, %v16186_v10  ;;  %1065 = vst.msk [vmem:[#allocation7 + $0x99] sm:$0x1] %vm1045_vm13, %v16186_v10  ;;  %10386 = vmatprep.subr.bf16.mxu0 %v16144_v14  ;;  %v10387_v33 = vpack.c.bf16 %v8116_v6, %v8115_v30 }
 0x9a3   : > { %v7516_v51 = vpop.permute.xlu0 %7515 }
 0x9a4   : > { %v7420_v9 = vpop.permute.xlu1 %7419  ;;  %10388 = vmatpush1.bf16.msra.mxu0 %v10387_v33  ;;  %v15614_v33 = vld [vmem:[%s11023_s20] sm:$0xff] }
 0x9a5   : > { %v7566_v5 = vsel %vm2324_vm6, %v7558_v27, %v7420_v9  ;;  %10389 = vmatprep.subr.bf16.mxu0 %v16144_v14  ;;  %v8117_v9 = vld [vmem:[%s16114_s6 + $0x30] sm:$0xff] }
 0x9a7   : > { %v7326_v53 = vpop.permute.xlu0 %7325  ;;  %v7763_v56 = vld [vmem:[#allocation7 + $0x1] sm:$0xff] }
 0x9a8   : > { %v7452_v63 = vpop.permute.xlu1 %7451  ;;  %v7771_v36 = vld [vmem:[#allocation7 + $0x2] sm:$0xff] }
 0x9a9   : > { %v7574_v0 = vsel %vm2357_vm7, %v7566_v5, %v7452_v63 }
 0x9ab   : > { %v7358_v40 = vpop.permute.xlu0 %7357 }
 0x9ac   : > { %v7484_v54 = vpop.permute.xlu1 %7483 }
 0x9ad   : > { %v7582_v35 = vsel %vm2390_vm8, %v7574_v0, %v7484_v54  ;;  %v8119_v54 = vld [vmem:[%s16114_s6 + $0x40] sm:$0xff] }
 0x9ae   : > { %v7590_v52 = vsel %vm2423_vm9, %v7582_v35, %v7516_v51  ;;  %v8118_v51 = vld [vmem:[%s16114_s6 + $0x38] sm:$0xff] }
 0x9af   : > { %10168 = vmatmul.mubr.msk.f32.gmra.mrb[68].mxu0 %vm2472_vm10, %v7590_v52  ;;  %v7390_v31 = vpop.permute.xlu0 %7389  ;;  %v10390_v24 = vpack.c.bf16 %v8118_v51, %v8117_v9 }
 0x9b0   : > { %v7294_v20 = vpop.permute.xlu1 %7293 }
 0x9b1   : > { %v7535_v38 = vsel %vm900_vm2, %v15344_v60, %v7294_v20  ;;  %10391 = vmatpush1.bf16.msra.mxu0 %v10390_v24  ;;  %v8121_v20 = vld [vmem:[%s16114_s6 + $0x50] sm:$0xff] }
 0x9b2   : > { %v7543_v25 = vsel %vm1038_vm3, %v7535_v38, %v7326_v53  ;;  %10392 = vmatprep.subr.bf16.mxu0 %v16144_v14 }
 0x9b3   : > { %v7422_v19 = vpop.permute.xlu0 %7421  ;;  %v7551_v13 = vsel %vm2258_vm4, %v7543_v25, %v7358_v40  ;;  %v8120_v40 = vld [vmem:[%s16114_s6 + $0x48] sm:$0xff]  ;;  %v8123_v25 = vld [vmem:[%s16114_s6 + $0x60] sm:$0xff] }
 0x9b4   : > { %v7296_v15 = vpop.permute.xlu1 %7295  ;;  %v7559_v1 = vsel %vm2291_vm5, %v7551_v13, %v7390_v31  ;;  %v10393_v52 = vpack.c.bf16 %v8120_v40, %v8119_v54  ;;  %v8122_v31 = vld [vmem:[%s16114_s6 + $0x58] sm:$0xff]  ;;  %v8124_v13 = vld [vmem:[%s16114_s6 + $0x68] sm:$0xff] }
 0x9b5   : > { %v7567_v58 = vsel %vm2324_vm6, %v7559_v1, %v7422_v19  ;;  %v7536_v8 = vsel %vm900_vm2, %v15355_v44, %v7296_v15  ;;  %v10396_v19 = vpack.c.bf16 %v8122_v31, %v8121_v20  ;;  %v8125_v1 = vld [vmem:[%s16114_s6 + $0x70] sm:$0xff] }
 0x9b6   : > { %10394 = vmatpush1.bf16.msra.mxu0 %v10393_v52 }
 0x9b7   : > { %v7454_v12 = vpop.permute.xlu0 %7453  ;;  %10395 = vmatprep.subr.bf16.mxu0 %v16144_v14 }
 0x9b8   : > { %v7328_v62 = vpop.permute.xlu1 %7327  ;;  %v7575_v49 = vsel %vm2357_vm7, %v7567_v58, %v7454_v12  ;;  %v10399_v12 = vpack.c.bf16 %v8124_v13, %v8123_v25 }
 0x9b9   : > { %v7544_v48 = vsel %vm1038_vm3, %v7536_v8, %v7328_v62 }
 0x9ba   : > { %10397 = vmatpush1.bf16.msra.mxu0 %v10396_v19 }
 0x9bb   : > { %v7486_v7 = vpop.permute.xlu0 %7485  ;;  %10398 = vmatprep.subr.bf16.mxu0 %v16144_v14 }
 0x9bc   : > { %v7360_v50 = vpop.permute.xlu1 %7359  ;;  %v7583_v39 = vsel %vm2390_vm8, %v7575_v49, %v7486_v7 }
 0x9bd   : > { %v7552_v16 = vsel %vm2258_vm4, %v7544_v48, %v7360_v50  ;;  %v8126_v50 = vld [vmem:[%s16114_s6 + $0x78] sm:$0xff]  ;;  %vm1066_vm4 = vcmask 126976  }
 0x9be   : > { %10400 = vmatpush1.bf16.msra.mxu0 %v10399_v12  ;;  %v10402_v7 = vpack.c.bf16 %v8126_v50, %v8125_v1  ;;  %v7819_v1 = vld [vmem:[#allocation7 + $0x91] sm:$0xff]  ;;  %1069 = vst.msk [vmem:[#allocation8 + $0x20] sm:$0x1f] %vm1066_vm4, %v16186_v10  ;;  %1082 = vst.msk [vmem:[#allocation9 + $0x20] sm:$0x1f] %vm1066_vm4, %v16186_v10 }
 0x9bf   : > { %v7518_v60 = vpop.permute.xlu0 %7517  ;;  %10401 = vmatprep.subr.bf16.mxu0 %v16144_v14  ;;  %v7811_v50 = vld [vmem:[#allocation7 + $0x90] sm:$0xff]  ;;  %1093 = vst.msk [vmem:[#allocation10] sm:$0x1f] %vm1066_vm4, %v16186_v10  ;;  %1095 = vst.msk [vmem:[#allocation10 + $0x20] sm:$0x1f] %vm1066_vm4, %v16186_v10 }
 0x9c0   : > { %v7392_v47 = vpop.permute.xlu1 %7391  ;;  %v7591_v45 = vsel %vm2423_vm9, %v7583_v39, %v7518_v60  ;;  %1106 = vst.msk [vmem:[#allocation11] sm:$0x1f] %vm1066_vm4, %v16186_v10  ;;  %1108 = vst.msk [vmem:[#allocation11 + $0x20] sm:$0x1f] %vm1066_vm4, %v16186_v10 }
 0x9c1   : > { %10170 = vmatprep.mubr.msk.f32.mxu0 %vm2472_vm10, %v7591_v45  ;;  %v7560_v4 = vsel %vm2291_vm5, %v7552_v16, %v7392_v47  ;;  %v8127_v45 = vld [vmem:[%s16114_s6 + $0x80] sm:$0xff]  ;;  %1079 = vst.msk [vmem:[#allocation8 + $0x24] sm:$0x1] %vm1045_vm13, %v16186_v10  ;;  %1087 = vst.msk [vmem:[#allocation9 + $0x20] sm:$0x1] %vm1045_vm13, %v16186_v10 }
 0x9c2   : > { %10403 = vmatpush1.bf16.msra.mxu0 %v10402_v7  ;;  %1092 = vst.msk [vmem:[#allocation9 + $0x24] sm:$0x1] %vm1045_vm13, %v16186_v10  ;;  %1101 = vst.msk [vmem:[#allocation10 + $0x4] sm:$0x1] %vm1045_vm13, %v16186_v10 }
 0x9c3   : > { %10404 = vmatprep.subr.bf16.mxu0 %v16144_v14  ;;  %1105 = vst.msk [vmem:[#allocation10 + $0x24] sm:$0x1] %vm1045_vm13, %v16186_v10  ;;  %1109 = vst.msk [vmem:[#allocation11] sm:$0x1] %vm1045_vm13, %v16186_v10 }
 0x9c4   : > { %v7424_v2 = vpop.permute.xlu1 %7423  ;;  %1113 = vst.msk [vmem:[#allocation11 + $0x20] sm:$0x1] %vm1045_vm13, %v16186_v10  ;;  %1114 = vst.msk [vmem:[#allocation11 + $0x4] sm:$0x1] %vm1045_vm13, %v16186_v10 }
 0x9c5   : > { %v7568_v44 = vsel %vm2324_vm6, %v7560_v4, %v7424_v2  ;;  %v8128_v2 = vld [vmem:[%s16114_s6 + $0x88] sm:$0xff]  ;;  %1118 = vst.msk [vmem:[#allocation11 + $0x24] sm:$0x1] %vm1045_vm13, %v16186_v10  ;;  %vm1119_vm6 = vcmask 259072  }
 0x9c6   : > { %v10405_v8 = vpack.c.bf16 %v8128_v2, %v8127_v45  ;;  %1120 = vst.msk [vmem:[#allocation12] sm:$0x3f] %vm1119_vm6, %v16186_v10  ;;  %1122 = vst.msk [vmem:[#allocation12 + $0x28] sm:$0x3f] %vm1119_vm6, %v16186_v10 }
 0x9c8   : > { %v7456_v21 = vpop.permute.xlu1 %7455  ;;  %10406 = vmatpush1.bf16.msra.mxu0 %v10405_v8 }
 0x9c9   : > { %v7576_v34 = vsel %vm2357_vm7, %v7568_v44, %v7456_v21  ;;  %10173 = vmatprep.subr.mxu0 %v15614_v33 }
 0x9cc   : > { %v7488_v28 = vpop.permute.xlu1 %7487 }
 0x9cd   : > { %v7584_v22 = vsel %vm2390_vm8, %v7576_v34, %v7488_v28  ;;  %vm8899_vm8 = vcmask 257024  }
 0x9d0   : > { %v7520_v23 = vpop.permute.xlu1 %7519 }
 0x9d1   : > { %v7592_v17 = vsel %vm2423_vm9, %v7584_v22, %v7520_v23 }
 0x9d2   : > { %10171 = vmatmul.mubr.msk.f32.gmra.mrb[70].mxu0 %vm2472_vm10, %v7592_v17 }
 0xa46   : > { %v10163_v42 = vpop.f32.mrb[64].mxu0 }
 0xa47   : > { %v7705_v46 = vadd.f32 %v10163_v42, %v15528_v11  ;;  %v7699_v18 = vpop.f32.mrb[65].mxu0 }
 0xa48   : > { %v7700_v57 = vadd.f32 %v15528_v11, %v7699_v18 }
 0xa49   : > { %v7739_v3 = vmax.f32 %v7705_v46, 0.0 }
 0xa4a   : > { %v7738_v26 = vmax.f32 %v7700_v57, 0.0 }
 0xa4b   : > { %7748 = vst.msk [vmem:[#allocation7 + $0x21] sm:$0xff] %vm1038_vm3, %v7739_v3 }
 0xa4c   : > { %7747 = vst.msk [vmem:[#allocation7 + $0x11] sm:$0xff] %vm1038_vm3, %v7738_v26 }
 0xa52   : > { %v15545_v59 = vld [vmem:[#allocation7 + $0x22] sm:$0xff] }
 0xa53   : > { %9674 = vmatprep.mubr.msk.f32.mxu0 %vm1038_vm3, %v15545_v59  ;;  %v7772_v63 = vld [vmem:[#allocation7 + $0x12] sm:$0xff]  ;;  %v7788_v61 = vld [vmem:[#allocation7 + $0x21] sm:$0xff] }
 0xa54   : > { %v7764_v53 = vld [vmem:[#allocation7 + $0x11] sm:$0xff]  ;;  %v10612_v27 = vpack.i.bf16 %v7772_v63, %v7771_v36  ;;  %v15549_v0 = vld [vmem:[#allocation7 + $0x20] sm:$0xff]  ;;  %v10627_v62 = vpack.i.bf16 %v15545_v59, %v7772_v63 }
 0xa55   : > { %v10607_v5 = vpack.i.bf16 %v7764_v53, %v7763_v56  ;;  %v15553_v35 = vld [vmem:[#allocation7 + $0x10] sm:$0xff]  ;;  %v10622_v38 = vpack.i.bf16 %v7788_v61, %v7764_v53 }
 0xa56   : > { %10613 = vrot.lane.b32.xlu1 %v10612_v27, %s16126_s11  ;;  %v10617_v15 = vpack.i.bf16 %v15549_v0, %v15553_v35 }
 0xa57   : > { %10608 = vrot.lane.b32.xlu0 %v10607_v5, %s16123_s16 }
 0xa5a   : > { %10623 = vrot.lane.b32.xlu1 %v10622_v38, %s16130_s18 }
 0xa5b   : > { %10618 = vrot.lane.b32.xlu0 %v10617_v15, %s16128_s2 }
 0xa5f   : > { %10628 = vrot.lane.b32.xlu0 %v10627_v62, %s16090_s5 }
 0xa62   : > { %v10166_v58 = vpop.f32.mrb[66].mxu0 }
 0xa63   : > { %v7715_v49 = vadd.f32 %v10166_v58, %v15528_v11  ;;  %v7709_v39 = vpop.f32.mrb[67].mxu0 }
 0xa64   : > { %v7710_v47 = vadd.f32 %v15528_v11, %v7709_v39 }
 0xa65   : > { %v7741_v60 = vmax.f32 %v7715_v49, 0.0 }
 0xa66   : > { %v7740_v21 = vmax.f32 %v7710_v47, 0.0  ;;  %v7755_v47 = vld [vmem:[#allocation7] sm:$0xff] }
 0xa67   : > { %7750 = vst.msk [vmem:[#allocation7 + $0x41] sm:$0xff] %vm1038_vm3, %v7741_v60 }
 0xa68   : > { %7749 = vst.msk [vmem:[#allocation7 + $0x31] sm:$0xff] %vm1038_vm3, %v7740_v21 }
 0xa6e   : > { %v7790_v22 = vld [vmem:[#allocation7 + $0x41] sm:$0xff] }
 0xa6f   : > { %v7813_v48 = vld [vmem:[#allocation7 + $0x31] sm:$0xff]  ;;  %v15590_v23 = vld [vmem:[#allocation7 + $0x40] sm:$0xff] }
 0xa70   : > { %v15580_v16 = vld [vmem:[#allocation7 + $0x30] sm:$0xff]  ;;  %v10637_v28 = vpack.i.bf16 %v7813_v48, %v7788_v61  ;;  %v10657_v17 = vpack.i.bf16 %v7790_v22, %v7813_v48  ;;  %v15596_v29 = vld [vmem:[#allocation7 + $0x42] sm:$0xff] }
 0xa71   : > { %v10632_v4 = vpack.i.bf16 %v15580_v16, %v15549_v0  ;;  %v15584_v44 = vld [vmem:[#allocation7 + $0x32] sm:$0xff]  ;;  %v10652_v43 = vpack.i.bf16 %v15590_v23, %v15580_v16 }
 0xa72   : > { %10638 = vrot.lane.b32.xlu0 %v10637_v28, %s16088_s17  ;;  %v10647_v34 = vpack.i.bf16 %v15584_v44, %v15545_v59  ;;  %v10662_v42 = vpack.i.bf16 %v15596_v29, %v15584_v44 }
 0xa73   : > { %10633 = vrot.lane.b32.xlu1 %v10632_v4, %s16086_s26 }
 0xa76   : > { %10648 = vrot.lane.b32.xlu0 %v10647_v34, %s16126_s11 }
 0xa77   : > { %10643 = vrot.lane.b32.xlu1 %v10637_v28, %s16123_s16 }
 0xa7a   : > { %10658 = vrot.lane.b32.xlu0 %v10657_v17, %s16130_s18 }
 0xa7b   : > { %10653 = vrot.lane.b32.xlu1 %v10652_v43, %s16128_s2 }
 0xa7f   : > { %10663 = vrot.lane.b32.xlu1 %v10662_v42, %s16090_s5 }
 0xa82   : > { %v10169_v41 = vpop.f32.mrb[68].mxu0 }
 0xa83   : > { %v7725_v46 = vadd.f32 %v10169_v41, %v15528_v11  ;;  %v7719_v18 = vpop.f32.mrb[69].mxu0 }
 0xa84   : > { %v7720_v57 = vadd.f32 %v15528_v11, %v7719_v18 }
 0xa85   : > { %v7743_v3 = vmax.f32 %v7725_v46, 0.0 }
 0xa86   : > { %v7742_v55 = vmax.f32 %v7720_v57, 0.0 }
 0xa87   : > { %7752 = vst.msk [vmem:[#allocation7 + $0x61] sm:$0xff] %vm1038_vm3, %v7743_v3 }
 0xa88   : > { %7751 = vst.msk [vmem:[#allocation7 + $0x51] sm:$0xff] %vm1038_vm3, %v7742_v55 }
 0xa8e   : > { %v7792_v56 = vld [vmem:[#allocation7 + $0x61] sm:$0xff] }
 0xa8f   : > { %v7815_v37 = vld [vmem:[#allocation7 + $0x51] sm:$0xff]  ;;  %v15621_v9 = vld [vmem:[#allocation7 + $0x60] sm:$0xff] }
 0xa90   : > { %v15607_v26 = vld [vmem:[#allocation7 + $0x50] sm:$0xff]  ;;  %v10672_v32 = vpack.i.bf16 %v7815_v37, %v7790_v22  ;;  %v10692_v51 = vpack.i.bf16 %v7792_v56, %v7815_v37  ;;  %v15627_v24 = vld [vmem:[#allocation7 + $0x62] sm:$0xff] }
 0xa91   : > { %v10667_v30 = vpack.i.bf16 %v15607_v26, %v15590_v23  ;;  %v15611_v6 = vld [vmem:[#allocation7 + $0x52] sm:$0xff]  ;;  %v10687_v59 = vpack.i.bf16 %v15621_v9, %v15607_v26 }
 0xa92   : > { %10673 = vrot.lane.b32.xlu1 %v10672_v32, %s16088_s17  ;;  %v10682_v36 = vpack.i.bf16 %v15611_v6, %v15596_v29  ;;  %v10697_v63 = vpack.i.bf16 %v15627_v24, %v15611_v6 }
 0xa93   : > { %10668 = vrot.lane.b32.xlu0 %v10667_v30, %s16086_s26 }
 0xa96   : > { %10683 = vrot.lane.b32.xlu1 %v10682_v36, %s16126_s11 }
 0xa97   : > { %10678 = vrot.lane.b32.xlu0 %v10672_v32, %s16123_s16 }
 0xa9a   : > { %10693 = vrot.lane.b32.xlu1 %v10692_v51, %s16130_s18 }
 0xa9b   : > { %10688 = vrot.lane.b32.xlu0 %v10687_v59, %s16128_s2 }
 0xa9f   : > { %10698 = vrot.lane.b32.xlu0 %v10697_v63, %s16090_s5 }
 0xaa5   : > { %v10172_v53 = vpop.f32.mrb[70].mxu0 }
 0xaa6   : > { %v7735_v61 = vadd.f32 %v10172_v53, %v15528_v11  ;;  %v7729_v27 = vpop.f32.mrb[71].mxu0 }
 0xaa7   : > { %v7730_v5 = vadd.f32 %v15528_v11, %v7729_v27 }
 0xaa8   : > { %v7745_v54 = vmax.f32 %v7735_v61, 0.0 }
 0xaa9   : > { %v7744_v40 = vmax.f32 %v7730_v5, 0.0 }
 0xaaa   : > { %7754 = vst.msk [vmem:[#allocation7 + $0x81] sm:$0xff] %vm1038_vm3, %v7745_v54 }
 0xaab   : > { %7753 = vst.msk [vmem:[#allocation7 + $0x71] sm:$0xff] %vm1038_vm3, %v7744_v40 }
 0xab1   : > { %v7810_v52 = vld [vmem:[#allocation7 + $0x80] sm:$0xff] }
 0xab2   : > { %8008 = vrot.lane.b32.xlu0 %v7810_v52, %s16086_s26  ;;  %v15639_v20 = vld [vmem:[#allocation7 + $0x70] sm:$0xff]  ;;  %v7794_v25 = vld [vmem:[#allocation7 + $0x81] sm:$0xff] }
 0xab3   : > { %v7817_v31 = vld [vmem:[#allocation7 + $0x71] sm:$0xff]  ;;  %v10702_v38 = vpack.i.bf16 %v15639_v20, %v15621_v9  ;;  %v10722_v13 = vpack.i.bf16 %v7810_v52, %v15639_v20  ;;  %v15656_v12 = vld [vmem:[#allocation7 + $0x82] sm:$0xff] }
 0xab4   : > { %v10707_v15 = vpack.i.bf16 %v7817_v31, %v7792_v56  ;;  %v15644_v19 = vld [vmem:[#allocation7 + $0x72] sm:$0xff]  ;;  %v10727_v62 = vpack.i.bf16 %v7794_v25, %v7817_v31 }
 0xab5   : > { %10703 = vrot.lane.b32.xlu1 %v10702_v38, %s16086_s26  ;;  %v10717_v11 = vpack.i.bf16 %v15644_v19, %v15627_v24 }
 0xab6   : > { %10708 = vrot.lane.b32.xlu0 %v10707_v15, %s16088_s17 }
 0xab9   : > { %10713 = vrot.lane.b32.xlu1 %v10707_v15, %s16123_s16 }
 0xaba   : > { %10718 = vrot.lane.b32.xlu0 %v10717_v11, %s16126_s11 }
 0xabd   : > { %10723 = vrot.lane.b32.xlu1 %v10722_v13, %s16128_s2 }
 0xabe   : > { %10728 = vrot.lane.b32.xlu0 %v10727_v62, %s16130_s18 }
 0xac1   : > { %7976 = vrot.lane.b32.xlu1 %v15644_v19, %s16090_s5 }
 0xac2   : > { %7978 = vrot.lane.b32.xlu0 %v15656_v12, %s16090_s5  ;;  %s16191_s5 = sld [smem:[#allocation25_spill]] }
 0xac5   : > { %8040 = vrot.lane.b32.xlu1 %v7794_v25, %s16088_s17 }
 0xac6   : > { %8042 = vrot.lane.b32.xlu0 %v7819_v1, %s16088_s17  ;;  %s16190_s17 = sld [smem:[#allocation24_spill]] }
 0xac8   : > { %v10614_v58 = vpop.permute.xlu1 %10613 }
 0xac9   : > { %8010 = vrot.lane.b32.xlu1 %v7811_v50, %s16086_s26  ;;  %v10609_v7 = vpop.permute.xlu0 %10608  ;;  %v10615_v45 = vunpack.i.l.bf16 %v10614_v58  ;;  %v10616_v48 = vunpack.i.h.bf16 %v10614_v58  ;;  %s16189_s26 = sld [smem:[#allocation22_spill]] }
 0xaca   : > { %v10610_v39 = vunpack.i.l.bf16 %v10609_v7  ;;  %v10611_v60 = vunpack.i.h.bf16 %v10609_v7 }
 0xacc   : > { %v8052_v2 = vsel %vm1038_vm3, %v7755_v47, %v10610_v39  ;;  %v10624_v21 = vpop.permute.xlu1 %10623  ;;  %v8053_v4 = vsel %vm1038_vm3, %v15553_v35, %v10611_v60 }
 0xacd   : > { %v10619_v49 = vpop.permute.xlu0 %10618  ;;  %v10625_v22 = vunpack.i.l.bf16 %v10624_v21  ;;  %v8060_v17 = vsel %vm2291_vm5, %v8052_v2, %v10615_v45  ;;  %v10626_v41 = vunpack.i.h.bf16 %v10624_v21  ;;  %v8061_v46 = vsel %vm2291_vm5, %v8053_v4, %v10616_v48 }
 0xace   : > { %v10620_v8 = vunpack.i.l.bf16 %v10619_v49  ;;  %v10621_v34 = vunpack.i.h.bf16 %v10619_v49 }
 0xad0   : > { %v8068_v43 = vsel %vm2357_vm7, %v8060_v17, %v10620_v8  ;;  %v8069_v18 = vsel %vm2357_vm7, %v8061_v46, %v10621_v34 }
 0xad1   : > { %v10629_v28 = vpop.permute.xlu0 %10628  ;;  %v8076_v35 = vsel %vm2423_vm9, %v8068_v43, %v10625_v22  ;;  %v8077_v51 = vsel %vm2423_vm9, %v8069_v18, %v10626_v41 }
 0xad2   : > { %v10630_v42 = vunpack.i.l.bf16 %v10629_v28  ;;  %v10631_v57 = vunpack.i.h.bf16 %v10629_v28 }
 0xad4   : > { %v8085_v36 = vsel %vm8084_vm15, %v8076_v35, %v10630_v42  ;;  %v8086_v53 = vsel %vm8084_vm15, %v8077_v51, %v10631_v57 }
 0xae4   : > { %v10639_v55 = vpop.permute.xlu0 %10638 }
 0xae5   : > { %v10634_v3 = vpop.permute.xlu1 %10633  ;;  %v10640_v30 = vunpack.i.l.bf16 %v10639_v55  ;;  %v10641_v59 = vunpack.i.h.bf16 %v10639_v55 }
 0xae6   : > { %v10636_v37 = vunpack.i.h.bf16 %v10634_v3  ;;  %v10635_v32 = vunpack.i.l.bf16 %v10634_v3 }
 0xae8   : > { %v8094_v56 = vsel %vm8093_vm0, %v8085_v36, %v10635_v32  ;;  %v8095_v61 = vsel %vm8093_vm0, %v8086_v53, %v10636_v37  ;;  %v10649_v54 = vpop.permute.xlu0 %10648 }
 0xae9   : > { %v8103_v63 = vsel %vm8102_vm1, %v8094_v56, %v10640_v30  ;;  %v8104_v27 = vsel %vm8102_vm1, %v8095_v61, %v10641_v59  ;;  %v10644_v5 = vpop.permute.xlu1 %10643  ;;  %v10650_v38 = vunpack.i.l.bf16 %v10649_v54 }
 0xaea   : > { %8225 = vmatmul.mubr.f32.vlgmr.msra.gmra.mrb[72].mxu0 %v8103_v63  ;;  %v10645_v52 = vunpack.i.l.bf16 %v10644_v5  ;;  %v10646_v31 = vunpack.i.h.bf16 %v10644_v5 }
 0xaeb   : > { %9675 = vmatprep.mubr.msk.f32.mxu0 %vm1038_vm3, %v15584_v44  ;;  %10174 = vmatpush3.msra.mxu0 %v15614_v33  ;;  %v10651_v44 = vunpack.i.h.bf16 %v10649_v54 }
 0xaec   : > { %v8054_v15 = vsel %vm1038_vm3, %v15549_v0, %v10645_v52  ;;  %v10659_v25 = vpop.permute.xlu0 %10658  ;;  %v8055_v33 = vsel %vm1038_vm3, %v15580_v16, %v10646_v31 }
 0xaed   : > { %v10654_v40 = vpop.permute.xlu1 %10653  ;;  %v8062_v1 = vsel %vm2291_vm5, %v8054_v15, %v10650_v38  ;;  %v8063_v58 = vsel %vm2291_vm5, %v8055_v33, %v10651_v44  ;;  %v10661_v49 = vunpack.i.h.bf16 %v10659_v25 }
 0xaee   : > { %8230 = vmatmul.mubr.f32.gmra.mrb[74].mxu0 %v8104_v27  ;;  %v10655_v11 = vunpack.i.l.bf16 %v10654_v40  ;;  %v10656_v62 = vunpack.i.h.bf16 %v10654_v40 }
 0xaef   : > { %9676 = vmatprep.mubr.msk.f32.mxu0 %vm1038_vm3, %v15596_v29  ;;  %v10660_v29 = vunpack.i.l.bf16 %v10659_v25 }
 0xaf0   : > { %v8070_v50 = vsel %vm2357_vm7, %v8062_v1, %v10655_v11  ;;  %v8071_v39 = vsel %vm2357_vm7, %v8063_v58, %v10656_v62 }
 0xaf1   : > { %v10664_v13 = vpop.permute.xlu1 %10663  ;;  %v8078_v45 = vsel %vm2423_vm9, %v8070_v50, %v10660_v29  ;;  %v8079_v48 = vsel %vm2423_vm9, %v8071_v39, %v10661_v49 }
 0xaf2   : > { %v10665_v7 = vunpack.i.l.bf16 %v10664_v13  ;;  %v10666_v0 = vunpack.i.h.bf16 %v10664_v13 }
 0xaf4   : > { %v8087_v8 = vsel %vm8084_vm15, %v8078_v45, %v10665_v7  ;;  %v8088_v22 = vsel %vm8084_vm15, %v8079_v48, %v10666_v0 }
 0xb04   : > { %v10674_v47 = vpop.permute.xlu1 %10673 }
 0xb05   : > { %v10669_v60 = vpop.permute.xlu0 %10668  ;;  %v10675_v2 = vunpack.i.l.bf16 %v10674_v47  ;;  %v10676_v4 = vunpack.i.h.bf16 %v10674_v47 }
 0xb06   : > { %v10671_v21 = vunpack.i.h.bf16 %v10669_v60  ;;  %v10670_v16 = vunpack.i.l.bf16 %v10669_v60 }
 0xb08   : > { %v8096_v28 = vsel %vm8093_vm0, %v8087_v8, %v10670_v16  ;;  %v8097_v17 = vsel %vm8093_vm0, %v8088_v22, %v10671_v21  ;;  %v10684_v46 = vpop.permute.xlu1 %10683 }
 0xb09   : > { %v8105_v34 = vsel %vm8102_vm1, %v8096_v28, %v10675_v2  ;;  %v8106_v43 = vsel %vm8102_vm1, %v8097_v17, %v10676_v4  ;;  %v10679_v42 = vpop.permute.xlu0 %10678  ;;  %v10685_v3 = vunpack.i.l.bf16 %v10684_v46  ;;  %v10686_v30 = vunpack.i.h.bf16 %v10684_v46 }
 0xb0a   : > { %8235 = vmatmul.mubr.f32.gmra.mrb[76].mxu0 %v8105_v34  ;;  %v10680_v18 = vunpack.i.l.bf16 %v10679_v42  ;;  %v10681_v57 = vunpack.i.h.bf16 %v10679_v42 }
 0xb0b   : > { %9677 = vmatprep.mubr.msk.f32.mxu0 %vm1038_vm3, %v15611_v6 }
 0xb0c   : > { %v8056_v35 = vsel %vm1038_vm3, %v15590_v23, %v10680_v18  ;;  %v10694_v37 = vpop.permute.xlu1 %10693  ;;  %v8057_v6 = vsel %vm1038_vm3, %v15607_v26, %v10681_v57 }
 0xb0d   : > { %v10689_v41 = vpop.permute.xlu0 %10688  ;;  %v10695_v56 = vunpack.i.l.bf16 %v10694_v37  ;;  %v10696_v53 = vunpack.i.h.bf16 %v10694_v37  ;;  %v8065_v61 = vsel %vm2291_vm5, %v8057_v6, %v10686_v30  ;;  %v8267_v37 = vld [vmem:[#allocation3 + $0x31] sm:$0xff]  ;;  %v8270_v6 = vld [vmem:[#allocation3 + $0x61] sm:$0xff] }
 0xb0e   : > { %8240 = vmatmul.mubr.f32.gmra.mrb[78].mxu0 %v8106_v43  ;;  %v10690_v32 = vunpack.i.l.bf16 %v10689_v41  ;;  %v10691_v36 = vunpack.i.h.bf16 %v10689_v41  ;;  %v7827_v43 = vld [vmem:[#allocation7 + $0x92] sm:$0xff] }
 0xb0f   : > { %9678 = vmatprep.mubr.msk.f32.mxu0 %vm1038_vm3, %v15627_v24  ;;  %v8064_v24 = vsel %vm2291_vm5, %v8056_v35, %v10685_v3  ;;  %v8266_v35 = vld [vmem:[#allocation3 + $0x21] sm:$0xff]  ;;  %v8269_v30 = vld [vmem:[#allocation3 + $0x51] sm:$0xff] }
 0xb10   : > { %v8072_v59 = vsel %vm2357_vm7, %v8064_v24, %v10690_v32  ;;  %v8073_v27 = vsel %vm2357_vm7, %v8065_v61, %v10691_v36  ;;  %v8268_v32 = vld [vmem:[#allocation3 + $0x41] sm:$0xff]  ;;  %v8271_v36 = vld [vmem:[#allocation3 + $0x71] sm:$0xff] }
 0xb11   : > { %v10699_v55 = vpop.permute.xlu0 %10698  ;;  %v8080_v26 = vsel %vm2423_vm9, %v8072_v59, %v10695_v56  ;;  %v8081_v11 = vsel %vm2423_vm9, %v8073_v27, %v10696_v53  ;;  %v8272_v56 = vld [vmem:[#allocation3 + $0x81] sm:$0xff]  ;;  %v8456_v24 = vld [vmem:[%s16187_s22] sm:$0xff] }
 0xb12   : > { %v10700_v63 = vunpack.i.l.bf16 %v10699_v55  ;;  %v10701_v23 = vunpack.i.h.bf16 %v10699_v55  ;;  %v8265_v55 = vld [vmem:[#allocation3 + $0x11] sm:$0xff] }
 0xb14   : > { %v8089_v38 = vsel %vm8084_vm15, %v8080_v26, %v10700_v63  ;;  %v8090_v33 = vsel %vm8084_vm15, %v8081_v11, %v10701_v23 }
 0xb24   : > { %v8009_v51 = vpop.permute.xlu0 %8008 }
 0xb27   : > { %v10704_v5 = vpop.permute.xlu1 %10703 }
 0xb28   : > { %v10706_v54 = vunpack.i.h.bf16 %v10704_v5  ;;  %v10705_v40 = vunpack.i.l.bf16 %v10704_v5  ;;  %v10709_v52 = vpop.permute.xlu0 %10708 }
 0xb29   : > { %v10710_v31 = vunpack.i.l.bf16 %v10709_v52  ;;  %v10711_v25 = vunpack.i.h.bf16 %v10709_v52 }
 0xb2a   : > { %v8098_v15 = vsel %vm8093_vm0, %v8089_v38, %v10705_v40  ;;  %v8099_v29 = vsel %vm8093_vm0, %v8090_v33, %v10706_v54 }
 0xb2b   : > { %v10714_v44 = vpop.permute.xlu1 %10713  ;;  %v8107_v13 = vsel %vm8102_vm1, %v8098_v15, %v10710_v31  ;;  %v8108_v39 = vsel %vm8102_vm1, %v8099_v29, %v10711_v25  ;;  %v9682_v25 = vld [vmem:[%s16188_s23] ss:$0 sm:$0xff]  ;;  %s16197_s23 = sld [smem:[#allocation30_spill]] }
 0xb2c   : > { %v10715_v62 = vunpack.i.l.bf16 %v10714_v44  ;;  %v10719_v1 = vpop.permute.xlu0 %10718  ;;  %8245 = vmatmul.mubr.f32.gmra.mrb[80].mxu0 %v8107_v13  ;;  %v10716_v50 = vunpack.i.h.bf16 %v10714_v44  ;;  %v9673_v44 = vld [vmem:[%s16189_s26] ss:$0 sm:$0xff]  ;;  %s16194_s26 = smov 112  }
 0xb2d   : > { %v10720_v7 = vunpack.i.l.bf16 %v10719_v1  ;;  %9679 = vmatprep.mubr.msk.f32.mxu0 %vm1038_vm3, %v15644_v19  ;;  %v10721_v0 = vunpack.i.h.bf16 %v10719_v1 }
 0xb2e   : > { %v8058_v58 = vsel %vm1038_vm3, %v15621_v9, %v10715_v62  ;;  %v8059_v45 = vsel %vm1038_vm3, %v15639_v20, %v10716_v50  ;;  %v9691_v50 = vld [vmem:[%s16190_s17] ss:$0 sm:$0xff]  ;;  %s16193_s17 = smov 80  }
 0xb2f   : > { %v10724_v49 = vpop.permute.xlu1 %10723  ;;  %v8066_v2 = vsel %vm2291_vm5, %v8058_v58, %v10720_v7  ;;  %v8067_v48 = vsel %vm2291_vm5, %v8059_v45, %v10721_v0  ;;  %v9692_v0 = vld [vmem:[%s16191_s5] ss:$0 sm:$0xff]  ;;  %s16192_s5 = sld [smem:[#allocation26_spill]] }
 0xb30   : > { %v10725_v47 = vunpack.i.l.bf16 %v10724_v49  ;;  %v10729_v60 = vpop.permute.xlu0 %10728  ;;  %8250 = vmatmul.mubr.f32.gmra.mrb[82].mxu0 %v8108_v39  ;;  %v10726_v21 = vunpack.i.h.bf16 %v10724_v49 }
 0xb31   : > { %v10730_v16 = vunpack.i.l.bf16 %v10729_v60  ;;  %9680 = vmatprep.mubr.msk.f32.mxu0 %vm1038_vm3, %v15656_v12  ;;  %v10731_v28 = vunpack.i.h.bf16 %v10729_v60 }
 0xb32   : > { %v8074_v19 = vsel %vm2357_vm7, %v8066_v2, %v10725_v47  ;;  %v8075_v34 = vsel %vm2357_vm7, %v8067_v48, %v10726_v21 }
 0xb33   : > { %v7977_v9 = vpop.permute.xlu1 %7976  ;;  %v8082_v8 = vsel %vm2423_vm9, %v8074_v19, %v10730_v16  ;;  %v8083_v42 = vsel %vm2423_vm9, %v8075_v34, %v10731_v28 }
 0xb34   : > { %v8091_v4 = vsel %vm8084_vm15, %v8082_v8, %v7977_v9  ;;  %v7979_v20 = vpop.permute.xlu0 %7978 }
 0xb35   : > { %v8100_v17 = vsel %vm8093_vm0, %v8091_v4, %v8009_v51  ;;  %v8092_v46 = vsel %vm8084_vm15, %v8083_v42, %v7979_v20 }
 0xb37   : > { %v8041_v22 = vpop.permute.xlu1 %8040 }
 0xb38   : > { %v8109_v12 = vsel %vm8102_vm1, %v8100_v17, %v8041_v22  ;;  %v8043_v41 = vpop.permute.xlu0 %8042 }
 0xb39   : > { %8255 = vmatmul.mubr.f32.gmra.mrb[84].mxu0 %v8109_v12 }
 0xb3a   : > { %9681 = vmatprep.mubr.msk.f32.mxu0 %vm1038_vm3, %v7827_v43 }
 0xb3b   : > { %v8011_v18 = vpop.permute.xlu1 %8010 }
 0xb3c   : > { %v8101_v57 = vsel %vm8093_vm0, %v8092_v46, %v8011_v18 }
 0xb3d   : > { %v8110_v3 = vsel %vm8102_vm1, %v8101_v57, %v8043_v41 }
 0xb3e   : > { %8260 = vmatmul.mubr.f32.gmra.mrb[86].mxu0 %v8110_v3 }
 0xb3f   : > { %10175 = vmatprep.mubr.msk.f32.mxu0 %vm900_vm2, %v8265_v55 }
 0xb42   : > { %10176 = vmatmul.mubr.msk.f32.vlgmr.msra.gmra.mrb[88].mxu0 %vm900_vm2, %v8266_v35 }
 0xb43   : > { %10178 = vmatprep.mubr.msk.f32.mxu0 %vm900_vm2, %v8267_v37 }
 0xb46   : > { %10179 = vmatmul.mubr.msk.f32.gmra.mrb[90].mxu0 %vm900_vm2, %v8268_v32 }
 0xb47   : > { %10181 = vmatprep.mubr.msk.f32.mxu0 %vm900_vm2, %v8269_v30 }
 0xb4a   : > { %10182 = vmatmul.mubr.msk.f32.gmra.mrb[92].mxu0 %vm900_vm2, %v8270_v6 }
 0xb4b   : > { %10184 = vmatprep.mubr.msk.f32.mxu0 %vm900_vm2, %v8271_v36 }
 0xb4e   : > { %10185 = vmatmul.mubr.msk.f32.gmra.mrb[94].mxu0 %vm900_vm2, %v8272_v56  ;;  %vm8600_vm2 = vcmask 125952  }
 0xb4f   : > { %10203 = vmatprep.mubr.msk.f32.mxu0 %vm2423_vm9, %v8456_v24 }
 0xbbd   : > { %v8226_v51 = vpop.f32.mrb[72].mxu0 }
 0xbbe   : > { %v8228_v59 = vpop.f32.mrb[73].mxu0  ;;  %v8227_v29 = vadd.f32 %v9673_v44, %v8226_v51 }
 0xbc1   : > { %v8231_v63 = vpop.f32.mrb[74].mxu0 }
 0xbc2   : > { %v8233_v53 = vpop.f32.mrb[75].mxu0  ;;  %v8232_v33 = vadd.f32 %v9673_v44, %v8231_v63 }
 0xbdd   : > { %v8236_v61 = vpop.f32.mrb[76].mxu0 }
 0xbde   : > { %v8238_v27 = vpop.f32.mrb[77].mxu0  ;;  %v8237_v21 = vadd.f32 %v9673_v44, %v8236_v61 }
 0xbe1   : > { %v8241_v23 = vpop.f32.mrb[78].mxu0 }
 0xbe2   : > { %v8243_v5 = vpop.f32.mrb[79].mxu0  ;;  %v8242_v47 = vadd.f32 %v9673_v44, %v8241_v23 }
 0xbff   : > { %v8246_v54 = vpop.f32.mrb[80].mxu0 }
 0xc00   : > { %v8248_v40 = vpop.f32.mrb[81].mxu0  ;;  %v8247_v42 = vadd.f32 %v9673_v44, %v8246_v54 }
 0xc03   : > { %v8251_v52 = vpop.f32.mrb[82].mxu0 }
 0xc04   : > { %v8253_v26 = vpop.f32.mrb[83].mxu0  ;;  %v8252_v34 = vadd.f32 %v9673_v44, %v8251_v52 }
 0xc0c   : > { %v8256_v31 = vpop.f32.mrb[84].mxu0 }
 0xc0d   : > { %v8258_v38 = vpop.f32.mrb[85].mxu0  ;;  %v8257_v24 = vadd.f32 %v9673_v44, %v8256_v31 }
 0xc11   : > { %v8261_v15 = vpop.f32.mrb[86].mxu0 }
 0xc12   : > { %v8263_v11 = vpop.f32.mrb[87].mxu0  ;;  %v8262_v32 = vadd.f32 %v9673_v44, %v8261_v15 }
 0xc15   : > { %v10177_v13 = vpop.f32.mrb[88].mxu0 }
 0xc16   : > { %v8377_v62 = vadd.f32 %v10177_v13, %v9682_v25  ;;  %v8371_v1 = vpop.f32.mrb[89].mxu0  ;;  %v8457_v13 = vld [vmem:[%s16187_s22 + $0x8] sm:$0xff] }
 0xc17   : > { %v8372_v7 = vadd.f32 %v9682_v25, %v8371_v1  ;;  %v8460_v1 = vld [vmem:[%s16187_s22 + $0x20] sm:$0xff] }
 0xc18   : > { %v8411_v58 = vadd.f32 %v8377_v62, %v8232_v33  ;;  %v8458_v33 = vld [vmem:[%s16187_s22 + $0x10] sm:$0xff]  ;;  %v8459_v62 = vld [vmem:[%s16187_s22 + $0x18] sm:$0xff] }
 0xc19   : > { %v8410_v49 = vadd.f32 %v8372_v7, %v8227_v29  ;;  %v10180_v39 = vpop.f32.mrb[90].mxu0  ;;  %v8461_v29 = vld [vmem:[%s16187_s22 + $0x28] sm:$0xff]  ;;  %v8463_v7 = vld [vmem:[%s16187_s22 + $0x38] sm:$0xff] }
 0xc1a   : > { %v8426_v60 = vmul.f32 %v9691_v50, %v8411_v58  ;;  %v8387_v45 = vadd.f32 %v10180_v39, %v9682_v25  ;;  %v8381_v2 = vpop.f32.mrb[91].mxu0  ;;  %v8786_v58 = vld [vmem:[%s16192_s5] sm:$0xff] }
 0xc1b   : > { %v8425_v16 = vmul.f32 %v9691_v50, %v8410_v49  ;;  %v8382_v19 = vadd.f32 %v9682_v25, %v8381_v2  ;;  %v8787_v49 = vld [vmem:[%s16192_s5 + $0x8] sm:$0xff] }
 0xc1c   : > { %v8413_v9 = vadd.f32 %v8387_v45, %v8242_v47  ;;  %v8441_v8 = vadd.f32 %v9692_v0, %v8426_v60  ;;  %v10424_v39 = vpack.c.bf16 %v8787_v49, %v8786_v58  ;;  %v8789_v47 = vld [vmem:[%s16192_s5 + $0x18] sm:$0xff]  ;;  %v8790_v45 = vld [vmem:[%s16192_s5 + $0x20] sm:$0xff]  ;;  %v8791_v2 = vld [vmem:[%s16192_s5 + $0x28] sm:$0xff] }
 0xc1d   : > { %v8412_v48 = vadd.f32 %v8382_v19, %v8237_v21  ;;  %v10183_v28 = vpop.f32.mrb[92].mxu0  ;;  %v8440_v4 = vadd.f32 %v9692_v0, %v8425_v16  ;;  %v8792_v21 = vld [vmem:[%s16192_s5 + $0x30] sm:$0xff]  ;;  %v10430_v16 = vpack.c.bf16 %v8791_v2, %v8790_v45  ;;  %v8793_v19 = vld [vmem:[%s16192_s5 + $0x38] sm:$0xff] }
 0xc1e   : > { %v8428_v20 = vmul.f32 %v9691_v50, %v8413_v9  ;;  %v8397_v22 = vadd.f32 %v10183_v28, %v9682_v25  ;;  %v8391_v17 = vpop.f32.mrb[93].mxu0  ;;  %v8449_v43 = vmax.f32 %v8441_v8, 0.0  ;;  %10425 = vmatpush1.bf16.msra.mxu1 %v10424_v39  ;;  %v10433_v9 = vpack.c.bf16 %v8793_v19, %v8792_v21  ;;  %v8794_v8 = vld [vmem:[%s16192_s5 + $0x40] sm:$0xff] }
 0xc1f   : > { %v8427_v12 = vmul.f32 %v9691_v50, %v8412_v48  ;;  %v8392_v41 = vadd.f32 %v9682_v25, %v8391_v17  ;;  %v8448_v46 = vmax.f32 %v8440_v4, 0.0  ;;  %10426 = vmatprep.subr.bf16.mxu1 %v16144_v14  ;;  %v8795_v48 = vld [vmem:[%s16192_s5 + $0x48] sm:$0xff]  ;;  %v8796_v4 = vld [vmem:[%s16192_s5 + $0x50] sm:$0xff] }
 0xc20   : > { %v8415_v18 = vadd.f32 %v8397_v22, %v8252_v34  ;;  %v8443_v57 = vadd.f32 %v9692_v0, %v8428_v20  ;;  %v10436_v28 = vpack.c.bf16 %v8795_v48, %v8794_v8  ;;  %v8797_v34 = vld [vmem:[%s16192_s5 + $0x58] sm:$0xff]  ;;  %v8798_v22 = vld [vmem:[%s16192_s5 + $0x60] sm:$0xff]  ;;  %v8799_v17 = vld [vmem:[%s16192_s5 + $0x68] sm:$0xff] }
 0xc21   : > { %v8414_v3 = vadd.f32 %v8392_v41, %v8247_v42  ;;  %v10186_v55 = vpop.f32.mrb[94].mxu0  ;;  %v10407_v35 = vpack.c.bf16 %v8449_v43, %v8448_v46  ;;  %v8442_v37 = vadd.f32 %v9692_v0, %v8427_v12  ;;  %v10439_v20 = vpack.c.bf16 %v8797_v34, %v8796_v4  ;;  %v8800_v42 = vld [vmem:[%s16192_s5 + $0x70] sm:$0xff]  ;;  %v8801_v12 = vld [vmem:[%s16192_s5 + $0x78] sm:$0xff] }
 0xc22   : > { %v8430_v30 = vmul.f32 %v9691_v50, %v8415_v18  ;;  %v8407_v6 = vadd.f32 %v10186_v55, %v9682_v25  ;;  %v8401_v36 = vpop.f32.mrb[95].mxu0  ;;  %v8451_v56 = vmax.f32 %v8443_v57, 0.0  ;;  %v10442_v43 = vpack.c.bf16 %v8799_v17, %v8798_v22 }
 0xc23   : > { %v8429_v51 = vmul.f32 %v9691_v50, %v8414_v3  ;;  %v8402_v59 = vadd.f32 %v9682_v25, %v8401_v36  ;;  %10408 = vmatprep.subr.bf16.mxu0 %v10407_v35  ;;  %v8450_v63 = vmax.f32 %v8442_v37, 0.0  ;;  %v10445_v41 = vpack.c.bf16 %v8801_v12, %v8800_v42 }
 0xc24   : > { %v8417_v53 = vadd.f32 %v8407_v6, %v8262_v32  ;;  %10410 = vmatpush3.bf16.msra.mxu0 %v10407_v35  ;;  %v8445_v61 = vadd.f32 %v9692_v0, %v8430_v30 }
 0xc25   : > { %v8416_v27 = vadd.f32 %v8402_v59, %v8257_v24  ;;  %v10411_v23 = vpack.c.bf16 %v8451_v56, %v8450_v63  ;;  %v8444_v5 = vadd.f32 %v9692_v0, %v8429_v51  ;;  %v8802_v63 = vld [vmem:[%s16192_s5 + $0x80] sm:$0xff] }
 0xc26   : > { %v8432_v54 = vmul.f32 %v9691_v50, %v8417_v53  ;;  %v8453_v40 = vmax.f32 %v8445_v61, 0.0 }
 0xc27   : > { %v8431_v52 = vmul.f32 %v9691_v50, %v8416_v27  ;;  %10412 = vmatprep.subr.bf16.mxu0 %v10411_v23  ;;  %v8452_v26 = vmax.f32 %v8444_v5, 0.0  ;;  %v8462_v50 = vld [vmem:[%s16187_s22 + $0x30] sm:$0xff] }
 0xc28   : > { %10414 = vmatpush3.bf16.msra.mxu0 %v10411_v23  ;;  %v8447_v31 = vadd.f32 %v9692_v0, %v8432_v54  ;;  %v8803_v23 = vld [vmem:[%s16192_s5 + $0x88] sm:$0xff] }
 0xc29   : > { %v10415_v38 = vpack.c.bf16 %v8453_v40, %v8452_v26  ;;  %v8446_v15 = vadd.f32 %v9692_v0, %v8431_v52  ;;  %v8788_v0 = vld [vmem:[%s16192_s5 + $0x10] sm:$0xff]  ;;  %v10448_v40 = vpack.c.bf16 %v8803_v23, %v8802_v63 }
 0xc2a   : > { %v8455_v11 = vmax.f32 %v8447_v31, 0.0  ;;  %v10427_v60 = vpack.c.bf16 %v8789_v47, %v8788_v0 }
 0xc2b   : > { %10416 = vmatprep.subr.bf16.mxu0 %v10415_v38  ;;  %v8454_v25 = vmax.f32 %v8446_v15, 0.0 }
 0xc2c   : > { %10418 = vmatpush3.bf16.msra.mxu0 %v10415_v38  ;;  %10428 = vmatpush1.bf16.msra.mxu1 %v10427_v60 }
 0xc2d   : > { %v10419_v44 = vpack.c.bf16 %v8455_v11, %v8454_v25  ;;  %10429 = vmatprep.subr.bf16.mxu1 %v16144_v14 }
 0xc2f   : > { %10420 = vmatprep.subr.bf16.mxu0 %v10419_v44 }
 0xc30   : > { %10422 = vmatpush3.bf16.msra.mxu0 %v10419_v44  ;;  %10431 = vmatpush1.bf16.msra.mxu1 %v10430_v16 }
 0xc31   : > { %10432 = vmatprep.subr.bf16.mxu1 %v16144_v14 }
 0xc33   : > { %10204 = vmatmul.mubr.msk.f32.vlgmr.msra.gmra.mrb[96].mxu0 %vm2423_vm9, %v8457_v13 }
 0xc34   : > { %10206 = vmatprep.mubr.msk.f32.mxu0 %vm2423_vm9, %v8458_v33  ;;  %10434 = vmatpush1.bf16.msra.mxu1 %v10433_v9 }
 0xc35   : > { %10435 = vmatprep.subr.bf16.mxu1 %v16144_v14 }
 0xc37   : > { %10207 = vmatmul.mubr.msk.f32.gmra.mrb[98].mxu0 %vm2423_vm9, %v8459_v62 }
 0xc38   : > { %10209 = vmatprep.mubr.msk.f32.mxu0 %vm2423_vm9, %v8460_v1  ;;  %10437 = vmatpush1.bf16.msra.mxu1 %v10436_v28 }
 0xc39   : > { %10438 = vmatprep.subr.bf16.mxu1 %v16144_v14 }
 0xc3b   : > { %10210 = vmatmul.mubr.msk.f32.gmra.mrb[100].mxu0 %vm2423_vm9, %v8461_v29 }
 0xc3c   : > { %10212 = vmatprep.mubr.msk.f32.mxu0 %vm2423_vm9, %v8462_v50  ;;  %10440 = vmatpush1.bf16.msra.mxu1 %v10439_v20 }
 0xc3d   : > { %10441 = vmatprep.subr.bf16.mxu1 %v16144_v14 }
 0xc3f   : > { %10213 = vmatmul.mubr.msk.f32.gmra.mrb[102].mxu0 %vm2423_vm9, %v8463_v7 }
 0xc40   : > { %10443 = vmatpush1.bf16.msra.mxu1 %v10442_v43 }
 0xc41   : > { %10444 = vmatprep.subr.bf16.mxu1 %v16144_v14 }
 0xc44   : > { %10446 = vmatpush1.bf16.msra.mxu1 %v10445_v41 }
 0xc45   : > { %10447 = vmatprep.subr.bf16.mxu1 %v16144_v14 }
 0xc48   : > { %10449 = vmatpush1.bf16.msra.mxu1 %v10448_v40 }
 0xd06   : > { %v10205_v46 = vpop.f32.mrb[96].mxu0 }
 0xd07   : > { %v8596_v18 = vcombine.high %v10205_v46, %v10205_v46  ;;  %8603 = vst.msk [vmem:[#allocation8 + $0x19] sm:$0xf] %vm8600_vm2, %v10205_v46  ;;  %v8554_v57 = vpop.f32.mrb[97].mxu0 }
 0xd08   : > { %v8595_v3 = vcombine.high %v8554_v57, %v8554_v57  ;;  %8601 = vst.msk [vmem:[#allocation8 + $0x9] sm:$0xf] %vm8600_vm2, %v8554_v57 }
 0xd09   : > { %8604 = vst.msk [vmem:[#allocation8 + $0x21] sm:$0xf] %vm8600_vm2, %v8596_v18 }
 0xd0a   : > { %8602 = vst.msk [vmem:[#allocation8 + $0x11] sm:$0xf] %vm8600_vm2, %v8595_v3  ;;  %v10208_v55 = vpop.f32.mrb[98].mxu0 }
 0xd0b   : > { %v8608_v35 = vcombine.high %v10208_v55, %v10208_v55  ;;  %8614 = vst.msk [vmem:[#allocation9 + $0x19] sm:$0xf] %vm8600_vm2, %v10208_v55  ;;  %v8564_v37 = vpop.f32.mrb[99].mxu0 }
 0xd0c   : > { %v8607_v32 = vcombine.high %v8564_v37, %v8564_v37  ;;  %8612 = vst.msk [vmem:[#allocation9 + $0x9] sm:$0xf] %vm8600_vm2, %v8564_v37 }
 0xd0d   : > { %8615 = vst.msk [vmem:[#allocation9 + $0x21] sm:$0xf] %vm8600_vm2, %v8608_v35 }
 0xd0e   : > { %8613 = vst.msk [vmem:[#allocation9 + $0x11] sm:$0xf] %vm8600_vm2, %v8607_v32  ;;  %v10211_v30 = vpop.f32.mrb[100].mxu0 }
 0xd0f   : > { %v8619_v6 = vcombine.high %v10211_v30, %v10211_v30  ;;  %8625 = vst.msk [vmem:[#allocation10 + $0x19] sm:$0xf] %vm8600_vm2, %v10211_v30  ;;  %v8574_v36 = vpop.f32.mrb[101].mxu0 }
 0xd10   : > { %v8618_v56 = vcombine.high %v8574_v36, %v8574_v36  ;;  %8623 = vst.msk [vmem:[#allocation10 + $0x9] sm:$0xf] %vm8600_vm2, %v8574_v36  ;;  %v10783_v24 = vld [vmem:[#allocation8 + $0x19] ss:$8 sps:$4 sm:$0xff]  }
 0xd11   : > { %8626 = vst.msk [vmem:[#allocation10 + $0x21] sm:$0xf] %vm8600_vm2, %v8619_v6  ;;  %v10782_v51 = vld [vmem:[#allocation8 + $0x9] ss:$8 sps:$4 sm:$0xff]  }
 0xd12   : > { %8624 = vst.msk [vmem:[#allocation10 + $0x11] sm:$0xf] %vm8600_vm2, %v8618_v56  ;;  %v10214_v59 = vpop.f32.mrb[102].mxu0  ;;  %v10732_v27 = vpack.i.bf16 %v10783_v24, %v10782_v51 }
 0xd13   : > { %v8630_v53 = vcombine.high %v10214_v59, %v10214_v59  ;;  %8636 = vst.msk [vmem:[#allocation11 + $0x19] sm:$0xf] %vm8600_vm2, %v10214_v59  ;;  %v8584_v61 = vpop.f32.mrb[103].mxu0 }
 0xd14   : > { %v8629_v5 = vcombine.high %v8584_v61, %v8584_v61  ;;  %8634 = vst.msk [vmem:[#allocation11 + $0x9] sm:$0xf] %vm8600_vm2, %v8584_v61  ;;  %v10785_v54 = vld [vmem:[#allocation9 + $0x18] ss:$8 sps:$4 sm:$0xff]   ;;  %10733 = vrot.lane.b32.xlu0 %v10732_v27, %s16130_s18  ;;  %v9248_v61 = vld [vmem:[%s16197_s23] sm:$0xff]  ;;  %v9249_v27 = vld [vmem:[%s16197_s23 + $0x8] sm:$0xff] }
 0xd15   : > { %8637 = vst.msk [vmem:[#allocation11 + $0x21] sm:$0xf] %vm8600_vm2, %v8630_v53  ;;  %v10784_v52 = vld [vmem:[#allocation9 + $0x8] ss:$8 sps:$4 sm:$0xff]   ;;  %v10795_v50 = vld [vmem:[#allocation9 + $0x19] ss:$8 sps:$4 sm:$0xff]   ;;  %v15880_v23 = vpack.c.bf16 %v9249_v27, %v9248_v61 }
 0xd16   : > { %8635 = vst.msk [vmem:[#allocation11 + $0x11] sm:$0xf] %vm8600_vm2, %v8629_v5  ;;  %v10737_v26 = vpack.i.bf16 %v10785_v54, %v10784_v52  ;;  %v10789_v25 = vld [vmem:[#allocation9 + $0x9] ss:$8 sps:$4 sm:$0xff]  }
 0xd17   : > { %v10786_v31 = vld [vmem:[#allocation10 + $0x1] ss:$8 sps:$4 sm:$0xff]  }
 0xd18   : > { %10738 = vrot.lane.b32.xlu1 %v10737_v26, %s16128_s2  ;;  %s16195_s2 = smov 96   ;;  %v10796_v7 = vld [vmem:[#allocation10 + $0x19] ss:$8 sps:$4 sm:$0xff]  }
 0xd19   : > { %v10787_v38 = vld [vmem:[#allocation10 + $0x11] ss:$8 sps:$4 sm:$0xff]  }
 0xd1a   : > { %v10742_v15 = vpack.i.bf16 %v10787_v38, %v10786_v31  ;;  %v10792_v62 = vld [vmem:[#allocation10 + $0x9] ss:$8 sps:$4 sm:$0xff]  }
 0xd1b   : > { %v10790_v44 = vld [vmem:[#allocation11 + $0x1] ss:$8 sps:$4 sm:$0xff]  }
 0xd1c   : > { %10743 = vrot.lane.b32.xlu1 %v10742_v15, %s16123_s16  ;;  %v10794_v29 = vld [vmem:[#allocation11 + $0x18] ss:$8 sps:$4 sm:$0xff]   ;;  %s16196_s16 = sld [smem:[#allocation28_spill]] }
 0xd1d   : > { %v10788_v11 = vld [vmem:[#allocation11 + $0x9] ss:$8 sps:$4 sm:$0xff]   ;;  %v10799_v35 = vld [vmem:[#allocation11 + $0x19] ss:$8 sps:$4 sm:$0xff]  }
 0xd1e   : > { %v10791_v13 = vld [vmem:[#allocation11 + $0x11] ss:$8 sps:$4 sm:$0xff]   ;;  %9702 = vmatprep.mubr.msk.f32.mxu1 %vm1038_vm3, %v10788_v11  ;;  %v10797_v45 = vld [vmem:[#allocation11] ss:$8 sps:$4 sm:$0xff]  }
 0xd1f   : > { %v10747_v33 = vpack.i.bf16 %v10791_v13, %v10790_v44  ;;  %v10793_v1 = vld [vmem:[#allocation11 + $0x8] ss:$8 sps:$4 sm:$0xff]  }
 0xd20   : > { %8736 = vrot.lane.b32.xlu1 %v10789_v25, %s16193_s17  ;;  %v10798_v2 = vld [vmem:[#allocation11 + $0x10] ss:$8 sps:$4 sm:$0xff]  }
 0xd21   : > { %10748 = vrot.lane.b32.xlu0 %v10747_v33, %s16126_s11 }
 0xd22   : > { %v9079_v56 = vld [vmem:[%s16196_s16 + $0x100] sm:$0xff]  ;;  %v9080_v24 = vld [vmem:[%s16196_s16 + $0x108] sm:$0xff]  ;;  %v9081_v51 = vld [vmem:[%s16196_s16 + $0x110] sm:$0xff] }
 0xd23   : > { %v10482_v59 = vpack.c.bf16 %v9080_v24, %v9079_v56  ;;  %v9082_v63 = vld [vmem:[%s16196_s16 + $0x118] sm:$0xff]  ;;  %v9063_v5 = vld [vmem:[%s16196_s16 + $0x80] sm:$0xff]  ;;  %v9064_v54 = vld [vmem:[%s16196_s16 + $0x88] sm:$0xff] }
 0xd24   : > { %8760 = vrot.lane.b32.xlu1 %v10792_v62, %s16194_s26  ;;  %v10486_v53 = vpack.c.bf16 %v9082_v63, %v9081_v51  ;;  %v9047_v40 = vld [vmem:[%s16196_s16] sm:$0xff]  ;;  %v10450_v52 = vpack.c.bf16 %v9064_v54, %v9063_v5  ;;  %v9048_v26 = vld [vmem:[%s16196_s16 + $0x8] sm:$0xff]  ;;  %v9065_v31 = vld [vmem:[%s16196_s16 + $0x90] sm:$0xff] }
 0xd25   : > { %8748 = vrot.lane.b32.xlu0 %v10793_v1, %s16195_s2  ;;  %10483 = vmatprep.subr.bf16.mxu1 %v10482_v59  ;;  %v9066_v38 = vld [vmem:[%s16196_s16 + $0x98] sm:$0xff]  ;;  %v10452_v15 = vpack.c.bf16 %v9048_v26, %v9047_v40  ;;  %v9049_v25 = vld [vmem:[%s16196_s16 + $0x10] sm:$0xff]  ;;  %v9067_v13 = vld [vmem:[%s16196_s16 + $0xa0] sm:$0xff] }
 0xd26   : > { %v10454_v11 = vpack.c.bf16 %v9066_v38, %v9065_v31  ;;  %v9050_v44 = vld [vmem:[%s16196_s16 + $0x18] sm:$0xff]  ;;  %10451 = vmatprep.subr.bf16.mxu0 %v10450_v52  ;;  %v9068_v33 = vld [vmem:[%s16196_s16 + $0xa8] sm:$0xff]  ;;  %v9077_v56 = vld [vmem:[%s16196_s16 + $0xf0] sm:$0xff] }
 0xd27   : > { %10453 = vmatpush3.bf16.msra.mxu0 %v10452_v15  ;;  %v10456_v62 = vpack.c.bf16 %v9050_v44, %v9049_v25  ;;  %v10458_v1 = vpack.c.bf16 %v9068_v33, %v9067_v13  ;;  %v9078_v24 = vld [vmem:[%s16196_s16 + $0xf8] sm:$0xff]  ;;  %v9061_v13 = vld [vmem:[%s16196_s16 + $0x70] sm:$0xff] }
 0xd28   : > { %8750 = vrot.lane.b32.xlu1 %v10794_v29, %s16195_s2  ;;  %10455 = vmatprep.subr.bf16.mxu0 %v10454_v11  ;;  %v9051_v29 = vld [vmem:[%s16196_s16 + $0x20] sm:$0xff]  ;;  %v10478_v51 = vpack.c.bf16 %v9078_v24, %v9077_v56 }
 0xd29   : > { %8738 = vrot.lane.b32.xlu0 %v10795_v50, %s16193_s17  ;;  %v9052_v50 = vld [vmem:[%s16196_s16 + $0x28] sm:$0xff]  ;;  %s16198_s17 = sld [smem:[#allocation27_spill]]  ;;  %v10808_v26 = vld [vmem:[#allocation8 + $0x9] ss:$8 sps:$4 sm:$0xff]  }
 0xd2b   : > { %10457 = vmatpush3.bf16.msra.mxu0 %v10456_v62 }
 0xd2c   : > { %10459 = vmatprep.subr.bf16.mxu0 %v10458_v1 }
 0xd2d   : > { %8762 = vrot.lane.b32.xlu0 %v10796_v7, %s16194_s26  ;;  %v9069_v7 = vld [vmem:[%s16196_s16 + $0xb0] sm:$0xff]  ;;  %s16201_s26 = sld [smem:[#allocation32_spill]] }
 0xd86   : > { %v10734_v39 = vpop.permute.xlu0 %10733 }
 0xd87   : > { %v10735_v28 = vunpack.i.l.bf16 %v10734_v39  ;;  %v10736_v41 = vunpack.i.h.bf16 %v10734_v39 }
 0xd8a   : > { %v10739_v58 = vpop.permute.xlu1 %10738 }
 0xd8b   : > { %v10740_v9 = vunpack.i.l.bf16 %v10739_v58  ;;  %v10741_v4 = vunpack.i.h.bf16 %v10739_v58  ;;  %v9070_v58 = vld [vmem:[%s16196_s16 + $0xb8] sm:$0xff] }
 0xd8c   : > { %v10462_v39 = vpack.c.bf16 %v9070_v58, %v9069_v7  ;;  %v10813_v58 = vld [vmem:[#allocation8 + $0x19] ss:$8 sps:$4 sm:$0xff]  }
 0xd8e   : > { %v10744_v49 = vpop.permute.xlu1 %10743 }
 0xd8f   : > { %v10746_v0 = vunpack.i.h.bf16 %v10744_v49  ;;  %v10745_v47 = vunpack.i.l.bf16 %v10744_v49  ;;  %v10460_v49 = vpack.c.bf16 %v9052_v50, %v9051_v29  ;;  %v9062_v50 = vld [vmem:[%s16196_s16 + $0x78] sm:$0xff] }
 0xd90   : > { %v10480_v7 = vpack.c.bf16 %v9062_v50, %v9061_v13  ;;  %v9385_v13 = vld [vmem:[%s11083_s13 + $0x60] sm:$0xff] }
 0xd91   : > { %v8772_v8 = vsel %vm1038_vm3, %v10797_v45, %v10745_v47  ;;  %v8773_v48 = vsel %vm1038_vm3, %v10798_v2, %v10746_v0  ;;  %v9053_v0 = vld [vmem:[%s16196_s16 + $0x30] sm:$0xff]  ;;  %v9054_v47 = vld [vmem:[%s16196_s16 + $0x38] sm:$0xff]  ;;  %v9072_v45 = vld [vmem:[%s16196_s16 + $0xc8] sm:$0xff]  ;;  %10461 = vmatpush3.bf16.msra.mxu0 %v10460_v49 }
 0xd92   : > { %v8737_v60 = vpop.permute.xlu1 %8736  ;;  %v10464_v2 = vpack.c.bf16 %v9054_v47, %v9053_v0  ;;  %10463 = vmatprep.subr.bf16.mxu0 %v10462_v39 }
 0xd93   : > { %v10749_v21 = vpop.permute.xlu0 %10748 }
 0xd94   : > { %v10751_v16 = vunpack.i.h.bf16 %v10749_v21  ;;  %v10750_v19 = vunpack.i.l.bf16 %v10749_v21 }
 0xd95   : > { %10465 = vmatpush3.bf16.msra.mxu0 %v10464_v2 }
 0xd96   : > { %v8774_v34 = vsel %vm2291_vm5, %v8772_v8, %v10750_v19  ;;  %v8775_v20 = vsel %vm2291_vm5, %v8773_v48, %v10751_v16  ;;  %v8761_v22 = vpop.permute.xlu1 %8760  ;;  %v9055_v16 = vld [vmem:[%s16196_s16 + $0x40] sm:$0xff]  ;;  %v9056_v19 = vld [vmem:[%s16196_s16 + $0x48] sm:$0xff]  ;;  %v9074_v8 = vld [vmem:[%s16196_s16 + $0xd8] sm:$0xff] }
 0xd97   : > { %v8749_v17 = vpop.permute.xlu0 %8748  ;;  %v8776_v43 = vsel %vm2357_vm7, %v8774_v34, %v10740_v9  ;;  %v8777_v12 = vsel %vm2357_vm7, %v8775_v20, %v10741_v4  ;;  %vm1123_vm7 = vcmask 253952   ;;  %v9073_v9 = vld [vmem:[%s16196_s16 + $0xd0] sm:$0xff]  ;;  %v10468_v48 = vpack.c.bf16 %v9056_v19, %v9055_v16  ;;  %v9058_v34 = vld [vmem:[%s16196_s16 + $0x58] sm:$0xff] }
 0xd98   : > { %v8778_v42 = vsel %vm2423_vm9, %v8776_v43, %v10735_v28  ;;  %v8779_v55 = vsel %vm2423_vm9, %v8777_v12, %v10736_v41  ;;  %1131 = vst.msk [vmem:[#allocation12 + $0xd] sm:$0x1] %vm1123_vm7, %v16186_v10  ;;  %1132 = vst.msk [vmem:[#allocation12 + $0x15] sm:$0x1] %vm1123_vm7, %v16186_v10  ;;  %v10470_v28 = vpack.c.bf16 %v9074_v8, %v9073_v9  ;;  %v9057_v4 = vld [vmem:[%s16196_s16 + $0x50] sm:$0xff] }
 0xd99   : > { %v8780_v46 = vsel %vm8084_vm15, %v8778_v42, %v8737_v60  ;;  %1124 = vst.msk [vmem:[#allocation12] sm:$0x1] %vm1123_vm7, %v16186_v10  ;;  %1125 = vst.msk [vmem:[#allocation12 + $0x8] sm:$0x1] %vm1123_vm7, %v16186_v10  ;;  %v9071_v60 = vld [vmem:[%s16196_s16 + $0xc0] sm:$0xff]  ;;  %v10472_v20 = vpack.c.bf16 %v9058_v34, %v9057_v4 }
 0xd9a   : > { %v8782_v18 = vsel %vm8093_vm0, %v8780_v46, %v8749_v17  ;;  %v8751_v37 = vpop.permute.xlu1 %8750  ;;  %1126 = vst.msk [vmem:[#allocation12 + $0x10] sm:$0x1] %vm1123_vm7, %v16186_v10  ;;  %1127 = vst.msk [vmem:[#allocation12 + $0x18] sm:$0x1] %vm1123_vm7, %v16186_v10  ;;  %v10466_v21 = vpack.c.bf16 %v9072_v45, %v9071_v60 }
 0xd9b   : > { %v8784_v57 = vsel %vm8102_vm1, %v8782_v18, %v8761_v22  ;;  %v8739_v3 = vpop.permute.xlu0 %8738  ;;  %1128 = vst.msk [vmem:[#allocation12 + $0x20] sm:$0x1] %vm1123_vm7, %v16186_v10  ;;  %1129 = vst.msk [vmem:[#allocation12 + $0x28] sm:$0x1] %vm1123_vm7, %v16186_v10  ;;  %v9701_v22 = vld [vmem:[%s16198_s17] ss:$0 sm:$0xff] }
 0xd9c   : > { %v8781_v32 = vsel %vm8084_vm15, %v8779_v55, %v8739_v3  ;;  %8880 = vmatmul.mubr.f32.vlgmr.msra.gmra.mrb[96].mxu1 %v8784_v57  ;;  %1130 = vst.msk [vmem:[#allocation12 + $0x5] sm:$0x1] %vm1123_vm7, %v16186_v10  ;;  %1133 = vst.msk [vmem:[#allocation12 + $0x1d] sm:$0x1] %vm1123_vm7, %v16186_v10  ;;  %10467 = vmatprep.subr.bf16.mxu0 %v10466_v21  ;;  %v9075_v3 = vld [vmem:[%s16196_s16 + $0xe0] sm:$0xff]  ;;  %v9076_v55 = vld [vmem:[%s16196_s16 + $0xe8] sm:$0xff] }
 0xd9d   : > { %9703 = vmatprep.mubr.msk.f32.mxu1 %vm1038_vm3, %v10799_v35  ;;  %v8783_v6 = vsel %vm8093_vm0, %v8781_v32, %v8751_v37  ;;  %1134 = vst.msk [vmem:[#allocation12 + $0x25] sm:$0x1] %vm1123_vm7, %v16186_v10  ;;  %1135 = vst.msk [vmem:[#allocation12 + $0x2d] sm:$0x1] %vm1123_vm7, %v16186_v10  ;;  %10485 = vmatpush3.bf16.msra.mxu1 %v10482_v59  ;;  %v9059_v35 = vld [vmem:[%s16196_s16 + $0x60] sm:$0xff]  ;;  %v10474_v32 = vpack.c.bf16 %v9076_v55, %v9075_v3  ;;  %s9712_s17 = sshll.u32 %s11116_s0, 4 }
 0xd9e   : > { %10487 = vmatprep.subr.bf16.mxu1 %v10486_v53  ;;  %10469 = vmatpush3.bf16.msra.mxu0 %v10468_v48  ;;  %s10939_s0 = smov [#allocation13]  }
 0xd9f   : > { %v8763_v30 = vpop.permute.xlu0 %8762  ;;  %10471 = vmatprep.subr.bf16.mxu0 %v10470_v28  ;;  %s10836_s6 = sshll.u32 %s10939_s0, 4  ;;  %s10837_s6 = int_to_ptr.vmem [resolvable:$false] %s10836_s6 }
 0xda0   : > { %v8785_v36 = vsel %vm8102_vm1, %v8783_v6, %v8763_v30  ;;  %v9060_v30 = vld [vmem:[%s16196_s16 + $0x68] sm:$0xff]  ;;  %s10838_s8 = scalar_lea.vmem %s10837_s6, 32 }
 0xda1   : > { %8885 = vmatmul.mubr.f32.gmra.mrb[98].mxu1 %v8785_v36  ;;  %v10476_v6 = vpack.c.bf16 %v9060_v30, %v9059_v35 }
 0xda2   : > { %10489 = vmatpush3.bf16.msra.mxu1 %v10486_v53  ;;  %10473 = vmatpush3.bf16.msra.mxu0 %v10472_v20 }
 0xda3   : > { %10491 = vmatprep.subr.bf16.mxu1 %v15880_v23  ;;  %10475 = vmatprep.subr.bf16.mxu0 %v10474_v32 }
 0xda6   : > { %10477 = vmatpush3.bf16.msra.mxu0 %v10476_v6 }
 0xda7   : > { %10479 = vmatprep.subr.bf16.mxu0 %v10478_v51  ;;  %v9373_v51 = vld [vmem:[%s11083_s13] sm:$0xff] }
 0xdaa   : > { %10481 = vmatpush3.bf16.msra.mxu0 %v10480_v7 }
 0xe6f   : > { %v8881_v17 = vpop.f32.mrb[96].mxu1 }
 0xe70   : > { %v8882_v43 = vadd.f32 %v9701_v22, %v8881_v17  ;;  %v8883_v42 = vpop.f32.mrb[97].mxu1 }
 0xe72   : > { %v8890_v12 = vmax.f32 %v8882_v43, 0.0 }
 0xe74   : > { %v8894_v41 = vcombine.high %v8890_v12, %v8890_v12  ;;  %8900 = vst.msk [vmem:[#allocation12 + $0x9] sm:$0xf] %vm8899_vm8, %v8890_v12  ;;  %v8886_v46 = vpop.f32.mrb[98].mxu1 }
 0xe75   : > { %v8887_v18 = vadd.f32 %v9701_v22, %v8886_v46  ;;  %v8888_v57 = vpop.f32.mrb[99].mxu1 }
 0xe76   : > { %8901 = vst.msk [vmem:[#allocation12 + $0x11] sm:$0xf] %vm8899_vm8, %v8894_v41 }
 0xe77   : > { %v8891_v37 = vmax.f32 %v8887_v18, 0.0 }
 0xe79   : > { %v8895_v36 = vcombine.high %v8891_v37, %v8891_v37  ;;  %8902 = vst.msk [vmem:[#allocation12 + $0x19] sm:$0xf] %vm8899_vm8, %v8891_v37 }
 0xe7b   : > { %8903 = vst.msk [vmem:[#allocation12 + $0x21] sm:$0xf] %vm8899_vm8, %v8895_v36  ;;  %v10800_v59 = vld [vmem:[#allocation12 + $0x1] ss:$8 sps:$4 sm:$0xff]  }
 0xe7c   : > { %v10803_v61 = vld [vmem:[#allocation12 + $0x2] ss:$8 sps:$4 sm:$0xff]  }
 0xe7d   : > { %v10801_v63 = vld [vmem:[#allocation12 + $0xa] ss:$8 sps:$4 sm:$0xff]  }
 0xe7e   : > { %v10752_v53 = vpack.i.bf16 %v10800_v59, %v10801_v63  ;;  %v10806_v27 = vld [vmem:[#allocation12 + $0x8] ss:$8 sps:$4 sm:$0xff]   ;;  %v9374_v59 = vld [vmem:[%s11083_s13 + $0x8] sm:$0xff] }
 0xe7f   : > { %v10816_v47 = vld [vmem:[#allocation12] ss:$8 sps:$4 sm:$0xff]   ;;  %v10495_v63 = vpack.c.bf16 %v9374_v59, %v9373_v51 }
 0xe80   : > { %v10802_v5 = vld [vmem:[#allocation12 + $0x12] ss:$8 sps:$4 sm:$0xff]   ;;  %10753 = vrot.lane.b32.xlu1 %v10752_v53, %s16126_s11  ;;  %v9375_v53 = vld [vmem:[%s11083_s13 + $0x10] sm:$0xff] }
 0xe81   : > { %v10804_v54 = vld [vmem:[#allocation12 + $0x10] ss:$8 sps:$4 sm:$0xff]   ;;  %10223 = vmatprep.mubr.msk.f32.mxu1 %vm2291_vm5, %v10802_v5 }
 0xe82   : > { %v10807_v40 = vld [vmem:[#allocation12 + $0x11] ss:$8 sps:$4 sm:$0xff]   ;;  %v10805_v52 = vld [vmem:[#allocation12 + $0x22] ss:$8 sps:$4 sm:$0xff]   ;;  %v10757_v31 = vpack.i.bf16 %v10803_v61, %v10804_v54 }
 0xe83   : > { %v10762_v38 = vpack.i.bf16 %v10806_v27, %v10807_v40  ;;  %v10809_v15 = vld [vmem:[#allocation12 + $0x11] ss:$8 sps:$4 sm:$0xff]   ;;  %10224 = vmatmul.mubr.msk.f32.vlgmr.msra.gmra.mrb[100].mxu1 %vm2291_vm5, %v10805_v52  ;;  %v10812_v44 = vld [vmem:[#allocation12 + $0x20] ss:$8 sps:$4 sm:$0xff]  }
 0xe84   : > { %v10810_v11 = vld [vmem:[#allocation12 + $0x1a] ss:$8 sps:$4 sm:$0xff]   ;;  %10758 = vrot.lane.b32.xlu0 %v10757_v31, %s16130_s18  ;;  %10230 = vmatprep.mubr.msk.f32.mxu1 %vm1038_vm3, %v10808_v26  ;;  %v10817_v2 = vld [vmem:[#allocation12 + $0x9] ss:$8 sps:$4 sm:$0xff]  }
 0xe85   : > { %10763 = vrot.lane.b32.xlu1 %v10762_v38, %s16195_s2  ;;  %v10811_v25 = vld [vmem:[#allocation12 + $0x12] ss:$8 sps:$4 sm:$0xff]   ;;  %10493 = vmatpush3.bf16.msra.mxu1 %v15880_v23  ;;  %v10767_v33 = vpack.i.bf16 %v10809_v15, %v10810_v11  ;;  %v10815_v29 = vld [vmem:[#allocation12 + $0x21] ss:$8 sps:$4 sm:$0xff]  }
 0xe86   : > { %v10772_v62 = vpack.i.bf16 %v10811_v25, %v10812_v44  ;;  %v10814_v1 = vld [vmem:[#allocation12 + $0x18] ss:$8 sps:$4 sm:$0xff]   ;;  %10494 = vmatprep.subr.bf16.mxu1 %v16144_v14  ;;  %v9376_v61 = vld [vmem:[%s11083_s13 + $0x18] sm:$0xff]  ;;  %v9377_v5 = vld [vmem:[%s11083_s13 + $0x20] sm:$0xff] }
 0xe87   : > { %v10777_v49 = vpack.i.bf16 %v10814_v1, %v10815_v29  ;;  %v10818_v12 = vld [vmem:[#allocation12 + $0x19] ss:$8 sps:$4 sm:$0xff]   ;;  %v10498_v27 = vpack.c.bf16 %v9376_v61, %v9375_v53  ;;  %v9380_v26 = vld [vmem:[%s11083_s13 + $0x38] sm:$0xff] }
 0xe88   : > { %10768 = vrot.lane.b32.xlu0 %v10767_v33, %s16126_s11  ;;  %v10819_v41 = vld [vmem:[#allocation12 + $0x10] ss:$8 sps:$4 sm:$0xff]   ;;  %v9379_v52 = vld [vmem:[%s11083_s13 + $0x30] sm:$0xff]  ;;  %v9384_v25 = vld [vmem:[%s11083_s13 + $0x58] sm:$0xff]  ;;  %s16199_s11 = sld [smem:[#allocation29_spill]] }
 0xe89   : > { %10773 = vrot.lane.b32.xlu1 %v10772_v62, %s16130_s18  ;;  %v9378_v54 = vld [vmem:[%s11083_s13 + $0x28] sm:$0xff]  ;;  %v10504_v31 = vpack.c.bf16 %v9380_v26, %v9379_v52  ;;  %v9383_v11 = vld [vmem:[%s11083_s13 + $0x50] sm:$0xff]  ;;  %s16200_s18 = sld [smem:[#allocation31_spill]]  ;;  %v9388_v29 = vld [vmem:[%s11083_s13 + $0x78] sm:$0xff] }
 0xe8a   : > { %v10501_v40 = vpack.c.bf16 %v9378_v54, %v9377_v5  ;;  %v9382_v38 = vld [vmem:[%s11083_s13 + $0x48] sm:$0xff]  ;;  %v10510_v44 = vpack.c.bf16 %v9384_v25, %v9383_v11  ;;  %v9387_v1 = vld [vmem:[%s11083_s13 + $0x70] sm:$0xff] }
 0xe8b   : > { %10231 = vmatmul.mubr.msk.f32.vlgmr.msra.gmra.mrb[100].mxu1 %vm1038_vm3, %v10813_v58  ;;  %vm10938_vm3 = vmmov 0   ;;  %v9386_v33 = vld [vmem:[%s11083_s13 + $0x68] sm:$0xff]  ;;  %v10516_v50 = vpack.c.bf16 %v9388_v29, %v9387_v1 }
 0xe8c   : > { %10778 = vrot.lane.b32.xlu0 %v10777_v49, %s16195_s2  ;;  %10496 = vmatpush3.bf16.msra.mxu1 %v10495_v63  ;;  %v10513_v62 = vpack.c.bf16 %v9386_v33, %v9385_v13  ;;  %s893_s2 = sand.u32 1, %s10886_s10  }
 0xe8d   : > { %10265 = vmatprep.mubr.msk.f32.mxu1 %vm10938_vm3, %v16186_v10  ;;  %10497 = vmatprep.subr.bf16.mxu1 %v16144_v14  ;;  %v9381_v10 = vld [vmem:[%s11083_s13 + $0x40] sm:$0xff]  ;;  %s9462_s3 = scalar_lea.sflag [#allocation14], %s893_s2 }
 0xe8e   : > { %v10507_v15 = vpack.c.bf16 %v9382_v38, %v9381_v10  ;;  %v9704_v58 = vld [vmem:[%s16199_s11] ss:$0 sm:$0xff]  ;;  %s894_s11 = scalar_lea.vmem [#allocation13], %s893_s2 }
 0xe90   : > { %10499 = vmatpush3.bf16.msra.mxu1 %v10498_v27 }
 0xe91   : > { %10500 = vmatprep.subr.bf16.mxu1 %v16144_v14 }
 0xe94   : > { %10502 = vmatpush3.bf16.msra.mxu1 %v10501_v40 }
 0xe95   : > { %10503 = vmatprep.subr.bf16.mxu1 %v16144_v14 }
 0xe98   : > { %10505 = vmatpush3.bf16.msra.mxu1 %v10504_v31 }
 0xe99   : > { %10506 = vmatprep.subr.bf16.mxu1 %v16144_v14 }
 0xe9c   : > { %10508 = vmatpush3.bf16.msra.mxu1 %v10507_v15 }
 0xe9d   : > { %10509 = vmatprep.subr.bf16.mxu1 %v16144_v14 }
 0xea0   : > { %10511 = vmatpush3.bf16.msra.mxu1 %v10510_v44 }
 0xea1   : > { %10512 = vmatprep.subr.bf16.mxu1 %v16144_v14 }
 0xea4   : > { %10514 = vmatpush3.bf16.msra.mxu1 %v10513_v62 }
 0xea5   : > { %10515 = vmatprep.subr.bf16.mxu1 %v16144_v14 }
 0xea8   : > { %10517 = vmatpush3.bf16.msra.mxu1 %v10516_v50 }
 0xef2   : > { %v10754_v23 = vpop.permute.xlu1 %10753 }
 0xef3   : > { %v10756_v39 = vunpack.i.h.bf16 %v10754_v23  ;;  %v10755_v0 = vunpack.i.l.bf16 %v10754_v23 }
 0xef5   : > { %v9035_v8 = vsel %vm2291_vm5, %v10816_v47, %v10756_v39  ;;  %v9041_v48 = vsel %vm2291_vm5, %v10817_v2, %v10755_v0  ;;  %v9707_v0 = vld [vmem:[%s16200_s18] ss:$0 sm:$0xff]  ;;  %s9474_s18 = sshll.u32 %s894_s11, 4  ;;  %s15978_s18 = int_to_ptr.vmem [resolvable:$true] %s9474_s18 }
 0xef6   : > { %v10759_v60 = vpop.permute.xlu0 %10758  ;;  %s10832_s5 = scalar_lea.vmem %s15978_s18, 16  ;;  %p10839_p0 = scmp.lt.s32.totalorder %s15978_s18, %s10837_s6 }
 0xef7   : > { %v10764_v45 = vpop.permute.xlu1 %10763  ;;  %v10761_v21 = vunpack.i.h.bf16 %v10759_v60  ;;  %v10760_v16 = vunpack.i.l.bf16 %v10759_v60  ;;  %p10833_p11 = scmp.ne.s32.totalorder %s15978_s18, %s10832_s5  ;;  %p10840_p1 = scmp.lt.s32.totalorder %s10838_s8, %s10832_s5 }
 0xef8   : > { %v10766_v19 = vunpack.i.h.bf16 %v10764_v45  ;;  %v10765_v9 = vunpack.i.l.bf16 %v10764_v45 }
 0xef9   : > { %v9037_v28 = vsel %vm2423_vm9, %v9035_v8, %v10761_v21  ;;  %v9043_v4 = vsel %vm2423_vm9, %v9041_v48, %v10760_v16  ;;  %v9710_v16 = vld [vmem:[%s16201_s26] ss:$0 sm:$0xff]  ;;  %s15976_s26 = scalar_lea.hbm %s11093_s4, %s9712_s17  ;;  %p10834_p12 = pnand %p10833_p11, %p11133_p5 }
 0xefa   : > { %v10769_v34 = vpop.permute.xlu0 %10768  ;;  %v9045_v20 = vsel %vm8093_vm0, %v9043_v4, %v10765_v9  ;;  %v9039_v17 = vsel %vm8093_vm0, %v9037_v28, %v10766_v19  ;;  %v9711_v48 = vld [vmem:[%s11078_s12] ss:$0 sm:$0xff]  ;;  %p10841_p2 = por %p10840_p1, %p10839_p0 }
 0xefb   : > { %v10774_v22 = vpop.permute.xlu1 %10773  ;;  %v10771_v43 = vunpack.i.h.bf16 %v10769_v34  ;;  %v10770_v42 = vunpack.i.l.bf16 %v10769_v34  ;;  %9158 = vmatprep.mubr.f32.mxu0 %v9045_v20  ;;  %p10835_p13 = pneg %p10834_p12 }
 0xefc   : > { %v10776_v46 = vunpack.i.h.bf16 %v10774_v22  ;;  %v10775_v18 = vunpack.i.l.bf16 %v10774_v22  ;;  %9159 = vmatmul.mubr.f32.vlgmr.msra.gmra.mrb[104].mxu0 %v9039_v17 }
 0xefd   : > { %v9042_v57 = vsel %vm2291_vm5, %v10818_v12, %v10770_v42  ;;  %v9036_v3 = vsel %vm2291_vm5, %v10819_v41, %v10771_v43  ;;  %p10842_p3 = pnand %p10841_p2, %p10835_p13 }
 0xefe   : > { %v10779_v55 = vpop.permute.xlu0 %10778  ;;  %v9044_v32 = vsel %vm2423_vm9, %v9042_v57, %v10775_v18  ;;  %v9038_v30 = vsel %vm2423_vm9, %v9036_v3, %v10776_v46  ;;  %v9389_v3 = vld [vmem:[%s11088_s27] sm:$0x1] }
 0xeff   : > { %v10781_v35 = vunpack.i.h.bf16 %v10779_v55  ;;  %v10780_v37 = vunpack.i.l.bf16 %v10779_v55 }
 0xf01   : > { %v9046_v6 = vsel %vm8093_vm0, %v9044_v32, %v10780_v37  ;;  %v9040_v36 = vsel %vm8093_vm0, %v9038_v30, %v10781_v35 }
 0xf02   : > { %9163 = vmatprep.mubr.f32.mxu0 %v9046_v6 }
 0xf03   : > { %9164 = vmatmul.mubr.f32.gmra.mrb[106].mxu0 %v9040_v36 }
 0xf5e   : > { %v10232_v56 = vpop.f32.mrb[100].mxu1 }
 0xf5f   : > { %v9333_v24 = vpop.f32.mrb[101].mxu1 }
 0xfcf   : > { %v9912_v7 = vpop.f32.mrb[104].mxu0 }
 0xfd0   : > { %v9913_v49 = vpop.f32.mrb[105].mxu0 }
 0xfd1   : > { %v9914_v23 = vadd.f32 %v9913_v49, %v9912_v7 }
 0xfd3   : > { %v9161_v39 = vadd.f32 %v9914_v23, %v9704_v58 }
 0xfd5   : > { %v10520_v47 = vadd.f32 %v9333_v24, %v9161_v39 }
 0xfd6   : > { %v9915_v60 = vpop.f32.mrb[106].mxu0 }
 0xfd7   : > { %v9916_v45 = vpop.f32.mrb[107].mxu0  ;;  %v10521_v2 = vadd.f32 %v10520_v47, %v9707_v0 }
 0xfd8   : > { %v9917_v21 = vadd.f32 %v9916_v45, %v9915_v60 }
 0xfd9   : > { %v9351_v9 = vmul.f32 %v10521_v2, %v9710_v16 }
 0xfda   : > { %v9166_v19 = vadd.f32 %v9917_v21, %v9704_v58 }
 0xfdb   : > { %v9360_v28 = vadd.f32 %v9711_v48, %v9351_v9 }
 0xfdc   : > { %v10518_v8 = vadd.f32 %v10232_v56, %v9166_v19 }
 0xfdd   : > { %v9362_v20 = vmax.f32 %v9360_v28, 0.0 }
 0xfde   : > { %v10519_v14 = vadd.f32 %v10518_v8, %v9707_v0 }
 0xfe0   : > { %v9352_v4 = vmul.f32 %v10519_v14, %v9710_v16 }
 0xfe2   : > { %v9361_v34 = vadd.f32 %v9711_v48, %v9352_v4 }
 0xfe4   : > { %v9363_v22 = vmax.f32 %v9361_v34, 0.0 }
 0xfe6   : > { %v9364_v17 = vadd.f32 %v9363_v22, %v9362_v20 }
 0xfe8   : > { %v9365_v43 = vrot.slane %v9364_v17, 4 }
 0xfea   : > { %v9366_v42 = vadd.f32 %v9365_v43, %v9364_v17 }
 0xfec   : > { %v9367_v12 = vrot.slane %v9366_v42, 2 }
 0xfee   : > { %v9368_v41 = vadd.f32 %v9367_v12, %v9366_v42 }
 0xff0   : > { %v9369_v46 = vrot.slane %v9368_v41, 1 }
 0xff2   : > { %v9370_v18 = vadd.f32 %v9369_v46, %v9368_v41 }
 0xff4   : > { %v9372_v57 = vmul.f32 0.0625, %v9370_v18 }
 0xff6   : > { %10266 = vmatmul.mubr.f32.vlgmr.msra.gmra.mrb[102].mxu1 %v9372_v57 }
0x10c9   : > { %v9456_v55 = vpop.f32.mrb[102].mxu1 }
0x10ca   : > { %v9457_v35 = vadd.f32 %v9456_v55, %v9389_v3  ;;  %v10267_v37 = vpop.f32.mrb[103].mxu1 }
0x10cc   : > { %9460 = vst [vmem:[%s894_s11] sm:$0x1] %v9457_v35 }
0x10cd   : > { %10845 = shalt.err (!%p10842_p3)
}
0x10ce   : > { %s10846_s2 = scalar_lea.hbm %s15976_s26, 16  ;;  %s10850_s17 = scalar_lea.hbm %s11093_s4, 32 }
0x10cf   : > { %p10847_p4 = scmp.ne.s32.totalorder %s15976_s26, %s10846_s2  ;;  %p10851_p9 = scmp.lt.u32.totalorder %s15976_s26, %s11093_s4 }
0x10d0   : > { %p10852_p10 = scmp.lt.u32.totalorder %s10850_s17, %s10846_s2  ;;  %p10854_p12 = scmp.lt.u32.totalorder %s10846_s2, %s15976_s26 }
0x10d1   : > { %p10848_p7 = pnand %p10847_p4, %p11133_p5 }
0x10d2   : > { %p10853_p11 = por %p10852_p10, %p10851_p9 }
0x10d3   : > { %p10849_p8 = pneg %p10848_p7 }
0x10d4   : > { %p10855_p0 = por %p10854_p12, %p10853_p11 }
0x10d6   : > { %p10856_p13 = pnand %p10855_p0, %p10849_p8 }
0x10d8   : > { %10859 = shalt.err (!%p10856_p13)
}
0x10d9   : > { %10525 = dma.vmem_to_hbm [thread:$0]  (%p11133_p5), %s15978_s18, 16, %s15976_s26, %s9462_s3  }
0x10da PF: > { %p10531_p1 = scmp.ge.s32.totalorder %s10894_s15, 2  ;;  %s9486_s8 = sand.u32 1, %s10882_s7  }
0x10db   : > { %s9487_s6 = scalar_lea.sflag [#allocation14], %s9486_s8 }
0x10dc   : > { %p10528_p2 = pnand %p10531_p1, %p11137_p6 }
0x10de   : > { %10877 = dma.done.wait (!%p10528_p2), %s9487_s6, 16  }
0x10df   : > { %10879 = vsyncadd (!%p10528_p2), %s9487_s6, 4294967280  ;;  %s16202_s15 = sld [smem:[#allocation34_spill]]  ;;  %s16203_s5 = sld [smem:[#allocation33_spill]] }
0x10e0   : > { %s16204_s11 = sld [smem:[#allocation35_spill]]  ;;  %s16205_s7 = smov %s10886_s10 }
0x10e5   : > { %p69_p3 = scmp.ge.s32.totalorder %s16202_s15, 4   ;;  %s16206_s10 = smov %s16203_s5 }
0x10e7   :  { %71 = sbr.rel (!%p69_p3) target bundleno = 53 (0x35), region = 225 }
0x10ee   :  { %9491 = vsyncpa [#allocation14], 1 }
0x10ef   :  { %9493 = vsyncpa [#allocation14 + $0x1], 1 }

</bundles_post_ra>
